<compile_context>
chip_gen: v5e
topology: v5e:2x2
jax: 0.10.0
libtpu: 0.0.40
codegen_flags: <defaults>
</compile_context>

<pallas_src>
import math

import jax
import jax.numpy as jnp
from jax.experimental import pallas as pl
from jax.experimental.pallas import tpu as pltpu

IN_FEATURES = 3072   # 3 * 32 * 32 after flatten(start_dim=1)
HIDDEN1 = 32
HIDDEN2 = 32
OUT_FEATURES = 10
OUT_PAD = 128        # lane-dense output columns (padded cols are exactly 0)
TILE_M = 1024        # max batch tile; ~27 MiB live (double-buffered) -> fits v7x 64 MiB VMEM
MIN_SPLIT = 512      # batches >= this get >= 2 grid steps (engages both TCs on v7x)


def _mlp3_kernel(x_ref, w1_ref, b1_ref, w2_ref, b2_ref, w3_ref, b3_ref, o_ref):
    prec = jax.lax.Precision.HIGHEST  # free (HBM-bound); closer to f32 reference
    # Layer 1: (tm, 3072) @ (3072, 32) + b1, ReLU  -- f32 accumulate on MXU
    h = jnp.dot(x_ref[...], w1_ref[...],
                preferred_element_type=jnp.float32, precision=prec)
    h = jnp.maximum(h + b1_ref[...], 0.0)
    # Layer 2: (tm, 32) @ (32, 32) + b2, ReLU
    h = jnp.dot(h, w2_ref[...], preferred_element_type=jnp.float32, precision=prec)
    h = jnp.maximum(h + b2_ref[...], 0.0)
    # Layer 3: (tm, 32) @ (32, 128) + b3, ReLU  (cols 10..127 are zero-padded)
    h = jnp.dot(h, w3_ref[...], preferred_element_type=jnp.float32, precision=prec)
    h = jnp.maximum(h + b3_ref[...], 0.0)
    o_ref[...] = h.astype(o_ref.dtype)


def _round_up(x, m):
    return (x + m - 1) // m * m


def feedforwardnet3_forward(x, params, *, use_bf16=False):
    """Fused 3-layer MLP forward. x: (N, ...) flattened to (N, 3072)."""
    w1, b1, w2, b2, w3, b3 = params

    M = x.shape[0]
    x2 = x.reshape(M, -1)                       # flatten(start_dim=1)
    assert x2.shape[1] == IN_FEATURES, x2.shape

    if use_bf16:
        # Optional: halve HBM traffic on x (the dominant tensor); f32 accumulation
        # is preserved inside the kernel. Slight deviation from the f32 reference.
        x2 = x2.astype(jnp.bfloat16)
        w1 = w1.astype(jnp.bfloat16)
        w2 = w2.astype(jnp.bfloat16)
        w3 = w3.astype(jnp.bfloat16)

    # Lane-pad ONLY the final output dim (16 KiB, trivial); no M or K padding at all.
    w3p = jnp.zeros((HIDDEN2, OUT_PAD), w3.dtype).at[:, :OUT_FEATURES].set(w3)
    b3p = jnp.zeros((1, OUT_PAD), b3.dtype).at[0, :OUT_FEATURES].set(b3)
    b1r = b1.reshape(1, HIDDEN1)
    b2r = b2.reshape(1, HIDDEN2)

    # Tile selection:
    #  - tiny/medium batches (< MIN_SPLIT): single grid step, tm == M (full-dim block,
    #    so the (8,128) rule is satisfied without any padding).
    #  - larger batches: at least 2 grid steps (both TCs on v7x), tm a multiple of 8,
    #    capped at TILE_M. The ragged last tile is handled by Pallas via masked
    #    partial-block stores; out-of-range input rows never reach the output.
    if M < MIN_SPLIT:
        tm = M
    else:
        tm = min(TILE_M, _round_up(pl.cdiv(M, 2), 8))
    grid = (pl.cdiv(M, tm),)

    flops = 2 * M * (IN_FEATURES * HIDDEN1 + HIDDEN1 * HIDDEN2 + HIDDEN2 * OUT_PAD)
    in_bytes = x2.dtype.itemsize
    bytes_accessed = (in_bytes * (M * IN_FEATURES + IN_FEATURES * HIDDEN1
                                  + HIDDEN1 * HIDDEN2 + HIDDEN2 * OUT_PAD
                                  + HIDDEN1 + HIDDEN2 + OUT_PAD)
                      + 4 * M * OUT_PAD)

    out = pl.pallas_call(
        _mlp3_kernel,
        out_shape=jax.ShapeDtypeStruct((M, OUT_PAD), jnp.float32),
        grid=grid,
        in_specs=[
            pl.BlockSpec((tm, IN_FEATURES), lambda i: (i, 0)),        # x tile (streamed)
            pl.BlockSpec((IN_FEATURES, HIDDEN1), lambda i: (0, 0)),   # W1 (resident)
            pl.BlockSpec((1, HIDDEN1), lambda i: (0, 0)),             # b1
            pl.BlockSpec((HIDDEN1, HIDDEN2), lambda i: (0, 0)),       # W2
            pl.BlockSpec((1, HIDDEN2), lambda i: (0, 0)),             # b2
            pl.BlockSpec((HIDDEN2, OUT_PAD), lambda i: (0, 0)),       # W3 (lane-padded)
            pl.BlockSpec((1, OUT_PAD), lambda i: (0, 0)),             # b3 (lane-padded)
        ],
        out_specs=pl.BlockSpec((tm, OUT_PAD), lambda i: (i, 0)),
        compiler_params=pltpu.CompilerParams(
            dimension_semantics=("parallel",),
            vmem_limit_bytes=48 * 1024 * 1024),
        cost_estimate=pl.CostEstimate(
            flops=flops, transcendentals=0, bytes_accessed=bytes_accessed),
    )(x2, w1, b1r, w2, b2r, w3p, b3p)

    return out[:, :OUT_FEATURES]


def init_params(key):
    """Deterministic init matching PyTorch Linear defaults (U(-1/sqrt(fan_in), +))."""
    def linear_init(k, fan_in, fan_out):
        kw, kb = jax.random.split(k)
        bound = 1.0 / math.sqrt(fan_in)
        w = jax.random.uniform(kw, (fan_in, fan_out),
                               minval=-bound, maxval=bound, dtype=jnp.float32)
        b = jax.random.uniform(kb, (fan_out,),
                               minval=-bound, maxval=bound, dtype=jnp.float32)
        return w, b

    k1, k2, k3 = jax.random.split(key, 3)
    w1, b1 = linear_init(k1, IN_FEATURES, HIDDEN1)
    w2, b2 = linear_init(k2, HIDDEN1, HIDDEN2)
    w3, b3 = linear_init(k3, HIDDEN2, OUT_FEATURES)
    return (w1, b1, w2, b2, w3, b3)


if __name__ == "__main__":
    key = jax.random.PRNGKey(0)
    k_x, k_p = jax.random.split(key)
    params = init_params(k_p)

    def ref_fwd(xa):
        w1, b1, w2, b2, w3, b3 = params
        xf = xa.reshape(xa.shape[0], -1)
        r = jnp.maximum(xf @ w1 + b1, 0.0)
        r = jnp.maximum(r @ w2 + b2, 0.0)
        return jnp.maximum(r @ w3 + b3, 0.0)

    fwd = jax.jit(feedforwardnet3_forward)

    # Small batch: single-grid-step fast path. CIFAR-like (3, 32, 32) -> 3072 features.
    N = 2
    x = jax.random.normal(k_x, (N, 3, 32, 32), dtype=jnp.float32)
    y = jax.block_until_ready(fwd(x, params))
    ref = ref_fwd(x)
    assert y.shape == (N, OUT_FEATURES), y.shape
    assert jnp.allclose(y, ref, atol=1e-5, rtol=1e-5), float(jnp.max(jnp.abs(y - ref)))

    # Larger batch: exercises >=2 parallel grid steps and the ragged last tile
    # (no host-side padding of x anymore).
    N2 = 520
    x_big = jax.random.normal(k_x, (N2, 3, 32, 32), dtype=jnp.float32)
    y_big = jax.block_until_ready(fwd(x_big, params))
    ref_big = ref_fwd(x_big)
    assert y_big.shape == (N2, OUT_FEATURES), y_big.shape
    assert jnp.allclose(y_big, ref_big, atol=1e-4, rtol=1e-4), \
        float(jnp.max(jnp.abs(y_big - ref_big)))

    print("KERNEL_OK")
</pallas_src>

<mosaic_0001>
module attributes {stable_mosaic.version = 11 : i64} {
  func.func @_mlp3_kernel(%arg0: i32, %arg1: memref<2x3072xf32, #tpu.memory_space<vmem>>, %arg2: memref<3072x32xf32, #tpu.memory_space<vmem>>, %arg3: memref<1x32xf32, #tpu.memory_space<vmem>>, %arg4: memref<32x32xf32, #tpu.memory_space<vmem>>, %arg5: memref<1x32xf32, #tpu.memory_space<vmem>>, %arg6: memref<32x128xf32, #tpu.memory_space<vmem>>, %arg7: memref<1x128xf32, #tpu.memory_space<vmem>>, %arg8: memref<2x128xf32, #tpu.memory_space<vmem>>) attributes {dimension_semantics = [#tpu.dimension_semantics<parallel>], iteration_bounds = array<i64: 1>, scalar_prefetch = 0 : i64, scratch_operands = 0 : i64, tpu.core_type = #tpu.core_type<tc>, window_params = [{transform_indices = @transform_0, window_bounds = array<i64: 2, 3072>}, {pipeline_mode = #tpu.pipeline_mode<synchronous>, transform_indices = @transform_1, window_bounds = array<i64: 3072, 32>}, {pipeline_mode = #tpu.pipeline_mode<synchronous>, transform_indices = @transform_2, window_bounds = array<i64: 1, 32>}, {pipeline_mode = #tpu.pipeline_mode<synchronous>, transform_indices = @transform_3, window_bounds = array<i64: 32, 32>}, {pipeline_mode = #tpu.pipeline_mode<synchronous>, transform_indices = @transform_4, window_bounds = array<i64: 1, 32>}, {pipeline_mode = #tpu.pipeline_mode<synchronous>, transform_indices = @transform_5, window_bounds = array<i64: 32, 128>}, {pipeline_mode = #tpu.pipeline_mode<synchronous>, transform_indices = @transform_6, window_bounds = array<i64: 1, 128>}, {transform_indices = @transform_7, window_bounds = array<i64: 2, 128>}]} {
    %c0 = arith.constant 0 : index
    %c0_0 = arith.constant 0 : index
    %0 = vector.load %arg1[%c0, %c0_0] : memref<2x3072xf32, #tpu.memory_space<vmem>>, vector<2x3072xf32>
    %c0_1 = arith.constant 0 : index
    %c0_2 = arith.constant 0 : index
    %1 = vector.load %arg2[%c0_1, %c0_2] : memref<3072x32xf32, #tpu.memory_space<vmem>>, vector<3072x32xf32>
    %cst = arith.constant dense<0.000000e+00> : vector<2x32xf32>
    %2 = tpu.matmul %0, %1, %cst {dimension_numbers = #tpu.dot_dimension_numbers<[1], [0], [0], [1], [0, 0, 1, 1], [], []>, precision = #tpu.contract_precision<fp32>} : vector<2x3072xf32>, vector<3072x32xf32>, vector<2x32xf32> -> vector<2x32xf32>
    %c0_3 = arith.constant 0 : index
    %c0_4 = arith.constant 0 : index
    %3 = vector.load %arg3[%c0_3, %c0_4] : memref<1x32xf32, #tpu.memory_space<vmem>>, vector<1x32xf32>
    %4 = vector.broadcast %3 : vector<1x32xf32> to vector<2x32xf32>
    %5 = arith.addf %2, %4 : vector<2x32xf32>
    %cst_5 = arith.constant 0.000000e+00 : f32
    %6 = vector.broadcast %cst_5 : f32 to vector<2x32xf32>
    %7 = arith.maximumf %5, %6 : vector<2x32xf32>
    %c0_6 = arith.constant 0 : index
    %c0_7 = arith.constant 0 : index
    %8 = vector.load %arg4[%c0_6, %c0_7] : memref<32x32xf32, #tpu.memory_space<vmem>>, vector<32x32xf32>
    %cst_8 = arith.constant dense<0.000000e+00> : vector<2x32xf32>
    %9 = tpu.matmul %7, %8, %cst_8 {dimension_numbers = #tpu.dot_dimension_numbers<[1], [0], [0], [1], [0, 0, 1, 1], [], []>, precision = #tpu.contract_precision<fp32>} : vector<2x32xf32>, vector<32x32xf32>, vector<2x32xf32> -> vector<2x32xf32>
    %c0_9 = arith.constant 0 : index
    %c0_10 = arith.constant 0 : index
    %10 = vector.load %arg5[%c0_9, %c0_10] : memref<1x32xf32, #tpu.memory_space<vmem>>, vector<1x32xf32>
    %11 = vector.broadcast %10 : vector<1x32xf32> to vector<2x32xf32>
    %12 = arith.addf %9, %11 : vector<2x32xf32>
    %cst_11 = arith.constant 0.000000e+00 : f32
    %13 = vector.broadcast %cst_11 : f32 to vector<2x32xf32>
    %14 = arith.maximumf %12, %13 : vector<2x32xf32>
    %c0_12 = arith.constant 0 : index
    %c0_13 = arith.constant 0 : index
    %15 = vector.load %arg6[%c0_12, %c0_13] : memref<32x128xf32, #tpu.memory_space<vmem>>, vector<32x128xf32>
    %cst_14 = arith.constant dense<0.000000e+00> : vector<2x128xf32>
    %16 = tpu.matmul %14, %15, %cst_14 {dimension_numbers = #tpu.dot_dimension_numbers<[1], [0], [0], [1], [0, 0, 1, 1], [], []>, precision = #tpu.contract_precision<fp32>} : vector<2x32xf32>, vector<32x128xf32>, vector<2x128xf32> -> vector<2x128xf32>
    %c0_15 = arith.constant 0 : index
    %c0_16 = arith.constant 0 : index
    %17 = vector.load %arg7[%c0_15, %c0_16] : memref<1x128xf32, #tpu.memory_space<vmem>>, vector<1x128xf32>
    %18 = vector.broadcast %17 : vector<1x128xf32> to vector<2x128xf32>
    %19 = arith.addf %16, %18 : vector<2x128xf32>
    %cst_17 = arith.constant 0.000000e+00 : f32
    %20 = vector.broadcast %cst_17 : f32 to vector<2x128xf32>
    %21 = arith.maximumf %19, %20 : vector<2x128xf32>
    %c0_18 = arith.constant 0 : index
    %c0_19 = arith.constant 0 : index
    %22 = vector.load %arg8[%c0_18, %c0_19] : memref<2x128xf32, #tpu.memory_space<vmem>>, vector<2x128xf32>
    tpu.vector_store %arg8[%c0_18, %c0_19], %21 {strides = array<i32>} : memref<2x128xf32, #tpu.memory_space<vmem>>, vector<2x128xf32>,
    return
  }
  func.func @transform_0(%arg0: i32) -> (i32, i32) {
    %c0_i32 = arith.constant 0 : i32
    %c0_i32_0 = arith.constant 0 : i32
    return %arg0, %c0_i32 : i32, i32
  }
  func.func @transform_1(%arg0: i32) -> (i32, i32) {
    %c0_i32 = arith.constant 0 : i32
    %c0_i32_0 = arith.constant 0 : i32
    %c0_i32_1 = arith.constant 0 : i32
    return %c0_i32, %c0_i32_0 : i32, i32
  }
  func.func @transform_2(%arg0: i32) -> (i32, i32) {
    %c0_i32 = arith.constant 0 : i32
    %c0_i32_0 = arith.constant 0 : i32
    %c0_i32_1 = arith.constant 0 : i32
    return %c0_i32, %c0_i32_0 : i32, i32
  }
  func.func @transform_3(%arg0: i32) -> (i32, i32) {
    %c0_i32 = arith.constant 0 : i32
    %c0_i32_0 = arith.constant 0 : i32
    %c0_i32_1 = arith.constant 0 : i32
    return %c0_i32, %c0_i32_0 : i32, i32
  }
  func.func @transform_4(%arg0: i32) -> (i32, i32) {
    %c0_i32 = arith.constant 0 : i32
    %c0_i32_0 = arith.constant 0 : i32
    %c0_i32_1 = arith.constant 0 : i32
    return %c0_i32, %c0_i32_0 : i32, i32
  }
  func.func @transform_5(%arg0: i32) -> (i32, i32) {
    %c0_i32 = arith.constant 0 : i32
    %c0_i32_0 = arith.constant 0 : i32
    %c0_i32_1 = arith.constant 0 : i32
    return %c0_i32, %c0_i32_0 : i32, i32
  }
  func.func @transform_6(%arg0: i32) -> (i32, i32) {
    %c0_i32 = arith.constant 0 : i32
    %c0_i32_0 = arith.constant 0 : i32
    %c0_i32_1 = arith.constant 0 : i32
    return %c0_i32, %c0_i32_0 : i32, i32
  }
  func.func @transform_7(%arg0: i32) -> (i32, i32) {
    %c0_i32 = arith.constant 0 : i32
    %c0_i32_0 = arith.constant 0 : i32
    return %arg0, %c0_i32 : i32, i32
  }
}

</mosaic_0001>

<bundles_post_ra>
// kernel: feedforwardnet3_forward.1
= control target key start
LH: loop header
LB: loop body
LE: loop exit
PB: predicated region body
PF: predicated region fallthrough
CT: control target
= control target key end

     0   :  { %s16535_s0 = inlined_call_operand.vmem [shape: f32[2,3072], index: 0, kind: input, shape index: {}]   ;;  %s16536_s1 = inlined_call_operand.vmem [shape: f32[3072,32], index: 1, kind: input, shape index: {}]   ;;  %s16537_s2 = inlined_call_operand.vmem [shape: f32[1,32], index: 2, kind: input, shape index: {}]   ;;  %s16538_s3 = inlined_call_operand.vmem [shape: f32[32,32], index: 3, kind: input, shape index: {}]   ;;  %s16539_s4 = inlined_call_operand.vmem [shape: f32[1,32], index: 4, kind: input, shape index: {}]   ;;  %s16540_s5 = inlined_call_operand.vmem [shape: f32[32,128], index: 5, kind: input, shape index: {}]   ;;  %s16541_s6 = inlined_call_operand.vmem [shape: f32[1,128], index: 6, kind: input, shape index: {}]   ;;  %s16542_s7 = inlined_call_operand.hbm [shape: f32[2,128], index: 7, kind: output, shape index: {}]  }
   0x1   :  { %v48_v0 = vld [vmem:[%s16536_s1 + $0x78] sm:$0xff]  ;;  %v47_v1 = vld [vmem:[%s16536_s1 + $0x70] sm:$0xff]  ;;  %v46_v2 = vld [vmem:[%s16536_s1 + $0x68] sm:$0xff] }
   0x2   :  { %v9159_v3 = vand.u32 4294901760, %v48_v0  ;;  %v9161_v4 = vand.u32 4294901760, %v47_v1  ;;  %v9163_v5 = vand.u32 4294901760, %v46_v2  ;;  %v45_v6 = vld [vmem:[%s16536_s1 + $0x60] sm:$0xff]  ;;  %v44_v7 = vld [vmem:[%s16536_s1 + $0x58] sm:$0xff]  ;;  %v43_v8 = vld [vmem:[%s16536_s1 + $0x50] sm:$0xff] }
   0x3   :  { %v9174_v9 = vand.u32 4294901760, %v45_v6  ;;  %v9176_v10 = vand.u32 4294901760, %v44_v7  ;;  %v9178_v11 = vand.u32 4294901760, %v43_v8  ;;  %v42_v12 = vld [vmem:[%s16536_s1 + $0x48] sm:$0xff]  ;;  %v41_v13 = vld [vmem:[%s16536_s1 + $0x40] sm:$0xff]  ;;  %v40_v21 = vld [vmem:[%s16536_s1 + $0x38] sm:$0xff] }
   0x4   :  { %483 = vmatpush.msra.mxu0 %v9159_v3  ;;  %v9188_v14 = vsub.f32 %v48_v0, %v9159_v3  ;;  %v9191_v15 = vsub.f32 %v47_v1, %v9161_v4  ;;  %679 = vmatpush.msra.mxu3 %v9159_v3  ;;  %v9195_v16 = vsub.f32 %v46_v2, %v9163_v5  ;;  %v9197_v17 = vand.u32 4294901760, %v42_v12  ;;  %v39_v26 = vld [vmem:[%s16536_s1 + $0x30] sm:$0xff]  ;;  %v38_v34 = vld [vmem:[%s16536_s1 + $0x28] sm:$0xff] }
   0x5   :  { %v9200_v18 = vsub.f32 %v45_v6, %v9174_v9  ;;  %v9203_v19 = vsub.f32 %v44_v7, %v9176_v10  ;;  %v9206_v20 = vsub.f32 %v43_v8, %v9178_v11  ;;  %v9216_v25 = vand.u32 4294901760, %v41_v13 }
   0x6   :  { %485 = vmatpush.msra.mxu0 %v9161_v4  ;;  %626 = vmatpush.msra.mxu2 %v9188_v14  ;;  %v525_v22 = vand.u32 4294901760, %v9188_v14  ;;  %v16558_v23 = vand.u32 4294901760, %v9191_v15  ;;  %v16556_v24 = vand.u32 4294901760, %v9195_v16  ;;  %v9225_v29 = vsub.f32 %v42_v12, %v9197_v17 }
   0x7   :  { %681 = vmatpush.msra.mxu3 %v9161_v4  ;;  %v16555_v27 = vand.u32 4294901760, %v9200_v18  ;;  %v16552_v28 = vand.u32 4294901760, %v9203_v19  ;;  %v9238_v33 = vand.u32 4294901760, %v40_v21  ;;  %v9244_v35 = vand.u32 4294901760, %v39_v26 }
   0x8   :  { %487 = vmatpush.msra.mxu0 %v9163_v5  ;;  %629 = vmatpush.msra.mxu2 %v9191_v15  ;;  %v526_v30 = vsub.f32 %v9188_v14, %v525_v22  ;;  %v532_v31 = vsub.f32 %v9191_v15, %v16558_v23  ;;  %v538_v32 = vsub.f32 %v9195_v16, %v16556_v24  ;;  %v16550_v36 = vand.u32 4294901760, %v9206_v20 }
   0x9   :  { %683 = vmatpush.msra.mxu3 %v9163_v5  ;;  %v544_v39 = vsub.f32 %v9200_v18, %v16555_v27  ;;  %v9253_v40 = vsub.f32 %v41_v13, %v9216_v25 }
   0xa   :  { %489 = vmatpush.msra.mxu0 %v9174_v9  ;;  %v527_v37 = vand.u32 4294901760, %v526_v30  ;;  %632 = vmatpush.msra.mxu2 %v9195_v16  ;;  %v533_v38 = vand.u32 4294901760, %v532_v31 }
   0xb   :  { %12 = vsyncpa [#allocation3], 0  ;;  %685 = vmatpush.msra.mxu3 %v9174_v9  ;;  %v550_v41 = vsub.f32 %v9203_v19, %v16552_v28  ;;  %v37_v42 = vld [vmem:[%s16536_s1 + $0x20] sm:$0xff]  ;;  %v539_v43 = vand.u32 4294901760, %v538_v32  ;;  %v9263_v44 = vand.u32 4294901760, %v38_v34  ;;  %v16549_v45 = vand.u32 4294901760, %v9225_v29 }
   0xc   :  { %491 = vmatpush.msra.mxu0 %v9176_v10  ;;  %528 = vmatpush.msra.mxu1 %v527_v37  ;;  %v9267_v46 = vsub.f32 %v40_v21, %v9238_v33  ;;  %v36_v47 = vld [vmem:[%s16536_s1 + $0x18] sm:$0xff]  ;;  %v556_v48 = vsub.f32 %v9206_v20, %v16550_v36  ;;  %v545_v49 = vand.u32 4294901760, %v544_v39  ;;  %v9278_v50 = vand.u32 4294901760, %v37_v42  ;;  %v35_v54 = vld [vmem:[%s16536_s1 + $0x10] sm:$0xff]  ;;  %v27_v55 = vld [vmem:[%s16535_s0] sm:$0xff]  ;;  %s9109_s20 = smov [#allocation2]  }
   0xd   :  { %635 = vmatpush.msra.mxu2 %v9200_v18  ;;  %687 = vmatpush.msra.mxu3 %v9176_v10  ;;  %v16548_v51 = vand.u32 4294901760, %v9253_v40  ;;  %v9282_v52 = vsub.f32 %v39_v26, %v9244_v35  ;;  %v9286_v53 = vand.u32 4294901760, %v36_v47  ;;  %v551_v56 = vand.u32 4294901760, %v550_v41  ;;  %v64_v60 = vld [vmem:[%s16536_s1 + $0xf8] sm:$0xff]  ;;  %427 = vst [vmem:[#allocation1] ss:$4 sm:$0xff] %v27_v55 }
   0xe   :  { %493 = vmatpush.msra.mxu0 %v9178_v11  ;;  %534 = vmatpush.msra.mxu1 %v533_v38  ;;  %v562_v57 = vsub.f32 %v9225_v29, %v16549_v45  ;;  %v16547_v58 = vand.u32 4294901760, %v9267_v46  ;;  %v9300_v59 = vsub.f32 %v38_v34, %v9263_v44  ;;  %v557_v61 = vand.u32 4294901760, %v556_v48  ;;  %v34_v62 = vld [vmem:[%s16536_s1 + $0x8] sm:$0xff]  ;;  %v33_v6 = vld [vmem:[%s16536_s1] sm:$0xff]  ;;  %v63_v7 = vld [vmem:[%s16536_s1 + $0xf0] sm:$0xff]  ;;  %s9068_s21 = sshll.u32 %s9109_s20, 4  ;;  %s9069_s21 = int_to_ptr.vmem [resolvable:$true] %s9068_s21 }
   0xf   :  { %638 = vmatpush.msra.mxu2 %v9203_v19  ;;  %689 = vmatpush.msra.mxu3 %v9178_v11  ;;  %v568_v63 = vsub.f32 %v9253_v40, %v16548_v51  ;;  %v9314_v0 = vand.u32 4294901760, %v35_v54  ;;  %v16546_v1 = vand.u32 4294901760, %v9282_v52  ;;  %v9318_v2 = vsub.f32 %v37_v42, %v9278_v50  ;;  %v62_v34 = vld [vmem:[%s16536_s1 + $0xe8] sm:$0xff]  ;;  %v57_v45 = vld [vmem:[%s16536_s1 + $0xc0] sm:$0xff]  ;;  %s9070_s24 = sshll.u32 %s16542_s7, 4  ;;  %s9071_s24 = int_to_ptr.hbm [resolvable:$true] %s9070_s24 }
  0x10   :  { %495 = vmatpush.msra.mxu0 %v9197_v17  ;;  %540 = vmatpush.msra.mxu1 %v539_v43  ;;  %v9329_v8 = vsub.f32 %v36_v47, %v9286_v53  ;;  %v9331_v12 = vand.u32 4294901760, %v64_v60  ;;  %v563_v13 = vand.u32 4294901760, %v562_v57  ;;  %v574_v21 = vsub.f32 %v9267_v46, %v16547_v58  ;;  %v61_v47 = vld [vmem:[%s16536_s1 + $0xe0] sm:$0xff] }
  0x11   :  { %641 = vmatpush.msra.mxu2 %v9206_v20  ;;  %691 = vmatpush.msra.mxu3 %v9197_v17  ;;  %v9337_v26 = vand.u32 4294901760, %v34_v62  ;;  %v16544_v30 = vand.u32 4294901760, %v9300_v59  ;;  %v9342_v31 = vand.u32 4294901760, %v33_v6  ;;  %v9344_v32 = vand.u32 4294901760, %v63_v7 }
  0x12   :  { %497 = vmatpush.msra.mxu0 %v9216_v25  ;;  %546 = vmatpush.msra.mxu1 %v545_v49  ;;  %v569_v37 = vand.u32 4294901760, %v568_v63  ;;  %v580_v38 = vsub.f32 %v9282_v52, %v16546_v1  ;;  %v16543_v39 = vand.u32 4294901760, %v9318_v2  ;;  %v9355_v41 = vsub.f32 %v35_v54, %v9314_v0 }
  0x13   :  { %644 = vmatpush.msra.mxu2 %v9225_v29  ;;  %693 = vmatpush.msra.mxu3 %v9216_v25  ;;  %v16545_v42 = vand.u32 4294901760, %v9329_v8  ;;  %v9361_v43 = vsub.f32 %v64_v60, %v9331_v12  ;;  %v575_v48 = vand.u32 4294901760, %v574_v21  ;;  %v586_v49 = vsub.f32 %v9300_v59, %v16544_v30  ;;  %v60_v60 = vld [vmem:[%s16536_s1 + $0xd8] sm:$0xff]  ;;  %v59_v21 = vld [vmem:[%s16536_s1 + $0xd0] sm:$0xff] }
  0x14   :  { %499 = vmatpush.msra.mxu0 %v9238_v33  ;;  %552 = vmatpush.msra.mxu1 %v551_v56  ;;  %v9371_v54 = vsub.f32 %v34_v62, %v9337_v26  ;;  %v9373_v55 = vand.u32 4294901760, %v62_v34  ;;  %v9378_v56 = vsub.f32 %v33_v6, %v9342_v31  ;;  %v9381_v57 = vsub.f32 %v63_v7, %v9344_v32 }
  0x15   :  { %647 = vmatpush.msra.mxu2 %v9253_v40  ;;  %695 = vmatpush.msra.mxu3 %v9238_v33  ;;  %v592_v62 = vsub.f32 %v9318_v2, %v16543_v39  ;;  %v16551_v63 = vand.u32 4294901760, %v9355_v41  ;;  %v598_v6 = vsub.f32 %v9329_v8, %v16545_v42  ;;  %v16553_v7 = vand.u32 4294901760, %v9361_v43 }
  0x16   :  { %501 = vmatpush.msra.mxu0 %v9244_v35  ;;  %558 = vmatpush.msra.mxu1 %v557_v61  ;;  %16826 = vst [vmem:[#allocation5_spill] sm:$0xff] %v9373_v55  ;;  %v581_v61 = vand.u32 4294901760, %v580_v38  ;;  %v16554_v38 = vand.u32 4294901760, %v9371_v54  ;;  %v9405_v39 = vsub.f32 %v62_v34, %v9373_v55  ;;  %v9407_v30 = vand.u32 4294901760, %v60_v60 }
  0x17   :  { %650 = vmatpush.msra.mxu2 %v9267_v46  ;;  %697 = vmatpush.msra.mxu3 %v9244_v35  ;;  %v16559_v42 = vand.u32 4294901760, %v9378_v56  ;;  %v16557_v1 = vand.u32 4294901760, %v9381_v57  ;;  %v604_v34 = vsub.f32 %v9355_v41, %v16551_v63  ;;  %v9423_v51 = vand.u32 4294901760, %v59_v21 }
  0x18   :  { %503 = vmatpush.msra.mxu0 %v9263_v44  ;;  %564 = vmatpush.msra.mxu1 %v563_v13  ;;  %v9391_v13 = vand.u32 4294901760, %v61_v47  ;;  %v599_v36 = vand.u32 4294901760, %v598_v6  ;;  %v9439_v63 = vsub.f32 %v60_v60, %v9407_v30  ;;  %v56_v6 = vld [vmem:[%s16536_s1 + $0xb8] sm:$0xff]  ;;  %vm8675_vm0 = vcmask 261120  }
  0x19   :  { %653 = vmatpush.msra.mxu2 %v9282_v52  ;;  %699 = vmatpush.msra.mxu3 %v9263_v44  ;;  %v605_v60 = vand.u32 4294901760, %v604_v34  ;;  %v9459_v24 = vsub.f32 %v59_v21, %v9423_v51  ;;  %v9464_v23 = vand.u32 4294901760, %v56_v6 }
  0x1a   :  { %505 = vmatpush.msra.mxu0 %v9278_v50  ;;  %570 = vmatpush.msra.mxu1 %v569_v37  ;;  %v587_v37 = vand.u32 4294901760, %v586_v49  ;;  %v593_v49 = vand.u32 4294901760, %v592_v62  ;;  %v9421_v58 = vsub.f32 %v61_v47, %v9391_v13  ;;  %v610_v47 = vsub.f32 %v9371_v54, %v16554_v38 }
  0x1b   :  { %656 = vmatpush.msra.mxu2 %v9300_v59  ;;  %701 = vmatpush.msra.mxu3 %v9278_v50  ;;  %v16560_v62 = vand.u32 4294901760, %v9405_v39  ;;  %v616_v38 = vsub.f32 %v9378_v56, %v16559_v42  ;;  %v16562_v14 = vand.u32 4294901760, %v9439_v63 }
  0x1c   :  { %507 = vmatpush.msra.mxu0 %v9286_v53  ;;  %576 = vmatpush.msra.mxu1 %v575_v48  ;;  %v58_v48 = vld [vmem:[%s16536_s1 + $0xc8] sm:$0xff]  ;;  %v16561_v27 = vand.u32 4294901760, %v9421_v58  ;;  %v611_v34 = vand.u32 4294901760, %v610_v47 }
  0x1d   :  { %659 = vmatpush.msra.mxu2 %v9318_v2  ;;  %703 = vmatpush.msra.mxu3 %v9286_v53  ;;  %v9441_v28 = vand.u32 4294901760, %v58_v48  ;;  %v879_v21 = vsub.f32 %v9405_v39, %v16560_v62  ;;  %v54_v47 = vld [vmem:[%s16536_s1 + $0xa8] sm:$0xff]  ;;  %v617_v62 = vand.u32 4294901760, %v616_v38 }
  0x1e   :  { %509 = vmatpush.msra.mxu0 %v9314_v0  ;;  %582 = vmatpush.msra.mxu1 %v581_v61  ;;  %v867_v61 = vsub.f32 %v9361_v43, %v16553_v7  ;;  %v9451_v7 = vand.u32 4294901760, %v57_v45 }
  0x1f   :  { %662 = vmatpush.msra.mxu2 %v9329_v8  ;;  %705 = vmatpush.msra.mxu3 %v9314_v0  ;;  %v880_v38 = vand.u32 4294901760, %v879_v21 }
  0x20   :  { %511 = vmatpush.msra.mxu0 %v9337_v26  ;;  %588 = vmatpush.msra.mxu1 %v587_v37  ;;  %v873_v37 = vsub.f32 %v9381_v57, %v16557_v1  ;;  %v868_v1 = vand.u32 4294901760, %v867_v61  ;;  %v16827_v61 = vand.u32 4294901760, %v9191_v15 }
  0x21   :  { %665 = vmatpush.msra.mxu2 %v9355_v41  ;;  %707 = vmatpush.msra.mxu3 %v9337_v26 }
  0x22   :  { %513 = vmatpush.msra.mxu0 %v9342_v31  ;;  %594 = vmatpush.msra.mxu1 %v593_v49  ;;  %v55_v49 = vld [vmem:[%s16536_s1 + $0xb0] sm:$0xff]  ;;  %v874_v42 = vand.u32 4294901760, %v873_v37  ;;  %v16828_v37 = vand.u32 4294901760, %v9195_v16  ;;  %v9506_v16 = vand.u32 4294901760, %v54_v47 }
  0x23   :  { %668 = vmatpush.msra.mxu2 %v9371_v54  ;;  %709 = vmatpush.msra.mxu3 %v9342_v31 }
  0x24   :  { %720 = vmatpush.msrb.mxu0 %v525_v22  ;;  %600 = vmatpush.msra.mxu1 %v599_v36  ;;  %v9475_v22 = vsub.f32 %v58_v48, %v9441_v28  ;;  %v9481_v36 = vsub.f32 %v57_v45, %v9451_v7  ;;  %v885_v48 = vsub.f32 %v9421_v58, %v16561_v27 }
  0x25   :  { %671 = vmatpush.msra.mxu2 %v9378_v56  ;;  %869 = vmatpush.msrb.mxu3 %v868_v1  ;;  %v9496_v45 = vsub.f32 %v56_v6, %v9464_v23  ;;  %v891_v27 = vsub.f32 %v9439_v63, %v16562_v14  ;;  %v16829_v1 = vand.u32 4294901760, %v9200_v18 }
  0x26   :  { %724 = vmatpush.msrb.mxu0 %v16827_v61  ;;  %606 = vmatpush.msra.mxu1 %v605_v60  ;;  %v9491_v61 = vand.u32 4294901760, %v55_v49  ;;  %v53_v60 = vld [vmem:[%s16536_s1 + $0xa0] sm:$0xff]  ;;  %v886_v21 = vand.u32 4294901760, %v885_v48  ;;  %v16832_v6 = vand.u32 4294901760, %v9475_v22 }
  0x27   :  { %824 = vmatpush.msrb.mxu2 %v9331_v12  ;;  %875 = vmatpush.msrb.mxu3 %v874_v42  ;;  %v9521_v18 = vand.u32 4294901760, %v53_v60  ;;  %v16831_v42 = vand.u32 4294901760, %v9203_v19  ;;  %v892_v48 = vand.u32 4294901760, %v891_v27  ;;  %v16833_v19 = vand.u32 4294901760, %v9206_v20  ;;  %v51_v27 = vld [vmem:[%s16536_s1 + $0x90] sm:$0xff] }
  0x28   :  { %728 = vmatpush.msrb.mxu0 %v16828_v37  ;;  %612 = vmatpush.msra.mxu1 %v611_v34  ;;  %v52_v34 = vld [vmem:[%s16536_s1 + $0x98] sm:$0xff]  ;;  %v16830_v37 = vand.u32 4294901760, %v9459_v24  ;;  %v9519_v15 = vsub.f32 %v55_v49, %v9491_v61  ;;  %v9532_v49 = vsub.f32 %v54_v47, %v9506_v16 }
  0x29   :  { %826 = vmatpush.msrb.mxu2 %v9344_v32  ;;  %881 = vmatpush.msrb.mxu3 %v880_v38 }
  0x2a   :  { %732 = vmatpush.msrb.mxu0 %v16829_v1  ;;  %618 = vmatpush.msra.mxu1 %v617_v62  ;;  %v897_v14 = vsub.f32 %v9459_v24, %v16830_v37  ;;  %v16565_v1 = vand.u32 4294901760, %v9496_v45  ;;  %v430_v62 = vld.sshfl [vmem:[#allocation1] sm:$0xff pattern:$0x73625140]  ;;  %v903_v37 = vsub.f32 %v9475_v22, %v16832_v6  ;;  %v16566_v38 = vand.u32 4294901760, %v9519_v15 }
  0x2b   :  { %828 = vmatpush.msrb.mxu2 %v9373_v55  ;;  %v9534_v55 = vand.u32 4294901760, %v52_v34  ;;  %887 = vmatpush.msrb.mxu3 %v886_v21  ;;  %v9548_v6 = vsub.f32 %v53_v60, %v9521_v18  ;;  %v9550_v20 = vand.u32 4294901760, %v430_v62  ;;  %v926_v21 = vand.u32 4294901760, %v9532_v49 }
  0x2c   :  { %736 = vmatpush.msrb.mxu0 %v16831_v42  ;;  %787 = vmatpush.msrb.mxu1 %v9159_v3  ;;  %v16834_v3 = vand.u32 4294901760, %v9481_v36  ;;  %v898_v47 = vand.u32 4294901760, %v897_v14  ;;  %v50_v14 = vld [vmem:[%s16536_s1 + $0x88] sm:$0xff]  ;;  %v904_v60 = vand.u32 4294901760, %v903_v37 }
  0x2d   :  { %830 = vmatpush.msrb.mxu2 %v9391_v13  ;;  %893 = vmatpush.msrb.mxu3 %v892_v48  ;;  %v921_v48 = vsub.f32 %v9519_v15, %v16566_v38  ;;  %v9580_v37 = vsub.f32 %v430_v62, %v9550_v20 }
  0x2e   :  { %740 = vmatpush.msrb.mxu0 %v16833_v19  ;;  %789 = vmatpush.msrb.mxu1 %v9161_v4  ;;  %v909_v42 = vsub.f32 %v9481_v36, %v16834_v3  ;;  %v16835_v4 = vand.u32 4294901760, %v9225_v29  ;;  %v915_v19 = vsub.f32 %v9496_v45, %v16565_v1  ;;  %v9563_v3 = vand.u32 4294901760, %v51_v27  ;;  %v49_v1 = vld [vmem:[%s16536_s1 + $0x80] sm:$0xff] }
  0x2f   :  { %832 = vmatpush.msrb.mxu2 %v9407_v30  ;;  %v9566_v29 = vsub.f32 %v52_v34, %v9534_v55  ;;  %899 = vmatpush.msrb.mxu3 %v898_v47  ;;  %v932_v34 = vand.u32 4294901760, %v9548_v6  ;;  %v927_v47 = vsub.f32 %v9532_v49, %v926_v21  ;;  %v9595_v38 = vand.u32 4294901760, %v49_v1 }
  0x30   :  { %744 = vmatpush.msrb.mxu0 %v16835_v4  ;;  %791 = vmatpush.msrb.mxu1 %v9163_v5  ;;  %v16836_v5 = vand.u32 4294901760, %v9253_v40  ;;  %v910_v4 = vand.u32 4294901760, %v909_v42  ;;  %v9582_v40 = vand.u32 4294901760, %v50_v14  ;;  %v916_v42 = vand.u32 4294901760, %v915_v19 }
  0x31   :  { %834 = vmatpush.msrb.mxu2 %v9423_v51  ;;  %905 = vmatpush.msrb.mxu3 %v904_v60  ;;  %v9593_v62 = vsub.f32 %v51_v27, %v9563_v3  ;;  %v933_v19 = vsub.f32 %v9548_v6, %v932_v34  ;;  %v516_v60 = vand.u32 4294901760, %v9580_v37 }
  0x32   :  { %748 = vmatpush.msrb.mxu0 %v16836_v5  ;;  %793 = vmatpush.msrb.mxu1 %v9174_v9  ;;  %v16837_v9 = vand.u32 4294901760, %v9267_v46  ;;  %v938_v5 = vand.u32 4294901760, %v9566_v29  ;;  %v16838_v46 = vand.u32 4294901760, %v9282_v52  ;;  %v9606_v27 = vsub.f32 %v50_v14, %v9582_v40 }
  0x33   :  { %836 = vmatpush.msrb.mxu2 %v9441_v28  ;;  %911 = vmatpush.msrb.mxu3 %v910_v4  ;;  %v944_v4 = vand.u32 4294901760, %v9593_v62  ;;  %v16840_v14 = vand.u32 4294901760, %v9318_v2 }
  0x34   :  { %752 = vmatpush.msrb.mxu0 %v16837_v9  ;;  %795 = vmatpush.msrb.mxu1 %v9176_v10  ;;  %v922_v10 = vand.u32 4294901760, %v921_v48  ;;  %v16839_v9 = vand.u32 4294901760, %v9300_v59  ;;  %v939_v52 = vsub.f32 %v9566_v29, %v938_v5  ;;  %v9617_v48 = vsub.f32 %v49_v1, %v9595_v38  ;;  %v431_v59 = vld.sshfl [vmem:[#allocation1 + $0x8] sm:$0xff pattern:$0x73625140] }
  0x35   :  { %838 = vmatpush.msrb.mxu2 %v9451_v7  ;;  %917 = vmatpush.msrb.mxu3 %v916_v42  ;;  %v517_v42 = vsub.f32 %v9580_v37, %v516_v60 }
  0x36   :  { %756 = vmatpush.msrb.mxu0 %v16838_v46  ;;  %797 = vmatpush.msrb.mxu1 %v9178_v11  ;;  %v928_v11 = vand.u32 4294901760, %v927_v47  ;;  %v950_v47 = vand.u32 4294901760, %v9606_v27  ;;  %v16841_v46 = vand.u32 4294901760, %v9329_v8  ;;  %v940_v2 = vand.u32 4294901760, %v939_v52 }
  0x37   :  { %840 = vmatpush.msrb.mxu2 %v9464_v23  ;;  %923 = vmatpush.msrb.mxu3 %v922_v10  ;;  %v956_v1 = vand.u32 4294901760, %v9617_v48  ;;  %v9633_v10 = vand.u32 4294901760, %v431_v59  ;;  %v16844_v52 = vand.u32 4294901760, %v9378_v56  ;;  %v16848_v56 = vand.u32 4294901760, %v9421_v58 }
  0x38   :  { %760 = vmatpush.msrb.mxu0 %v16839_v9  ;;  %799 = vmatpush.msrb.mxu1 %v9197_v17  ;;  %v934_v17 = vand.u32 4294901760, %v933_v19  ;;  %v16842_v19 = vand.u32 4294901760, %v9355_v41  ;;  %v951_v8 = vsub.f32 %v9606_v27, %v950_v47  ;;  %v16843_v9 = vand.u32 4294901760, %v9371_v54 }
  0x39   :  { %842 = vmatpush.msrb.mxu2 %v9491_v61  ;;  %929 = vmatpush.msrb.mxu3 %v928_v11  ;;  %v9650_v11 = vsub.f32 %v431_v59, %v9633_v10 }
  0x3a   :  { %764 = vmatpush.msrb.mxu0 %v16840_v14  ;;  %801 = vmatpush.msrb.mxu1 %v9216_v25  ;;  %v945_v25 = vsub.f32 %v9593_v62, %v944_v4 }
  0x3b   :  { %844 = vmatpush.msrb.mxu2 %v9506_v16  ;;  %935 = vmatpush.msrb.mxu3 %v934_v17  ;;  %v857_v14 = vand.u32 4294901760, %v9650_v11  ;;  %v71_v17 = vld [vmem:[%s16536_s1 + $0x130] sm:$0xff] }
  0x3c   :  { %768 = vmatpush.msrb.mxu0 %v16841_v46  ;;  %803 = vmatpush.msrb.mxu1 %v9238_v33  ;;  %v518_v33 = vand.u32 4294901760, %v517_v42  ;;  %v946_v41 = vand.u32 4294901760, %v945_v25  ;;  %v70_v25 = vld [vmem:[%s16536_s1 + $0x128] sm:$0xff] }
  0x3d   :  { %846 = vmatpush.msrb.mxu2 %v9521_v18  ;;  %941 = vmatpush.msrb.mxu3 %v940_v2 }
  0x3e   :  { %772 = vmatpush.msrb.mxu0 %v16842_v19  ;;  %805 = vmatpush.msrb.mxu1 %v9244_v35  ;;  %v957_v35 = vsub.f32 %v9617_v48, %v956_v1  ;;  %v9851_v19 = vand.u32 4294901760, %v71_v17 }
  0x3f   :  { %848 = vmatpush.msrb.mxu2 %v9534_v55  ;;  %519 = vmatmul.f32.vlgmr.msra.gmra.mxu0 %v518_v33 }
  0x40   :  { %776 = vmatpush.msrb.mxu0 %v16843_v9  ;;  %807 = vmatpush.msrb.mxu1 %v9263_v44  ;;  %v952_v44 = vand.u32 4294901760, %v951_v8  ;;  %v958_v54 = vand.u32 4294901760, %v957_v35  ;;  %v69_v8 = vld [vmem:[%s16536_s1 + $0x120] sm:$0xff] }
  0x41   :  { %850 = vmatpush.msrb.mxu2 %v9563_v3  ;;  %947 = vmatpush.msrb.mxu3 %v946_v41  ;;  %v9866_v41 = vand.u32 4294901760, %v70_v25 }
  0x42   :  { %780 = vmatpush.msrb.mxu0 %v16844_v52  ;;  %809 = vmatpush.msrb.mxu1 %v9278_v50  ;;  %v16845_v50 = vand.u32 4294901760, %v9361_v43  ;;  %v432_v52 = vld.sshfl [vmem:[#allocation1 + $0x10] sm:$0xff pattern:$0x73625140] }
  0x43   :  { %852 = vmatpush.msrb.mxu2 %v9582_v40  ;;  %953 = vmatpush.msrb.mxu3 %v952_v44 }
  0x44   :  { %967 = vmatpush.msra.mxu0 %v9361_v43  ;;  %811 = vmatpush.msrb.mxu1 %v9286_v53  ;;  %v858_v53 = vsub.f32 %v9650_v11, %v857_v14 }
  0x45   :  { %854 = vmatpush.msrb.mxu2 %v9595_v38  ;;  %959 = vmatpush.msrb.mxu3 %v958_v54  ;;  %v68_v54 = vld [vmem:[%s16536_s1 + $0x118] sm:$0xff] }
  0x46   :  { %970 = vmatpush.msra.mxu0 %v9381_v57  ;;  %813 = vmatpush.msrb.mxu1 %v9314_v0  ;;  %v16846_v0 = vand.u32 4294901760, %v9381_v57  ;;  %v859_v43 = vand.u32 4294901760, %v858_v53  ;;  %v16855_v57 = vand.u32 4294901760, %v9519_v15 }
  0x47   :  { %674 = vmatmul.f32.vlgmr.msra.gmra.mxu2 %v9580_v37  ;;  %713 = vmatmul.f32.vlgmr.msra.gmra.mxu3 %v516_v60  ;;  %v72_v60 = vld [vmem:[%s16536_s1 + $0x138] sm:$0xff] }
  0x48   :  { %973 = vmatpush.msra.mxu0 %v9405_v39  ;;  %1061 = vmatpush.msra.mxu2 %v16845_v50  ;;  %v9835_v46 = vand.u32 4294901760, %v72_v60  ;;  %v9881_v50 = vand.u32 4294901760, %v69_v8 }
  0x49   :  { %815 = vmatpush.msrb.mxu1 %v9337_v26  ;;  %1128 = vmatpush.msra.mxu3 %v9331_v12  ;;  %v16847_v26 = vand.u32 4294901760, %v9405_v39  ;;  %v16850_v39 = vand.u32 4294901760, %v9439_v63 }
  0x4a   :  { %976 = vmatpush.msra.mxu0 %v9421_v58  ;;  %1065 = vmatpush.msra.mxu2 %v16846_v0  ;;  %v16851_v58 = vand.u32 4294901760, %v9459_v24  ;;  %v9885_v0 = vsub.f32 %v71_v17, %v9851_v19 }
  0x4b   :  { %817 = vmatpush.msrb.mxu1 %v9342_v31  ;;  %1130 = vmatpush.msra.mxu3 %v9344_v32  ;;  %v16849_v31 = vld [vmem:[#allocation5_spill] sm:$0xff] }
  0x4c   :  { %979 = vmatpush.msra.mxu0 %v9439_v63  ;;  %620 = vmatmul.f32.vlgmr.msra.gmra.mxu1 %v9550_v20  ;;  %v78_v63 = vld [vmem:[%s16536_s1 + $0x168] sm:$0xff] }
  0x4d   :  { %1069 = vmatpush.msra.mxu2 %v16847_v26  ;;  %1020 = vmatpush.msra.mxu1 %v9331_v12  ;;  %v16852_v12 = vand.u32 4294901760, %v9475_v22 }
  0x4e   :  { %982 = vmatpush.msra.mxu0 %v9459_v24  ;;  %1132 = vmatpush.msra.mxu3 %v16849_v31  ;;  %v16853_v24 = vand.u32 4294901760, %v9481_v36 }
  0x4f   :  { %1073 = vmatpush.msra.mxu2 %v16848_v56  ;;  %1022 = vmatpush.msra.mxu1 %v9344_v32  ;;  %v16854_v32 = vand.u32 4294901760, %v9496_v45  ;;  %v9892_v56 = vand.u32 4294901760, %v432_v52 }
  0x50   :  { %860 = vmatmul.f32.vlgmr.msrb.gmra.mxu2 %v859_v43  ;;  %985 = vmatpush.msra.mxu0 %v9475_v22  ;;  %v67_v43 = vld [vmem:[%s16536_s1 + $0x110] sm:$0xff] }
  0x51   :  { %1024 = vmatpush.msra.mxu1 %v16849_v31  ;;  %1077 = vmatpush.msra.mxu2 %v16850_v39  ;;  %v9898_v39 = vand.u32 4294901760, %v68_v54 }
  0x52   :  { %1134 = vmatpush.msra.mxu3 %v9391_v13  ;;  %782 = vmatmul.f32.vlgmr.msrb.gmra.mxu0 %v9550_v20 }
  0x53   :  { %961 = vmatmul.f32.vlgmr.msrb.gmra.mxu3 %v9633_v10  ;;  %988 = vmatpush.msra.mxu0 %v9481_v36  ;;  %v76_v36 = vld [vmem:[%s16536_s1 + $0x158] sm:$0xff] }
  0x54   :  { %1026 = vmatpush.msra.mxu1 %v9391_v13  ;;  %1081 = vmatpush.msra.mxu2 %v16851_v58 }
  0x55   :  { %1136 = vmatpush.msra.mxu3 %v9407_v30  ;;  %819 = vmatmul.f32.vlgmr.msrb.gmra.mxu1 %v9550_v20 }
  0x56   :  { %991 = vmatpush.msra.mxu0 %v9496_v45  ;;  %1028 = vmatpush.msra.mxu1 %v9407_v30  ;;  %v80_v30 = vld [vmem:[%s16536_s1 + $0x178] sm:$0xff]  ;;  %v75_v45 = vld [vmem:[%s16536_s1 + $0x150] sm:$0xff] }
  0x57   :  { %1085 = vmatpush.msra.mxu2 %v16852_v12  ;;  %1138 = vmatpush.msra.mxu3 %v9423_v51  ;;  %v9779_v20 = vand.u32 4294901760, %v75_v45  ;;  %v9902_v12 = vsub.f32 %v70_v25, %v9866_v41 }
  0x58   :  { %994 = vmatpush.msra.mxu0 %v9519_v15  ;;  %1030 = vmatpush.msra.mxu1 %v9423_v51  ;;  %v79_v51 = vld [vmem:[%s16536_s1 + $0x170] sm:$0xff] }
  0x59   :  { %1089 = vmatpush.msra.mxu2 %v16853_v24  ;;  %1140 = vmatpush.msra.mxu3 %v9441_v28  ;;  %v9735_v13 = vand.u32 4294901760, %v79_v51 }
  0x5a   :  { %997 = vmatpush.msra.mxu0 %v9532_v49  ;;  %1032 = vmatpush.msra.mxu1 %v9441_v28  ;;  %v9725_v28 = vand.u32 4294901760, %v80_v30  ;;  %v9768_v49 = vand.u32 4294901760, %v76_v36 }
  0x5b   :  { %1093 = vmatpush.msra.mxu2 %v16854_v32  ;;  %1142 = vmatpush.msra.mxu3 %v9451_v7  ;;  %v9910_v32 = vand.u32 4294901760, %v67_v43 }
  0x5c   :  { %1000 = vmatpush.msra.mxu0 %v9548_v6  ;;  %1034 = vmatpush.msra.mxu1 %v9451_v7  ;;  %v77_v7 = vld [vmem:[%s16536_s1 + $0x160] sm:$0xff]  ;;  %v9748_v22 = vsub.f32 %v80_v30, %v9725_v28 }
  0x5d   :  { %1097 = vmatpush.msra.mxu2 %v16855_v57  ;;  %1144 = vmatpush.msra.mxu3 %v9464_v23  ;;  %v9758_v15 = vand.u32 4294901760, %v77_v7  ;;  %v9914_v57 = vsub.f32 %v69_v8, %v9881_v50  ;;  %v9948_v25 = vsub.f32 %v67_v43, %v9910_v32 }
  0x5e   :  { %1003 = vmatpush.msra.mxu0 %v9566_v29  ;;  %1036 = vmatpush.msra.mxu1 %v9464_v23  ;;  %v9745_v23 = vand.u32 4294901760, %v78_v63 }
  0x5f   :  { %1101 = vmatpush.msra.mxu2 %v926_v21  ;;  %1146 = vmatpush.msra.mxu3 %v9491_v61  ;;  %v9789_v29 = vsub.f32 %v77_v7, %v9758_v15  ;;  %v9922_v7 = vsub.f32 %v432_v52, %v9892_v56 }
  0x60   :  { %1006 = vmatpush.msra.mxu0 %v9593_v62  ;;  %1038 = vmatpush.msra.mxu1 %v9491_v61  ;;  %v9761_v61 = vsub.f32 %v79_v51, %v9735_v13  ;;  %v9775_v6 = vsub.f32 %v78_v63, %v9745_v23  ;;  %v9811_v62 = vsub.f32 %v75_v45, %v9779_v20  ;;  %v16570_v51 = vand.u32 4294901760, %v9885_v0  ;;  %v66_v63 = vld [vmem:[%s16536_s1 + $0x108] sm:$0xff] }
  0x61   :  { %1105 = vmatpush.msra.mxu2 %v932_v34  ;;  %1148 = vmatpush.msra.mxu3 %v9506_v16  ;;  %v73_v34 = vld [vmem:[%s16536_s1 + $0x140] sm:$0xff] }
  0x62   :  { %1009 = vmatpush.msra.mxu0 %v9606_v27  ;;  %1040 = vmatpush.msra.mxu1 %v9506_v16  ;;  %v1207_v16 = vand.u32 4294901760, %v9748_v22  ;;  %v1213_v21 = vand.u32 4294901760, %v9761_v61  ;;  %v16575_v2 = vand.u32 4294901760, %v9811_v62 }
  0x63   :  { %1109 = vmatpush.msra.mxu2 %v938_v5  ;;  %1150 = vmatpush.msra.mxu3 %v9521_v18 }
  0x64   :  { %1012 = vmatpush.msra.mxu0 %v9617_v48  ;;  %1042 = vmatpush.msra.mxu1 %v9521_v18  ;;  %v74_v18 = vld [vmem:[%s16536_s1 + $0x148] sm:$0xff]  ;;  %v1208_v37 = vsub.f32 %v9748_v22, %v1207_v16  ;;  %v1214_v27 = vsub.f32 %v9761_v61, %v1213_v21  ;;  %v16580_v48 = vand.u32 4294901760, %v9789_v29  ;;  %v1238_v44 = vsub.f32 %v9811_v62, %v16575_v2 }
  0x65   :  { %1113 = vmatpush.msra.mxu2 %v944_v4  ;;  %1152 = vmatpush.msra.mxu3 %v9534_v55  ;;  %v9805_v5 = vand.u32 4294901760, %v74_v18  ;;  %v9821_v4 = vand.u32 4294901760, %v73_v34 }
  0x66   :  { %1015 = vmatmul.f32.vlgmr.msra.gmra.mxu0 %v9650_v11  ;;  %1044 = vmatpush.msra.mxu1 %v9534_v55  ;;  %v9794_v55 = vsub.f32 %v76_v36, %v9768_v49  ;;  %v1209_v42 = vand.u32 4294901760, %v1208_v37  ;;  %v9870_v11 = vsub.f32 %v72_v60, %v9835_v46  ;;  %v1239_v24 = vand.u32 4294901760, %v1238_v44  ;;  %v96_v37 = vld [vmem:[%s16536_s1 + $0x1f8] sm:$0xff] }
  0x67   :  { %1165 = vmatpush.msrb.mxu0 %v9725_v28  ;;  %1117 = vmatpush.msra.mxu2 %v950_v47  ;;  %v9854_v33 = vsub.f32 %v73_v34, %v9821_v4  ;;  %v9930_v34 = vsub.f32 %v68_v54, %v9898_v39  ;;  %v9937_v60 = vand.u32 4294901760, %v66_v63 }
  0x68   :  { %1154 = vmatpush.msra.mxu3 %v9563_v3  ;;  %1046 = vmatpush.msra.mxu1 %v9563_v3  ;;  %v1219_v3 = vand.u32 4294901760, %v9775_v6  ;;  %v16577_v59 = vand.u32 4294901760, %v9794_v55  ;;  %v16571_v58 = vand.u32 4294901760, %v9870_v11 }
  0x69   :  { %1167 = vmatpush.msrb.mxu0 %v9735_v13  ;;  %1121 = vmatpush.msra.mxu2 %v956_v1  ;;  %v1215_v1 = vand.u32 4294901760, %v1214_v27  ;;  %v16572_v53 = vand.u32 4294901760, %v9854_v33  ;;  %v65_v27 = vld [vmem:[%s16536_s1 + $0x100] sm:$0xff]  ;;  %v16569_v44 = vand.u32 4294901760, %v9930_v34  ;;  %v9968_v54 = vsub.f32 %v66_v63, %v9937_v60 }
  0x6a   :  { %1156 = vmatpush.msra.mxu3 %v9582_v40  ;;  %1123 = vmatmul.f32.vlgmr.msra.gmra.mxu2 %v9633_v10  ;;  %v1220_v47 = vsub.f32 %v9775_v6, %v1219_v3  ;;  %v1256_v45 = vsub.f32 %v9870_v11, %v16571_v58  ;;  %v9962_v52 = vand.u32 4294901760, %v65_v27 }
  0x6b   :  { %1169 = vmatpush.msrb.mxu0 %v9745_v23  ;;  %1308 = vmatpush.msrb.mxu2 %v9748_v22  ;;  %v1250_v30 = vsub.f32 %v9854_v33, %v16572_v53  ;;  %v88_v22 = vld [vmem:[%s16536_s1 + $0x1b8] sm:$0xff] }
  0x6c   :  { %1048 = vmatpush.msra.mxu1 %v9582_v40  ;;  %1158 = vmatpush.msra.mxu3 %v9595_v38  ;;  %v9838_v40 = vsub.f32 %v74_v18, %v9805_v5  ;;  %v1221_v9 = vand.u32 4294901760, %v1220_v47  ;;  %v16568_v18 = vand.u32 4294901760, %v9902_v12  ;;  %v16567_v47 = vand.u32 4294901760, %v9914_v57  ;;  %16856 = vst [vmem:[#allocation5_spill] sm:$0xff] %v9962_v52 }
  0x6d   :  { %1160 = vmatmul.f32.vlgmr.msra.gmra.mxu3 %v9633_v10  ;;  %1171 = vmatpush.msrb.mxu0 %v9758_v15  ;;  %v1226_v10 = vsub.f32 %v9789_v29, %v16580_v48  ;;  %v1251_v17 = vand.u32 4294901760, %v1250_v30  ;;  %v1257_v8 = vand.u32 4294901760, %v1256_v45  ;;  %v93_v30 = vld [vmem:[%s16536_s1 + $0x1e0] sm:$0xff] }
  0x6e   :  { %1311 = vmatpush.msrb.mxu2 %v9761_v61  ;;  %1361 = vmatpush.msrb.mxu3 %v9725_v28  ;;  %v16574_v35 = vand.u32 4294901760, %v9838_v40  ;;  %v1274_v43 = vsub.f32 %v9914_v57, %v16567_v47  ;;  %v87_v61 = vld [vmem:[%s16536_s1 + $0x1b0] sm:$0xff] }
  0x6f   :  { %1050 = vmatpush.msra.mxu1 %v9595_v38  ;;  %1173 = vmatpush.msrb.mxu0 %v9768_v49  ;;  %v1232_v38 = vsub.f32 %v9794_v55, %v16577_v59  ;;  %v10114_v48 = vand.u32 4294901760, %v87_v61 }
  0x70   :  { %1054 = vmatmul.f32.vlgmr.msra.gmra.mxu1 %v857_v14  ;;  %1314 = vmatpush.msrb.mxu2 %v9775_v6  ;;  %v1227_v14 = vand.u32 4294901760, %v1226_v10  ;;  %v1244_v31 = vsub.f32 %v9838_v40, %v16574_v35  ;;  %v9953_v10 = vand.u32 4294901760, %v96_v37 }
  0x71   :  { %1210 = vmatpush.msrb.mxu1 %v1209_v42  ;;  %1363 = vmatpush.msrb.mxu3 %v9735_v13  ;;  %v1233_v26 = vand.u32 4294901760, %v1232_v38  ;;  %v1262_v42 = vsub.f32 %v9885_v0, %v16570_v51  ;;  %v95_v38 = vld [vmem:[%s16536_s1 + $0x1f0] sm:$0xff] }
  0x72   :  { %1175 = vmatpush.msrb.mxu0 %v9779_v20  ;;  %1317 = vmatpush.msrb.mxu2 %v9789_v29  ;;  %v1245_v36 = vand.u32 4294901760, %v1244_v31  ;;  %v16573_v31 = vand.u32 4294901760, %v9948_v25 }
  0x73   :  { %1216 = vmatpush.msrb.mxu1 %v1215_v1  ;;  %1365 = vmatpush.msrb.mxu3 %v9745_v23  ;;  %v1198_v1 = vand.u32 4294901760, %v9922_v7 }
  0x74   :  { %1177 = vmatpush.msrb.mxu0 %v9805_v5  ;;  %1320 = vmatpush.msrb.mxu2 %v9794_v55 }
  0x75   :  { %1222 = vmatpush.msrb.mxu1 %v1221_v9  ;;  %1367 = vmatpush.msrb.mxu3 %v9758_v15  ;;  %v1268_v9 = vsub.f32 %v9902_v12, %v16568_v18  ;;  %v1199_v63 = vsub.f32 %v9922_v7, %v1198_v1  ;;  %v92_v18 = vld [vmem:[%s16536_s1 + $0x1d8] sm:$0xff] }
  0x76   :  { %1179 = vmatpush.msrb.mxu0 %v9821_v4  ;;  %1323 = vmatpush.msrb.mxu2 %v9811_v62  ;;  %v10018_v53 = vand.u32 4294901760, %v92_v18 }
  0x77   :  { %1228 = vmatpush.msrb.mxu1 %v1227_v14  ;;  %1369 = vmatpush.msrb.mxu3 %v9768_v49  ;;  %v94_v14 = vld [vmem:[%s16536_s1 + $0x1e8] sm:$0xff]  ;;  %v1269_v45 = vand.u32 4294901760, %v1268_v9  ;;  %v1275_v9 = vand.u32 4294901760, %v1274_v43  ;;  %v1200_v51 = vand.u32 4294901760, %v1199_v63 }
  0x78   :  { %1181 = vmatpush.msrb.mxu0 %v9835_v46  ;;  %1326 = vmatpush.msrb.mxu2 %v9838_v40  ;;  %v9998_v47 = vand.u32 4294901760, %v94_v14 }
  0x79   :  { %1234 = vmatpush.msrb.mxu1 %v1233_v26  ;;  %1371 = vmatpush.msrb.mxu3 %v9779_v20  ;;  %v1263_v26 = vand.u32 4294901760, %v1262_v42  ;;  %v9996_v42 = vsub.f32 %v65_v27, %v9962_v52  ;;  %v1286_v27 = vsub.f32 %v9948_v25, %v16573_v31 }
  0x7a   :  { %1183 = vmatpush.msrb.mxu0 %v9851_v19  ;;  %1329 = vmatpush.msrb.mxu2 %v9854_v33  ;;  %v10026_v31 = vsub.f32 %v94_v14, %v9998_v47 }
  0x7b   :  { %1240 = vmatpush.msrb.mxu1 %v1239_v24  ;;  %1373 = vmatpush.msrb.mxu3 %v9805_v5  ;;  %v9978_v24 = vand.u32 4294901760, %v95_v38  ;;  %v1287_v14 = vand.u32 4294901760, %v1286_v27 }
  0x7c   :  { %1185 = vmatpush.msrb.mxu0 %v9866_v41  ;;  %1332 = vmatpush.msrb.mxu2 %v9870_v11  ;;  %v16581_v27 = vand.u32 4294901760, %v10026_v31 }
  0x7d   :  { %1246 = vmatpush.msrb.mxu1 %v1245_v36  ;;  %1375 = vmatpush.msrb.mxu3 %v9821_v4  ;;  %v9989_v36 = vsub.f32 %v96_v37, %v9953_v10  ;;  %v16576_v37 = vand.u32 4294901760, %v9968_v54 }
  0x7e   :  { %1187 = vmatpush.msrb.mxu0 %v9881_v50  ;;  %1335 = vmatpush.msrb.mxu2 %v9885_v0 }
  0x7f   :  { %1252 = vmatpush.msrb.mxu1 %v1251_v17  ;;  %1377 = vmatpush.msrb.mxu3 %v9835_v46  ;;  %v1280_v17 = vsub.f32 %v9930_v34, %v16569_v44  ;;  %v10013_v44 = vsub.f32 %v95_v38, %v9978_v24  ;;  %v16578_v58 = vand.u32 4294901760, %v9989_v36  ;;  %v16579_v38 = vand.u32 4294901760, %v9996_v42 }
  0x80   :  { %1189 = vmatpush.msrb.mxu0 %v9898_v39  ;;  %1338 = vmatpush.msrb.mxu2 %v9902_v12  ;;  %v1292_v63 = vsub.f32 %v9968_v54, %v16576_v37  ;;  %v10048_v37 = vsub.f32 %v92_v18, %v10018_v53 }
  0x81   :  { %1258 = vmatpush.msrb.mxu1 %v1257_v8  ;;  %1379 = vmatpush.msrb.mxu3 %v9851_v19  ;;  %v10006_v8 = vand.u32 4294901760, %v93_v30  ;;  %v1281_v43 = vand.u32 4294901760, %v1280_v17  ;;  %v16582_v17 = vand.u32 4294901760, %v10013_v44 }
  0x82   :  { %1191 = vmatpush.msrb.mxu0 %v9910_v32  ;;  %1341 = vmatpush.msrb.mxu2 %v9914_v57  ;;  %v1293_v18 = vand.u32 4294901760, %v1292_v63 }
  0x83   :  { %1264 = vmatpush.msrb.mxu1 %v1263_v26  ;;  %1381 = vmatpush.msrb.mxu3 %v9866_v41  ;;  %v91_v26 = vld [vmem:[%s16536_s1 + $0x1d0] sm:$0xff]  ;;  %v10034_v35 = vsub.f32 %v93_v30, %v10006_v8  ;;  %v1549_v30 = vsub.f32 %v9989_v36, %v16578_v58 }
  0x84   :  { %1193 = vmatpush.msrb.mxu0 %v9937_v60  ;;  %1344 = vmatpush.msrb.mxu2 %v9930_v34  ;;  %v10041_v2 = vand.u32 4294901760, %v91_v26 }
  0x85   :  { %1270 = vmatpush.msrb.mxu1 %v1269_v45  ;;  %1383 = vmatpush.msrb.mxu3 %v9881_v50  ;;  %v90_v45 = vld [vmem:[%s16536_s1 + $0x1c8] sm:$0xff]  ;;  %v16583_v58 = vand.u32 4294901760, %v10034_v35  ;;  %v1550_v63 = vand.u32 4294901760, %v1549_v30  ;;  %v10092_v30 = vand.u32 4294901760, %v88_v22 }
  0x86   :  { %1195 = vmatpush.msrb.mxu0 %v9962_v52  ;;  %1347 = vmatpush.msrb.mxu2 %v9948_v25  ;;  %v10059_v59 = vand.u32 4294901760, %v90_v45 }
  0x87   :  { %1276 = vmatpush.msrb.mxu1 %v1275_v9  ;;  %1385 = vmatpush.msrb.mxu3 %v9898_v39  ;;  %v89_v9 = vld [vmem:[%s16536_s1 + $0x1c0] sm:$0xff]  ;;  %v1567_v6 = vsub.f32 %v10034_v35, %v16583_v58 }
  0x88   :  { %1201 = vmatmul.f32.vlgmr.msrb.gmra.mxu0 %v1200_v51  ;;  %1350 = vmatpush.msrb.mxu2 %v9968_v54  ;;  %v1298_v51 = vsub.f32 %v9996_v42, %v16579_v38  ;;  %v10075_v38 = vand.u32 4294901760, %v89_v9 }
  0x89   :  { %1402 = vmatpush.msra.mxu0 %v1207_v16  ;;  %1282 = vmatpush.msrb.mxu1 %v1281_v43  ;;  %v1555_v16 = vsub.f32 %v10013_v44, %v16582_v17  ;;  %v10073_v43 = vsub.f32 %v91_v26, %v10041_v2  ;;  %v1561_v26 = vsub.f32 %v10026_v31, %v16581_v27  ;;  %v10104_v27 = vld.sshfl [vmem:[#allocation1 + $0x18] sm:$0xff pattern:$0x73625140] }
  0x8a   :  { %1387 = vmatpush.msrb.mxu3 %v9910_v32  ;;  %1353 = vmatpush.msrb.mxu2 %v9996_v42  ;;  %v10112_v58 = vsub.f32 %v89_v9, %v10075_v38 }
  0x8b   :  { %1406 = vmatpush.msra.mxu0 %v1213_v21  ;;  %1288 = vmatpush.msrb.mxu1 %v1287_v14  ;;  %v1299_v21 = vand.u32 4294901760, %v1298_v51  ;;  %v10090_v14 = vsub.f32 %v90_v45, %v10059_v59  ;;  %v29_v51 = vld [vmem:[%s16535_s0 + $0x10] sm:$0xff]  ;;  %v16857_v45 = vand.u32 4294901760, %v9789_v29  ;;  %v16585_v17 = vand.u32 4294901760, %v10073_v43  ;;  %v85_v29 = vld [vmem:[%s16536_s1 + $0x1a0] sm:$0xff] }
  0x8c   :  { %1389 = vmatpush.msrb.mxu3 %v9937_v60  ;;  %1356 = vmatmul.f32.vlgmr.msrb.gmra.mxu2 %v9922_v7  ;;  %438 = vst [vmem:[#allocation1] ss:$4 sm:$0xff] %v29_v51  ;;  %v1562_v9 = vand.u32 4294901760, %v1561_v26  ;;  %v10127_v51 = vsub.f32 %v88_v22, %v10092_v30  ;;  %v16586_v22 = vand.u32 4294901760, %v10112_v58  ;;  %v10144_v26 = vand.u32 4294901760, %v85_v29 }
  0x8d   :  { %1410 = vmatpush.msra.mxu0 %v1219_v3  ;;  %1506 = vmatpush.msra.mxu2 %v9953_v10  ;;  %v86_v3 = vld [vmem:[%s16536_s1 + $0x1a8] sm:$0xff] }
  0x8e   :  { %1294 = vmatpush.msrb.mxu1 %v1293_v18  ;;  %1391 = vmatpush.msrb.mxu3 %v9962_v52  ;;  %v1556_v18 = vand.u32 4294901760, %v1555_v16  ;;  %v16858_v52 = vand.u32 4294901760, %v10048_v37  ;;  %v16588_v16 = vand.u32 4294901760, %v10090_v14 }
  0x8f   :  { %1395 = vmatmul.f32.vlgmr.msrb.gmra.mxu3 %v1198_v1  ;;  %1414 = vmatpush.msra.mxu0 %v16857_v45  ;;  %v16859_v1 = vand.u32 4294901760, %v9794_v55  ;;  %v10129_v45 = vand.u32 4294901760, %v86_v3  ;;  %v1579_v55 = vsub.f32 %v10073_v43, %v16585_v17 }
  0x90   :  { %1508 = vmatpush.msra.mxu2 %v9978_v24  ;;  %1551 = vmatpush.msra.mxu3 %v1550_v63  ;;  %v1573_v7 = vsub.f32 %v10048_v37, %v16858_v52  ;;  %v1568_v52 = vand.u32 4294901760, %v1567_v6  ;;  %v84_v63 = vld [vmem:[%s16536_s1 + $0x198] sm:$0xff]  ;;  %v16860_v6 = vand.u32 4294901760, %v9811_v62  ;;  %v83_v62 = vld [vmem:[%s16536_s1 + $0x190] sm:$0xff] }
  0x91   :  { %1300 = vmatpush.msrb.mxu1 %v1299_v21  ;;  %1418 = vmatpush.msra.mxu0 %v16859_v1  ;;  %v10142_v21 = vsub.f32 %v87_v61, %v10114_v48  ;;  %v10155_v61 = vsub.f32 %v86_v3, %v10129_v45  ;;  %v10157_v17 = vand.u32 4294901760, %v84_v63  ;;  %v1591_v3 = vsub.f32 %v10112_v58, %v16586_v22 }
  0x92   :  { %1302 = vmatmul.f32.vlgmr.msrb.gmra.mxu1 %v9892_v56  ;;  %1510 = vmatpush.msra.mxu2 %v9998_v47  ;;  %v1574_v1 = vand.u32 4294901760, %v1573_v7  ;;  %v16861_v7 = vand.u32 4294901760, %v9838_v40  ;;  %v82_v40 = vld [vmem:[%s16536_s1 + $0x188] sm:$0xff] }
  0x93   :  { %1469 = vmatpush.msra.mxu1 %v9725_v28  ;;  %1557 = vmatpush.msra.mxu3 %v1556_v18  ;;  %v1585_v28 = vsub.f32 %v10090_v14, %v16588_v16  ;;  %v16587_v18 = vand.u32 4294901760, %v10127_v51  ;;  %v10187_v22 = vsub.f32 %v84_v63, %v10157_v17 }
  0x94   :  { %1422 = vmatpush.msra.mxu0 %v16860_v6  ;;  %1512 = vmatpush.msra.mxu2 %v10006_v8  ;;  %v10171_v6 = vsub.f32 %v85_v29, %v10144_v26 }
  0x95   :  { %1471 = vmatpush.msra.mxu1 %v9735_v13  ;;  %1563 = vmatpush.msra.mxu3 %v1562_v9  ;;  %v1580_v13 = vand.u32 4294901760, %v1579_v55  ;;  %v1602_v9 = vand.u32 4294901760, %v10142_v21  ;;  %v1597_v29 = vsub.f32 %v10127_v51, %v16587_v18  ;;  %v1608_v55 = vand.u32 4294901760, %v10155_v61 }
  0x96   :  { %1426 = vmatpush.msra.mxu0 %v16861_v7  ;;  %1514 = vmatpush.msra.mxu2 %v10018_v53  ;;  %v16862_v7 = vand.u32 4294901760, %v9854_v33  ;;  %v81_v33 = vld [vmem:[%s16536_s1 + $0x180] sm:$0xff]  ;;  %v1614_v18 = vand.u32 4294901760, %v10171_v6 }
  0x97   :  { %1473 = vmatpush.msra.mxu1 %v9745_v23  ;;  %1569 = vmatpush.msra.mxu3 %v1568_v52  ;;  %v10179_v23 = vand.u32 4294901760, %v83_v62  ;;  %v1586_v52 = vand.u32 4294901760, %v1585_v28  ;;  %v1592_v28 = vand.u32 4294901760, %v1591_v3  ;;  %v1603_v63 = vsub.f32 %v10142_v21, %v1602_v9 }
  0x98   :  { %1430 = vmatpush.msra.mxu0 %v16862_v7  ;;  %1516 = vmatpush.msra.mxu2 %v10041_v2  ;;  %v16863_v7 = vand.u32 4294901760, %v9870_v11  ;;  %v16864_v11 = vand.u32 4294901760, %v9885_v0  ;;  %v10211_v16 = vand.u32 4294901760, %v81_v33  ;;  %v1620_v3 = vand.u32 4294901760, %v10187_v22 }
  0x99   :  { %1475 = vmatpush.msra.mxu1 %v9758_v15  ;;  %1575 = vmatpush.msra.mxu3 %v1574_v1  ;;  %v10195_v15 = vand.u32 4294901760, %v82_v40  ;;  %v10198_v1 = vand.u32 4294901760, %v10104_v27  ;;  %v16865_v0 = vand.u32 4294901760, %v9902_v12  ;;  %v16866_v12 = vand.u32 4294901760, %v9914_v57 }
  0x9a   :  { %1434 = vmatpush.msra.mxu0 %v16863_v7  ;;  %1518 = vmatpush.msra.mxu2 %v10059_v59  ;;  %v10209_v7 = vsub.f32 %v83_v62, %v10179_v23 }
  0x9b   :  { %1477 = vmatpush.msra.mxu1 %v9768_v49  ;;  %1581 = vmatpush.msra.mxu3 %v1580_v13  ;;  %v1598_v49 = vand.u32 4294901760, %v1597_v29  ;;  %v1609_v13 = vsub.f32 %v10155_v61, %v1608_v55  ;;  %v10222_v62 = vsub.f32 %v82_v40, %v10195_v15  ;;  %v10237_v29 = vsub.f32 %v81_v33, %v10211_v16 }
  0x9c   :  { %1438 = vmatpush.msra.mxu0 %v16864_v11  ;;  %1520 = vmatpush.msra.mxu2 %v10075_v38  ;;  %v10226_v11 = vsub.f32 %v10104_v27, %v10198_v1  ;;  %v1626_v40 = vand.u32 4294901760, %v10209_v7  ;;  %v1621_v27 = vsub.f32 %v10187_v22, %v1620_v3 }
  0x9d   :  { %1479 = vmatpush.msra.mxu1 %v9779_v20  ;;  %1587 = vmatpush.msra.mxu3 %v1586_v52  ;;  %v1604_v20 = vand.u32 4294901760, %v1603_v63  ;;  %v1615_v52 = vsub.f32 %v10171_v6, %v1614_v18  ;;  %v1632_v57 = vand.u32 4294901760, %v10222_v62 }
  0x9e   :  { %1442 = vmatpush.msra.mxu0 %v16865_v0  ;;  %1522 = vmatpush.msra.mxu2 %v10092_v30  ;;  %v1539_v63 = vand.u32 4294901760, %v10226_v11  ;;  %v16869_v0 = vand.u32 4294901760, %v9968_v54 }
  0x9f   :  { %1481 = vmatpush.msra.mxu1 %v9805_v5  ;;  %1593 = vmatpush.msra.mxu3 %v1592_v28  ;;  %v1610_v5 = vand.u32 4294901760, %v1609_v13  ;;  %v16867_v28 = vand.u32 4294901760, %v9930_v34  ;;  %v1616_v33 = vand.u32 4294901760, %v1615_v52  ;;  %v1627_v34 = vsub.f32 %v10209_v7, %v1626_v40 }
  0xa0   :  { %1446 = vmatpush.msra.mxu0 %v16866_v12  ;;  %1524 = vmatpush.msra.mxu2 %v10114_v48  ;;  %v1622_v13 = vand.u32 4294901760, %v1621_v27 }
  0xa1   :  { %1483 = vmatpush.msra.mxu1 %v9821_v4  ;;  %1599 = vmatpush.msra.mxu3 %v1598_v49  ;;  %v16868_v4 = vand.u32 4294901760, %v9948_v25  ;;  %v1638_v49 = vand.u32 4294901760, %v10237_v29  ;;  %v1540_v25 = vsub.f32 %v10226_v11, %v1539_v63  ;;  %v1628_v54 = vand.u32 4294901760, %v1627_v34 }
  0xa2   :  { %1450 = vmatpush.msra.mxu0 %v16867_v28  ;;  %1526 = vmatpush.msra.mxu2 %v10129_v45 }
  0xa3   :  { %1485 = vmatpush.msra.mxu1 %v9835_v46  ;;  %1605 = vmatpush.msra.mxu3 %v1604_v20  ;;  %v1633_v46 = vsub.f32 %v10222_v62, %v1632_v57  ;;  %v1639_v20 = vsub.f32 %v10237_v29, %v1638_v49 }
  0xa4   :  { %1454 = vmatpush.msra.mxu0 %v16868_v4  ;;  %1528 = vmatpush.msra.mxu2 %v10144_v26 }
  0xa5   :  { %1487 = vmatpush.msra.mxu1 %v9851_v19  ;;  %1611 = vmatpush.msra.mxu3 %v1610_v5  ;;  %v16870_v19 = vand.u32 4294901760, %v9996_v42  ;;  %v1634_v52 = vand.u32 4294901760, %v1633_v46  ;;  %v1640_v42 = vand.u32 4294901760, %v1639_v20  ;;  %v103_v5 = vld [vmem:[%s16536_s1 + $0x230] sm:$0xff]  ;;  %v100_v20 = vld [vmem:[%s16536_s1 + $0x218] sm:$0xff] }
  0xa6   :  { %1458 = vmatpush.msra.mxu0 %v16869_v0  ;;  %1530 = vmatpush.msra.mxu2 %v10157_v17  ;;  %v101_v0 = vld [vmem:[%s16536_s1 + $0x220] sm:$0xff] }
  0xa7   :  { %1489 = vmatpush.msra.mxu1 %v9866_v41  ;;  %1617 = vmatpush.msra.mxu3 %v1616_v33  ;;  %v1541_v41 = vand.u32 4294901760, %v1540_v25 }
  0xa8   :  { %1462 = vmatpush.msra.mxu0 %v16870_v19  ;;  %1532 = vmatpush.msra.mxu2 %v10179_v23 }
  0xa9   :  { %1491 = vmatpush.msra.mxu1 %v9881_v50  ;;  %1623 = vmatpush.msra.mxu3 %v1622_v13  ;;  %v16871_v50 = vand.u32 4294901760, %v9989_v36 }
  0xaa   :  { %1464 = vmatmul.f32.vlgmr.msra.gmra.mxu0 %v9892_v56  ;;  %1534 = vmatpush.msra.mxu2 %v10195_v15 }
  0xab   :  { %1649 = vmatpush.msrb.mxu0 %v9989_v36  ;;  %1493 = vmatpush.msra.mxu1 %v9898_v39  ;;  %v16872_v39 = vand.u32 4294901760, %v10013_v44  ;;  %v16874_v36 = vand.u32 4294901760, %v10026_v31 }
  0xac   :  { %1629 = vmatpush.msra.mxu3 %v1628_v54  ;;  %1536 = vmatpush.msra.mxu2 %v10211_v16 }
  0xad   :  { %1652 = vmatpush.msrb.mxu0 %v10013_v44  ;;  %1495 = vmatpush.msra.mxu1 %v9910_v32  ;;  %v16873_v32 = vld [vmem:[#allocation5_spill] sm:$0xff]  ;;  %v16878_v44 = vand.u32 4294901760, %v10090_v14 }
  0xae   :  { %1635 = vmatpush.msra.mxu3 %v1634_v52  ;;  %1542 = vmatmul.f32.vlgmr.msra.gmra.mxu2 %v1541_v41  ;;  %v10497_v41 = vand.u32 4294901760, %v101_v0 }
  0xaf   :  { %1655 = vmatpush.msrb.mxu0 %v10026_v31  ;;  %1743 = vmatpush.msrb.mxu2 %v16871_v50  ;;  %v16880_v31 = vand.u32 4294901760, %v10127_v51 }
  0xb0   :  { %1497 = vmatpush.msra.mxu1 %v9937_v60  ;;  %1641 = vmatpush.msra.mxu3 %v1640_v42  ;;  %v16875_v60 = vand.u32 4294901760, %v10034_v35 }
  0xb1   :  { %1643 = vmatmul.f32.vlgmr.msra.gmra.mxu3 %v10198_v1  ;;  %1658 = vmatpush.msrb.mxu0 %v10034_v35  ;;  %v28_v35 = vld [vmem:[%s16535_s0 + $0x8] sm:$0xff] }
  0xb2   :  { %1747 = vmatpush.msrb.mxu2 %v16872_v39  ;;  %1810 = vmatpush.msrb.mxu3 %v9953_v10  ;;  %429 = vst [vmem:[#allocation1 + $0x20] ss:$4 sm:$0xff] %v28_v35 }
  0xb3   :  { %1499 = vmatpush.msra.mxu1 %v16873_v32  ;;  %1661 = vmatpush.msrb.mxu0 %v10048_v37  ;;  %v99_v32 = vld [vmem:[%s16536_s1 + $0x210] sm:$0xff] }
  0xb4   :  { %1501 = vmatmul.f32.vlgmr.msra.gmra.mxu1 %v9892_v56  ;;  %1751 = vmatpush.msrb.mxu2 %v16874_v36  ;;  %v16876_v56 = vand.u32 4294901760, %v10048_v37  ;;  %v109_v37 = vld [vmem:[%s16536_s1 + $0x260] sm:$0xff] }
  0xb5   :  { %1702 = vmatpush.msrb.mxu1 %v9953_v10  ;;  %1812 = vmatpush.msrb.mxu3 %v9978_v24  ;;  %v16877_v10 = vand.u32 4294901760, %v10073_v43 }
  0xb6   :  { %1664 = vmatpush.msrb.mxu0 %v10073_v43  ;;  %1755 = vmatpush.msrb.mxu2 %v16875_v60  ;;  %v108_v43 = vld [vmem:[%s16536_s1 + $0x258] sm:$0xff] }
  0xb7   :  { %1704 = vmatpush.msrb.mxu1 %v9978_v24  ;;  %1814 = vmatpush.msrb.mxu3 %v9998_v47 }
  0xb8   :  { %1667 = vmatpush.msrb.mxu0 %v10090_v14  ;;  %1759 = vmatpush.msrb.mxu2 %v16876_v56  ;;  %v10514_v56 = vand.u32 4294901760, %v100_v20 }
  0xb9   :  { %1706 = vmatpush.msrb.mxu1 %v9998_v47  ;;  %1816 = vmatpush.msrb.mxu3 %v10006_v8  ;;  %v16879_v47 = vand.u32 4294901760, %v10112_v58 }
  0xba   :  { %1670 = vmatpush.msrb.mxu0 %v10112_v58  ;;  %1763 = vmatpush.msrb.mxu2 %v16877_v10 }
  0xbb   :  { %1708 = vmatpush.msrb.mxu1 %v10006_v8  ;;  %1818 = vmatpush.msrb.mxu3 %v10018_v53 }
  0xbc   :  { %1673 = vmatpush.msrb.mxu0 %v10127_v51  ;;  %1767 = vmatpush.msrb.mxu2 %v16878_v44  ;;  %v10385_v51 = vand.u32 4294901760, %v108_v43 }
  0xbd   :  { %1710 = vmatpush.msrb.mxu1 %v10018_v53  ;;  %1820 = vmatpush.msrb.mxu3 %v10041_v2  ;;  %v112_v53 = vld [vmem:[%s16536_s1 + $0x278] sm:$0xff] }
  0xbe   :  { %1676 = vmatpush.msrb.mxu0 %v10142_v21  ;;  %1771 = vmatpush.msrb.mxu2 %v16879_v47  ;;  %v10341_v58 = vand.u32 4294901760, %v112_v53 }
  0xbf   :  { %1712 = vmatpush.msrb.mxu1 %v10041_v2  ;;  %1822 = vmatpush.msrb.mxu3 %v10059_v59  ;;  %v111_v2 = vld [vmem:[%s16536_s1 + $0x270] sm:$0xff] }
  0xc0   :  { %1679 = vmatpush.msrb.mxu0 %v10155_v61  ;;  %1775 = vmatpush.msrb.mxu2 %v16880_v31  ;;  %v10351_v24 = vand.u32 4294901760, %v111_v2  ;;  %v10526_v31 = vand.u32 4294901760, %v99_v32 }
  0xc1   :  { %1714 = vmatpush.msrb.mxu1 %v10059_v59  ;;  %1824 = vmatpush.msrb.mxu3 %v10075_v38  ;;  %v110_v59 = vld [vmem:[%s16536_s1 + $0x268] sm:$0xff] }
  0xc2   :  { %1682 = vmatpush.msrb.mxu0 %v10171_v6  ;;  %1779 = vmatpush.msrb.mxu2 %v1602_v9  ;;  %v10361_v8 = vand.u32 4294901760, %v110_v59  ;;  %v10377_v14 = vsub.f32 %v111_v2, %v10351_v24  ;;  %v10411_v9 = vsub.f32 %v108_v43, %v10385_v51  ;;  %v105_v6 = vld [vmem:[%s16536_s1 + $0x240] sm:$0xff]  ;;  %v10530_v2 = vsub.f32 %v101_v0, %v10497_v41 }
  0xc3   :  { %1716 = vmatpush.msrb.mxu1 %v10075_v38  ;;  %1826 = vmatpush.msrb.mxu3 %v10092_v30  ;;  %v10364_v38 = vsub.f32 %v112_v53, %v10341_v58  ;;  %v10437_v12 = vand.u32 4294901760, %v105_v6 }
  0xc4   :  { %1685 = vmatpush.msrb.mxu0 %v10187_v22  ;;  %1783 = vmatpush.msrb.mxu2 %v1608_v55  ;;  %v10391_v22 = vsub.f32 %v110_v59, %v10361_v8  ;;  %v98_v59 = vld [vmem:[%s16536_s1 + $0x208] sm:$0xff] }
  0xc5   :  { %1718 = vmatpush.msrb.mxu1 %v10092_v30  ;;  %1828 = vmatpush.msrb.mxu3 %v10114_v48  ;;  %v107_v30 = vld [vmem:[%s16536_s1 + $0x250] sm:$0xff]  ;;  %v10470_v13 = vsub.f32 %v105_v6, %v10437_v12  ;;  %v10546_v6 = vsub.f32 %v100_v20, %v10514_v56 }
  0xc6   :  { %1688 = vmatpush.msrb.mxu0 %v10209_v7  ;;  %1787 = vmatpush.msrb.mxu2 %v1614_v18  ;;  %v10396_v21 = vand.u32 4294901760, %v107_v30  ;;  %v106_v18 = vld [vmem:[%s16536_s1 + $0x248] sm:$0xff]  ;;  %v1901_v7 = vand.u32 4294901760, %v10391_v22 }
  0xc7   :  { %1720 = vmatpush.msrb.mxu1 %v10114_v48  ;;  %1830 = vmatpush.msrb.mxu3 %v10129_v45  ;;  %v10374_v48 = vand.u32 4294901760, %v109_v37  ;;  %v10421_v55 = vand.u32 4294901760, %v106_v18  ;;  %v16594_v42 = vand.u32 4294901760, %v10470_v13 }
  0xc8   :  { %1691 = vmatpush.msrb.mxu0 %v10222_v62  ;;  %1791 = vmatpush.msrb.mxu2 %v1620_v3  ;;  %v10427_v3 = vsub.f32 %v107_v30, %v10396_v21  ;;  %v104_v62 = vld [vmem:[%s16536_s1 + $0x238] sm:$0xff]  ;;  %v1902_v28 = vsub.f32 %v10391_v22, %v1901_v7 }
  0xc9   :  { %1722 = vmatpush.msrb.mxu1 %v10129_v45  ;;  %1832 = vmatpush.msrb.mxu3 %v10144_v26  ;;  %v1889_v45 = vand.u32 4294901760, %v10364_v38  ;;  %v10405_v61 = vsub.f32 %v109_v37, %v10374_v48  ;;  %v1932_v47 = vsub.f32 %v10470_v13, %v16594_v42 }
  0xca   :  { %1694 = vmatpush.msrb.mxu0 %v10237_v29  ;;  %1795 = vmatpush.msrb.mxu2 %v1626_v40  ;;  %v16599_v29 = vand.u32 4294901760, %v10411_v9  ;;  %v16597_v33 = vand.u32 4294901760, %v10427_v3  ;;  %v1903_v46 = vand.u32 4294901760, %v1902_v28  ;;  %v16589_v28 = vand.u32 4294901760, %v10530_v2 }
  0xcb   :  { %1724 = vmatpush.msrb.mxu1 %v10144_v26  ;;  %1834 = vmatpush.msrb.mxu3 %v10157_v17  ;;  %v1895_v26 = vand.u32 4294901760, %v10377_v14  ;;  %v16602_v40 = vand.u32 4294901760, %v10405_v61 }
  0xcc   :  { %1697 = vmatmul.f32.vlgmr.msrb.gmra.mxu0 %v10226_v11  ;;  %1799 = vmatpush.msrb.mxu2 %v1632_v57  ;;  %v10451_v57 = vand.u32 4294901760, %v104_v62  ;;  %v1920_v54 = vsub.f32 %v10427_v3, %v16597_v33 }
  0xcd   :  { %1847 = vmatpush.msra.mxu0 %v10341_v58  ;;  %1726 = vmatpush.msrb.mxu1 %v10157_v17  ;;  %v1890_v17 = vsub.f32 %v10364_v38, %v1889_v45  ;;  %v1908_v34 = vsub.f32 %v10405_v61, %v16602_v40 }
  0xce   :  { %1836 = vmatpush.msrb.mxu3 %v10179_v23  ;;  %1803 = vmatpush.msrb.mxu2 %v1638_v49  ;;  %v10467_v49 = vand.u32 4294901760, %v103_v5  ;;  %v10486_v11 = vsub.f32 %v104_v62, %v10451_v57  ;;  %v1921_v44 = vand.u32 4294901760, %v1920_v54  ;;  %v10553_v62 = vand.u32 4294901760, %v98_v59 }
  0xcf   :  { %1849 = vmatpush.msra.mxu0 %v10351_v24  ;;  %1728 = vmatpush.msrb.mxu1 %v10179_v23  ;;  %v1896_v23 = vsub.f32 %v10377_v14, %v1895_v26  ;;  %v1891_v27 = vand.u32 4294901760, %v1890_v17  ;;  %v1909_v52 = vand.u32 4294901760, %v1908_v34  ;;  %v128_v17 = vld [vmem:[%s16536_s1 + $0x2f8] sm:$0xff]  ;;  %v16591_v54 = vand.u32 4294901760, %v10546_v6 }
  0xd0   :  { %1838 = vmatpush.msrb.mxu3 %v10195_v15  ;;  %1805 = vmatmul.f32.vlgmr.msrb.gmra.mxu2 %v10198_v1  ;;  %v10501_v50 = vsub.f32 %v103_v5, %v10467_v49  ;;  %v16593_v10 = vand.u32 4294901760, %v10486_v11  ;;  %v1933_v5 = vand.u32 4294901760, %v1932_v47  ;;  %v10569_v34 = vand.u32 4294901760, %v128_v17  ;;  %v125_v47 = vld [vmem:[%s16536_s1 + $0x2e0] sm:$0xff] }
  0xd1   :  { %1851 = vmatpush.msra.mxu0 %v10361_v8  ;;  %1990 = vmatpush.msra.mxu2 %v10364_v38  ;;  %v1897_v4 = vand.u32 4294901760, %v1896_v23  ;;  %v97_v23 = vld [vmem:[%s16536_s1 + $0x200] sm:$0xff]  ;;  %v10584_v20 = vsub.f32 %v98_v59, %v10553_v62  ;;  %v120_v38 = vld [vmem:[%s16536_s1 + $0x2b8] sm:$0xff] }
  0xd2   :  { %1730 = vmatpush.msrb.mxu1 %v10195_v15  ;;  %1840 = vmatpush.msrb.mxu3 %v10211_v16  ;;  %v10454_v15 = vsub.f32 %v106_v18, %v10421_v55  ;;  %v16592_v53 = vand.u32 4294901760, %v10501_v50  ;;  %v1938_v30 = vsub.f32 %v10486_v11, %v16593_v10 }
  0xd3   :  { %1842 = vmatmul.f32.vlgmr.msrb.gmra.mxu3 %v10198_v1  ;;  %1853 = vmatpush.msra.mxu0 %v10374_v48  ;;  %v102_v1 = vld [vmem:[%s16536_s1 + $0x228] sm:$0xff] }
  0xd4   :  { %1993 = vmatpush.msra.mxu2 %v10377_v14  ;;  %2043 = vmatpush.msra.mxu3 %v10341_v58  ;;  %v10482_v25 = vand.u32 4294901760, %v102_v1  ;;  %v16596_v19 = vand.u32 4294901760, %v10454_v15  ;;  %v1939_v0 = vand.u32 4294901760, %v1938_v30  ;;  %v119_v14 = vld [vmem:[%s16536_s1 + $0x2b0] sm:$0xff] }
  0xd5   :  { %1732 = vmatpush.msrb.mxu1 %v10211_v16  ;;  %1855 = vmatpush.msra.mxu0 %v10385_v51  ;;  %v1914_v16 = vsub.f32 %v10411_v9, %v16599_v29 }
  0xd6   :  { %1736 = vmatmul.f32.vlgmr.msrb.gmra.mxu1 %v1539_v63  ;;  %1996 = vmatpush.msra.mxu2 %v10391_v22  ;;  %v434_v63 = vld.sshfl [vmem:[#allocation1 + $0x20] sm:$0xff pattern:$0x73625140]  ;;  %v1926_v60 = vsub.f32 %v10454_v15, %v16596_v19  ;;  %v10518_v35 = vsub.f32 %v102_v1, %v10482_v25  ;;  %v10564_v1 = vsub.f32 %v99_v32, %v10526_v31 }
  0xd7   :  { %1892 = vmatpush.msra.mxu1 %v1891_v27  ;;  %2045 = vmatpush.msra.mxu3 %v10351_v24  ;;  %v1915_v39 = vand.u32 4294901760, %v1914_v16  ;;  %v10508_v36 = vand.u32 4294901760, %v434_v63  ;;  %v1944_v27 = vsub.f32 %v10501_v50, %v16592_v53  ;;  %v127_v16 = vld [vmem:[%s16536_s1 + $0x2f0] sm:$0xff]  ;;  %v1956_v32 = vsub.f32 %v10530_v2, %v16589_v28 }
  0xd8   :  { %1857 = vmatpush.msra.mxu0 %v10396_v21  ;;  %1999 = vmatpush.msra.mxu2 %v10405_v61  ;;  %v1927_v43 = vand.u32 4294901760, %v1926_v60  ;;  %v16590_v18 = vand.u32 4294901760, %v10518_v35  ;;  %v16595_v60 = vand.u32 4294901760, %v10564_v1 }
  0xd9   :  { %1898 = vmatpush.msra.mxu1 %v1897_v4  ;;  %2047 = vmatpush.msra.mxu3 %v10361_v8  ;;  %v10538_v37 = vsub.f32 %v434_v63, %v10508_v36  ;;  %v10578_v63 = vand.u32 4294901760, %v97_v23 }
  0xda   :  { %1859 = vmatpush.msra.mxu0 %v10421_v55  ;;  %2002 = vmatpush.msra.mxu2 %v10411_v9 }
  0xdb   :  { %1904 = vmatpush.msra.mxu1 %v1903_v46  ;;  %2049 = vmatpush.msra.mxu3 %v10374_v48  ;;  %v1880_v4 = vand.u32 4294901760, %v10538_v37  ;;  %v1950_v46 = vsub.f32 %v10518_v35, %v16590_v18  ;;  %v124_v18 = vld [vmem:[%s16536_s1 + $0x2d8] sm:$0xff] }
  0xdc   :  { %1861 = vmatpush.msra.mxu0 %v10437_v12  ;;  %2005 = vmatpush.msra.mxu2 %v10427_v3  ;;  %v10634_v42 = vand.u32 4294901760, %v124_v18 }
  0xdd   :  { %1910 = vmatpush.msra.mxu1 %v1909_v52  ;;  %2051 = vmatpush.msra.mxu3 %v10385_v51  ;;  %v126_v52 = vld [vmem:[%s16536_s1 + $0x2e8] sm:$0xff]  ;;  %v1881_v59 = vsub.f32 %v10538_v37, %v1880_v4  ;;  %v1951_v30 = vand.u32 4294901760, %v1950_v46  ;;  %v1957_v46 = vand.u32 4294901760, %v1956_v32 }
  0xde   :  { %1863 = vmatpush.msra.mxu0 %v10451_v57  ;;  %2008 = vmatpush.msra.mxu2 %v10454_v15  ;;  %v10614_v28 = vand.u32 4294901760, %v126_v52 }
  0xdf   :  { %1916 = vmatpush.msra.mxu1 %v1915_v39  ;;  %2053 = vmatpush.msra.mxu3 %v10396_v21  ;;  %v1945_v39 = vand.u32 4294901760, %v1944_v27  ;;  %v10612_v27 = vsub.f32 %v97_v23, %v10578_v63  ;;  %v1968_v23 = vsub.f32 %v10564_v1, %v16595_v60  ;;  %v1882_v53 = vand.u32 4294901760, %v1881_v59 }
  0xe0   :  { %1865 = vmatpush.msra.mxu0 %v10467_v49  ;;  %2011 = vmatpush.msra.mxu2 %v10470_v13  ;;  %v10642_v60 = vsub.f32 %v126_v52, %v10614_v28 }
  0xe1   :  { %1922 = vmatpush.msra.mxu1 %v1921_v44  ;;  %2055 = vmatpush.msra.mxu3 %v10421_v55  ;;  %v10594_v44 = vand.u32 4294901760, %v127_v16  ;;  %v1969_v52 = vand.u32 4294901760, %v1968_v23 }
  0xe2   :  { %1867 = vmatpush.msra.mxu0 %v10482_v25  ;;  %2014 = vmatpush.msra.mxu2 %v10486_v11  ;;  %v16603_v23 = vand.u32 4294901760, %v10642_v60 }
  0xe3   :  { %1928 = vmatpush.msra.mxu1 %v1927_v43  ;;  %2057 = vmatpush.msra.mxu3 %v10437_v12  ;;  %v10605_v43 = vsub.f32 %v128_v17, %v10569_v34  ;;  %v16598_v17 = vand.u32 4294901760, %v10584_v20 }
  0xe4   :  { %1869 = vmatpush.msra.mxu0 %v10497_v41  ;;  %2017 = vmatpush.msra.mxu2 %v10501_v50 }
  0xe5   :  { %1934 = vmatpush.msra.mxu1 %v1933_v5  ;;  %2059 = vmatpush.msra.mxu3 %v10451_v57  ;;  %v1962_v5 = vsub.f32 %v10546_v6, %v16591_v54  ;;  %v10629_v54 = vsub.f32 %v127_v16, %v10594_v44  ;;  %v16600_v10 = vand.u32 4294901760, %v10605_v43  ;;  %v16601_v16 = vand.u32 4294901760, %v10612_v27 }
  0xe6   :  { %1871 = vmatpush.msra.mxu0 %v10514_v56  ;;  %2020 = vmatpush.msra.mxu2 %v10518_v35  ;;  %v1974_v59 = vsub.f32 %v10584_v20, %v16598_v17  ;;  %v10664_v17 = vsub.f32 %v124_v18, %v10634_v42 }
  0xe7   :  { %1940 = vmatpush.msra.mxu1 %v1939_v0  ;;  %2061 = vmatpush.msra.mxu3 %v10467_v49  ;;  %v10622_v0 = vand.u32 4294901760, %v125_v47  ;;  %v1963_v32 = vand.u32 4294901760, %v1962_v5  ;;  %v16604_v5 = vand.u32 4294901760, %v10629_v54 }
  0xe8   :  { %1873 = vmatpush.msra.mxu0 %v10526_v31  ;;  %2023 = vmatpush.msra.mxu2 %v10530_v2  ;;  %v1975_v18 = vand.u32 4294901760, %v1974_v59  ;;  %v16606_v40 = vand.u32 4294901760, %v10664_v17 }
  0xe9   :  { %1946 = vmatpush.msra.mxu1 %v1945_v39  ;;  %2063 = vmatpush.msra.mxu3 %v10482_v25  ;;  %v123_v39 = vld [vmem:[%s16536_s1 + $0x2d0] sm:$0xff]  ;;  %v10650_v19 = vsub.f32 %v125_v47, %v10622_v0  ;;  %v2231_v47 = vsub.f32 %v10605_v43, %v16600_v10 }
  0xea   :  { %1875 = vmatpush.msra.mxu0 %v10553_v62  ;;  %2026 = vmatpush.msra.mxu2 %v10546_v6  ;;  %v10657_v33 = vand.u32 4294901760, %v123_v39 }
  0xeb   :  { %1952 = vmatpush.msra.mxu1 %v1951_v30  ;;  %2065 = vmatpush.msra.mxu3 %v10497_v41  ;;  %v122_v30 = vld [vmem:[%s16536_s1 + $0x2c8] sm:$0xff]  ;;  %v16605_v10 = vand.u32 4294901760, %v10650_v19  ;;  %v2232_v59 = vand.u32 4294901760, %v2231_v47  ;;  %v10708_v47 = vand.u32 4294901760, %v120_v38 }
  0xec   :  { %1877 = vmatpush.msra.mxu0 %v10578_v63  ;;  %2029 = vmatpush.msra.mxu2 %v10564_v1  ;;  %v10675_v29 = vand.u32 4294901760, %v122_v30 }
  0xed   :  { %1958 = vmatpush.msra.mxu1 %v1957_v46  ;;  %2067 = vmatpush.msra.mxu3 %v10514_v56  ;;  %v121_v46 = vld [vmem:[%s16536_s1 + $0x2c0] sm:$0xff]  ;;  %v2249_v22 = vsub.f32 %v10650_v19, %v16605_v10  ;;  %v2255_v10 = vsub.f32 %v10664_v17, %v16606_v40 }
  0xee   :  { %1883 = vmatmul.f32.vlgmr.msra.gmra.mxu0 %v1882_v53  ;;  %2032 = vmatpush.msra.mxu2 %v10584_v20  ;;  %v1980_v53 = vsub.f32 %v10612_v27, %v16601_v16  ;;  %v10691_v16 = vand.u32 4294901760, %v121_v46 }
  0xef   :  { %2084 = vmatpush.msrb.mxu0 %v1889_v45  ;;  %1964 = vmatpush.msra.mxu1 %v1963_v32  ;;  %v2237_v45 = vsub.f32 %v10629_v54, %v16604_v5  ;;  %v10689_v32 = vsub.f32 %v123_v39, %v10657_v33  ;;  %v2243_v39 = vsub.f32 %v10642_v60, %v16603_v23  ;;  %v10725_v5 = vand.u32 4294901760, %v119_v14 }
  0xf0   :  { %2069 = vmatpush.msra.mxu3 %v10526_v31  ;;  %2035 = vmatpush.msra.mxu2 %v10612_v27  ;;  %v2256_v40 = vand.u32 4294901760, %v2255_v10  ;;  %v16884_v10 = vand.u32 4294901760, %v10454_v15  ;;  %v114_v15 = vld [vmem:[%s16536_s1 + $0x288] sm:$0xff] }
  0xf1   :  { %2088 = vmatpush.msrb.mxu0 %v1895_v26  ;;  %1970 = vmatpush.msra.mxu1 %v1969_v52  ;;  %v1981_v26 = vand.u32 4294901760, %v1980_v53  ;;  %v10706_v52 = vsub.f32 %v122_v30, %v10675_v29  ;;  %v16881_v53 = vand.u32 4294901760, %v10405_v61  ;;  %v2238_v30 = vand.u32 4294901760, %v2237_v45  ;;  %v117_v61 = vld [vmem:[%s16536_s1 + $0x2a0] sm:$0xff] }
  0xf2   :  { %2071 = vmatpush.msra.mxu3 %v10553_v62  ;;  %2038 = vmatmul.f32.vlgmr.msra.gmra.mxu2 %v10538_v37  ;;  %v16607_v23 = vand.u32 4294901760, %v10689_v32  ;;  %v16882_v37 = vand.u32 4294901760, %v10411_v9  ;;  %v10738_v45 = vsub.f32 %v120_v38, %v10708_v47 }
  0xf3   :  { %2092 = vmatpush.msrb.mxu0 %v1901_v7  ;;  %2188 = vmatpush.msrb.mxu2 %v10569_v34  ;;  %v118_v7 = vld [vmem:[%s16536_s1 + $0x2a8] sm:$0xff] }
  0xf4   :  { %1976 = vmatpush.msra.mxu1 %v1975_v18  ;;  %2073 = vmatpush.msra.mxu3 %v10578_v63  ;;  %v10723_v18 = vsub.f32 %v121_v46, %v10691_v16  ;;  %v16608_v46 = vand.u32 4294901760, %v10706_v52  ;;  %v2261_v9 = vsub.f32 %v10689_v32, %v16607_v23 }
  0xf5   :  { %2077 = vmatmul.f32.vlgmr.msra.gmra.mxu3 %v1880_v4  ;;  %2096 = vmatpush.msrb.mxu0 %v16881_v53  ;;  %v2244_v4 = vand.u32 4294901760, %v2243_v39  ;;  %v10740_v53 = vand.u32 4294901760, %v118_v7  ;;  %v10753_v39 = vsub.f32 %v119_v14, %v10725_v5 }
  0xf6   :  { %2190 = vmatpush.msrb.mxu2 %v10594_v44  ;;  %2233 = vmatpush.msrb.mxu3 %v2232_v59  ;;  %v2250_v59 = vand.u32 4294901760, %v2249_v22  ;;  %v16609_v38 = vand.u32 4294901760, %v10723_v18  ;;  %v16883_v22 = vand.u32 4294901760, %v10427_v3  ;;  %v115_v3 = vld [vmem:[%s16536_s1 + $0x290] sm:$0xff] }
  0xf7   :  { %1982 = vmatpush.msra.mxu1 %v1981_v26  ;;  %2100 = vmatpush.msrb.mxu0 %v16882_v37  ;;  %v116_v26 = vld [vmem:[%s16536_s1 + $0x298] sm:$0xff]  ;;  %v10755_v37 = vand.u32 4294901760, %v117_v61  ;;  %v10766_v14 = vsub.f32 %v118_v7, %v10740_v53 }
  0xf8   :  { %1984 = vmatmul.f32.vlgmr.msra.gmra.mxu1 %v10508_v36  ;;  %2192 = vmatpush.msrb.mxu2 %v10614_v28  ;;  %v10768_v23 = vand.u32 4294901760, %v116_v26  ;;  %v2273_v7 = vsub.f32 %v10723_v18, %v16609_v38 }
  0xf9   :  { %2151 = vmatpush.msrb.mxu1 %v10341_v58  ;;  %2239 = vmatpush.msrb.mxu3 %v2238_v30  ;;  %v2267_v58 = vsub.f32 %v10706_v52, %v16608_v46  ;;  %v16610_v30 = vand.u32 4294901760, %v10738_v45  ;;  %v16885_v46 = vand.u32 4294901760, %v10470_v13  ;;  %v113_v13 = vld [vmem:[%s16536_s1 + $0x280] sm:$0xff] }
  0xfa   :  { %2104 = vmatpush.msrb.mxu0 %v16883_v22  ;;  %2194 = vmatpush.msrb.mxu2 %v10622_v0  ;;  %v10782_v22 = vsub.f32 %v117_v61, %v10755_v37  ;;  %v10798_v38 = vsub.f32 %v116_v26, %v10768_v23 }
  0xfb   :  { %2153 = vmatpush.msrb.mxu1 %v10351_v24  ;;  %2245 = vmatpush.msrb.mxu3 %v2244_v4  ;;  %v2262_v24 = vand.u32 4294901760, %v2261_v9  ;;  %v16611_v4 = vand.u32 4294901760, %v10753_v39  ;;  %v2279_v61 = vsub.f32 %v10738_v45, %v16610_v30  ;;  %v16887_v9 = vand.u32 4294901760, %v10501_v50 }
  0xfc   :  { %2108 = vmatpush.msrb.mxu0 %v16884_v10  ;;  %2196 = vmatpush.msrb.mxu2 %v10634_v42  ;;  %v435_v10 = vld.sshfl [vmem:[#allocation1 + $0x28] sm:$0xff pattern:$0x73625140]  ;;  %v2296_v30 = vand.u32 4294901760, %v10782_v22  ;;  %v16889_v50 = vand.u32 4294901760, %v10518_v35 }
  0xfd   :  { %2155 = vmatpush.msrb.mxu1 %v10361_v8  ;;  %2251 = vmatpush.msrb.mxu3 %v2250_v59  ;;  %v10790_v8 = vand.u32 4294901760, %v115_v3  ;;  %v2268_v59 = vand.u32 4294901760, %v2267_v58  ;;  %v2274_v58 = vand.u32 4294901760, %v2273_v7  ;;  %v2285_v26 = vsub.f32 %v10753_v39, %v16611_v4 }
  0xfe   :  { %2112 = vmatpush.msrb.mxu0 %v16885_v46  ;;  %2198 = vmatpush.msrb.mxu2 %v10657_v33  ;;  %v16886_v46 = vand.u32 4294901760, %v10486_v11  ;;  %v2302_v4 = vand.u32 4294901760, %v10798_v38 }
  0xff   :  { %2157 = vmatpush.msrb.mxu1 %v10374_v48  ;;  %2257 = vmatpush.msrb.mxu3 %v2256_v40  ;;  %v10806_v48 = vand.u32 4294901760, %v114_v15  ;;  %v10808_v40 = vand.u32 4294901760, %v435_v10  ;;  %v10819_v11 = vsub.f32 %v115_v3, %v10790_v8 }
 0x100   :  { %2116 = vmatpush.msrb.mxu0 %v16886_v46  ;;  %2200 = vmatpush.msrb.mxu2 %v10675_v29  ;;  %v10821_v46 = vand.u32 4294901760, %v113_v13 }
 0x101   :  { %2159 = vmatpush.msrb.mxu1 %v10385_v51  ;;  %2263 = vmatpush.msrb.mxu3 %v2262_v24  ;;  %v2280_v51 = vand.u32 4294901760, %v2279_v61  ;;  %v16888_v24 = vand.u32 4294901760, %v10766_v14  ;;  %v10832_v3 = vsub.f32 %v114_v15, %v10806_v48  ;;  %v16890_v61 = vand.u32 4294901760, %v10530_v2 }
 0x102   :  { %2120 = vmatpush.msrb.mxu0 %v16887_v9  ;;  %2202 = vmatpush.msrb.mxu2 %v10691_v16  ;;  %v10835_v9 = vsub.f32 %v435_v10, %v10808_v40  ;;  %v2308_v35 = vand.u32 4294901760, %v10819_v11  ;;  %v10846_v15 = vsub.f32 %v113_v13, %v10821_v46  ;;  %v2303_v10 = vsub.f32 %v10798_v38, %v2302_v4 }
 0x103   :  { %2161 = vmatpush.msrb.mxu1 %v10396_v21  ;;  %2269 = vmatpush.msrb.mxu3 %v2268_v59  ;;  %v2291_v7 = vsub.f32 %v10766_v14, %v16888_v24  ;;  %v2286_v21 = vand.u32 4294901760, %v2285_v26  ;;  %v2297_v59 = vsub.f32 %v10782_v22, %v2296_v30  ;;  %v2314_v2 = vand.u32 4294901760, %v10832_v3 }
 0x104   :  { %2124 = vmatpush.msrb.mxu0 %v16889_v50  ;;  %2204 = vmatpush.msrb.mxu2 %v10708_v47  ;;  %v2221_v26 = vand.u32 4294901760, %v10835_v9  ;;  %v2304_v24 = vand.u32 4294901760, %v2303_v10 }
 0x105   :  { %2163 = vmatpush.msrb.mxu1 %v10421_v55  ;;  %2275 = vmatpush.msrb.mxu3 %v2274_v58  ;;  %v2292_v55 = vand.u32 4294901760, %v2291_v7  ;;  %v16891_v58 = vand.u32 4294901760, %v10546_v6  ;;  %v2298_v13 = vand.u32 4294901760, %v2297_v59  ;;  %v2309_v6 = vsub.f32 %v10819_v11, %v2308_v35  ;;  %v136_v59 = vld [vmem:[%s16536_s1 + $0x338] sm:$0xff] }
 0x106   :  { %2128 = vmatpush.msrb.mxu0 %v16890_v61  ;;  %2206 = vmatpush.msrb.mxu2 %v10725_v5  ;;  %v16893_v7 = vand.u32 4294901760, %v10584_v20 }
 0x107   :  { %2165 = vmatpush.msrb.mxu1 %v10437_v12  ;;  %2281 = vmatpush.msrb.mxu3 %v2280_v51  ;;  %v16892_v12 = vand.u32 4294901760, %v10564_v1  ;;  %v2320_v51 = vand.u32 4294901760, %v10846_v15  ;;  %v2222_v1 = vsub.f32 %v10835_v9, %v2221_v26  ;;  %v2310_v20 = vand.u32 4294901760, %v2309_v6 }
 0x108   :  { %2132 = vmatpush.msrb.mxu0 %v16891_v58  ;;  %2208 = vmatpush.msrb.mxu2 %v10740_v53 }
 0x109   :  { %2167 = vmatpush.msrb.mxu1 %v10451_v57  ;;  %2287 = vmatpush.msrb.mxu3 %v2286_v21  ;;  %v2315_v57 = vsub.f32 %v10832_v3, %v2314_v2  ;;  %v2321_v50 = vsub.f32 %v10846_v15, %v2320_v51 }
 0x10a   :  { %2136 = vmatpush.msrb.mxu0 %v16892_v12  ;;  %2210 = vmatpush.msrb.mxu2 %v10755_v37 }
 0x10b   :  { %2169 = vmatpush.msrb.mxu1 %v10467_v49  ;;  %2293 = vmatpush.msrb.mxu3 %v2292_v55  ;;  %v16894_v49 = vand.u32 4294901760, %v10612_v27  ;;  %v2316_v21 = vand.u32 4294901760, %v2315_v57  ;;  %v2322_v27 = vand.u32 4294901760, %v2321_v50  ;;  %v135_v55 = vld [vmem:[%s16536_s1 + $0x330] sm:$0xff]  ;;  %v132_v50 = vld [vmem:[%s16536_s1 + $0x318] sm:$0xff] }
 0x10c   :  { %2140 = vmatpush.msrb.mxu0 %v16893_v7  ;;  %2212 = vmatpush.msrb.mxu2 %v10768_v23  ;;  %v133_v7 = vld [vmem:[%s16536_s1 + $0x320] sm:$0xff] }
 0x10d   :  { %2171 = vmatpush.msrb.mxu1 %v10482_v25  ;;  %2299 = vmatpush.msrb.mxu3 %v2298_v13  ;;  %v2223_v25 = vand.u32 4294901760, %v2222_v1 }
 0x10e   :  { %2144 = vmatpush.msrb.mxu0 %v16894_v49  ;;  %2214 = vmatpush.msrb.mxu2 %v10790_v8 }
 0x10f   :  { %2173 = vmatpush.msrb.mxu1 %v10497_v41  ;;  %2305 = vmatpush.msrb.mxu3 %v2304_v24  ;;  %v16895_v41 = vand.u32 4294901760, %v10605_v43 }
 0x110   :  { %2146 = vmatmul.f32.vlgmr.msrb.gmra.mxu0 %v10508_v36  ;;  %2216 = vmatpush.msrb.mxu2 %v10806_v48 }
 0x111   :  { %2331 = vmatpush.msra.mxu0 %v10605_v43  ;;  %2175 = vmatpush.msrb.mxu1 %v10514_v56  ;;  %v16896_v56 = vand.u32 4294901760, %v10629_v54 }
 0x112   :  { %2311 = vmatpush.msrb.mxu3 %v2310_v20  ;;  %2218 = vmatpush.msrb.mxu2 %v10821_v46 }
 0x113   :  { %2334 = vmatpush.msra.mxu0 %v10629_v54  ;;  %2177 = vmatpush.msrb.mxu1 %v10526_v31  ;;  %v16897_v31 = vand.u32 4294901760, %v10642_v60  ;;  %v16904_v54 = vand.u32 4294901760, %v10753_v39 }
 0x114   :  { %2317 = vmatpush.msrb.mxu3 %v2316_v21  ;;  %2224 = vmatmul.f32.vlgmr.msrb.gmra.mxu2 %v2223_v25  ;;  %v11103_v25 = vand.u32 4294901760, %v133_v7 }
 0x115   :  { %2337 = vmatpush.msra.mxu0 %v10642_v60  ;;  %2425 = vmatpush.msra.mxu2 %v16895_v41 }
 0x116   :  { %2179 = vmatpush.msrb.mxu1 %v10553_v62  ;;  %2323 = vmatpush.msrb.mxu3 %v2322_v27  ;;  %v16898_v62 = vand.u32 4294901760, %v10650_v19 }
 0x117   :  { %2325 = vmatmul.f32.vlgmr.msrb.gmra.mxu3 %v10808_v40  ;;  %2340 = vmatpush.msra.mxu0 %v10650_v19  ;;  %v16901_v19 = vand.u32 4294901760, %v10706_v52 }
 0x118   :  { %2429 = vmatpush.msra.mxu2 %v16896_v56  ;;  %2492 = vmatpush.msra.mxu3 %v10569_v34 }
 0x119   :  { %2181 = vmatpush.msrb.mxu1 %v10578_v63  ;;  %2343 = vmatpush.msra.mxu0 %v10664_v17  ;;  %v16903_v63 = vand.u32 4294901760, %v10738_v45 }
 0x11a   :  { %2183 = vmatmul.f32.vlgmr.msrb.gmra.mxu1 %v10508_v36  ;;  %2433 = vmatpush.msra.mxu2 %v16897_v31  ;;  %v16899_v36 = vand.u32 4294901760, %v10664_v17  ;;  %v141_v17 = vld [vmem:[%s16536_s1 + $0x360] sm:$0xff]  ;;  %v131_v31 = vld [vmem:[%s16536_s1 + $0x310] sm:$0xff] }
 0x11b   :  { %2384 = vmatpush.msra.mxu1 %v10569_v34  ;;  %2494 = vmatpush.msra.mxu3 %v10594_v44  ;;  %v16900_v34 = vand.u32 4294901760, %v10689_v32 }
 0x11c   :  { %2346 = vmatpush.msra.mxu0 %v10689_v32  ;;  %2437 = vmatpush.msra.mxu2 %v16898_v62  ;;  %v140_v32 = vld [vmem:[%s16536_s1 + $0x358] sm:$0xff] }
 0x11d   :  { %2386 = vmatpush.msra.mxu1 %v10594_v44  ;;  %2496 = vmatpush.msra.mxu3 %v10614_v28  ;;  %v142_v44 = vld [vmem:[%s16536_s1 + $0x368] sm:$0xff] }
 0x11e   :  { %2349 = vmatpush.msra.mxu0 %v10706_v52  ;;  %2441 = vmatpush.msra.mxu2 %v16899_v36 }
 0x11f   :  { %2388 = vmatpush.msra.mxu1 %v10614_v28  ;;  %2498 = vmatpush.msra.mxu3 %v10622_v0  ;;  %v16902_v28 = vand.u32 4294901760, %v10723_v18 }
 0x120   :  { %2352 = vmatpush.msra.mxu0 %v10723_v18  ;;  %2445 = vmatpush.msra.mxu2 %v16900_v34  ;;  %v10991_v18 = vand.u32 4294901760, %v140_v32  ;;  %v11120_v34 = vand.u32 4294901760, %v132_v50 }
 0x121   :  { %2390 = vmatpush.msra.mxu1 %v10622_v0  ;;  %2500 = vmatpush.msra.mxu3 %v10634_v42  ;;  %v10967_v0 = vand.u32 4294901760, %v142_v44 }
 0x122   :  { %2355 = vmatpush.msra.mxu0 %v10738_v45  ;;  %2449 = vmatpush.msra.mxu2 %v16901_v19 }
 0x123   :  { %2392 = vmatpush.msra.mxu1 %v10634_v42  ;;  %2502 = vmatpush.msra.mxu3 %v10657_v33  ;;  %v144_v42 = vld [vmem:[%s16536_s1 + $0x378] sm:$0xff] }
 0x124   :  { %2358 = vmatpush.msra.mxu0 %v10753_v39  ;;  %2453 = vmatpush.msra.mxu2 %v16902_v28  ;;  %v10947_v60 = vand.u32 4294901760, %v144_v42  ;;  %v138_v39 = vld [vmem:[%s16536_s1 + $0x348] sm:$0xff] }
 0x125   :  { %2394 = vmatpush.msra.mxu1 %v10657_v33  ;;  %2504 = vmatpush.msra.mxu3 %v10675_v29  ;;  %v143_v33 = vld [vmem:[%s16536_s1 + $0x370] sm:$0xff] }
 0x126   :  { %2361 = vmatpush.msra.mxu0 %v10766_v14  ;;  %2457 = vmatpush.msra.mxu2 %v16903_v63  ;;  %v10957_v43 = vand.u32 4294901760, %v143_v33 }
 0x127   :  { %2396 = vmatpush.msra.mxu1 %v10675_v29  ;;  %2506 = vmatpush.msra.mxu3 %v10691_v16  ;;  %v16905_v29 = vand.u32 4294901760, %v10766_v14  ;;  %v11017_v14 = vsub.f32 %v140_v32, %v10991_v18 }
 0x128   :  { %2364 = vmatpush.msra.mxu0 %v10782_v22  ;;  %2461 = vmatpush.msra.mxu2 %v16904_v54  ;;  %v10983_v52 = vsub.f32 %v143_v33, %v10957_v43  ;;  %v11027_v22 = vand.u32 4294901760, %v138_v39  ;;  %v11132_v54 = vand.u32 4294901760, %v131_v31 }
 0x129   :  { %2398 = vmatpush.msra.mxu1 %v10691_v16  ;;  %2508 = vmatpush.msra.mxu3 %v10708_v47  ;;  %v10970_v16 = vsub.f32 %v144_v42, %v10947_v60 }
 0x12a   :  { %2367 = vmatpush.msra.mxu0 %v10798_v38  ;;  %2465 = vmatpush.msra.mxu2 %v16905_v29  ;;  %v11136_v29 = vsub.f32 %v133_v7, %v11103_v25 }
 0x12b   :  { %2400 = vmatpush.msra.mxu1 %v10708_v47  ;;  %2510 = vmatpush.msra.mxu3 %v10725_v5  ;;  %v139_v47 = vld [vmem:[%s16536_s1 + $0x350] sm:$0xff]  ;;  %v2571_v45 = vand.u32 4294901760, %v10970_v16 }
 0x12c   :  { %2370 = vmatpush.msra.mxu0 %v10819_v11  ;;  %2469 = vmatpush.msra.mxu2 %v2296_v30  ;;  %v11002_v38 = vand.u32 4294901760, %v139_v47 }
 0x12d   :  { %2402 = vmatpush.msra.mxu1 %v10725_v5  ;;  %2512 = vmatpush.msra.mxu3 %v10740_v53  ;;  %v10980_v5 = vand.u32 4294901760, %v141_v17 }
 0x12e   :  { %2373 = vmatpush.msra.mxu0 %v10832_v3  ;;  %2473 = vmatpush.msra.mxu2 %v2302_v4  ;;  %v137_v4 = vld [vmem:[%s16536_s1 + $0x340] sm:$0xff]  ;;  %v11033_v3 = vsub.f32 %v139_v47, %v11002_v38 }
 0x12f   :  { %2404 = vmatpush.msra.mxu1 %v10740_v53  ;;  %2514 = vmatpush.msra.mxu3 %v10755_v37  ;;  %v10997_v53 = vsub.f32 %v142_v44, %v10967_v0  ;;  %v11011_v30 = vsub.f32 %v141_v17, %v10980_v5  ;;  %v11043_v61 = vand.u32 4294901760, %v137_v4  ;;  %v130_v44 = vld [vmem:[%s16536_s1 + $0x308] sm:$0xff] }
 0x130   :  { %2376 = vmatpush.msra.mxu0 %v10846_v15  ;;  %2477 = vmatpush.msra.mxu2 %v2308_v35  ;;  %v16622_v15 = vand.u32 4294901760, %v11017_v14  ;;  %v16620_v13 = vand.u32 4294901760, %v11033_v3 }
 0x131   :  { %2406 = vmatpush.msra.mxu1 %v10755_v37  ;;  %2516 = vmatpush.msra.mxu3 %v10768_v23  ;;  %v2577_v37 = vand.u32 4294901760, %v10983_v52  ;;  %v2583_v11 = vand.u32 4294901760, %v10997_v53  ;;  %v16625_v35 = vand.u32 4294901760, %v11011_v30  ;;  %v11076_v24 = vsub.f32 %v137_v4, %v11043_v61 }
 0x132   :  { %2379 = vmatmul.f32.vlgmr.msra.gmra.mxu0 %v10835_v9  ;;  %2481 = vmatpush.msra.mxu2 %v2314_v2  ;;  %v11057_v2 = vand.u32 4294901760, %v136_v59  ;;  %v2602_v20 = vsub.f32 %v11033_v3, %v16620_v13  ;;  %v11152_v4 = vsub.f32 %v132_v50, %v11120_v34 }
 0x133   :  { %2529 = vmatpush.msrb.mxu0 %v10947_v60  ;;  %2408 = vmatpush.msra.mxu1 %v10768_v23  ;;  %v2572_v23 = vsub.f32 %v10970_v16, %v2571_v45  ;;  %v2584_v58 = vsub.f32 %v10997_v53, %v2583_v11  ;;  %v2590_v6 = vsub.f32 %v11011_v30, %v16625_v35  ;;  %v16617_v27 = vand.u32 4294901760, %v11076_v24 }
 0x134   :  { %2518 = vmatpush.msra.mxu3 %v10790_v8  ;;  %2485 = vmatpush.msra.mxu2 %v2320_v51  ;;  %v11073_v51 = vand.u32 4294901760, %v135_v55  ;;  %v11092_v9 = vsub.f32 %v136_v59, %v11057_v2  ;;  %v2603_v63 = vand.u32 4294901760, %v2602_v20  ;;  %v11159_v59 = vand.u32 4294901760, %v130_v44 }
 0x135   :  { %2531 = vmatpush.msrb.mxu0 %v10957_v43  ;;  %2410 = vmatpush.msra.mxu1 %v10790_v8  ;;  %v2578_v8 = vsub.f32 %v10983_v52, %v2577_v37  ;;  %v2573_v10 = vand.u32 4294901760, %v2572_v23  ;;  %v2585_v57 = vand.u32 4294901760, %v2584_v58  ;;  %v2591_v21 = vand.u32 4294901760, %v2590_v6  ;;  %v160_v23 = vld [vmem:[%s16536_s1 + $0x3f8] sm:$0xff] }
 0x136   :  { %2520 = vmatpush.msra.mxu3 %v10806_v48  ;;  %2487 = vmatmul.f32.vlgmr.msra.gmra.mxu2 %v10808_v40  ;;  %v11107_v41 = vsub.f32 %v135_v55, %v11073_v51  ;;  %v16616_v19 = vand.u32 4294901760, %v11092_v9  ;;  %v2614_v42 = vsub.f32 %v11076_v24, %v16617_v27  ;;  %v16612_v58 = vand.u32 4294901760, %v11136_v29 }
 0x137   :  { %2533 = vmatpush.msrb.mxu0 %v10967_v0  ;;  %2672 = vmatpush.msrb.mxu2 %v10970_v16  ;;  %v2579_v12 = vand.u32 4294901760, %v2578_v8  ;;  %v129_v8 = vld [vmem:[%s16536_s1 + $0x300] sm:$0xff]  ;;  %v11175_v6 = vand.u32 4294901760, %v160_v23  ;;  %v16614_v20 = vand.u32 4294901760, %v11152_v4  ;;  %v11190_v50 = vsub.f32 %v130_v44, %v11159_v59  ;;  %v152_v16 = vld [vmem:[%s16536_s1 + $0x3b8] sm:$0xff] }
 0x138   :  { %2412 = vmatpush.msra.mxu1 %v10806_v48  ;;  %2522 = vmatpush.msra.mxu3 %v10821_v46  ;;  %v11060_v48 = vsub.f32 %v138_v39, %v11027_v22  ;;  %v16615_v33 = vand.u32 4294901760, %v11107_v41  ;;  %v2620_v47 = vsub.f32 %v11092_v9, %v16616_v19  ;;  %v2615_v55 = vand.u32 4294901760, %v2614_v42  ;;  %v157_v42 = vld [vmem:[%s16536_s1 + $0x3e0] sm:$0xff] }
 0x139   :  { %2524 = vmatmul.f32.vlgmr.msra.gmra.mxu3 %v10808_v40  ;;  %2535 = vmatpush.msrb.mxu0 %v10980_v5  ;;  %v134_v40 = vld [vmem:[%s16536_s1 + $0x328] sm:$0xff] }
 0x13a   :  { %2675 = vmatpush.msrb.mxu2 %v10983_v52  ;;  %2725 = vmatpush.msrb.mxu3 %v10947_v60  ;;  %v11088_v1 = vand.u32 4294901760, %v134_v40  ;;  %v16619_v49 = vand.u32 4294901760, %v11060_v48  ;;  %v2621_v7 = vand.u32 4294901760, %v2620_v47  ;;  %v151_v52 = vld [vmem:[%s16536_s1 + $0x3b0] sm:$0xff] }
 0x13b   :  { %2414 = vmatpush.msra.mxu1 %v10821_v46  ;;  %2537 = vmatpush.msrb.mxu0 %v10991_v18  ;;  %v2596_v46 = vsub.f32 %v11017_v14, %v16622_v15  ;;  %v11336_v35 = vand.u32 4294901760, %v151_v52 }
 0x13c   :  { %2418 = vmatmul.f32.vlgmr.msra.gmra.mxu1 %v2221_v26  ;;  %2678 = vmatpush.msrb.mxu2 %v10997_v53  ;;  %v436_v26 = vld.sshfl [vmem:[#allocation1 + $0x30] sm:$0xff pattern:$0x73625140]  ;;  %v2608_v36 = vsub.f32 %v11060_v48, %v16619_v49  ;;  %v11124_v28 = vsub.f32 %v134_v40, %v11088_v1  ;;  %v11170_v40 = vsub.f32 %v131_v31, %v11132_v54 }
 0x13d   :  { %2574 = vmatpush.msrb.mxu1 %v2573_v10  ;;  %2727 = vmatpush.msrb.mxu3 %v10957_v43  ;;  %v2597_v56 = vand.u32 4294901760, %v2596_v46  ;;  %v11114_v62 = vand.u32 4294901760, %v436_v26  ;;  %v2626_v10 = vsub.f32 %v11107_v41, %v16615_v33  ;;  %v159_v46 = vld [vmem:[%s16536_s1 + $0x3f0] sm:$0xff]  ;;  %v2638_v31 = vsub.f32 %v11136_v29, %v16612_v58 }
 0x13e   :  { %2539 = vmatpush.msrb.mxu0 %v11002_v38  ;;  %2681 = vmatpush.msrb.mxu2 %v11011_v30  ;;  %v2609_v32 = vand.u32 4294901760, %v2608_v36  ;;  %v16613_v39 = vand.u32 4294901760, %v11124_v28  ;;  %v16618_v36 = vand.u32 4294901760, %v11170_v40 }
 0x13f   :  { %2580 = vmatpush.msrb.mxu1 %v2579_v12  ;;  %2729 = vmatpush.msrb.mxu3 %v10967_v0  ;;  %v11144_v17 = vsub.f32 %v436_v26, %v11114_v62  ;;  %v11184_v26 = vand.u32 4294901760, %v129_v8 }
 0x140   :  { %2541 = vmatpush.msrb.mxu0 %v11027_v22  ;;  %2684 = vmatpush.msrb.mxu2 %v11017_v14 }
 0x141   :  { %2586 = vmatpush.msrb.mxu1 %v2585_v57  ;;  %2731 = vmatpush.msrb.mxu3 %v10980_v5  ;;  %v2562_v12 = vand.u32 4294901760, %v11144_v17  ;;  %v2632_v57 = vsub.f32 %v11124_v28, %v16613_v39  ;;  %16906 = vst [vmem:[#allocation5_spill] sm:$0xff] %v11184_v26  ;;  %v156_v39 = vld [vmem:[%s16536_s1 + $0x3d8] sm:$0xff] }
 0x142   :  { %2543 = vmatpush.msrb.mxu0 %v11043_v61  ;;  %2687 = vmatpush.msrb.mxu2 %v11033_v3  ;;  %v11240_v27 = vand.u32 4294901760, %v156_v39 }
 0x143   :  { %2592 = vmatpush.msrb.mxu1 %v2591_v21  ;;  %2733 = vmatpush.msrb.mxu3 %v10991_v18  ;;  %v158_v21 = vld [vmem:[%s16536_s1 + $0x3e8] sm:$0xff]  ;;  %v2563_v44 = vsub.f32 %v11144_v17, %v2562_v12  ;;  %v2633_v47 = vand.u32 4294901760, %v2632_v57  ;;  %v2639_v57 = vand.u32 4294901760, %v2638_v31 }
 0x144   :  { %2545 = vmatpush.msrb.mxu0 %v11057_v2  ;;  %2690 = vmatpush.msrb.mxu2 %v11060_v48  ;;  %v11220_v58 = vand.u32 4294901760, %v158_v21 }
 0x145   :  { %2598 = vmatpush.msrb.mxu1 %v2597_v56  ;;  %2735 = vmatpush.msrb.mxu3 %v11002_v38  ;;  %v2627_v56 = vand.u32 4294901760, %v2626_v10  ;;  %v11218_v10 = vsub.f32 %v129_v8, %v11184_v26  ;;  %v2650_v8 = vsub.f32 %v11170_v40, %v16618_v36  ;;  %v2564_v33 = vand.u32 4294901760, %v2563_v44 }
 0x146   :  { %2547 = vmatpush.msrb.mxu0 %v11073_v51  ;;  %2693 = vmatpush.msrb.mxu2 %v11076_v24  ;;  %v11248_v36 = vsub.f32 %v158_v21, %v11220_v58 }
 0x147   :  { %2604 = vmatpush.msrb.mxu1 %v2603_v63  ;;  %2737 = vmatpush.msrb.mxu3 %v11027_v22  ;;  %v11200_v63 = vand.u32 4294901760, %v159_v46  ;;  %v2651_v21 = vand.u32 4294901760, %v2650_v8 }
 0x148   :  { %2549 = vmatpush.msrb.mxu0 %v11088_v1  ;;  %2696 = vmatpush.msrb.mxu2 %v11092_v9  ;;  %v16626_v8 = vand.u32 4294901760, %v11248_v36 }
 0x149   :  { %2610 = vmatpush.msrb.mxu1 %v2609_v32  ;;  %2739 = vmatpush.msrb.mxu3 %v11043_v61  ;;  %v11211_v32 = vsub.f32 %v160_v23, %v11175_v6  ;;  %v16621_v23 = vand.u32 4294901760, %v11190_v50 }
 0x14a   :  { %2551 = vmatpush.msrb.mxu0 %v11103_v25  ;;  %2699 = vmatpush.msrb.mxu2 %v11107_v41 }
 0x14b   :  { %2616 = vmatpush.msrb.mxu1 %v2615_v55  ;;  %2741 = vmatpush.msrb.mxu3 %v11057_v2  ;;  %v2644_v55 = vsub.f32 %v11152_v4, %v16614_v20  ;;  %v11235_v20 = vsub.f32 %v159_v46, %v11200_v63  ;;  %v16623_v19 = vand.u32 4294901760, %v11211_v32  ;;  %v16624_v46 = vand.u32 4294901760, %v11218_v10 }
 0x14c   :  { %2553 = vmatpush.msrb.mxu0 %v11120_v34  ;;  %2702 = vmatpush.msrb.mxu2 %v11124_v28  ;;  %v2656_v44 = vsub.f32 %v11190_v50, %v16621_v23  ;;  %v11270_v23 = vsub.f32 %v156_v39, %v11240_v27 }
 0x14d   :  { %2622 = vmatpush.msrb.mxu1 %v2621_v7  ;;  %2743 = vmatpush.msrb.mxu3 %v11073_v51  ;;  %v11228_v7 = vand.u32 4294901760, %v157_v42  ;;  %v2645_v31 = vand.u32 4294901760, %v2644_v55  ;;  %v16627_v55 = vand.u32 4294901760, %v11235_v20 }
 0x14e   :  { %2555 = vmatpush.msrb.mxu0 %v11132_v54  ;;  %2705 = vmatpush.msrb.mxu2 %v11136_v29  ;;  %v2657_v39 = vand.u32 4294901760, %v2656_v44 }
 0x14f   :  { %2628 = vmatpush.msrb.mxu1 %v2627_v56  ;;  %2745 = vmatpush.msrb.mxu3 %v11088_v1  ;;  %v155_v56 = vld [vmem:[%s16536_s1 + $0x3d0] sm:$0xff]  ;;  %v11256_v49 = vsub.f32 %v157_v42, %v11228_v7  ;;  %v2913_v42 = vsub.f32 %v11211_v32, %v16623_v19 }
 0x150   :  { %2557 = vmatpush.msrb.mxu0 %v11159_v59  ;;  %2708 = vmatpush.msrb.mxu2 %v11152_v4  ;;  %v11263_v13 = vand.u32 4294901760, %v155_v56 }
 0x151   :  { %2634 = vmatpush.msrb.mxu1 %v2633_v47  ;;  %2747 = vmatpush.msrb.mxu3 %v11103_v25  ;;  %v154_v47 = vld [vmem:[%s16536_s1 + $0x3c8] sm:$0xff]  ;;  %v16628_v19 = vand.u32 4294901760, %v11256_v49  ;;  %v2914_v44 = vand.u32 4294901760, %v2913_v42  ;;  %v11314_v42 = vand.u32 4294901760, %v152_v16 }
 0x152   :  { %2559 = vmatpush.msrb.mxu0 %v11184_v26  ;;  %2711 = vmatpush.msrb.mxu2 %v11170_v40  ;;  %v11281_v15 = vand.u32 4294901760, %v154_v47 }
 0x153   :  { %2640 = vmatpush.msrb.mxu1 %v2639_v57  ;;  %2749 = vmatpush.msrb.mxu3 %v11120_v34  ;;  %v153_v57 = vld [vmem:[%s16536_s1 + $0x3c0] sm:$0xff]  ;;  %v2931_v53 = vsub.f32 %v11256_v49, %v16628_v19 }
 0x154   :  { %2565 = vmatmul.f32.vlgmr.msrb.gmra.mxu0 %v2564_v33  ;;  %2714 = vmatpush.msrb.mxu2 %v11190_v50  ;;  %v2662_v33 = vsub.f32 %v11218_v10, %v16624_v46  ;;  %v11297_v46 = vand.u32 4294901760, %v153_v57 }
 0x155   :  { %2766 = vmatpush.msra.mxu0 %v2571_v45  ;;  %2646 = vmatpush.msrb.mxu1 %v2645_v31  ;;  %v2919_v45 = vsub.f32 %v11235_v20, %v16627_v55  ;;  %v11295_v31 = vsub.f32 %v155_v56, %v11263_v13  ;;  %v2925_v56 = vsub.f32 %v11248_v36, %v16626_v8  ;;  %v11326_v8 = vld.sshfl [vmem:[#allocation1 + $0x38] sm:$0xff pattern:$0x73625140] }
 0x156   :  { %2751 = vmatpush.msrb.mxu3 %v11132_v54  ;;  %2717 = vmatpush.msrb.mxu2 %v11218_v10  ;;  %v11334_v19 = vsub.f32 %v153_v57, %v11297_v46 }
 0x157   :  { %2770 = vmatpush.msra.mxu0 %v2577_v37  ;;  %2652 = vmatpush.msrb.mxu1 %v2651_v21  ;;  %v2663_v37 = vand.u32 4294901760, %v2662_v33  ;;  %v11312_v21 = vsub.f32 %v154_v47, %v11281_v15  ;;  %v30_v33 = vld [vmem:[%s16535_s0 + $0x18] sm:$0xff]  ;;  %v16907_v47 = vand.u32 4294901760, %v11011_v30  ;;  %v16630_v55 = vand.u32 4294901760, %v11295_v31  ;;  %v149_v30 = vld [vmem:[%s16536_s1 + $0x3a0] sm:$0xff] }
 0x158   :  { %2753 = vmatpush.msrb.mxu3 %v11159_v59  ;;  %2720 = vmatmul.f32.vlgmr.msrb.gmra.mxu2 %v11144_v17  ;;  %439 = vst [vmem:[#allocation1 + $0x20] ss:$4 sm:$0xff] %v30_v33  ;;  %v2926_v57 = vand.u32 4294901760, %v2925_v56  ;;  %v11349_v33 = vsub.f32 %v152_v16, %v11314_v42  ;;  %v16631_v16 = vand.u32 4294901760, %v11334_v19  ;;  %v11366_v56 = vand.u32 4294901760, %v149_v30 }
 0x159   :  { %2774 = vmatpush.msra.mxu0 %v2583_v11  ;;  %2870 = vmatpush.msra.mxu2 %v11175_v6  ;;  %v150_v11 = vld [vmem:[%s16536_s1 + $0x3a8] sm:$0xff] }
 0x15a   :  { %2658 = vmatpush.msrb.mxu1 %v2657_v39  ;;  %2755 = vmatpush.msrb.mxu3 %v11184_v26  ;;  %v2920_v39 = vand.u32 4294901760, %v2919_v45  ;;  %v16908_v26 = vand.u32 4294901760, %v11270_v23  ;;  %v16633_v45 = vand.u32 4294901760, %v11312_v21 }
 0x15b   :  { %2759 = vmatmul.f32.vlgmr.msrb.gmra.mxu3 %v2562_v12  ;;  %2778 = vmatpush.msra.mxu0 %v16907_v47  ;;  %v16909_v12 = vand.u32 4294901760, %v11017_v14  ;;  %v11351_v47 = vand.u32 4294901760, %v150_v11  ;;  %v2943_v14 = vsub.f32 %v11295_v31, %v16630_v55 }
 0x15c   :  { %2872 = vmatpush.msra.mxu2 %v11200_v63  ;;  %2915 = vmatpush.msra.mxu3 %v2914_v44  ;;  %v2937_v17 = vsub.f32 %v11270_v23, %v16908_v26  ;;  %v2932_v26 = vand.u32 4294901760, %v2931_v53  ;;  %v148_v44 = vld [vmem:[%s16536_s1 + $0x398] sm:$0xff]  ;;  %v16910_v53 = vand.u32 4294901760, %v11033_v3  ;;  %v147_v3 = vld [vmem:[%s16536_s1 + $0x390] sm:$0xff] }
 0x15d   :  { %2664 = vmatpush.msrb.mxu1 %v2663_v37  ;;  %2782 = vmatpush.msra.mxu0 %v16909_v12  ;;  %v11364_v37 = vsub.f32 %v151_v52, %v11336_v35  ;;  %v11377_v52 = vsub.f32 %v150_v11, %v11351_v47  ;;  %v11379_v55 = vand.u32 4294901760, %v148_v44  ;;  %v2955_v11 = vsub.f32 %v11334_v19, %v16631_v16 }
 0x15e   :  { %2666 = vmatmul.f32.vlgmr.msrb.gmra.mxu1 %v11114_v62  ;;  %2874 = vmatpush.msra.mxu2 %v11220_v58  ;;  %v2938_v12 = vand.u32 4294901760, %v2937_v17  ;;  %v16911_v17 = vand.u32 4294901760, %v11060_v48  ;;  %v146_v48 = vld [vmem:[%s16536_s1 + $0x388] sm:$0xff] }
 0x15f   :  { %2833 = vmatpush.msra.mxu1 %v10947_v60  ;;  %2921 = vmatpush.msra.mxu3 %v2920_v39  ;;  %v2949_v60 = vsub.f32 %v11312_v21, %v16633_v45  ;;  %v16632_v39 = vand.u32 4294901760, %v11349_v33  ;;  %v11409_v16 = vsub.f32 %v148_v44, %v11379_v55 }
 0x160   :  { %2786 = vmatpush.msra.mxu0 %v16910_v53  ;;  %2876 = vmatpush.msra.mxu2 %v11228_v7  ;;  %v11393_v53 = vsub.f32 %v149_v30, %v11366_v56 }
 0x161   :  { %2835 = vmatpush.msra.mxu1 %v10957_v43  ;;  %2927 = vmatpush.msra.mxu3 %v2926_v57  ;;  %v2944_v43 = vand.u32 4294901760, %v2943_v14  ;;  %v2966_v57 = vand.u32 4294901760, %v11364_v37  ;;  %v2961_v30 = vsub.f32 %v11349_v33, %v16632_v39  ;;  %v2972_v14 = vand.u32 4294901760, %v11377_v52 }
 0x162   :  { %2790 = vmatpush.msra.mxu0 %v16911_v17  ;;  %2878 = vmatpush.msra.mxu2 %v11240_v27  ;;  %v16912_v17 = vand.u32 4294901760, %v11076_v24  ;;  %v145_v24 = vld [vmem:[%s16536_s1 + $0x380] sm:$0xff]  ;;  %v2978_v39 = vand.u32 4294901760, %v11393_v53 }
 0x163   :  { %2837 = vmatpush.msra.mxu1 %v10967_v0  ;;  %2933 = vmatpush.msra.mxu3 %v2932_v26  ;;  %v11401_v0 = vand.u32 4294901760, %v147_v3  ;;  %v2950_v26 = vand.u32 4294901760, %v2949_v60  ;;  %v2956_v60 = vand.u32 4294901760, %v2955_v11  ;;  %v2967_v44 = vsub.f32 %v11364_v37, %v2966_v57 }
 0x164   :  { %2794 = vmatpush.msra.mxu0 %v16912_v17  ;;  %2880 = vmatpush.msra.mxu2 %v11263_v13  ;;  %v16913_v17 = vand.u32 4294901760, %v11092_v9  ;;  %v16914_v9 = vand.u32 4294901760, %v11107_v41  ;;  %v11433_v45 = vand.u32 4294901760, %v145_v24  ;;  %v2984_v11 = vand.u32 4294901760, %v11409_v16 }
 0x165   :  { %2839 = vmatpush.msra.mxu1 %v10980_v5  ;;  %2939 = vmatpush.msra.mxu3 %v2938_v12  ;;  %v11417_v5 = vand.u32 4294901760, %v146_v48  ;;  %v11420_v12 = vand.u32 4294901760, %v11326_v8  ;;  %v16915_v41 = vand.u32 4294901760, %v11124_v28  ;;  %v16916_v28 = vand.u32 4294901760, %v11136_v29 }
 0x166   :  { %2798 = vmatpush.msra.mxu0 %v16913_v17  ;;  %2882 = vmatpush.msra.mxu2 %v11281_v15  ;;  %v11431_v17 = vsub.f32 %v147_v3, %v11401_v0 }
 0x167   :  { %2841 = vmatpush.msra.mxu1 %v10991_v18  ;;  %2945 = vmatpush.msra.mxu3 %v2944_v43  ;;  %v2962_v18 = vand.u32 4294901760, %v2961_v30  ;;  %v2973_v43 = vsub.f32 %v11377_v52, %v2972_v14  ;;  %v11444_v3 = vsub.f32 %v146_v48, %v11417_v5  ;;  %v11459_v30 = vsub.f32 %v145_v24, %v11433_v45 }
 0x168   :  { %2802 = vmatpush.msra.mxu0 %v16914_v9  ;;  %2884 = vmatpush.msra.mxu2 %v11297_v46  ;;  %v11448_v9 = vsub.f32 %v11326_v8, %v11420_v12  ;;  %v2990_v48 = vand.u32 4294901760, %v11431_v17  ;;  %v2985_v8 = vsub.f32 %v11409_v16, %v2984_v11 }
 0x169   :  { %2843 = vmatpush.msra.mxu1 %v11002_v38  ;;  %2951 = vmatpush.msra.mxu3 %v2950_v26  ;;  %v2968_v38 = vand.u32 4294901760, %v2967_v44  ;;  %v2979_v26 = vsub.f32 %v11393_v53, %v2978_v39  ;;  %v2996_v29 = vand.u32 4294901760, %v11444_v3 }
 0x16a   :  { %2806 = vmatpush.msra.mxu0 %v16915_v41  ;;  %2886 = vmatpush.msra.mxu2 %v11314_v42  ;;  %v2903_v44 = vand.u32 4294901760, %v11448_v9  ;;  %v16919_v41 = vand.u32 4294901760, %v11190_v50 }
 0x16b   :  { %2845 = vmatpush.msra.mxu1 %v11027_v22  ;;  %2957 = vmatpush.msra.mxu3 %v2956_v60  ;;  %v2974_v22 = vand.u32 4294901760, %v2973_v43  ;;  %v16917_v60 = vand.u32 4294901760, %v11152_v4  ;;  %v2980_v24 = vand.u32 4294901760, %v2979_v26  ;;  %v2991_v4 = vsub.f32 %v11431_v17, %v2990_v48 }
 0x16c   :  { %2810 = vmatpush.msra.mxu0 %v16916_v28  ;;  %2888 = vmatpush.msra.mxu2 %v11336_v35  ;;  %v2986_v43 = vand.u32 4294901760, %v2985_v8 }
 0x16d   :  { %2847 = vmatpush.msra.mxu1 %v11043_v61  ;;  %2963 = vmatpush.msra.mxu3 %v2962_v18  ;;  %v16918_v61 = vand.u32 4294901760, %v11170_v40  ;;  %v3002_v18 = vand.u32 4294901760, %v11459_v30  ;;  %v2904_v40 = vsub.f32 %v11448_v9, %v2903_v44  ;;  %v2992_v50 = vand.u32 4294901760, %v2991_v4 }
 0x16e   :  { %2814 = vmatpush.msra.mxu0 %v16917_v60  ;;  %2890 = vmatpush.msra.mxu2 %v11351_v47 }
 0x16f   :  { %2849 = vmatpush.msra.mxu1 %v11057_v2  ;;  %2969 = vmatpush.msra.mxu3 %v2968_v38  ;;  %v2997_v2 = vsub.f32 %v11444_v3, %v2996_v29  ;;  %v3003_v38 = vsub.f32 %v11459_v30, %v3002_v18 }
 0x170   :  { %2818 = vmatpush.msra.mxu0 %v16918_v61  ;;  %2892 = vmatpush.msra.mxu2 %v11366_v56 }
 0x171   :  { %2851 = vmatpush.msra.mxu1 %v11073_v51  ;;  %2975 = vmatpush.msra.mxu3 %v2974_v22  ;;  %v16920_v51 = vand.u32 4294901760, %v11218_v10  ;;  %v2998_v26 = vand.u32 4294901760, %v2997_v2  ;;  %v3004_v10 = vand.u32 4294901760, %v3003_v38 }
 0x172   :  { %2822 = vmatpush.msra.mxu0 %v16919_v41  ;;  %2894 = vmatpush.msra.mxu2 %v11379_v55 }
 0x173   :  { %2853 = vmatpush.msra.mxu1 %v11088_v1  ;;  %2981 = vmatpush.msra.mxu3 %v2980_v24  ;;  %v2905_v1 = vand.u32 4294901760, %v2904_v40 }
 0x174   :  { %2826 = vmatpush.msra.mxu0 %v16920_v51  ;;  %2896 = vmatpush.msra.mxu2 %v11401_v0 }
 0x175   :  { %2855 = vmatpush.msra.mxu1 %v11103_v25  ;;  %2987 = vmatpush.msra.mxu3 %v2986_v43  ;;  %v16921_v25 = vand.u32 4294901760, %v11211_v32  ;;  %v165_v43 = vld [vmem:[%s16536_s1 + $0x420] sm:$0xff] }
 0x176   :  { %2828 = vmatmul.f32.vlgmr.msra.gmra.mxu0 %v11114_v62  ;;  %2898 = vmatpush.msra.mxu2 %v11417_v5 }
 0x177   :  { %3013 = vmatpush.msrb.mxu0 %v11211_v32  ;;  %2857 = vmatpush.msra.mxu1 %v11120_v34  ;;  %v16922_v34 = vand.u32 4294901760, %v11235_v20  ;;  %v16924_v32 = vand.u32 4294901760, %v11248_v36 }
 0x178   :  { %2993 = vmatpush.msra.mxu3 %v2992_v50  ;;  %2900 = vmatpush.msra.mxu2 %v11433_v45  ;;  %v164_v50 = vld [vmem:[%s16536_s1 + $0x418] sm:$0xff] }
 0x179   :  { %3016 = vmatpush.msrb.mxu0 %v11235_v20  ;;  %2859 = vmatpush.msra.mxu1 %v11132_v54  ;;  %v16923_v54 = vld [vmem:[#allocation5_spill] sm:$0xff]  ;;  %v16930_v20 = vand.u32 4294901760, %v11349_v33 }
 0x17a   :  { %2999 = vmatpush.msra.mxu3 %v2998_v26  ;;  %2906 = vmatmul.f32.vlgmr.msra.gmra.mxu2 %v2905_v1  ;;  %v11716_v26 = vand.u32 4294901760, %v165_v43 }
 0x17b   :  { %3019 = vmatpush.msrb.mxu0 %v11248_v36  ;;  %3107 = vmatpush.msrb.mxu2 %v16921_v25 }
 0x17c   :  { %2861 = vmatpush.msra.mxu1 %v11159_v59  ;;  %3005 = vmatpush.msra.mxu3 %v3004_v10  ;;  %v16925_v59 = vand.u32 4294901760, %v11256_v49 }
 0x17d   :  { %3007 = vmatmul.f32.vlgmr.msra.gmra.mxu3 %v11420_v12  ;;  %3022 = vmatpush.msrb.mxu0 %v11256_v49  ;;  %v16928_v49 = vand.u32 4294901760, %v11312_v21 }
 0x17e   :  { %3111 = vmatpush.msrb.mxu2 %v16922_v34  ;;  %3174 = vmatpush.msrb.mxu3 %v11175_v6  ;;  %v163_v34 = vld [vmem:[%s16536_s1 + $0x410] sm:$0xff] }
 0x17f   :  { %2863 = vmatpush.msra.mxu1 %v16923_v54  ;;  %3025 = vmatpush.msrb.mxu0 %v11270_v23 }
 0x180   :  { %2865 = vmatmul.f32.vlgmr.msra.gmra.mxu1 %v11114_v62  ;;  %3115 = vmatpush.msrb.mxu2 %v16924_v32  ;;  %v16926_v62 = vand.u32 4294901760, %v11270_v23 }
 0x181   :  { %3066 = vmatpush.msrb.mxu1 %v11175_v6  ;;  %3176 = vmatpush.msrb.mxu3 %v11200_v63  ;;  %v16927_v6 = vand.u32 4294901760, %v11295_v31 }
 0x182   :  { %3028 = vmatpush.msrb.mxu0 %v11295_v31  ;;  %3119 = vmatpush.msrb.mxu2 %v16925_v59  ;;  %v11733_v59 = vand.u32 4294901760, %v164_v50 }
 0x183   :  { %3068 = vmatpush.msrb.mxu1 %v11200_v63  ;;  %3178 = vmatpush.msrb.mxu3 %v11220_v58  ;;  %v173_v63 = vld [vmem:[%s16536_s1 + $0x460] sm:$0xff] }
 0x184   :  { %3031 = vmatpush.msrb.mxu0 %v11312_v21  ;;  %3123 = vmatpush.msrb.mxu2 %v16926_v62  ;;  %v171_v21 = vld [vmem:[%s16536_s1 + $0x450] sm:$0xff] }
 0x185   :  { %3070 = vmatpush.msrb.mxu1 %v11220_v58  ;;  %3180 = vmatpush.msrb.mxu3 %v11228_v7  ;;  %v16929_v58 = vand.u32 4294901760, %v11334_v19 }
 0x186   :  { %3034 = vmatpush.msrb.mxu0 %v11334_v19  ;;  %3127 = vmatpush.msrb.mxu2 %v16927_v6 }
 0x187   :  { %3072 = vmatpush.msrb.mxu1 %v11228_v7  ;;  %3182 = vmatpush.msrb.mxu3 %v11240_v27 }
 0x188   :  { %3037 = vmatpush.msrb.mxu0 %v11349_v33  ;;  %3131 = vmatpush.msrb.mxu2 %v16928_v49 }
 0x189   :  { %3074 = vmatpush.msrb.mxu1 %v11240_v27  ;;  %3184 = vmatpush.msrb.mxu3 %v11263_v13  ;;  %v176_v27 = vld [vmem:[%s16536_s1 + $0x478] sm:$0xff] }
 0x18a   :  { %3040 = vmatpush.msrb.mxu0 %v11364_v37  ;;  %3135 = vmatpush.msrb.mxu2 %v16929_v58  ;;  %v11560_v19 = vand.u32 4294901760, %v176_v27  ;;  %v170_v37 = vld [vmem:[%s16536_s1 + $0x448] sm:$0xff] }
 0x18b   :  { %3076 = vmatpush.msrb.mxu1 %v11263_v13  ;;  %3186 = vmatpush.msrb.mxu3 %v11281_v15  ;;  %v175_v13 = vld [vmem:[%s16536_s1 + $0x470] sm:$0xff] }
 0x18c   :  { %3043 = vmatpush.msrb.mxu0 %v11377_v52  ;;  %3139 = vmatpush.msrb.mxu2 %v16930_v20  ;;  %v11570_v36 = vand.u32 4294901760, %v175_v13  ;;  %v11583_v7 = vsub.f32 %v176_v27, %v11560_v19  ;;  %v11745_v20 = vand.u32 4294901760, %v163_v34 }
 0x18d   :  { %3078 = vmatpush.msrb.mxu1 %v11281_v15  ;;  %3188 = vmatpush.msrb.mxu3 %v11297_v46  ;;  %v174_v15 = vld [vmem:[%s16536_s1 + $0x468] sm:$0xff] }
 0x18e   :  { %3046 = vmatpush.msrb.mxu0 %v11393_v53  ;;  %3143 = vmatpush.msrb.mxu2 %v2966_v57  ;;  %v11580_v23 = vand.u32 4294901760, %v174_v15  ;;  %v11596_v31 = vsub.f32 %v175_v13, %v11570_v36  ;;  %v3253_v33 = vand.u32 4294901760, %v11583_v7  ;;  %v169_v57 = vld [vmem:[%s16536_s1 + $0x440] sm:$0xff]  ;;  %v11640_v53 = vand.u32 4294901760, %v170_v37 }
 0x18f   :  { %3080 = vmatpush.msrb.mxu1 %v11297_v46  ;;  %3190 = vmatpush.msrb.mxu3 %v11314_v42  ;;  %v172_v46 = vld [vmem:[%s16536_s1 + $0x458] sm:$0xff]  ;;  %v11749_v13 = vsub.f32 %v165_v43, %v11716_v26 }
 0x190   :  { %3049 = vmatpush.msrb.mxu0 %v11409_v16  ;;  %3147 = vmatpush.msrb.mxu2 %v2972_v14  ;;  %v11615_v16 = vand.u32 4294901760, %v171_v21 }
 0x191   :  { %3082 = vmatpush.msrb.mxu1 %v11314_v42  ;;  %3192 = vmatpush.msrb.mxu3 %v11336_v35  ;;  %v11604_v42 = vand.u32 4294901760, %v172_v46 }
 0x192   :  { %3052 = vmatpush.msrb.mxu0 %v11431_v17  ;;  %3151 = vmatpush.msrb.mxu2 %v2978_v39  ;;  %v11646_v17 = vsub.f32 %v171_v21, %v11615_v16 }
 0x193   :  { %3084 = vmatpush.msrb.mxu1 %v11336_v35  ;;  %3194 = vmatpush.msrb.mxu3 %v11351_v47  ;;  %v11593_v35 = vand.u32 4294901760, %v173_v63  ;;  %v11630_v52 = vsub.f32 %v172_v46, %v11604_v42 }
 0x194   :  { %3055 = vmatpush.msrb.mxu0 %v11444_v3  ;;  %3155 = vmatpush.msrb.mxu2 %v2984_v11  ;;  %v168_v11 = vld [vmem:[%s16536_s1 + $0x438] sm:$0xff]  ;;  %v11656_v3 = vand.u32 4294901760, %v169_v57 }
 0x195   :  { %3086 = vmatpush.msrb.mxu1 %v11351_v47  ;;  %3196 = vmatpush.msrb.mxu3 %v11366_v56  ;;  %v11610_v47 = vsub.f32 %v174_v15, %v11580_v23  ;;  %v11624_v39 = vsub.f32 %v173_v63, %v11593_v35  ;;  %v11670_v60 = vand.u32 4294901760, %v168_v11  ;;  %v162_v15 = vld [vmem:[%s16536_s1 + $0x408] sm:$0xff] }
 0x196   :  { %3058 = vmatpush.msrb.mxu0 %v11459_v30  ;;  %3159 = vmatpush.msrb.mxu2 %v2990_v48  ;;  %v16644_v48 = vand.u32 4294901760, %v11630_v52  ;;  %v167_v30 = vld [vmem:[%s16536_s1 + $0x430] sm:$0xff] }
 0x197   :  { %3088 = vmatpush.msrb.mxu1 %v11366_v56  ;;  %3198 = vmatpush.msrb.mxu3 %v11379_v55  ;;  %v3259_v56 = vand.u32 4294901760, %v11596_v31  ;;  %v3265_v14 = vand.u32 4294901760, %v11610_v47  ;;  %v16647_v28 = vand.u32 4294901760, %v11624_v39  ;;  %v11686_v4 = vand.u32 4294901760, %v167_v30 }
 0x198   :  { %3061 = vmatmul.f32.vlgmr.msrb.gmra.mxu0 %v11448_v9  ;;  %3163 = vmatpush.msrb.mxu2 %v2996_v29  ;;  %v16642_v29 = vand.u32 4294901760, %v11646_v17  ;;  %v11705_v9 = vsub.f32 %v168_v11, %v11670_v60  ;;  %v11772_v11 = vand.u32 4294901760, %v162_v15 }
 0x199   :  { %3211 = vmatpush.msra.mxu0 %v11560_v19  ;;  %3090 = vmatpush.msrb.mxu1 %v11379_v55  ;;  %v3254_v55 = vsub.f32 %v11583_v7, %v3253_v33  ;;  %v3266_v8 = vsub.f32 %v11610_v47, %v3265_v14  ;;  %v3272_v61 = vsub.f32 %v11624_v39, %v16647_v28 }
 0x19a   :  { %3200 = vmatpush.msrb.mxu3 %v11401_v0  ;;  %3167 = vmatpush.msrb.mxu2 %v3002_v18  ;;  %v11689_v18 = vsub.f32 %v169_v57, %v11656_v3  ;;  %v3284_v51 = vsub.f32 %v11646_v17, %v16642_v29  ;;  %v11720_v10 = vsub.f32 %v167_v30, %v11686_v4  ;;  %v16638_v62 = vand.u32 4294901760, %v11705_v9 }
 0x19b   :  { %3213 = vmatpush.msra.mxu0 %v11570_v36  ;;  %3092 = vmatpush.msrb.mxu1 %v11401_v0  ;;  %v3260_v0 = vsub.f32 %v11596_v31, %v3259_v56  ;;  %v3255_v22 = vand.u32 4294901760, %v3254_v55  ;;  %v3267_v41 = vand.u32 4294901760, %v3266_v8  ;;  %v3273_v38 = vand.u32 4294901760, %v3272_v61  ;;  %v192_v55 = vld [vmem:[%s16536_s1 + $0x4f8] sm:$0xff] }
 0x19c   :  { %3202 = vmatpush.msrb.mxu3 %v11417_v5  ;;  %3169 = vmatmul.f32.vlgmr.msrb.gmra.mxu2 %v11420_v12  ;;  %v16639_v1 = vand.u32 4294901760, %v11689_v18  ;;  %v3285_v49 = vand.u32 4294901760, %v3284_v51  ;;  %v16637_v27 = vand.u32 4294901760, %v11720_v10  ;;  %v3302_v21 = vsub.f32 %v11705_v9, %v16638_v62 }
 0x19d   :  { %3215 = vmatpush.msra.mxu0 %v11580_v23  ;;  %3354 = vmatpush.msra.mxu2 %v11583_v7  ;;  %v3261_v24 = vand.u32 4294901760, %v3260_v0  ;;  %v11765_v57 = vsub.f32 %v164_v50, %v11733_v59  ;;  %v161_v0 = vld [vmem:[%s16536_s1 + $0x400] sm:$0xff]  ;;  %v16634_v8 = vand.u32 4294901760, %v11749_v13  ;;  %v11788_v61 = vand.u32 4294901760, %v192_v55  ;;  %v184_v7 = vld [vmem:[%s16536_s1 + $0x4b8] sm:$0xff] }
 0x19e   :  { %3094 = vmatpush.msrb.mxu1 %v11417_v5  ;;  %3204 = vmatpush.msrb.mxu3 %v11433_v45  ;;  %v11673_v5 = vsub.f32 %v170_v37, %v11640_v53  ;;  %v3296_v58 = vsub.f32 %v11689_v18, %v16639_v1  ;;  %v3303_v43 = vand.u32 4294901760, %v3302_v21  ;;  %v11803_v50 = vsub.f32 %v162_v15, %v11772_v11 }
 0x19f   :  { %3206 = vmatmul.f32.vlgmr.msrb.gmra.mxu3 %v11420_v12  ;;  %3217 = vmatpush.msra.mxu0 %v11593_v35  ;;  %v166_v12 = vld [vmem:[%s16536_s1 + $0x428] sm:$0xff]  ;;  %v16636_v51 = vand.u32 4294901760, %v11765_v57 }
 0x1a0   :  { %3357 = vmatpush.msra.mxu2 %v11596_v31  ;;  %3407 = vmatpush.msra.mxu3 %v11560_v19  ;;  %v11701_v2 = vand.u32 4294901760, %v166_v12  ;;  %v16641_v40 = vand.u32 4294901760, %v11673_v5  ;;  %v3297_v30 = vand.u32 4294901760, %v3296_v58  ;;  %v189_v58 = vld [vmem:[%s16536_s1 + $0x4e0] sm:$0xff]  ;;  %v183_v31 = vld [vmem:[%s16536_s1 + $0x4b0] sm:$0xff] }
 0x1a1   :  { %3096 = vmatpush.msrb.mxu1 %v11433_v45  ;;  %3219 = vmatpush.msra.mxu0 %v11604_v42  ;;  %v3278_v45 = vsub.f32 %v11630_v52, %v16644_v48 }
 0x1a2   :  { %3100 = vmatmul.f32.vlgmr.msrb.gmra.mxu1 %v2903_v44  ;;  %3360 = vmatpush.msra.mxu2 %v11610_v47  ;;  %v440_v44 = vld.sshfl [vmem:[#allocation1] sm:$0xff pattern:$0x73625140]  ;;  %v3290_v32 = vsub.f32 %v11673_v5, %v16641_v40  ;;  %v11737_v6 = vsub.f32 %v166_v12, %v11701_v2  ;;  %v11783_v12 = vsub.f32 %v163_v34, %v11745_v20 }
 0x1a3   :  { %3256 = vmatpush.msra.mxu1 %v3255_v22  ;;  %3409 = vmatpush.msra.mxu3 %v11570_v36  ;;  %v3279_v25 = vand.u32 4294901760, %v3278_v45  ;;  %v11727_v54 = vand.u32 4294901760, %v440_v44  ;;  %v3308_v22 = vsub.f32 %v11720_v10, %v16637_v27  ;;  %v191_v45 = vld [vmem:[%s16536_s1 + $0x4f0] sm:$0xff]  ;;  %v3320_v34 = vsub.f32 %v11749_v13, %v16634_v8 }
 0x1a4   :  { %3221 = vmatpush.msra.mxu0 %v11615_v16  ;;  %3363 = vmatpush.msra.mxu2 %v11624_v39  ;;  %v3291_v46 = vand.u32 4294901760, %v3290_v32  ;;  %v16635_v37 = vand.u32 4294901760, %v11737_v6  ;;  %v16640_v32 = vand.u32 4294901760, %v11783_v12 }
 0x1a5   :  { %3262 = vmatpush.msra.mxu1 %v3261_v24  ;;  %3411 = vmatpush.msra.mxu3 %v11580_v23  ;;  %v11757_v63 = vsub.f32 %v440_v44, %v11727_v54  ;;  %v11797_v44 = vand.u32 4294901760, %v161_v0 }
 0x1a6   :  { %3223 = vmatpush.msra.mxu0 %v11640_v53  ;;  %3366 = vmatpush.msra.mxu2 %v11630_v52 }
 0x1a7   :  { %3268 = vmatpush.msra.mxu1 %v3267_v41  ;;  %3413 = vmatpush.msra.mxu3 %v11593_v35  ;;  %v3244_v24 = vand.u32 4294901760, %v11757_v63  ;;  %v3314_v41 = vsub.f32 %v11737_v6, %v16635_v37  ;;  %v188_v37 = vld [vmem:[%s16536_s1 + $0x4d8] sm:$0xff] }
 0x1a8   :  { %3225 = vmatpush.msra.mxu0 %v11656_v3  ;;  %3369 = vmatpush.msra.mxu2 %v11646_v17  ;;  %v11853_v1 = vand.u32 4294901760, %v188_v37 }
 0x1a9   :  { %3274 = vmatpush.msra.mxu1 %v3273_v38  ;;  %3415 = vmatpush.msra.mxu3 %v11604_v42  ;;  %v190_v38 = vld [vmem:[%s16536_s1 + $0x4e8] sm:$0xff]  ;;  %v3245_v15 = vsub.f32 %v11757_v63, %v3244_v24  ;;  %v3315_v21 = vand.u32 4294901760, %v3314_v41  ;;  %v3321_v41 = vand.u32 4294901760, %v3320_v34 }
 0x1aa   :  { %3227 = vmatpush.msra.mxu0 %v11670_v60  ;;  %3372 = vmatpush.msra.mxu2 %v11673_v5  ;;  %v11833_v8 = vand.u32 4294901760, %v190_v38 }
 0x1ab   :  { %3280 = vmatpush.msra.mxu1 %v3279_v25  ;;  %3417 = vmatpush.msra.mxu3 %v11615_v16  ;;  %v3309_v25 = vand.u32 4294901760, %v3308_v22  ;;  %v11831_v22 = vsub.f32 %v161_v0, %v11797_v44  ;;  %v3332_v0 = vsub.f32 %v11783_v12, %v16640_v32  ;;  %v3246_v27 = vand.u32 4294901760, %v3245_v15 }
 0x1ac   :  { %3229 = vmatpush.msra.mxu0 %v11686_v4  ;;  %3375 = vmatpush.msra.mxu2 %v11689_v18  ;;  %v11861_v32 = vsub.f32 %v190_v38, %v11833_v8 }
 0x1ad   :  { %3286 = vmatpush.msra.mxu1 %v3285_v49  ;;  %3419 = vmatpush.msra.mxu3 %v11640_v53  ;;  %v11813_v49 = vand.u32 4294901760, %v191_v45  ;;  %v3333_v38 = vand.u32 4294901760, %v3332_v0 }
 0x1ae   :  { %3231 = vmatpush.msra.mxu0 %v11701_v2  ;;  %3378 = vmatpush.msra.mxu2 %v11705_v9  ;;  %v16648_v0 = vand.u32 4294901760, %v11861_v32 }
 0x1af   :  { %3292 = vmatpush.msra.mxu1 %v3291_v46  ;;  %3421 = vmatpush.msra.mxu3 %v11656_v3  ;;  %v11824_v46 = vsub.f32 %v192_v55, %v11788_v61  ;;  %v16643_v55 = vand.u32 4294901760, %v11803_v50 }
 0x1b0   :  { %3233 = vmatpush.msra.mxu0 %v11716_v26  ;;  %3381 = vmatpush.msra.mxu2 %v11720_v10 }
 0x1b1   :  { %3298 = vmatpush.msra.mxu1 %v3297_v30  ;;  %3423 = vmatpush.msra.mxu3 %v11670_v60  ;;  %v3326_v30 = vsub.f32 %v11765_v57, %v16636_v51  ;;  %v11848_v51 = vsub.f32 %v191_v45, %v11813_v49  ;;  %v16645_v62 = vand.u32 4294901760, %v11824_v46  ;;  %v16646_v45 = vand.u32 4294901760, %v11831_v22 }
 0x1b2   :  { %3235 = vmatpush.msra.mxu0 %v11733_v59  ;;  %3384 = vmatpush.msra.mxu2 %v11737_v6  ;;  %v3338_v15 = vsub.f32 %v11803_v50, %v16643_v55  ;;  %v11883_v55 = vsub.f32 %v188_v37, %v11853_v1 }
 0x1b3   :  { %3304 = vmatpush.msra.mxu1 %v3303_v43  ;;  %3425 = vmatpush.msra.mxu3 %v11686_v4  ;;  %v11841_v43 = vand.u32 4294901760, %v189_v58  ;;  %v3327_v34 = vand.u32 4294901760, %v3326_v30  ;;  %v16649_v30 = vand.u32 4294901760, %v11848_v51 }
 0x1b4   :  { %3237 = vmatpush.msra.mxu0 %v11745_v20  ;;  %3387 = vmatpush.msra.mxu2 %v11749_v13  ;;  %v3339_v37 = vand.u32 4294901760, %v3338_v15  ;;  %v16651_v28 = vand.u32 4294901760, %v11883_v55 }
 0x1b5   :  { %3310 = vmatpush.msra.mxu1 %v3309_v25  ;;  %3427 = vmatpush.msra.mxu3 %v11701_v2  ;;  %v187_v25 = vld [vmem:[%s16536_s1 + $0x4d0] sm:$0xff]  ;;  %v11869_v40 = vsub.f32 %v189_v58, %v11841_v43  ;;  %v3595_v58 = vsub.f32 %v11824_v46, %v16645_v62 }
 0x1b6   :  { %3239 = vmatpush.msra.mxu0 %v11772_v11  ;;  %3390 = vmatpush.msra.mxu2 %v11765_v57  ;;  %v11876_v29 = vand.u32 4294901760, %v187_v25 }
 0x1b7   :  { %3316 = vmatpush.msra.mxu1 %v3315_v21  ;;  %3429 = vmatpush.msra.mxu3 %v11716_v26  ;;  %v186_v21 = vld [vmem:[%s16536_s1 + $0x4c8] sm:$0xff]  ;;  %v16650_v62 = vand.u32 4294901760, %v11869_v40  ;;  %v3596_v15 = vand.u32 4294901760, %v3595_v58  ;;  %v11927_v58 = vand.u32 4294901760, %v184_v7 }
 0x1b8   :  { %3241 = vmatpush.msra.mxu0 %v11797_v44  ;;  %3393 = vmatpush.msra.mxu2 %v11783_v12  ;;  %v11894_v48 = vand.u32 4294901760, %v186_v21 }
 0x1b9   :  { %3322 = vmatpush.msra.mxu1 %v3321_v41  ;;  %3431 = vmatpush.msra.mxu3 %v11733_v59  ;;  %v185_v41 = vld [vmem:[%s16536_s1 + $0x4c0] sm:$0xff]  ;;  %v3613_v47 = vsub.f32 %v11869_v40, %v16650_v62  ;;  %v3619_v62 = vsub.f32 %v11883_v55, %v16651_v28 }
 0x1ba   :  { %3247 = vmatmul.f32.vlgmr.msra.gmra.mxu0 %v3246_v27  ;;  %3396 = vmatpush.msra.mxu2 %v11803_v50  ;;  %v3344_v27 = vsub.f32 %v11831_v22, %v16646_v45  ;;  %v11910_v45 = vand.u32 4294901760, %v185_v41 }
 0x1bb   :  { %3448 = vmatpush.msrb.mxu0 %v3253_v33  ;;  %3328 = vmatpush.msra.mxu1 %v3327_v34  ;;  %v3601_v33 = vsub.f32 %v11848_v51, %v16649_v30  ;;  %v11908_v34 = vsub.f32 %v187_v25, %v11876_v29  ;;  %v3607_v25 = vsub.f32 %v11861_v32, %v16648_v0  ;;  %v11944_v30 = vand.u32 4294901760, %v183_v31 }
 0x1bc   :  { %3433 = vmatpush.msra.mxu3 %v11745_v20  ;;  %3399 = vmatpush.msra.mxu2 %v11831_v22  ;;  %v3620_v28 = vand.u32 4294901760, %v3619_v62  ;;  %v16934_v62 = vand.u32 4294901760, %v11673_v5  ;;  %v178_v5 = vld [vmem:[%s16536_s1 + $0x488] sm:$0xff] }
 0x1bd   :  { %3452 = vmatpush.msrb.mxu0 %v3259_v56  ;;  %3334 = vmatpush.msra.mxu1 %v3333_v38  ;;  %v3345_v56 = vand.u32 4294901760, %v3344_v27  ;;  %v11925_v38 = vsub.f32 %v186_v21, %v11894_v48  ;;  %v16931_v27 = vand.u32 4294901760, %v11624_v39  ;;  %v3602_v21 = vand.u32 4294901760, %v3601_v33  ;;  %v181_v39 = vld [vmem:[%s16536_s1 + $0x4a0] sm:$0xff] }
 0x1be   :  { %3435 = vmatpush.msra.mxu3 %v11772_v11  ;;  %3402 = vmatmul.f32.vlgmr.msra.gmra.mxu2 %v11757_v63  ;;  %v16652_v0 = vand.u32 4294901760, %v11908_v34  ;;  %v16932_v63 = vand.u32 4294901760, %v11630_v52  ;;  %v11957_v33 = vsub.f32 %v184_v7, %v11927_v58 }
 0x1bf   :  { %3456 = vmatpush.msrb.mxu0 %v3265_v14  ;;  %3552 = vmatpush.msrb.mxu2 %v11788_v61  ;;  %v182_v14 = vld [vmem:[%s16536_s1 + $0x4a8] sm:$0xff] }
 0x1c0   :  { %3340 = vmatpush.msra.mxu1 %v3339_v37  ;;  %3437 = vmatpush.msra.mxu3 %v11797_v44  ;;  %v11942_v37 = vsub.f32 %v185_v41, %v11910_v45  ;;  %v16653_v41 = vand.u32 4294901760, %v11925_v38  ;;  %v3625_v52 = vsub.f32 %v11908_v34, %v16652_v0 }
 0x1c1   :  { %3441 = vmatmul.f32.vlgmr.msra.gmra.mxu3 %v3244_v24  ;;  %3460 = vmatpush.msrb.mxu0 %v16931_v27  ;;  %v3608_v24 = vand.u32 4294901760, %v3607_v25  ;;  %v11959_v27 = vand.u32 4294901760, %v182_v14  ;;  %v11972_v25 = vsub.f32 %v183_v31, %v11944_v30 }
 0x1c2   :  { %3554 = vmatpush.msrb.mxu2 %v11813_v49  ;;  %3597 = vmatpush.msrb.mxu3 %v3596_v15  ;;  %v3614_v15 = vand.u32 4294901760, %v3613_v47  ;;  %v16654_v7 = vand.u32 4294901760, %v11942_v37  ;;  %v16933_v47 = vand.u32 4294901760, %v11646_v17  ;;  %v179_v17 = vld [vmem:[%s16536_s1 + $0x490] sm:$0xff] }
 0x1c3   :  { %3346 = vmatpush.msra.mxu1 %v3345_v56  ;;  %3464 = vmatpush.msrb.mxu0 %v16932_v63  ;;  %v180_v56 = vld [vmem:[%s16536_s1 + $0x498] sm:$0xff]  ;;  %v11974_v63 = vand.u32 4294901760, %v181_v39  ;;  %v11985_v31 = vsub.f32 %v182_v14, %v11959_v27 }
 0x1c4   :  { %3348 = vmatmul.f32.vlgmr.msra.gmra.mxu1 %v11727_v54  ;;  %3556 = vmatpush.msrb.mxu2 %v11833_v8  ;;  %v11987_v0 = vand.u32 4294901760, %v180_v56  ;;  %v3637_v14 = vsub.f32 %v11942_v37, %v16654_v7 }
 0x1c5   :  { %3515 = vmatpush.msrb.mxu1 %v11560_v19  ;;  %3603 = vmatpush.msrb.mxu3 %v3602_v21  ;;  %v3631_v19 = vsub.f32 %v11925_v38, %v16653_v41  ;;  %v16655_v21 = vand.u32 4294901760, %v11957_v33  ;;  %v16935_v41 = vand.u32 4294901760, %v11689_v18  ;;  %v177_v18 = vld [vmem:[%s16536_s1 + $0x480] sm:$0xff] }
 0x1c6   :  { %3468 = vmatpush.msrb.mxu0 %v16933_v47  ;;  %3558 = vmatpush.msrb.mxu2 %v11841_v43  ;;  %v12001_v47 = vsub.f32 %v181_v39, %v11974_v63  ;;  %v12017_v7 = vsub.f32 %v180_v56, %v11987_v0 }
 0x1c7   :  { %3517 = vmatpush.msrb.mxu1 %v11570_v36  ;;  %3609 = vmatpush.msrb.mxu3 %v3608_v24  ;;  %v3626_v36 = vand.u32 4294901760, %v3625_v52  ;;  %v16656_v24 = vand.u32 4294901760, %v11972_v25  ;;  %v3643_v39 = vsub.f32 %v11957_v33, %v16655_v21  ;;  %v16937_v52 = vand.u32 4294901760, %v11720_v10 }
 0x1c8   :  { %3472 = vmatpush.msrb.mxu0 %v16934_v62  ;;  %3560 = vmatpush.msrb.mxu2 %v11853_v1  ;;  %v441_v62 = vld.sshfl [vmem:[#allocation1 + $0x8] sm:$0xff pattern:$0x73625140]  ;;  %v3660_v21 = vand.u32 4294901760, %v12001_v47  ;;  %v16939_v10 = vand.u32 4294901760, %v11737_v6 }
 0x1c9   :  { %3519 = vmatpush.msrb.mxu1 %v11580_v23  ;;  %3615 = vmatpush.msrb.mxu3 %v3614_v15  ;;  %v12009_v23 = vand.u32 4294901760, %v179_v17  ;;  %v3632_v15 = vand.u32 4294901760, %v3631_v19  ;;  %v3638_v19 = vand.u32 4294901760, %v3637_v14  ;;  %v3649_v56 = vsub.f32 %v11972_v25, %v16656_v24 }
 0x1ca   :  { %3476 = vmatpush.msrb.mxu0 %v16935_v41  ;;  %3562 = vmatpush.msrb.mxu2 %v11876_v29  ;;  %v16936_v41 = vand.u32 4294901760, %v11705_v9  ;;  %v3666_v24 = vand.u32 4294901760, %v12017_v7 }
 0x1cb   :  { %3521 = vmatpush.msrb.mxu1 %v11593_v35  ;;  %3621 = vmatpush.msrb.mxu3 %v3620_v28  ;;  %v12025_v35 = vand.u32 4294901760, %v178_v5  ;;  %v12027_v28 = vand.u32 4294901760, %v441_v62  ;;  %v12038_v9 = vsub.f32 %v179_v17, %v12009_v23 }
 0x1cc   :  { %3480 = vmatpush.msrb.mxu0 %v16936_v41  ;;  %3564 = vmatpush.msrb.mxu2 %v11894_v48  ;;  %v12040_v41 = vand.u32 4294901760, %v177_v18 }
 0x1cd   :  { %3523 = vmatpush.msrb.mxu1 %v11604_v42  ;;  %3627 = vmatpush.msrb.mxu3 %v3626_v36  ;;  %v3644_v42 = vand.u32 4294901760, %v3643_v39  ;;  %v16938_v36 = vand.u32 4294901760, %v11985_v31  ;;  %v12051_v17 = vsub.f32 %v178_v5, %v12025_v35  ;;  %v16940_v39 = vand.u32 4294901760, %v11749_v13 }
 0x1ce   :  { %3484 = vmatpush.msrb.mxu0 %v16937_v52  ;;  %3566 = vmatpush.msrb.mxu2 %v11910_v45  ;;  %v12054_v52 = vsub.f32 %v441_v62, %v12027_v28  ;;  %v3672_v6 = vand.u32 4294901760, %v12038_v9  ;;  %v12065_v5 = vsub.f32 %v177_v18, %v12040_v41  ;;  %v3667_v62 = vsub.f32 %v12017_v7, %v3666_v24 }
 0x1cf   :  { %3525 = vmatpush.msrb.mxu1 %v11615_v16  ;;  %3633 = vmatpush.msrb.mxu3 %v3632_v15  ;;  %v3655_v14 = vsub.f32 %v11985_v31, %v16938_v36  ;;  %v3650_v16 = vand.u32 4294901760, %v3649_v56  ;;  %v3661_v15 = vsub.f32 %v12001_v47, %v3660_v21  ;;  %v3678_v13 = vand.u32 4294901760, %v12051_v17 }
 0x1d0   :  { %3488 = vmatpush.msrb.mxu0 %v16939_v10  ;;  %3568 = vmatpush.msrb.mxu2 %v11927_v58  ;;  %v3585_v56 = vand.u32 4294901760, %v12054_v52  ;;  %v3668_v36 = vand.u32 4294901760, %v3667_v62 }
 0x1d1   :  { %3527 = vmatpush.msrb.mxu1 %v11640_v53  ;;  %3639 = vmatpush.msrb.mxu3 %v3638_v19  ;;  %v3656_v53 = vand.u32 4294901760, %v3655_v14  ;;  %v16941_v19 = vand.u32 4294901760, %v11765_v57  ;;  %v3662_v18 = vand.u32 4294901760, %v3661_v15  ;;  %v3673_v57 = vsub.f32 %v12038_v9, %v3672_v6  ;;  %v200_v15 = vld [vmem:[%s16536_s1 + $0x538] sm:$0xff] }
 0x1d2   :  { %3492 = vmatpush.msrb.mxu0 %v16940_v39  ;;  %3570 = vmatpush.msrb.mxu2 %v11944_v30  ;;  %v16943_v14 = vand.u32 4294901760, %v11803_v50 }
 0x1d3   :  { %3529 = vmatpush.msrb.mxu1 %v11656_v3  ;;  %3645 = vmatpush.msrb.mxu3 %v3644_v42  ;;  %v16942_v3 = vand.u32 4294901760, %v11783_v12  ;;  %v3684_v42 = vand.u32 4294901760, %v12065_v5  ;;  %v3586_v12 = vsub.f32 %v12054_v52, %v3585_v56  ;;  %v3674_v50 = vand.u32 4294901760, %v3673_v57 }
 0x1d4   :  { %3496 = vmatpush.msrb.mxu0 %v16941_v19  ;;  %3572 = vmatpush.msrb.mxu2 %v11959_v27 }
 0x1d5   :  { %3531 = vmatpush.msrb.mxu1 %v11670_v60  ;;  %3651 = vmatpush.msrb.mxu3 %v3650_v16  ;;  %v3679_v60 = vsub.f32 %v12051_v17, %v3678_v13  ;;  %v3685_v10 = vsub.f32 %v12065_v5, %v3684_v42 }
 0x1d6   :  { %3500 = vmatpush.msrb.mxu0 %v16942_v3  ;;  %3574 = vmatpush.msrb.mxu2 %v11974_v63 }
 0x1d7   :  { %3533 = vmatpush.msrb.mxu1 %v11686_v4  ;;  %3657 = vmatpush.msrb.mxu3 %v3656_v53  ;;  %v16944_v4 = vand.u32 4294901760, %v11831_v22  ;;  %v3680_v16 = vand.u32 4294901760, %v3679_v60  ;;  %v3686_v22 = vand.u32 4294901760, %v3685_v10  ;;  %v199_v53 = vld [vmem:[%s16536_s1 + $0x530] sm:$0xff]  ;;  %v196_v10 = vld [vmem:[%s16536_s1 + $0x518] sm:$0xff] }
 0x1d8   :  { %3504 = vmatpush.msrb.mxu0 %v16943_v14  ;;  %3576 = vmatpush.msrb.mxu2 %v11987_v0  ;;  %v197_v14 = vld [vmem:[%s16536_s1 + $0x520] sm:$0xff] }
 0x1d9   :  { %3535 = vmatpush.msrb.mxu1 %v11701_v2  ;;  %3663 = vmatpush.msrb.mxu3 %v3662_v18  ;;  %v3587_v2 = vand.u32 4294901760, %v3586_v12 }
 0x1da   :  { %3508 = vmatpush.msrb.mxu0 %v16944_v4  ;;  %3578 = vmatpush.msrb.mxu2 %v12009_v23 }
 0x1db   :  { %3537 = vmatpush.msrb.mxu1 %v11716_v26  ;;  %3669 = vmatpush.msrb.mxu3 %v3668_v36  ;;  %v16945_v26 = vand.u32 4294901760, %v11824_v46 }
 0x1dc   :  { %3510 = vmatmul.f32.vlgmr.msrb.gmra.mxu0 %v11727_v54  ;;  %3580 = vmatpush.msrb.mxu2 %v12025_v35 }
 0x1dd   :  { %3695 = vmatpush.msra.mxu0 %v11824_v46  ;;  %3539 = vmatpush.msrb.mxu1 %v11733_v59  ;;  %v16946_v59 = vand.u32 4294901760, %v11848_v51 }
 0x1de   :  { %3675 = vmatpush.msrb.mxu3 %v3674_v50  ;;  %3582 = vmatpush.msrb.mxu2 %v12040_v41 }
 0x1df   :  { %3698 = vmatpush.msra.mxu0 %v11848_v51  ;;  %3541 = vmatpush.msrb.mxu1 %v11745_v20  ;;  %v16947_v20 = vand.u32 4294901760, %v11861_v32  ;;  %v16954_v51 = vand.u32 4294901760, %v11972_v25 }
 0x1e0   :  { %3681 = vmatpush.msrb.mxu3 %v3680_v16  ;;  %3588 = vmatmul.f32.vlgmr.msrb.gmra.mxu2 %v3587_v2  ;;  %v12322_v2 = vand.u32 4294901760, %v197_v14 }
 0x1e1   :  { %3701 = vmatpush.msra.mxu0 %v11861_v32  ;;  %3789 = vmatpush.msra.mxu2 %v16945_v26 }
 0x1e2   :  { %3543 = vmatpush.msrb.mxu1 %v11772_v11  ;;  %3687 = vmatpush.msrb.mxu3 %v3686_v22  ;;  %v16948_v11 = vand.u32 4294901760, %v11869_v40 }
 0x1e3   :  { %3689 = vmatmul.f32.vlgmr.msrb.gmra.mxu3 %v12027_v28  ;;  %3704 = vmatpush.msra.mxu0 %v11869_v40  ;;  %v16951_v40 = vand.u32 4294901760, %v11925_v38 }
 0x1e4   :  { %3793 = vmatpush.msra.mxu2 %v16946_v59  ;;  %3856 = vmatpush.msra.mxu3 %v11788_v61 }
 0x1e5   :  { %3545 = vmatpush.msrb.mxu1 %v11797_v44  ;;  %3707 = vmatpush.msra.mxu0 %v11883_v55  ;;  %v16953_v44 = vand.u32 4294901760, %v11957_v33 }
 0x1e6   :  { %3547 = vmatmul.f32.vlgmr.msrb.gmra.mxu1 %v11727_v54  ;;  %3797 = vmatpush.msra.mxu2 %v16947_v20  ;;  %v16949_v54 = vand.u32 4294901760, %v11883_v55  ;;  %v205_v55 = vld [vmem:[%s16536_s1 + $0x560] sm:$0xff]  ;;  %v195_v20 = vld [vmem:[%s16536_s1 + $0x510] sm:$0xff] }
 0x1e7   :  { %3748 = vmatpush.msra.mxu1 %v11788_v61  ;;  %3858 = vmatpush.msra.mxu3 %v11813_v49  ;;  %v16950_v61 = vand.u32 4294901760, %v11908_v34 }
 0x1e8   :  { %3710 = vmatpush.msra.mxu0 %v11908_v34  ;;  %3801 = vmatpush.msra.mxu2 %v16948_v11  ;;  %v204_v34 = vld [vmem:[%s16536_s1 + $0x558] sm:$0xff] }
 0x1e9   :  { %3750 = vmatpush.msra.mxu1 %v11813_v49  ;;  %3860 = vmatpush.msra.mxu3 %v11833_v8  ;;  %v206_v49 = vld [vmem:[%s16536_s1 + $0x568] sm:$0xff] }
 0x1ea   :  { %3713 = vmatpush.msra.mxu0 %v11925_v38  ;;  %3805 = vmatpush.msra.mxu2 %v16949_v54 }
 0x1eb   :  { %3752 = vmatpush.msra.mxu1 %v11833_v8  ;;  %3862 = vmatpush.msra.mxu3 %v11841_v43  ;;  %v16952_v8 = vand.u32 4294901760, %v11942_v37 }
 0x1ec   :  { %3716 = vmatpush.msra.mxu0 %v11942_v37  ;;  %3809 = vmatpush.msra.mxu2 %v16950_v61  ;;  %v12210_v37 = vand.u32 4294901760, %v204_v34  ;;  %v12339_v61 = vand.u32 4294901760, %v196_v10 }
 0x1ed   :  { %3754 = vmatpush.msra.mxu1 %v11841_v43  ;;  %3864 = vmatpush.msra.mxu3 %v11853_v1  ;;  %v12186_v43 = vand.u32 4294901760, %v206_v49 }
 0x1ee   :  { %3719 = vmatpush.msra.mxu0 %v11957_v33  ;;  %3813 = vmatpush.msra.mxu2 %v16951_v40 }
 0x1ef   :  { %3756 = vmatpush.msra.mxu1 %v11853_v1  ;;  %3866 = vmatpush.msra.mxu3 %v11876_v29  ;;  %v208_v1 = vld [vmem:[%s16536_s1 + $0x578] sm:$0xff] }
 0x1f0   :  { %3722 = vmatpush.msra.mxu0 %v11972_v25  ;;  %3817 = vmatpush.msra.mxu2 %v16952_v8  ;;  %v12166_v32 = vand.u32 4294901760, %v208_v1  ;;  %v202_v25 = vld [vmem:[%s16536_s1 + $0x548] sm:$0xff] }
 0x1f1   :  { %3758 = vmatpush.msra.mxu1 %v11876_v29  ;;  %3868 = vmatpush.msra.mxu3 %v11894_v48  ;;  %v207_v29 = vld [vmem:[%s16536_s1 + $0x570] sm:$0xff] }
 0x1f2   :  { %3725 = vmatpush.msra.mxu0 %v11985_v31  ;;  %3821 = vmatpush.msra.mxu2 %v16953_v44  ;;  %v12176_v46 = vand.u32 4294901760, %v207_v29 }
 0x1f3   :  { %3760 = vmatpush.msra.mxu1 %v11894_v48  ;;  %3870 = vmatpush.msra.mxu3 %v11910_v45  ;;  %v16955_v48 = vand.u32 4294901760, %v11985_v31  ;;  %v12236_v31 = vsub.f32 %v204_v34, %v12210_v37 }
 0x1f4   :  { %3728 = vmatpush.msra.mxu0 %v12001_v47  ;;  %3825 = vmatpush.msra.mxu2 %v16954_v51  ;;  %v12202_v38 = vsub.f32 %v207_v29, %v12176_v46  ;;  %v12246_v47 = vand.u32 4294901760, %v202_v25  ;;  %v12351_v51 = vand.u32 4294901760, %v195_v20 }
 0x1f5   :  { %3762 = vmatpush.msra.mxu1 %v11910_v45  ;;  %3872 = vmatpush.msra.mxu3 %v11927_v58  ;;  %v12189_v45 = vsub.f32 %v208_v1, %v12166_v32 }
 0x1f6   :  { %3731 = vmatpush.msra.mxu0 %v12017_v7  ;;  %3829 = vmatpush.msra.mxu2 %v16955_v48  ;;  %v12355_v48 = vsub.f32 %v197_v14, %v12322_v2 }
 0x1f7   :  { %3764 = vmatpush.msra.mxu1 %v11927_v58  ;;  %3874 = vmatpush.msra.mxu3 %v11944_v30  ;;  %v203_v58 = vld [vmem:[%s16536_s1 + $0x550] sm:$0xff]  ;;  %v3935_v33 = vand.u32 4294901760, %v12189_v45 }
 0x1f8   :  { %3734 = vmatpush.msra.mxu0 %v12038_v9  ;;  %3833 = vmatpush.msra.mxu2 %v3660_v21  ;;  %v12221_v7 = vand.u32 4294901760, %v203_v58 }
 0x1f9   :  { %3766 = vmatpush.msra.mxu1 %v11944_v30  ;;  %3876 = vmatpush.msra.mxu3 %v11959_v27  ;;  %v12199_v30 = vand.u32 4294901760, %v205_v55 }
 0x1fa   :  { %3737 = vmatpush.msra.mxu0 %v12051_v17  ;;  %3837 = vmatpush.msra.mxu2 %v3666_v24  ;;  %v201_v24 = vld [vmem:[%s16536_s1 + $0x540] sm:$0xff]  ;;  %v12252_v17 = vsub.f32 %v203_v58, %v12221_v7 }
 0x1fb   :  { %3768 = vmatpush.msra.mxu1 %v11959_v27  ;;  %3878 = vmatpush.msra.mxu3 %v11974_v63  ;;  %v12216_v27 = vsub.f32 %v206_v49, %v12186_v43  ;;  %v12230_v21 = vsub.f32 %v205_v55, %v12199_v30  ;;  %v12262_v39 = vand.u32 4294901760, %v201_v24  ;;  %v194_v49 = vld [vmem:[%s16536_s1 + $0x508] sm:$0xff] }
 0x1fc   :  { %3740 = vmatpush.msra.mxu0 %v12065_v5  ;;  %3841 = vmatpush.msra.mxu2 %v3672_v6  ;;  %v16667_v5 = vand.u32 4294901760, %v12236_v31  ;;  %v16665_v18 = vand.u32 4294901760, %v12252_v17 }
 0x1fd   :  { %3770 = vmatpush.msra.mxu1 %v11974_v63  ;;  %3880 = vmatpush.msra.mxu3 %v11987_v0  ;;  %v3941_v63 = vand.u32 4294901760, %v12202_v38  ;;  %v3947_v9 = vand.u32 4294901760, %v12216_v27  ;;  %v16670_v6 = vand.u32 4294901760, %v12230_v21  ;;  %v12295_v36 = vsub.f32 %v201_v24, %v12262_v39 }
 0x1fe   :  { %3743 = vmatmul.f32.vlgmr.msra.gmra.mxu0 %v12054_v52  ;;  %3845 = vmatpush.msra.mxu2 %v3678_v13  ;;  %v12276_v13 = vand.u32 4294901760, %v200_v15  ;;  %v3966_v50 = vsub.f32 %v12252_v17, %v16665_v18  ;;  %v12371_v24 = vsub.f32 %v196_v10, %v12339_v61 }
 0x1ff   :  { %3893 = vmatpush.msrb.mxu0 %v12166_v32  ;;  %3772 = vmatpush.msra.mxu1 %v11987_v0  ;;  %v3936_v0 = vsub.f32 %v12189_v45, %v3935_v33  ;;  %v3948_v19 = vsub.f32 %v12216_v27, %v3947_v9  ;;  %v3954_v57 = vsub.f32 %v12230_v21, %v16670_v6  ;;  %v16662_v22 = vand.u32 4294901760, %v12295_v36 }
 0x200   :  { %3882 = vmatpush.msra.mxu3 %v12009_v23  ;;  %3849 = vmatpush.msra.mxu2 %v3684_v42  ;;  %v12292_v42 = vand.u32 4294901760, %v199_v53  ;;  %v12311_v52 = vsub.f32 %v200_v15, %v12276_v13  ;;  %v3967_v44 = vand.u32 4294901760, %v3966_v50  ;;  %v12378_v15 = vand.u32 4294901760, %v194_v49 }
 0x201   :  { %3895 = vmatpush.msrb.mxu0 %v12176_v46  ;;  %3774 = vmatpush.msra.mxu1 %v12009_v23  ;;  %v3942_v23 = vsub.f32 %v12202_v38, %v3941_v63  ;;  %v3937_v62 = vand.u32 4294901760, %v3936_v0  ;;  %v3949_v60 = vand.u32 4294901760, %v3948_v19  ;;  %v3955_v16 = vand.u32 4294901760, %v3954_v57  ;;  %v224_v0 = vld [vmem:[%s16536_s1 + $0x5f8] sm:$0xff] }
 0x202   :  { %3884 = vmatpush.msra.mxu3 %v12025_v35  ;;  %3851 = vmatmul.f32.vlgmr.msra.gmra.mxu2 %v12027_v28  ;;  %v12326_v26 = vsub.f32 %v199_v53, %v12292_v42  ;;  %v16661_v40 = vand.u32 4294901760, %v12311_v52  ;;  %v3978_v1 = vsub.f32 %v12295_v36, %v16662_v22  ;;  %v16657_v19 = vand.u32 4294901760, %v12355_v48 }
 0x203   :  { %3897 = vmatpush.msrb.mxu0 %v12186_v43  ;;  %4036 = vmatpush.msrb.mxu2 %v12189_v45  ;;  %v3943_v3 = vand.u32 4294901760, %v3942_v23  ;;  %v193_v23 = vld [vmem:[%s16536_s1 + $0x500] sm:$0xff]  ;;  %v12394_v57 = vand.u32 4294901760, %v224_v0  ;;  %v16659_v50 = vand.u32 4294901760, %v12371_v24  ;;  %v12409_v10 = vsub.f32 %v194_v49, %v12378_v15  ;;  %v216_v45 = vld [vmem:[%s16536_s1 + $0x5b8] sm:$0xff] }
 0x204   :  { %3776 = vmatpush.msra.mxu1 %v12025_v35  ;;  %3886 = vmatpush.msra.mxu3 %v12040_v41  ;;  %v12279_v35 = vsub.f32 %v202_v25, %v12246_v47  ;;  %v16660_v29 = vand.u32 4294901760, %v12326_v26  ;;  %v3984_v58 = vsub.f32 %v12311_v52, %v16661_v40  ;;  %v3979_v53 = vand.u32 4294901760, %v3978_v1  ;;  %v221_v1 = vld [vmem:[%s16536_s1 + $0x5e0] sm:$0xff] }
 0x205   :  { %3888 = vmatmul.f32.vlgmr.msra.gmra.mxu3 %v12027_v28  ;;  %3899 = vmatpush.msrb.mxu0 %v12199_v30  ;;  %v198_v28 = vld [vmem:[%s16536_s1 + $0x528] sm:$0xff] }
 0x206   :  { %4039 = vmatpush.msrb.mxu2 %v12202_v38  ;;  %4089 = vmatpush.msrb.mxu3 %v12166_v32  ;;  %v12307_v12 = vand.u32 4294901760, %v198_v28  ;;  %v16664_v4 = vand.u32 4294901760, %v12279_v35  ;;  %v3985_v14 = vand.u32 4294901760, %v3984_v58  ;;  %v215_v38 = vld [vmem:[%s16536_s1 + $0x5b0] sm:$0xff] }
 0x207   :  { %3778 = vmatpush.msra.mxu1 %v12040_v41  ;;  %3901 = vmatpush.msrb.mxu0 %v12210_v37  ;;  %v3960_v41 = vsub.f32 %v12236_v31, %v16667_v5  ;;  %v12555_v6 = vand.u32 4294901760, %v215_v38 }
 0x208   :  { %3782 = vmatmul.f32.vlgmr.msra.gmra.mxu1 %v3585_v56  ;;  %4042 = vmatpush.msrb.mxu2 %v12216_v27  ;;  %v442_v56 = vld.sshfl [vmem:[#allocation1 + $0x10] sm:$0xff pattern:$0x73625140]  ;;  %v3972_v54 = vsub.f32 %v12279_v35, %v16664_v4  ;;  %v12343_v8 = vsub.f32 %v198_v28, %v12307_v12  ;;  %v12389_v28 = vsub.f32 %v195_v20, %v12351_v51 }
 0x209   :  { %3938 = vmatpush.msrb.mxu1 %v3937_v62  ;;  %4091 = vmatpush.msrb.mxu3 %v12176_v46  ;;  %v3961_v59 = vand.u32 4294901760, %v3960_v41  ;;  %v12333_v11 = vand.u32 4294901760, %v442_v56  ;;  %v3990_v62 = vsub.f32 %v12326_v26, %v16660_v29  ;;  %v223_v41 = vld [vmem:[%s16536_s1 + $0x5f0] sm:$0xff]  ;;  %v4002_v20 = vsub.f32 %v12355_v48, %v16657_v19 }
 0x20a   :  { %3903 = vmatpush.msrb.mxu0 %v12221_v7  ;;  %4045 = vmatpush.msrb.mxu2 %v12230_v21  ;;  %v3973_v34 = vand.u32 4294901760, %v3972_v54  ;;  %v16658_v25 = vand.u32 4294901760, %v12343_v8  ;;  %v16663_v54 = vand.u32 4294901760, %v12389_v28 }
 0x20b   :  { %3944 = vmatpush.msrb.mxu1 %v3943_v3  ;;  %4093 = vmatpush.msrb.mxu3 %v12186_v43  ;;  %v12363_v55 = vsub.f32 %v442_v56, %v12333_v11  ;;  %v12403_v56 = vand.u32 4294901760, %v193_v23 }
 0x20c   :  { %3905 = vmatpush.msrb.mxu0 %v12246_v47  ;;  %4048 = vmatpush.msrb.mxu2 %v12236_v31 }
 0x20d   :  { %3950 = vmatpush.msrb.mxu1 %v3949_v60  ;;  %4095 = vmatpush.msrb.mxu3 %v12199_v30  ;;  %v3926_v3 = vand.u32 4294901760, %v12363_v55  ;;  %v3996_v60 = vsub.f32 %v12343_v8, %v16658_v25  ;;  %16956 = vst [vmem:[#allocation5_spill] sm:$0xff] %v12403_v56  ;;  %v220_v25 = vld [vmem:[%s16536_s1 + $0x5d8] sm:$0xff] }
 0x20e   :  { %3907 = vmatpush.msrb.mxu0 %v12262_v39  ;;  %4051 = vmatpush.msrb.mxu2 %v12252_v17  ;;  %v12459_v22 = vand.u32 4294901760, %v220_v25 }
 0x20f   :  { %3956 = vmatpush.msrb.mxu1 %v3955_v16  ;;  %4097 = vmatpush.msrb.mxu3 %v12210_v37  ;;  %v222_v16 = vld [vmem:[%s16536_s1 + $0x5e8] sm:$0xff]  ;;  %v3927_v49 = vsub.f32 %v12363_v55, %v3926_v3  ;;  %v3997_v58 = vand.u32 4294901760, %v3996_v60  ;;  %v4003_v60 = vand.u32 4294901760, %v4002_v20 }
 0x210   :  { %3909 = vmatpush.msrb.mxu0 %v12276_v13  ;;  %4054 = vmatpush.msrb.mxu2 %v12279_v35  ;;  %v12439_v19 = vand.u32 4294901760, %v222_v16 }
 0x211   :  { %3962 = vmatpush.msrb.mxu1 %v3961_v59  ;;  %4099 = vmatpush.msrb.mxu3 %v12221_v7  ;;  %v3991_v59 = vand.u32 4294901760, %v3990_v62  ;;  %v12437_v62 = vsub.f32 %v193_v23, %v12403_v56  ;;  %v4014_v23 = vsub.f32 %v12389_v28, %v16663_v54  ;;  %v3928_v29 = vand.u32 4294901760, %v3927_v49 }
 0x212   :  { %3911 = vmatpush.msrb.mxu0 %v12292_v42  ;;  %4057 = vmatpush.msrb.mxu2 %v12295_v36  ;;  %v12467_v54 = vsub.f32 %v222_v16, %v12439_v19 }
 0x213   :  { %3968 = vmatpush.msrb.mxu1 %v3967_v44  ;;  %4101 = vmatpush.msrb.mxu3 %v12246_v47  ;;  %v12419_v44 = vand.u32 4294901760, %v223_v41  ;;  %v4015_v16 = vand.u32 4294901760, %v4014_v23 }
 0x214   :  { %3913 = vmatpush.msrb.mxu0 %v12307_v12  ;;  %4060 = vmatpush.msrb.mxu2 %v12311_v52  ;;  %v16671_v23 = vand.u32 4294901760, %v12467_v54 }
 0x215   :  { %3974 = vmatpush.msrb.mxu1 %v3973_v34  ;;  %4103 = vmatpush.msrb.mxu3 %v12262_v39  ;;  %v12430_v34 = vsub.f32 %v224_v0, %v12394_v57  ;;  %v16666_v0 = vand.u32 4294901760, %v12409_v10 }
 0x216   :  { %3915 = vmatpush.msrb.mxu0 %v12322_v2  ;;  %4063 = vmatpush.msrb.mxu2 %v12326_v26 }
 0x217   :  { %3980 = vmatpush.msrb.mxu1 %v3979_v53  ;;  %4105 = vmatpush.msrb.mxu3 %v12276_v13  ;;  %v4008_v53 = vsub.f32 %v12371_v24, %v16659_v50  ;;  %v12454_v50 = vsub.f32 %v223_v41, %v12419_v44  ;;  %v16668_v40 = vand.u32 4294901760, %v12430_v34  ;;  %v16669_v41 = vand.u32 4294901760, %v12437_v62 }
 0x218   :  { %3917 = vmatpush.msrb.mxu0 %v12339_v61  ;;  %4066 = vmatpush.msrb.mxu2 %v12343_v8  ;;  %v4020_v49 = vsub.f32 %v12409_v10, %v16666_v0  ;;  %v12489_v0 = vsub.f32 %v220_v25, %v12459_v22 }
 0x219   :  { %3986 = vmatpush.msrb.mxu1 %v3985_v14  ;;  %4107 = vmatpush.msrb.mxu3 %v12292_v42  ;;  %v12447_v14 = vand.u32 4294901760, %v221_v1  ;;  %v4009_v20 = vand.u32 4294901760, %v4008_v53  ;;  %v16672_v53 = vand.u32 4294901760, %v12454_v50 }
 0x21a   :  { %3919 = vmatpush.msrb.mxu0 %v12351_v51  ;;  %4069 = vmatpush.msrb.mxu2 %v12355_v48  ;;  %v4021_v25 = vand.u32 4294901760, %v4020_v49 }
 0x21b   :  { %3992 = vmatpush.msrb.mxu1 %v3991_v59  ;;  %4109 = vmatpush.msrb.mxu3 %v12307_v12  ;;  %v219_v59 = vld [vmem:[%s16536_s1 + $0x5d0] sm:$0xff]  ;;  %v12475_v4 = vsub.f32 %v221_v1, %v12447_v14  ;;  %v4277_v1 = vsub.f32 %v12430_v34, %v16668_v40 }
 0x21c   :  { %3921 = vmatpush.msrb.mxu0 %v12378_v15  ;;  %4072 = vmatpush.msrb.mxu2 %v12371_v24  ;;  %v12482_v18 = vand.u32 4294901760, %v219_v59 }
 0x21d   :  { %3998 = vmatpush.msrb.mxu1 %v3997_v58  ;;  %4111 = vmatpush.msrb.mxu3 %v12322_v2  ;;  %v218_v58 = vld [vmem:[%s16536_s1 + $0x5c8] sm:$0xff]  ;;  %v16673_v40 = vand.u32 4294901760, %v12475_v4  ;;  %v4278_v49 = vand.u32 4294901760, %v4277_v1  ;;  %v12533_v1 = vand.u32 4294901760, %v216_v45 }
 0x21e   :  { %3923 = vmatpush.msrb.mxu0 %v12403_v56  ;;  %4075 = vmatpush.msrb.mxu2 %v12389_v28  ;;  %v12500_v5 = vand.u32 4294901760, %v218_v58 }
 0x21f   :  { %4004 = vmatpush.msrb.mxu1 %v4003_v60  ;;  %4113 = vmatpush.msrb.mxu3 %v12339_v61  ;;  %v217_v60 = vld [vmem:[%s16536_s1 + $0x5c0] sm:$0xff]  ;;  %v4295_v27 = vsub.f32 %v12475_v4, %v16673_v40 }
 0x220   :  { %3929 = vmatmul.f32.vlgmr.msrb.gmra.mxu0 %v3928_v29  ;;  %4078 = vmatpush.msrb.mxu2 %v12409_v10  ;;  %v4026_v29 = vsub.f32 %v12437_v62, %v16669_v41  ;;  %v12516_v41 = vand.u32 4294901760, %v217_v60 }
 0x221   :  { %4130 = vmatpush.msra.mxu0 %v3935_v33  ;;  %4010 = vmatpush.msrb.mxu1 %v4009_v20  ;;  %v4283_v33 = vsub.f32 %v12454_v50, %v16672_v53  ;;  %v12514_v20 = vsub.f32 %v219_v59, %v12482_v18  ;;  %v4289_v59 = vsub.f32 %v12467_v54, %v16671_v23  ;;  %v12545_v23 = vld.sshfl [vmem:[#allocation1 + $0x18] sm:$0xff pattern:$0x73625140] }
 0x222   :  { %4115 = vmatpush.msrb.mxu3 %v12351_v51  ;;  %4081 = vmatpush.msrb.mxu2 %v12437_v62  ;;  %v12553_v40 = vsub.f32 %v217_v60, %v12516_v41 }
 0x223   :  { %4134 = vmatpush.msra.mxu0 %v3941_v63  ;;  %4016 = vmatpush.msrb.mxu1 %v4015_v16  ;;  %v4027_v63 = vand.u32 4294901760, %v4026_v29  ;;  %v12531_v16 = vsub.f32 %v218_v58, %v12500_v5  ;;  %v31_v29 = vld [vmem:[%s16535_s0 + $0x20] sm:$0xff]  ;;  %v16957_v58 = vand.u32 4294901760, %v12230_v21  ;;  %v16675_v53 = vand.u32 4294901760, %v12514_v20 }
 0x224   :  { %4117 = vmatpush.msrb.mxu3 %v12378_v15  ;;  %4084 = vmatmul.f32.vlgmr.msrb.gmra.mxu2 %v12363_v55  ;;  %448 = vst [vmem:[#allocation1] ss:$4 sm:$0xff] %v31_v29  ;;  %v213_v21 = vld [vmem:[%s16536_s1 + $0x5a0] sm:$0xff]  ;;  %v4290_v60 = vand.u32 4294901760, %v4289_v59  ;;  %v12568_v29 = vsub.f32 %v216_v45, %v12533_v1  ;;  %v16676_v45 = vand.u32 4294901760, %v12553_v40 }
 0x225   :  { %4138 = vmatpush.msra.mxu0 %v3947_v9  ;;  %4234 = vmatpush.msra.mxu2 %v12394_v57  ;;  %v214_v9 = vld [vmem:[%s16536_s1 + $0x5a8] sm:$0xff]  ;;  %v12585_v59 = vand.u32 4294901760, %v213_v21 }
 0x226   :  { %4022 = vmatpush.msrb.mxu1 %v4021_v25  ;;  %4119 = vmatpush.msrb.mxu3 %v12403_v56  ;;  %v4284_v25 = vand.u32 4294901760, %v4283_v33  ;;  %v16958_v56 = vand.u32 4294901760, %v12489_v0  ;;  %v16678_v33 = vand.u32 4294901760, %v12531_v16 }
 0x227   :  { %4123 = vmatmul.f32.vlgmr.msrb.gmra.mxu3 %v3926_v3  ;;  %4142 = vmatpush.msra.mxu0 %v16957_v58  ;;  %v16959_v3 = vand.u32 4294901760, %v12236_v31  ;;  %v12570_v58 = vand.u32 4294901760, %v214_v9  ;;  %v4307_v31 = vsub.f32 %v12514_v20, %v16675_v53 }
 0x228   :  { %4236 = vmatpush.msra.mxu2 %v12419_v44  ;;  %4279 = vmatpush.msra.mxu3 %v4278_v49  ;;  %v4301_v55 = vsub.f32 %v12489_v0, %v16958_v56  ;;  %v4296_v56 = vand.u32 4294901760, %v4295_v27  ;;  %v212_v49 = vld [vmem:[%s16536_s1 + $0x598] sm:$0xff]  ;;  %v16960_v27 = vand.u32 4294901760, %v12252_v17  ;;  %v211_v17 = vld [vmem:[%s16536_s1 + $0x590] sm:$0xff] }
 0x229   :  { %4028 = vmatpush.msrb.mxu1 %v4027_v63  ;;  %4146 = vmatpush.msra.mxu0 %v16959_v3  ;;  %v12583_v63 = vsub.f32 %v215_v38, %v12555_v6  ;;  %v12596_v38 = vsub.f32 %v214_v9, %v12570_v58  ;;  %v12598_v53 = vand.u32 4294901760, %v212_v49  ;;  %v4319_v9 = vsub.f32 %v12553_v40, %v16676_v45 }
 0x22a   :  { %4030 = vmatmul.f32.vlgmr.msrb.gmra.mxu1 %v12333_v11  ;;  %4238 = vmatpush.msra.mxu2 %v12439_v19  ;;  %v4302_v3 = vand.u32 4294901760, %v4301_v55  ;;  %v16961_v55 = vand.u32 4294901760, %v12279_v35  ;;  %v210_v35 = vld [vmem:[%s16536_s1 + $0x588] sm:$0xff] }
 0x22b   :  { %4197 = vmatpush.msra.mxu1 %v12166_v32  ;;  %4285 = vmatpush.msra.mxu3 %v4284_v25  ;;  %v4313_v32 = vsub.f32 %v12531_v16, %v16678_v33  ;;  %v16677_v25 = vand.u32 4294901760, %v12568_v29  ;;  %v12628_v45 = vsub.f32 %v212_v49, %v12598_v53 }
 0x22c   :  { %4150 = vmatpush.msra.mxu0 %v16960_v27  ;;  %4240 = vmatpush.msra.mxu2 %v12447_v14  ;;  %v12612_v27 = vsub.f32 %v213_v21, %v12585_v59 }
 0x22d   :  { %4199 = vmatpush.msra.mxu1 %v12176_v46  ;;  %4291 = vmatpush.msra.mxu3 %v4290_v60  ;;  %v4308_v46 = vand.u32 4294901760, %v4307_v31  ;;  %v4330_v60 = vand.u32 4294901760, %v12583_v63  ;;  %v4325_v21 = vsub.f32 %v12568_v29, %v16677_v25  ;;  %v4336_v31 = vand.u32 4294901760, %v12596_v38 }
 0x22e   :  { %4154 = vmatpush.msra.mxu0 %v16961_v55  ;;  %4242 = vmatpush.msra.mxu2 %v12459_v22  ;;  %v16962_v55 = vand.u32 4294901760, %v12295_v36  ;;  %v209_v36 = vld [vmem:[%s16536_s1 + $0x580] sm:$0xff]  ;;  %v4342_v25 = vand.u32 4294901760, %v12612_v27 }
 0x22f   :  { %4201 = vmatpush.msra.mxu1 %v12186_v43  ;;  %4297 = vmatpush.msra.mxu3 %v4296_v56  ;;  %v12620_v43 = vand.u32 4294901760, %v211_v17  ;;  %v4314_v56 = vand.u32 4294901760, %v4313_v32  ;;  %v4320_v32 = vand.u32 4294901760, %v4319_v9  ;;  %v4331_v49 = vsub.f32 %v12583_v63, %v4330_v60 }
 0x230   :  { %4158 = vmatpush.msra.mxu0 %v16962_v55  ;;  %4244 = vmatpush.msra.mxu2 %v12482_v18  ;;  %v16963_v55 = vand.u32 4294901760, %v12311_v52  ;;  %v16964_v52 = vand.u32 4294901760, %v12326_v26  ;;  %v12652_v33 = vand.u32 4294901760, %v209_v36  ;;  %v4348_v9 = vand.u32 4294901760, %v12628_v45 }
 0x231   :  { %4203 = vmatpush.msra.mxu1 %v12199_v30  ;;  %4303 = vmatpush.msra.mxu3 %v4302_v3  ;;  %v12636_v30 = vand.u32 4294901760, %v210_v35  ;;  %v12639_v3 = vand.u32 4294901760, %v12545_v23  ;;  %v16965_v26 = vand.u32 4294901760, %v12343_v8  ;;  %v16966_v8 = vand.u32 4294901760, %v12355_v48 }
 0x232   :  { %4162 = vmatpush.msra.mxu0 %v16963_v55  ;;  %4246 = vmatpush.msra.mxu2 %v12500_v5  ;;  %v12650_v55 = vsub.f32 %v211_v17, %v12620_v43 }
 0x233   :  { %4205 = vmatpush.msra.mxu1 %v12210_v37  ;;  %4309 = vmatpush.msra.mxu3 %v4308_v46  ;;  %v4326_v37 = vand.u32 4294901760, %v4325_v21  ;;  %v4337_v46 = vsub.f32 %v12596_v38, %v4336_v31  ;;  %v12663_v17 = vsub.f32 %v210_v35, %v12636_v30  ;;  %v12678_v21 = vsub.f32 %v209_v36, %v12652_v33 }
 0x234   :  { %4166 = vmatpush.msra.mxu0 %v16964_v52  ;;  %4248 = vmatpush.msra.mxu2 %v12516_v41  ;;  %v12667_v52 = vsub.f32 %v12545_v23, %v12639_v3  ;;  %v4354_v35 = vand.u32 4294901760, %v12650_v55  ;;  %v4349_v23 = vsub.f32 %v12628_v45, %v4348_v9 }
 0x235   :  { %4207 = vmatpush.msra.mxu1 %v12221_v7  ;;  %4315 = vmatpush.msra.mxu3 %v4314_v56  ;;  %v4332_v7 = vand.u32 4294901760, %v4331_v49  ;;  %v4343_v56 = vsub.f32 %v12612_v27, %v4342_v25  ;;  %v4360_v48 = vand.u32 4294901760, %v12663_v17 }
 0x236   :  { %4170 = vmatpush.msra.mxu0 %v16965_v26  ;;  %4250 = vmatpush.msra.mxu2 %v12533_v1  ;;  %v4267_v49 = vand.u32 4294901760, %v12667_v52  ;;  %v16969_v26 = vand.u32 4294901760, %v12409_v10 }
 0x237   :  { %4209 = vmatpush.msra.mxu1 %v12246_v47  ;;  %4321 = vmatpush.msra.mxu3 %v4320_v32  ;;  %v4338_v47 = vand.u32 4294901760, %v4337_v46  ;;  %v16967_v32 = vand.u32 4294901760, %v12371_v24  ;;  %v4344_v36 = vand.u32 4294901760, %v4343_v56  ;;  %v4355_v24 = vsub.f32 %v12650_v55, %v4354_v35 }
 0x238   :  { %4174 = vmatpush.msra.mxu0 %v16966_v8  ;;  %4252 = vmatpush.msra.mxu2 %v12555_v6  ;;  %v4350_v46 = vand.u32 4294901760, %v4349_v23 }
 0x239   :  { %4211 = vmatpush.msra.mxu1 %v12262_v39  ;;  %4327 = vmatpush.msra.mxu3 %v4326_v37  ;;  %v16968_v39 = vand.u32 4294901760, %v12389_v28  ;;  %v4366_v37 = vand.u32 4294901760, %v12678_v21  ;;  %v4268_v28 = vsub.f32 %v12667_v52, %v4267_v49  ;;  %v4356_v10 = vand.u32 4294901760, %v4355_v24 }
 0x23a   :  { %4178 = vmatpush.msra.mxu0 %v16967_v32  ;;  %4254 = vmatpush.msra.mxu2 %v12570_v58 }
 0x23b   :  { %4213 = vmatpush.msra.mxu1 %v12276_v13  ;;  %4333 = vmatpush.msra.mxu3 %v4332_v7  ;;  %v4361_v13 = vsub.f32 %v12663_v17, %v4360_v48  ;;  %v4367_v7 = vsub.f32 %v12678_v21, %v4366_v37 }
 0x23c   :  { %4182 = vmatpush.msra.mxu0 %v16968_v39  ;;  %4256 = vmatpush.msra.mxu2 %v12585_v59 }
 0x23d   :  { %4215 = vmatpush.msra.mxu1 %v12292_v42  ;;  %4339 = vmatpush.msra.mxu3 %v4338_v47  ;;  %v16970_v42 = vand.u32 4294901760, %v12437_v62  ;;  %v4362_v56 = vand.u32 4294901760, %v4361_v13  ;;  %v4368_v62 = vand.u32 4294901760, %v4367_v7 }
 0x23e   :  { %4186 = vmatpush.msra.mxu0 %v16969_v26  ;;  %4258 = vmatpush.msra.mxu2 %v12598_v53 }
 0x23f   :  { %4217 = vmatpush.msra.mxu1 %v12307_v12  ;;  %4345 = vmatpush.msra.mxu3 %v4344_v36  ;;  %v4269_v12 = vand.u32 4294901760, %v4268_v28 }
 0x240   :  { %4190 = vmatpush.msra.mxu0 %v16970_v42  ;;  %4260 = vmatpush.msra.mxu2 %v12620_v43 }
 0x241   :  { %4219 = vmatpush.msra.mxu1 %v12322_v2  ;;  %4351 = vmatpush.msra.mxu3 %v4350_v46  ;;  %v16971_v2 = vand.u32 4294901760, %v12430_v34  ;;  %v229_v46 = vld [vmem:[%s16536_s1 + $0x620] sm:$0xff] }
 0x242   :  { %4192 = vmatmul.f32.vlgmr.msra.gmra.mxu0 %v12333_v11  ;;  %4262 = vmatpush.msra.mxu2 %v12636_v30 }
 0x243   :  { %4377 = vmatpush.msrb.mxu0 %v12430_v34  ;;  %4221 = vmatpush.msra.mxu1 %v12339_v61  ;;  %v16972_v61 = vand.u32 4294901760, %v12454_v50  ;;  %v16974_v34 = vand.u32 4294901760, %v12467_v54 }
 0x244   :  { %4357 = vmatpush.msra.mxu3 %v4356_v10  ;;  %4264 = vmatpush.msra.mxu2 %v12652_v33  ;;  %v228_v10 = vld [vmem:[%s16536_s1 + $0x618] sm:$0xff] }
 0x245   :  { %4380 = vmatpush.msrb.mxu0 %v12454_v50  ;;  %4223 = vmatpush.msra.mxu1 %v12351_v51  ;;  %v16973_v51 = vld [vmem:[#allocation5_spill] sm:$0xff]  ;;  %v16980_v50 = vand.u32 4294901760, %v12568_v29 }
 0x246   :  { %4363 = vmatpush.msra.mxu3 %v4362_v56  ;;  %4270 = vmatmul.f32.vlgmr.msra.gmra.mxu2 %v4269_v12  ;;  %v12935_v56 = vand.u32 4294901760, %v229_v46 }
 0x247   :  { %4383 = vmatpush.msrb.mxu0 %v12467_v54  ;;  %4471 = vmatpush.msrb.mxu2 %v16971_v2 }
 0x248   :  { %4225 = vmatpush.msra.mxu1 %v12378_v15  ;;  %4369 = vmatpush.msra.mxu3 %v4368_v62  ;;  %v16975_v15 = vand.u32 4294901760, %v12475_v4 }
 0x249   :  { %4371 = vmatmul.f32.vlgmr.msra.gmra.mxu3 %v12639_v3  ;;  %4386 = vmatpush.msrb.mxu0 %v12475_v4  ;;  %v16978_v4 = vand.u32 4294901760, %v12531_v16 }
 0x24a   :  { %4475 = vmatpush.msrb.mxu2 %v16972_v61  ;;  %4538 = vmatpush.msrb.mxu3 %v12394_v57  ;;  %v227_v61 = vld [vmem:[%s16536_s1 + $0x610] sm:$0xff] }
 0x24b   :  { %4227 = vmatpush.msra.mxu1 %v16973_v51  ;;  %4389 = vmatpush.msrb.mxu0 %v12489_v0 }
 0x24c   :  { %4229 = vmatmul.f32.vlgmr.msra.gmra.mxu1 %v12333_v11  ;;  %4479 = vmatpush.msrb.mxu2 %v16974_v34  ;;  %v16976_v11 = vand.u32 4294901760, %v12489_v0 }
 0x24d   :  { %4430 = vmatpush.msrb.mxu1 %v12394_v57  ;;  %4540 = vmatpush.msrb.mxu3 %v12419_v44  ;;  %v16977_v57 = vand.u32 4294901760, %v12514_v20 }
 0x24e   :  { %4392 = vmatpush.msrb.mxu0 %v12514_v20  ;;  %4483 = vmatpush.msrb.mxu2 %v16975_v15  ;;  %v12952_v15 = vand.u32 4294901760, %v228_v10 }
 0x24f   :  { %4432 = vmatpush.msrb.mxu1 %v12419_v44  ;;  %4542 = vmatpush.msrb.mxu3 %v12439_v19  ;;  %v237_v44 = vld [vmem:[%s16536_s1 + $0x660] sm:$0xff] }
 0x250   :  { %4395 = vmatpush.msrb.mxu0 %v12531_v16  ;;  %4487 = vmatpush.msrb.mxu2 %v16976_v11  ;;  %v235_v16 = vld [vmem:[%s16536_s1 + $0x650] sm:$0xff] }
 0x251   :  { %4434 = vmatpush.msrb.mxu1 %v12439_v19  ;;  %4544 = vmatpush.msrb.mxu3 %v12447_v14  ;;  %v16979_v19 = vand.u32 4294901760, %v12553_v40 }
 0x252   :  { %4398 = vmatpush.msrb.mxu0 %v12553_v40  ;;  %4491 = vmatpush.msrb.mxu2 %v16977_v57 }
 0x253   :  { %4436 = vmatpush.msrb.mxu1 %v12447_v14  ;;  %4546 = vmatpush.msrb.mxu3 %v12459_v22 }
 0x254   :  { %4401 = vmatpush.msrb.mxu0 %v12568_v29  ;;  %4495 = vmatpush.msrb.mxu2 %v16978_v4 }
 0x255   :  { %4438 = vmatpush.msrb.mxu1 %v12459_v22  ;;  %4548 = vmatpush.msrb.mxu3 %v12482_v18  ;;  %v240_v22 = vld [vmem:[%s16536_s1 + $0x678] sm:$0xff] }
 0x256   :  { %4404 = vmatpush.msrb.mxu0 %v12583_v63  ;;  %4499 = vmatpush.msrb.mxu2 %v16979_v19  ;;  %v12779_v40 = vand.u32 4294901760, %v240_v22  ;;  %v234_v63 = vld [vmem:[%s16536_s1 + $0x648] sm:$0xff] }
 0x257   :  { %4440 = vmatpush.msrb.mxu1 %v12482_v18  ;;  %4550 = vmatpush.msrb.mxu3 %v12500_v5  ;;  %v239_v18 = vld [vmem:[%s16536_s1 + $0x670] sm:$0xff] }
 0x258   :  { %4407 = vmatpush.msrb.mxu0 %v12596_v38  ;;  %4503 = vmatpush.msrb.mxu2 %v16980_v50  ;;  %v12789_v54 = vand.u32 4294901760, %v239_v18  ;;  %v12802_v14 = vsub.f32 %v240_v22, %v12779_v40  ;;  %v12964_v50 = vand.u32 4294901760, %v227_v61 }
 0x259   :  { %4442 = vmatpush.msrb.mxu1 %v12500_v5  ;;  %4552 = vmatpush.msrb.mxu3 %v12516_v41  ;;  %v238_v5 = vld [vmem:[%s16536_s1 + $0x668] sm:$0xff] }
 0x25a   :  { %4410 = vmatpush.msrb.mxu0 %v12612_v27  ;;  %4507 = vmatpush.msrb.mxu2 %v4330_v60  ;;  %v12799_v0 = vand.u32 4294901760, %v238_v5  ;;  %v12815_v20 = vsub.f32 %v239_v18, %v12789_v54  ;;  %v4617_v29 = vand.u32 4294901760, %v12802_v14  ;;  %v233_v60 = vld [vmem:[%s16536_s1 + $0x640] sm:$0xff]  ;;  %v12859_v27 = vand.u32 4294901760, %v234_v63 }
 0x25b   :  { %4444 = vmatpush.msrb.mxu1 %v12516_v41  ;;  %4554 = vmatpush.msrb.mxu3 %v12533_v1  ;;  %v236_v41 = vld [vmem:[%s16536_s1 + $0x658] sm:$0xff]  ;;  %v12968_v18 = vsub.f32 %v229_v46, %v12935_v56 }
 0x25c   :  { %4413 = vmatpush.msrb.mxu0 %v12628_v45  ;;  %4511 = vmatpush.msrb.mxu2 %v4336_v31  ;;  %v12834_v45 = vand.u32 4294901760, %v235_v16 }
 0x25d   :  { %4446 = vmatpush.msrb.mxu1 %v12533_v1  ;;  %4556 = vmatpush.msrb.mxu3 %v12555_v6  ;;  %v12823_v1 = vand.u32 4294901760, %v236_v41 }
 0x25e   :  { %4416 = vmatpush.msrb.mxu0 %v12650_v55  ;;  %4515 = vmatpush.msrb.mxu2 %v4342_v25  ;;  %v12865_v55 = vsub.f32 %v235_v16, %v12834_v45 }
 0x25f   :  { %4448 = vmatpush.msrb.mxu1 %v12555_v6  ;;  %4558 = vmatpush.msrb.mxu3 %v12570_v58  ;;  %v12812_v6 = vand.u32 4294901760, %v237_v44  ;;  %v12849_v38 = vsub.f32 %v236_v41, %v12823_v1 }
 0x260   :  { %4419 = vmatpush.msrb.mxu0 %v12663_v17  ;;  %4519 = vmatpush.msrb.mxu2 %v4348_v9  ;;  %v232_v9 = vld [vmem:[%s16536_s1 + $0x638] sm:$0xff]  ;;  %v12875_v17 = vand.u32 4294901760, %v233_v60 }
 0x261   :  { %4450 = vmatpush.msrb.mxu1 %v12570_v58  ;;  %4560 = vmatpush.msrb.mxu3 %v12585_v59  ;;  %v12829_v58 = vsub.f32 %v238_v5, %v12799_v0  ;;  %v12843_v25 = vsub.f32 %v237_v44, %v12812_v6  ;;  %v12889_v32 = vand.u32 4294901760, %v232_v9  ;;  %v226_v5 = vld [vmem:[%s16536_s1 + $0x608] sm:$0xff] }
 0x262   :  { %4422 = vmatpush.msrb.mxu0 %v12678_v21  ;;  %4523 = vmatpush.msrb.mxu2 %v4354_v35  ;;  %v16689_v35 = vand.u32 4294901760, %v12849_v38  ;;  %v231_v21 = vld [vmem:[%s16536_s1 + $0x630] sm:$0xff] }
 0x263   :  { %4452 = vmatpush.msrb.mxu1 %v12585_v59  ;;  %4562 = vmatpush.msrb.mxu3 %v12598_v53  ;;  %v4623_v59 = vand.u32 4294901760, %v12815_v20  ;;  %v4629_v31 = vand.u32 4294901760, %v12829_v58  ;;  %v16692_v8 = vand.u32 4294901760, %v12843_v25  ;;  %v12905_v24 = vand.u32 4294901760, %v231_v21 }
 0x264   :  { %4425 = vmatmul.f32.vlgmr.msrb.gmra.mxu0 %v12667_v52  ;;  %4527 = vmatpush.msrb.mxu2 %v4360_v48  ;;  %v16687_v48 = vand.u32 4294901760, %v12865_v55  ;;  %v12924_v52 = vsub.f32 %v232_v9, %v12889_v32  ;;  %v12991_v9 = vand.u32 4294901760, %v226_v5 }
 0x265   :  { %4575 = vmatpush.msra.mxu0 %v12779_v40  ;;  %4454 = vmatpush.msrb.mxu1 %v12598_v53  ;;  %v4618_v53 = vsub.f32 %v12802_v14, %v4617_v29  ;;  %v4630_v23 = vsub.f32 %v12829_v58, %v4629_v31  ;;  %v4636_v39 = vsub.f32 %v12843_v25, %v16692_v8 }
 0x266   :  { %4564 = vmatpush.msrb.mxu3 %v12620_v43  ;;  %4531 = vmatpush.msrb.mxu2 %v4366_v37  ;;  %v12908_v37 = vsub.f32 %v233_v60, %v12875_v17  ;;  %v4648_v42 = vsub.f32 %v12865_v55, %v16687_v48  ;;  %v12939_v62 = vsub.f32 %v231_v21, %v12905_v24  ;;  %v16683_v11 = vand.u32 4294901760, %v12924_v52 }
 0x267   :  { %4577 = vmatpush.msra.mxu0 %v12789_v54  ;;  %4456 = vmatpush.msrb.mxu1 %v12620_v43  ;;  %v4624_v43 = vsub.f32 %v12815_v20, %v4623_v59  ;;  %v4619_v47 = vand.u32 4294901760, %v4618_v53  ;;  %v4631_v26 = vand.u32 4294901760, %v4630_v23  ;;  %v4637_v7 = vand.u32 4294901760, %v4636_v39  ;;  %v256_v53 = vld [vmem:[%s16536_s1 + $0x6f8] sm:$0xff] }
 0x268   :  { %4566 = vmatpush.msrb.mxu3 %v12636_v30  ;;  %4533 = vmatmul.f32.vlgmr.msrb.gmra.mxu2 %v12639_v3  ;;  %v16684_v12 = vand.u32 4294901760, %v12908_v37  ;;  %v4649_v4 = vand.u32 4294901760, %v4648_v42  ;;  %v16682_v22 = vand.u32 4294901760, %v12939_v62  ;;  %v4666_v16 = vsub.f32 %v12924_v52, %v16683_v11 }
 0x269   :  { %4579 = vmatpush.msra.mxu0 %v12799_v0  ;;  %4718 = vmatpush.msra.mxu2 %v12802_v14  ;;  %v4625_v36 = vand.u32 4294901760, %v4624_v43  ;;  %v12984_v60 = vsub.f32 %v228_v10, %v12952_v15  ;;  %v225_v43 = vld [vmem:[%s16536_s1 + $0x600] sm:$0xff]  ;;  %v16679_v23 = vand.u32 4294901760, %v12968_v18  ;;  %v13007_v39 = vand.u32 4294901760, %v256_v53  ;;  %v248_v14 = vld [vmem:[%s16536_s1 + $0x6b8] sm:$0xff] }
 0x26a   :  { %4458 = vmatpush.msrb.mxu1 %v12636_v30  ;;  %4568 = vmatpush.msrb.mxu3 %v12652_v33  ;;  %v12892_v30 = vsub.f32 %v234_v63, %v12859_v27  ;;  %v4660_v19 = vsub.f32 %v12908_v37, %v16684_v12  ;;  %v4667_v46 = vand.u32 4294901760, %v4666_v16  ;;  %v13022_v10 = vsub.f32 %v226_v5, %v12991_v9 }
 0x26b   :  { %4570 = vmatmul.f32.vlgmr.msrb.gmra.mxu3 %v12639_v3  ;;  %4581 = vmatpush.msra.mxu0 %v12812_v6  ;;  %v230_v3 = vld [vmem:[%s16536_s1 + $0x628] sm:$0xff]  ;;  %v16681_v42 = vand.u32 4294901760, %v12984_v60 }
 0x26c   :  { %4721 = vmatpush.msra.mxu2 %v12815_v20  ;;  %4771 = vmatpush.msra.mxu3 %v12779_v40  ;;  %v12920_v13 = vand.u32 4294901760, %v230_v3  ;;  %v16686_v28 = vand.u32 4294901760, %v12892_v30  ;;  %v4661_v21 = vand.u32 4294901760, %v4660_v19  ;;  %v253_v19 = vld [vmem:[%s16536_s1 + $0x6e0] sm:$0xff]  ;;  %v247_v20 = vld [vmem:[%s16536_s1 + $0x6b0] sm:$0xff] }
 0x26d   :  { %4460 = vmatpush.msrb.mxu1 %v12652_v33  ;;  %4583 = vmatpush.msra.mxu0 %v12823_v1  ;;  %v4642_v33 = vsub.f32 %v12849_v38, %v16689_v35 }
 0x26e   :  { %4464 = vmatmul.f32.vlgmr.msrb.gmra.mxu1 %v4267_v49  ;;  %4724 = vmatpush.msra.mxu2 %v12829_v58  ;;  %v444_v49 = vld.sshfl [vmem:[#allocation1 + $0x20] sm:$0xff pattern:$0x73625140]  ;;  %v4654_v34 = vsub.f32 %v12892_v30, %v16686_v28  ;;  %v12956_v57 = vsub.f32 %v230_v3, %v12920_v13  ;;  %v13002_v3 = vsub.f32 %v227_v61, %v12964_v50 }
 0x26f   :  { %4620 = vmatpush.msra.mxu1 %v4619_v47  ;;  %4773 = vmatpush.msra.mxu3 %v12789_v54  ;;  %v4643_v2 = vand.u32 4294901760, %v4642_v33  ;;  %v12946_v51 = vand.u32 4294901760, %v444_v49  ;;  %v4672_v47 = vsub.f32 %v12939_v62, %v16682_v22  ;;  %v255_v33 = vld [vmem:[%s16536_s1 + $0x6f0] sm:$0xff]  ;;  %v4684_v61 = vsub.f32 %v12968_v18, %v16679_v23 }
 0x270   :  { %4585 = vmatpush.msra.mxu0 %v12834_v45  ;;  %4727 = vmatpush.msra.mxu2 %v12843_v25  ;;  %v4655_v41 = vand.u32 4294901760, %v4654_v34  ;;  %v16680_v63 = vand.u32 4294901760, %v12956_v57  ;;  %v16685_v34 = vand.u32 4294901760, %v13002_v3 }
 0x271   :  { %4626 = vmatpush.msra.mxu1 %v4625_v36  ;;  %4775 = vmatpush.msra.mxu3 %v12799_v0  ;;  %v12976_v44 = vsub.f32 %v444_v49, %v12946_v51  ;;  %v13016_v49 = vand.u32 4294901760, %v225_v43 }
 0x272   :  { %4587 = vmatpush.msra.mxu0 %v12859_v27  ;;  %4730 = vmatpush.msra.mxu2 %v12849_v38 }
 0x273   :  { %4632 = vmatpush.msra.mxu1 %v4631_v26  ;;  %4777 = vmatpush.msra.mxu3 %v12812_v6  ;;  %v4608_v36 = vand.u32 4294901760, %v12976_v44  ;;  %v4678_v26 = vsub.f32 %v12956_v57, %v16680_v63  ;;  %v252_v63 = vld [vmem:[%s16536_s1 + $0x6d8] sm:$0xff] }
 0x274   :  { %4589 = vmatpush.msra.mxu0 %v12875_v17  ;;  %4733 = vmatpush.msra.mxu2 %v12865_v55  ;;  %v13072_v12 = vand.u32 4294901760, %v252_v63 }
 0x275   :  { %4638 = vmatpush.msra.mxu1 %v4637_v7  ;;  %4779 = vmatpush.msra.mxu3 %v12823_v1  ;;  %v254_v7 = vld [vmem:[%s16536_s1 + $0x6e8] sm:$0xff]  ;;  %v4609_v5 = vsub.f32 %v12976_v44, %v4608_v36  ;;  %v4679_v16 = vand.u32 4294901760, %v4678_v26  ;;  %v4685_v26 = vand.u32 4294901760, %v4684_v61 }
 0x276   :  { %4591 = vmatpush.msra.mxu0 %v12889_v32  ;;  %4736 = vmatpush.msra.mxu2 %v12892_v30  ;;  %v13052_v23 = vand.u32 4294901760, %v254_v7 }
 0x277   :  { %4644 = vmatpush.msra.mxu1 %v4643_v2  ;;  %4781 = vmatpush.msra.mxu3 %v12834_v45  ;;  %v4673_v2 = vand.u32 4294901760, %v4672_v47  ;;  %v13050_v47 = vsub.f32 %v225_v43, %v13016_v49  ;;  %v4696_v43 = vsub.f32 %v13002_v3, %v16685_v34  ;;  %v4610_v22 = vand.u32 4294901760, %v4609_v5 }
 0x278   :  { %4593 = vmatpush.msra.mxu0 %v12905_v24  ;;  %4739 = vmatpush.msra.mxu2 %v12908_v37  ;;  %v13080_v34 = vsub.f32 %v254_v7, %v13052_v23 }
 0x279   :  { %4650 = vmatpush.msra.mxu1 %v4649_v4  ;;  %4783 = vmatpush.msra.mxu3 %v12859_v27  ;;  %v13032_v4 = vand.u32 4294901760, %v255_v33  ;;  %v4697_v7 = vand.u32 4294901760, %v4696_v43 }
 0x27a   :  { %4595 = vmatpush.msra.mxu0 %v12920_v13  ;;  %4742 = vmatpush.msra.mxu2 %v12924_v52  ;;  %v16693_v43 = vand.u32 4294901760, %v13080_v34 }
 0x27b   :  { %4656 = vmatpush.msra.mxu1 %v4655_v41  ;;  %4785 = vmatpush.msra.mxu3 %v12875_v17  ;;  %v13043_v41 = vsub.f32 %v256_v53, %v13007_v39  ;;  %v16688_v53 = vand.u32 4294901760, %v13022_v10 }
 0x27c   :  { %4597 = vmatpush.msra.mxu0 %v12935_v56  ;;  %4745 = vmatpush.msra.mxu2 %v12939_v62 }
 0x27d   :  { %4662 = vmatpush.msra.mxu1 %v4661_v21  ;;  %4787 = vmatpush.msra.mxu3 %v12889_v32  ;;  %v4690_v21 = vsub.f32 %v12984_v60, %v16681_v42  ;;  %v13067_v42 = vsub.f32 %v255_v33, %v13032_v4  ;;  %v16690_v11 = vand.u32 4294901760, %v13043_v41  ;;  %v16691_v33 = vand.u32 4294901760, %v13050_v47 }
 0x27e   :  { %4599 = vmatpush.msra.mxu0 %v12952_v15  ;;  %4748 = vmatpush.msra.mxu2 %v12956_v57  ;;  %v4702_v5 = vsub.f32 %v13022_v10, %v16688_v53  ;;  %v13102_v53 = vsub.f32 %v252_v63, %v13072_v12 }
 0x27f   :  { %4668 = vmatpush.msra.mxu1 %v4667_v46  ;;  %4789 = vmatpush.msra.mxu3 %v12905_v24  ;;  %v13060_v46 = vand.u32 4294901760, %v253_v19  ;;  %v4691_v61 = vand.u32 4294901760, %v4690_v21  ;;  %v16694_v21 = vand.u32 4294901760, %v13067_v42 }
 0x280   :  { %4601 = vmatpush.msra.mxu0 %v12964_v50  ;;  %4751 = vmatpush.msra.mxu2 %v12968_v18  ;;  %v4703_v63 = vand.u32 4294901760, %v4702_v5  ;;  %v16696_v8 = vand.u32 4294901760, %v13102_v53 }
 0x281   :  { %4674 = vmatpush.msra.mxu1 %v4673_v2  ;;  %4791 = vmatpush.msra.mxu3 %v12920_v13  ;;  %v251_v2 = vld [vmem:[%s16536_s1 + $0x6d0] sm:$0xff]  ;;  %v13088_v28 = vsub.f32 %v253_v19, %v13060_v46  ;;  %v4959_v19 = vsub.f32 %v13043_v41, %v16690_v11 }
 0x282   :  { %4603 = vmatpush.msra.mxu0 %v12991_v9  ;;  %4754 = vmatpush.msra.mxu2 %v12984_v60  ;;  %v13095_v48 = vand.u32 4294901760, %v251_v2 }
 0x283   :  { %4680 = vmatpush.msra.mxu1 %v4679_v16  ;;  %4793 = vmatpush.msra.mxu3 %v12935_v56  ;;  %v250_v16 = vld [vmem:[%s16536_s1 + $0x6c8] sm:$0xff]  ;;  %v16695_v11 = vand.u32 4294901760, %v13088_v28  ;;  %v4960_v5 = vand.u32 4294901760, %v4959_v19  ;;  %v13146_v19 = vand.u32 4294901760, %v248_v14 }
 0x284   :  { %4605 = vmatpush.msra.mxu0 %v13016_v49  ;;  %4757 = vmatpush.msra.mxu2 %v13002_v3  ;;  %v13113_v35 = vand.u32 4294901760, %v250_v16 }
 0x285   :  { %4686 = vmatpush.msra.mxu1 %v4685_v26  ;;  %4795 = vmatpush.msra.mxu3 %v12952_v15  ;;  %v249_v26 = vld [vmem:[%s16536_s1 + $0x6c0] sm:$0xff]  ;;  %v4977_v58 = vsub.f32 %v13088_v28, %v16695_v11  ;;  %v4983_v11 = vsub.f32 %v13102_v53, %v16696_v8 }
 0x286   :  { %4611 = vmatmul.f32.vlgmr.msra.gmra.mxu0 %v4610_v22  ;;  %4760 = vmatpush.msra.mxu2 %v13022_v10  ;;  %v4708_v22 = vsub.f32 %v13050_v47, %v16691_v33  ;;  %v13129_v33 = vand.u32 4294901760, %v249_v26 }
 0x287   :  { %4812 = vmatpush.msrb.mxu0 %v4617_v29  ;;  %4692 = vmatpush.msra.mxu1 %v4691_v61  ;;  %v4965_v29 = vsub.f32 %v13067_v42, %v16694_v21  ;;  %v13127_v61 = vsub.f32 %v251_v2, %v13095_v48  ;;  %v4971_v2 = vsub.f32 %v13080_v34, %v16693_v43  ;;  %v13163_v21 = vand.u32 4294901760, %v247_v20 }
 0x288   :  { %4797 = vmatpush.msra.mxu3 %v12964_v50  ;;  %4763 = vmatpush.msra.mxu2 %v13050_v47  ;;  %v4984_v8 = vand.u32 4294901760, %v4983_v11  ;;  %v16984_v11 = vand.u32 4294901760, %v12892_v30  ;;  %v242_v30 = vld [vmem:[%s16536_s1 + $0x688] sm:$0xff] }
 0x289   :  { %4816 = vmatpush.msrb.mxu0 %v4623_v59  ;;  %4698 = vmatpush.msra.mxu1 %v4697_v7  ;;  %v4709_v59 = vand.u32 4294901760, %v4708_v22  ;;  %v13144_v7 = vsub.f32 %v250_v16, %v13113_v35  ;;  %v16981_v22 = vand.u32 4294901760, %v12843_v25  ;;  %v4966_v16 = vand.u32 4294901760, %v4965_v29  ;;  %v245_v25 = vld [vmem:[%s16536_s1 + $0x6a0] sm:$0xff] }
 0x28a   :  { %4799 = vmatpush.msra.mxu3 %v12991_v9  ;;  %4766 = vmatmul.f32.vlgmr.msra.gmra.mxu2 %v12976_v44  ;;  %v16697_v43 = vand.u32 4294901760, %v13127_v61  ;;  %v16982_v44 = vand.u32 4294901760, %v12849_v38  ;;  %v13176_v29 = vsub.f32 %v248_v14, %v13146_v19 }
 0x28b   :  { %4820 = vmatpush.msrb.mxu0 %v4629_v31  ;;  %4916 = vmatpush.msrb.mxu2 %v13007_v39  ;;  %v246_v31 = vld [vmem:[%s16536_s1 + $0x6a8] sm:$0xff] }
 0x28c   :  { %4704 = vmatpush.msra.mxu1 %v4703_v63  ;;  %4801 = vmatpush.msra.mxu3 %v13016_v49  ;;  %v13161_v63 = vsub.f32 %v249_v26, %v13129_v33  ;;  %v16698_v26 = vand.u32 4294901760, %v13144_v7  ;;  %v4989_v38 = vsub.f32 %v13127_v61, %v16697_v43 }
 0x28d   :  { %4805 = vmatmul.f32.vlgmr.msra.gmra.mxu3 %v4608_v36  ;;  %4824 = vmatpush.msrb.mxu0 %v16981_v22  ;;  %v4972_v36 = vand.u32 4294901760, %v4971_v2  ;;  %v13178_v22 = vand.u32 4294901760, %v246_v31  ;;  %v13191_v2 = vsub.f32 %v247_v20, %v13163_v21 }
 0x28e   :  { %4918 = vmatpush.msrb.mxu2 %v13032_v4  ;;  %4961 = vmatpush.msrb.mxu3 %v4960_v5  ;;  %v4978_v5 = vand.u32 4294901760, %v4977_v58  ;;  %v16699_v14 = vand.u32 4294901760, %v13161_v63  ;;  %v16983_v58 = vand.u32 4294901760, %v12865_v55  ;;  %v243_v55 = vld [vmem:[%s16536_s1 + $0x690] sm:$0xff] }
 0x28f   :  { %4710 = vmatpush.msra.mxu1 %v4709_v59  ;;  %4828 = vmatpush.msrb.mxu0 %v16982_v44  ;;  %v244_v59 = vld [vmem:[%s16536_s1 + $0x698] sm:$0xff]  ;;  %v13193_v44 = vand.u32 4294901760, %v245_v25  ;;  %v13204_v20 = vsub.f32 %v246_v31, %v13178_v22 }
 0x290   :  { %4712 = vmatmul.f32.vlgmr.msra.gmra.mxu1 %v12946_v51  ;;  %4920 = vmatpush.msrb.mxu2 %v13052_v23  ;;  %v13206_v43 = vand.u32 4294901760, %v244_v59  ;;  %v5001_v31 = vsub.f32 %v13161_v63, %v16699_v14 }
 0x291   :  { %4879 = vmatpush.msrb.mxu1 %v12779_v40  ;;  %4967 = vmatpush.msrb.mxu3 %v4966_v16  ;;  %v4995_v40 = vsub.f32 %v13144_v7, %v16698_v26  ;;  %v16700_v16 = vand.u32 4294901760, %v13176_v29  ;;  %v16985_v26 = vand.u32 4294901760, %v12908_v37  ;;  %v241_v37 = vld [vmem:[%s16536_s1 + $0x680] sm:$0xff] }
 0x292   :  { %4832 = vmatpush.msrb.mxu0 %v16983_v58  ;;  %4922 = vmatpush.msrb.mxu2 %v13060_v46  ;;  %v13220_v58 = vsub.f32 %v245_v25, %v13193_v44  ;;  %v13236_v14 = vsub.f32 %v244_v59, %v13206_v43 }
 0x293   :  { %4881 = vmatpush.msrb.mxu1 %v12789_v54  ;;  %4973 = vmatpush.msrb.mxu3 %v4972_v36  ;;  %v4990_v54 = vand.u32 4294901760, %v4989_v38  ;;  %v16701_v36 = vand.u32 4294901760, %v13191_v2  ;;  %v5007_v25 = vsub.f32 %v13176_v29, %v16700_v16  ;;  %v16987_v38 = vand.u32 4294901760, %v12939_v62 }
 0x294   :  { %4836 = vmatpush.msrb.mxu0 %v16984_v11  ;;  %4924 = vmatpush.msrb.mxu2 %v13072_v12  ;;  %v445_v11 = vld.sshfl [vmem:[#allocation1 + $0x28] sm:$0xff pattern:$0x73625140]  ;;  %v5024_v16 = vand.u32 4294901760, %v13220_v58  ;;  %v16989_v62 = vand.u32 4294901760, %v12956_v57 }
 0x295   :  { %4883 = vmatpush.msrb.mxu1 %v12799_v0  ;;  %4979 = vmatpush.msrb.mxu3 %v4978_v5  ;;  %v13228_v0 = vand.u32 4294901760, %v243_v55  ;;  %v4996_v5 = vand.u32 4294901760, %v4995_v40  ;;  %v5002_v40 = vand.u32 4294901760, %v5001_v31  ;;  %v5013_v59 = vsub.f32 %v13191_v2, %v16701_v36 }
 0x296   :  { %4840 = vmatpush.msrb.mxu0 %v16985_v26  ;;  %4926 = vmatpush.msrb.mxu2 %v13095_v48  ;;  %v16986_v26 = vand.u32 4294901760, %v12924_v52  ;;  %v5030_v36 = vand.u32 4294901760, %v13236_v14 }
 0x297   :  { %4885 = vmatpush.msrb.mxu1 %v12812_v6  ;;  %4985 = vmatpush.msrb.mxu3 %v4984_v8  ;;  %v13244_v6 = vand.u32 4294901760, %v242_v30  ;;  %v13246_v8 = vand.u32 4294901760, %v445_v11  ;;  %v13257_v52 = vsub.f32 %v243_v55, %v13228_v0 }
 0x298   :  { %4844 = vmatpush.msrb.mxu0 %v16986_v26  ;;  %4928 = vmatpush.msrb.mxu2 %v13113_v35  ;;  %v13259_v26 = vand.u32 4294901760, %v241_v37 }
 0x299   :  { %4887 = vmatpush.msrb.mxu1 %v12823_v1  ;;  %4991 = vmatpush.msrb.mxu3 %v4990_v54  ;;  %v5008_v1 = vand.u32 4294901760, %v5007_v25  ;;  %v16988_v54 = vand.u32 4294901760, %v13204_v20  ;;  %v13270_v55 = vsub.f32 %v242_v30, %v13244_v6  ;;  %v16990_v25 = vand.u32 4294901760, %v12968_v18 }
 0x29a   :  { %4848 = vmatpush.msrb.mxu0 %v16987_v38  ;;  %4930 = vmatpush.msrb.mxu2 %v13129_v33  ;;  %v13273_v38 = vsub.f32 %v445_v11, %v13246_v8  ;;  %v5036_v57 = vand.u32 4294901760, %v13257_v52  ;;  %v13284_v30 = vsub.f32 %v241_v37, %v13259_v26  ;;  %v5031_v11 = vsub.f32 %v13236_v14, %v5030_v36 }
 0x29b   :  { %4889 = vmatpush.msrb.mxu1 %v12834_v45  ;;  %4997 = vmatpush.msrb.mxu3 %v4996_v5  ;;  %v5019_v31 = vsub.f32 %v13204_v20, %v16988_v54  ;;  %v5014_v45 = vand.u32 4294901760, %v5013_v59  ;;  %v5025_v5 = vsub.f32 %v13220_v58, %v5024_v16  ;;  %v5042_v18 = vand.u32 4294901760, %v13270_v55 }
 0x29c   :  { %4852 = vmatpush.msrb.mxu0 %v16989_v62  ;;  %4932 = vmatpush.msrb.mxu2 %v13146_v19  ;;  %v4949_v59 = vand.u32 4294901760, %v13273_v38  ;;  %v5032_v54 = vand.u32 4294901760, %v5031_v11 }
 0x29d   :  { %4891 = vmatpush.msrb.mxu1 %v12859_v27  ;;  %5003 = vmatpush.msrb.mxu3 %v5002_v40  ;;  %v5020_v27 = vand.u32 4294901760, %v5019_v31  ;;  %v16991_v40 = vand.u32 4294901760, %v12984_v60  ;;  %v5026_v37 = vand.u32 4294901760, %v5025_v5  ;;  %v5037_v60 = vsub.f32 %v13257_v52, %v5036_v57  ;;  %v264_v5 = vld [vmem:[%s16536_s1 + $0x738] sm:$0xff] }
 0x29e   :  { %4856 = vmatpush.msrb.mxu0 %v16990_v25  ;;  %4934 = vmatpush.msrb.mxu2 %v13163_v21  ;;  %v16993_v31 = vand.u32 4294901760, %v13022_v10 }
 0x29f   :  { %4893 = vmatpush.msrb.mxu1 %v12875_v17  ;;  %5009 = vmatpush.msrb.mxu3 %v5008_v1  ;;  %v16992_v17 = vand.u32 4294901760, %v13002_v3  ;;  %v5048_v1 = vand.u32 4294901760, %v13284_v30  ;;  %v4950_v3 = vsub.f32 %v13273_v38, %v4949_v59  ;;  %v5038_v10 = vand.u32 4294901760, %v5037_v60 }
 0x2a0   :  { %4860 = vmatpush.msrb.mxu0 %v16991_v40  ;;  %4936 = vmatpush.msrb.mxu2 %v13178_v22 }
 0x2a1   :  { %4895 = vmatpush.msrb.mxu1 %v12889_v32  ;;  %5015 = vmatpush.msrb.mxu3 %v5014_v45  ;;  %v5043_v32 = vsub.f32 %v13270_v55, %v5042_v18  ;;  %v5049_v62 = vsub.f32 %v13284_v30, %v5048_v1 }
 0x2a2   :  { %4864 = vmatpush.msrb.mxu0 %v16992_v17  ;;  %4938 = vmatpush.msrb.mxu2 %v13193_v44 }
 0x2a3   :  { %4897 = vmatpush.msrb.mxu1 %v12905_v24  ;;  %5021 = vmatpush.msrb.mxu3 %v5020_v27  ;;  %v16994_v24 = vand.u32 4294901760, %v13050_v47  ;;  %v5044_v45 = vand.u32 4294901760, %v5043_v32  ;;  %v5050_v47 = vand.u32 4294901760, %v5049_v62  ;;  %v263_v27 = vld [vmem:[%s16536_s1 + $0x730] sm:$0xff]  ;;  %v260_v62 = vld [vmem:[%s16536_s1 + $0x718] sm:$0xff] }
 0x2a4   :  { %4868 = vmatpush.msrb.mxu0 %v16993_v31  ;;  %4940 = vmatpush.msrb.mxu2 %v13206_v43  ;;  %v261_v31 = vld [vmem:[%s16536_s1 + $0x720] sm:$0xff] }
 0x2a5   :  { %4899 = vmatpush.msrb.mxu1 %v12920_v13  ;;  %5027 = vmatpush.msrb.mxu3 %v5026_v37  ;;  %v4951_v13 = vand.u32 4294901760, %v4950_v3 }
 0x2a6   :  { %4872 = vmatpush.msrb.mxu0 %v16994_v24  ;;  %4942 = vmatpush.msrb.mxu2 %v13228_v0 }
 0x2a7   :  { %4901 = vmatpush.msrb.mxu1 %v12935_v56  ;;  %5033 = vmatpush.msrb.mxu3 %v5032_v54  ;;  %v16995_v56 = vand.u32 4294901760, %v13043_v41 }
 0x2a8   :  { %4874 = vmatmul.f32.vlgmr.msrb.gmra.mxu0 %v12946_v51  ;;  %4944 = vmatpush.msrb.mxu2 %v13244_v6 }
 0x2a9   :  { %5059 = vmatpush.msra.mxu0 %v13043_v41  ;;  %4903 = vmatpush.msrb.mxu1 %v12952_v15  ;;  %v16996_v15 = vand.u32 4294901760, %v13067_v42 }
 0x2aa   :  { %5039 = vmatpush.msrb.mxu3 %v5038_v10  ;;  %4946 = vmatpush.msrb.mxu2 %v13259_v26 }
 0x2ab   :  { %5062 = vmatpush.msra.mxu0 %v13067_v42  ;;  %4905 = vmatpush.msrb.mxu1 %v12964_v50  ;;  %v16997_v50 = vand.u32 4294901760, %v13080_v34  ;;  %v17004_v42 = vand.u32 4294901760, %v13191_v2 }
 0x2ac   :  { %5045 = vmatpush.msrb.mxu3 %v5044_v45  ;;  %4952 = vmatmul.f32.vlgmr.msrb.gmra.mxu2 %v4951_v13  ;;  %v13541_v13 = vand.u32 4294901760, %v261_v31 }
 0x2ad   :  { %5065 = vmatpush.msra.mxu0 %v13080_v34  ;;  %5153 = vmatpush.msra.mxu2 %v16995_v56 }
 0x2ae   :  { %4907 = vmatpush.msrb.mxu1 %v12991_v9  ;;  %5051 = vmatpush.msrb.mxu3 %v5050_v47  ;;  %v16998_v9 = vand.u32 4294901760, %v13088_v28 }
 0x2af   :  { %5053 = vmatmul.f32.vlgmr.msrb.gmra.mxu3 %v13246_v8  ;;  %5068 = vmatpush.msra.mxu0 %v13088_v28  ;;  %v17001_v28 = vand.u32 4294901760, %v13144_v7 }
 0x2b0   :  { %5157 = vmatpush.msra.mxu2 %v16996_v15  ;;  %5220 = vmatpush.msra.mxu3 %v13007_v39 }
 0x2b1   :  { %4909 = vmatpush.msrb.mxu1 %v13016_v49  ;;  %5071 = vmatpush.msra.mxu0 %v13102_v53  ;;  %v17003_v49 = vand.u32 4294901760, %v13176_v29 }
 0x2b2   :  { %4911 = vmatmul.f32.vlgmr.msrb.gmra.mxu1 %v12946_v51  ;;  %5161 = vmatpush.msra.mxu2 %v16997_v50  ;;  %v16999_v51 = vand.u32 4294901760, %v13102_v53  ;;  %v269_v53 = vld [vmem:[%s16536_s1 + $0x760] sm:$0xff]  ;;  %v259_v50 = vld [vmem:[%s16536_s1 + $0x710] sm:$0xff] }
 0x2b3   :  { %5112 = vmatpush.msra.mxu1 %v13007_v39  ;;  %5222 = vmatpush.msra.mxu3 %v13032_v4  ;;  %v17000_v39 = vand.u32 4294901760, %v13127_v61 }
 0x2b4   :  { %5074 = vmatpush.msra.mxu0 %v13127_v61  ;;  %5165 = vmatpush.msra.mxu2 %v16998_v9  ;;  %v268_v61 = vld [vmem:[%s16536_s1 + $0x758] sm:$0xff] }
 0x2b5   :  { %5114 = vmatpush.msra.mxu1 %v13032_v4  ;;  %5224 = vmatpush.msra.mxu3 %v13052_v23  ;;  %v270_v4 = vld [vmem:[%s16536_s1 + $0x768] sm:$0xff] }
 0x2b6   :  { %5077 = vmatpush.msra.mxu0 %v13144_v7  ;;  %5169 = vmatpush.msra.mxu2 %v16999_v51 }
 0x2b7   :  { %5116 = vmatpush.msra.mxu1 %v13052_v23  ;;  %5226 = vmatpush.msra.mxu3 %v13060_v46  ;;  %v17002_v23 = vand.u32 4294901760, %v13161_v63 }
 0x2b8   :  { %5080 = vmatpush.msra.mxu0 %v13161_v63  ;;  %5173 = vmatpush.msra.mxu2 %v17000_v39  ;;  %v13429_v63 = vand.u32 4294901760, %v268_v61  ;;  %v13558_v39 = vand.u32 4294901760, %v260_v62 }
 0x2b9   :  { %5118 = vmatpush.msra.mxu1 %v13060_v46  ;;  %5228 = vmatpush.msra.mxu3 %v13072_v12  ;;  %v13405_v46 = vand.u32 4294901760, %v270_v4 }
 0x2ba   :  { %5083 = vmatpush.msra.mxu0 %v13176_v29  ;;  %5177 = vmatpush.msra.mxu2 %v17001_v28 }
 0x2bb   :  { %5120 = vmatpush.msra.mxu1 %v13072_v12  ;;  %5230 = vmatpush.msra.mxu3 %v13095_v48  ;;  %v272_v12 = vld [vmem:[%s16536_s1 + $0x778] sm:$0xff] }
 0x2bc   :  { %5086 = vmatpush.msra.mxu0 %v13191_v2  ;;  %5181 = vmatpush.msra.mxu2 %v17002_v23  ;;  %v13385_v34 = vand.u32 4294901760, %v272_v12  ;;  %v266_v2 = vld [vmem:[%s16536_s1 + $0x748] sm:$0xff] }
 0x2bd   :  { %5122 = vmatpush.msra.mxu1 %v13095_v48  ;;  %5232 = vmatpush.msra.mxu3 %v13113_v35  ;;  %v271_v48 = vld [vmem:[%s16536_s1 + $0x770] sm:$0xff] }
 0x2be   :  { %5089 = vmatpush.msra.mxu0 %v13204_v20  ;;  %5185 = vmatpush.msra.mxu2 %v17003_v49  ;;  %v13395_v41 = vand.u32 4294901760, %v271_v48 }
 0x2bf   :  { %5124 = vmatpush.msra.mxu1 %v13113_v35  ;;  %5234 = vmatpush.msra.mxu3 %v13129_v33  ;;  %v17005_v35 = vand.u32 4294901760, %v13204_v20  ;;  %v13455_v20 = vsub.f32 %v268_v61, %v13429_v63 }
 0x2c0   :  { %5092 = vmatpush.msra.mxu0 %v13220_v58  ;;  %5189 = vmatpush.msra.mxu2 %v17004_v42  ;;  %v13421_v7 = vsub.f32 %v271_v48, %v13395_v41  ;;  %v13465_v58 = vand.u32 4294901760, %v266_v2  ;;  %v13570_v42 = vand.u32 4294901760, %v259_v50 }
 0x2c1   :  { %5126 = vmatpush.msra.mxu1 %v13129_v33  ;;  %5236 = vmatpush.msra.mxu3 %v13146_v19  ;;  %v13408_v33 = vsub.f32 %v272_v12, %v13385_v34 }
 0x2c2   :  { %5095 = vmatpush.msra.mxu0 %v13236_v14  ;;  %5193 = vmatpush.msra.mxu2 %v17005_v35  ;;  %v13574_v35 = vsub.f32 %v261_v31, %v13541_v13 }
 0x2c3   :  { %5128 = vmatpush.msra.mxu1 %v13146_v19  ;;  %5238 = vmatpush.msra.mxu3 %v13163_v21  ;;  %v267_v19 = vld [vmem:[%s16536_s1 + $0x750] sm:$0xff]  ;;  %v5299_v29 = vand.u32 4294901760, %v13408_v33 }
 0x2c4   :  { %5098 = vmatpush.msra.mxu0 %v13257_v52  ;;  %5197 = vmatpush.msra.mxu2 %v5024_v16  ;;  %v13440_v14 = vand.u32 4294901760, %v267_v19 }
 0x2c5   :  { %5130 = vmatpush.msra.mxu1 %v13163_v21  ;;  %5240 = vmatpush.msra.mxu3 %v13178_v22  ;;  %v13418_v21 = vand.u32 4294901760, %v269_v53 }
 0x2c6   :  { %5101 = vmatpush.msra.mxu0 %v13270_v55  ;;  %5201 = vmatpush.msra.mxu2 %v5030_v36  ;;  %v265_v36 = vld [vmem:[%s16536_s1 + $0x740] sm:$0xff]  ;;  %v13471_v55 = vsub.f32 %v267_v19, %v13440_v14 }
 0x2c7   :  { %5132 = vmatpush.msra.mxu1 %v13178_v22  ;;  %5242 = vmatpush.msra.mxu3 %v13193_v44  ;;  %v13435_v22 = vsub.f32 %v270_v4, %v13405_v46  ;;  %v13449_v16 = vsub.f32 %v269_v53, %v13418_v21  ;;  %v13481_v25 = vand.u32 4294901760, %v265_v36  ;;  %v258_v4 = vld [vmem:[%s16536_s1 + $0x708] sm:$0xff] }
 0x2c8   :  { %5104 = vmatpush.msra.mxu0 %v13284_v30  ;;  %5205 = vmatpush.msra.mxu2 %v5036_v57  ;;  %v16712_v30 = vand.u32 4294901760, %v13455_v20  ;;  %v16710_v37 = vand.u32 4294901760, %v13471_v55 }
 0x2c9   :  { %5134 = vmatpush.msra.mxu1 %v13193_v44  ;;  %5244 = vmatpush.msra.mxu3 %v13206_v43  ;;  %v5305_v44 = vand.u32 4294901760, %v13421_v7  ;;  %v5311_v52 = vand.u32 4294901760, %v13435_v22  ;;  %v16715_v57 = vand.u32 4294901760, %v13449_v16  ;;  %v13514_v54 = vsub.f32 %v265_v36, %v13481_v25 }
 0x2ca   :  { %5107 = vmatmul.f32.vlgmr.msra.gmra.mxu0 %v13273_v38  ;;  %5209 = vmatpush.msra.mxu2 %v5042_v18  ;;  %v13495_v18 = vand.u32 4294901760, %v264_v5  ;;  %v5330_v10 = vsub.f32 %v13471_v55, %v16710_v37  ;;  %v13590_v36 = vsub.f32 %v260_v62, %v13558_v39 }
 0x2cb   :  { %5257 = vmatpush.msrb.mxu0 %v13385_v34  ;;  %5136 = vmatpush.msra.mxu1 %v13206_v43  ;;  %v5300_v43 = vsub.f32 %v13408_v33, %v5299_v29  ;;  %v5312_v40 = vsub.f32 %v13435_v22, %v5311_v52  ;;  %v5318_v60 = vsub.f32 %v13449_v16, %v16715_v57  ;;  %v16707_v47 = vand.u32 4294901760, %v13514_v54 }
 0x2cc   :  { %5246 = vmatpush.msra.mxu3 %v13228_v0  ;;  %5213 = vmatpush.msra.mxu2 %v5048_v1  ;;  %v13511_v1 = vand.u32 4294901760, %v263_v27  ;;  %v13530_v38 = vsub.f32 %v264_v5, %v13495_v18  ;;  %v5331_v49 = vand.u32 4294901760, %v5330_v10  ;;  %v13597_v5 = vand.u32 4294901760, %v258_v4 }
 0x2cd   :  { %5259 = vmatpush.msrb.mxu0 %v13395_v41  ;;  %5138 = vmatpush.msra.mxu1 %v13228_v0  ;;  %v5306_v0 = vsub.f32 %v13421_v7, %v5305_v44  ;;  %v5301_v11 = vand.u32 4294901760, %v5300_v43  ;;  %v5313_v32 = vand.u32 4294901760, %v5312_v40  ;;  %v5319_v45 = vand.u32 4294901760, %v5318_v60  ;;  %v288_v43 = vld [vmem:[%s16536_s1 + $0x7f8] sm:$0xff] }
 0x2ce   :  { %5248 = vmatpush.msra.mxu3 %v13244_v6  ;;  %5215 = vmatmul.f32.vlgmr.msra.gmra.mxu2 %v13246_v8  ;;  %v13545_v56 = vsub.f32 %v263_v27, %v13511_v1  ;;  %v16706_v28 = vand.u32 4294901760, %v13530_v38  ;;  %v5342_v12 = vsub.f32 %v13514_v54, %v16707_v47  ;;  %v16702_v40 = vand.u32 4294901760, %v13574_v35 }
 0x2cf   :  { %5261 = vmatpush.msrb.mxu0 %v13405_v46  ;;  %5400 = vmatpush.msrb.mxu2 %v13408_v33  ;;  %v5307_v17 = vand.u32 4294901760, %v5306_v0  ;;  %v257_v0 = vld [vmem:[%s16536_s1 + $0x700] sm:$0xff]  ;;  %v13613_v60 = vand.u32 4294901760, %v288_v43  ;;  %v16704_v10 = vand.u32 4294901760, %v13590_v36  ;;  %v13628_v62 = vsub.f32 %v258_v4, %v13597_v5  ;;  %v280_v33 = vld [vmem:[%s16536_s1 + $0x7b8] sm:$0xff] }
 0x2d0   :  { %5140 = vmatpush.msra.mxu1 %v13244_v6  ;;  %5250 = vmatpush.msra.mxu3 %v13259_v26  ;;  %v13498_v6 = vsub.f32 %v266_v2, %v13465_v58  ;;  %v16705_v48 = vand.u32 4294901760, %v13545_v56  ;;  %v5348_v19 = vsub.f32 %v13530_v38, %v16706_v28  ;;  %v5343_v27 = vand.u32 4294901760, %v5342_v12  ;;  %v285_v12 = vld [vmem:[%s16536_s1 + $0x7e0] sm:$0xff] }
 0x2d1   :  { %5252 = vmatmul.f32.vlgmr.msra.gmra.mxu3 %v13246_v8  ;;  %5263 = vmatpush.msrb.mxu0 %v13418_v21  ;;  %v262_v8 = vld [vmem:[%s16536_s1 + $0x728] sm:$0xff] }
 0x2d2   :  { %5403 = vmatpush.msrb.mxu2 %v13421_v7  ;;  %5453 = vmatpush.msrb.mxu3 %v13385_v34  ;;  %v13526_v3 = vand.u32 4294901760, %v262_v8  ;;  %v16709_v24 = vand.u32 4294901760, %v13498_v6  ;;  %v5349_v31 = vand.u32 4294901760, %v5348_v19  ;;  %v279_v7 = vld [vmem:[%s16536_s1 + $0x7b0] sm:$0xff] }
 0x2d3   :  { %5142 = vmatpush.msra.mxu1 %v13259_v26  ;;  %5265 = vmatpush.msrb.mxu0 %v13429_v63  ;;  %v5324_v26 = vsub.f32 %v13455_v20, %v16712_v30  ;;  %v13774_v57 = vand.u32 4294901760, %v279_v7 }
 0x2d4   :  { %5146 = vmatmul.f32.vlgmr.msra.gmra.mxu1 %v4949_v59  ;;  %5406 = vmatpush.msrb.mxu2 %v13435_v22  ;;  %v446_v59 = vld.sshfl [vmem:[#allocation1 + $0x30] sm:$0xff pattern:$0x73625140]  ;;  %v5336_v51 = vsub.f32 %v13498_v6, %v16709_v24  ;;  %v13562_v23 = vsub.f32 %v262_v8, %v13526_v3  ;;  %v13608_v8 = vsub.f32 %v259_v50, %v13570_v42 }
 0x2d5   :  { %5302 = vmatpush.msrb.mxu1 %v5301_v11  ;;  %5455 = vmatpush.msrb.mxu3 %v13395_v41  ;;  %v5325_v15 = vand.u32 4294901760, %v5324_v26  ;;  %v13552_v9 = vand.u32 4294901760, %v446_v59  ;;  %v5354_v11 = vsub.f32 %v13545_v56, %v16705_v48  ;;  %v287_v26 = vld [vmem:[%s16536_s1 + $0x7f0] sm:$0xff]  ;;  %v5366_v50 = vsub.f32 %v13574_v35, %v16702_v40 }
 0x2d6   :  { %5267 = vmatpush.msrb.mxu0 %v13440_v14  ;;  %5409 = vmatpush.msrb.mxu2 %v13449_v16  ;;  %v5337_v61 = vand.u32 4294901760, %v5336_v51  ;;  %v16703_v2 = vand.u32 4294901760, %v13562_v23  ;;  %v16708_v51 = vand.u32 4294901760, %v13608_v8 }
 0x2d7   :  { %5308 = vmatpush.msrb.mxu1 %v5307_v17  ;;  %5457 = vmatpush.msrb.mxu3 %v13405_v46  ;;  %v13582_v53 = vsub.f32 %v446_v59, %v13552_v9  ;;  %v13622_v59 = vand.u32 4294901760, %v257_v0 }
 0x2d8   :  { %5269 = vmatpush.msrb.mxu0 %v13465_v58  ;;  %5412 = vmatpush.msrb.mxu2 %v13455_v20 }
 0x2d9   :  { %5314 = vmatpush.msrb.mxu1 %v5313_v32  ;;  %5459 = vmatpush.msrb.mxu3 %v13418_v21  ;;  %v5290_v17 = vand.u32 4294901760, %v13582_v53  ;;  %v5360_v32 = vsub.f32 %v13562_v23, %v16703_v2  ;;  %17006 = vst [vmem:[#allocation5_spill] sm:$0xff] %v13622_v59  ;;  %v284_v2 = vld [vmem:[%s16536_s1 + $0x7d8] sm:$0xff] }
 0x2da   :  { %5271 = vmatpush.msrb.mxu0 %v13481_v25  ;;  %5415 = vmatpush.msrb.mxu2 %v13471_v55  ;;  %v13678_v47 = vand.u32 4294901760, %v284_v2 }
 0x2db   :  { %5320 = vmatpush.msrb.mxu1 %v5319_v45  ;;  %5461 = vmatpush.msrb.mxu3 %v13429_v63  ;;  %v286_v45 = vld [vmem:[%s16536_s1 + $0x7e8] sm:$0xff]  ;;  %v5291_v4 = vsub.f32 %v13582_v53, %v5290_v17  ;;  %v5361_v19 = vand.u32 4294901760, %v5360_v32  ;;  %v5367_v32 = vand.u32 4294901760, %v5366_v50 }
 0x2dc   :  { %5273 = vmatpush.msrb.mxu0 %v13495_v18  ;;  %5418 = vmatpush.msrb.mxu2 %v13498_v6  ;;  %v13658_v40 = vand.u32 4294901760, %v286_v45 }
 0x2dd   :  { %5326 = vmatpush.msrb.mxu1 %v5325_v15  ;;  %5463 = vmatpush.msrb.mxu3 %v13440_v14  ;;  %v5355_v15 = vand.u32 4294901760, %v5354_v11  ;;  %v13656_v11 = vsub.f32 %v257_v0, %v13622_v59  ;;  %v5378_v0 = vsub.f32 %v13608_v8, %v16708_v51  ;;  %v5292_v48 = vand.u32 4294901760, %v5291_v4 }
 0x2de   :  { %5275 = vmatpush.msrb.mxu0 %v13511_v1  ;;  %5421 = vmatpush.msrb.mxu2 %v13514_v54  ;;  %v13686_v51 = vsub.f32 %v286_v45, %v13658_v40 }
 0x2df   :  { %5332 = vmatpush.msrb.mxu1 %v5331_v49  ;;  %5465 = vmatpush.msrb.mxu3 %v13465_v58  ;;  %v13638_v49 = vand.u32 4294901760, %v287_v26  ;;  %v5379_v45 = vand.u32 4294901760, %v5378_v0 }
 0x2e0   :  { %5277 = vmatpush.msrb.mxu0 %v13526_v3  ;;  %5424 = vmatpush.msrb.mxu2 %v13530_v38  ;;  %v16716_v0 = vand.u32 4294901760, %v13686_v51 }
 0x2e1   :  { %5338 = vmatpush.msrb.mxu1 %v5337_v61  ;;  %5467 = vmatpush.msrb.mxu3 %v13481_v25  ;;  %v13649_v61 = vsub.f32 %v288_v43, %v13613_v60  ;;  %v16711_v43 = vand.u32 4294901760, %v13628_v62 }
 0x2e2   :  { %5279 = vmatpush.msrb.mxu0 %v13541_v13  ;;  %5427 = vmatpush.msrb.mxu2 %v13545_v56 }
 0x2e3   :  { %5344 = vmatpush.msrb.mxu1 %v5343_v27  ;;  %5469 = vmatpush.msrb.mxu3 %v13495_v18  ;;  %v5372_v27 = vsub.f32 %v13590_v36, %v16704_v10  ;;  %v13673_v10 = vsub.f32 %v287_v26, %v13638_v49  ;;  %v16713_v28 = vand.u32 4294901760, %v13649_v61  ;;  %v16714_v26 = vand.u32 4294901760, %v13656_v11 }
 0x2e4   :  { %5281 = vmatpush.msrb.mxu0 %v13558_v39  ;;  %5430 = vmatpush.msrb.mxu2 %v13562_v23  ;;  %v5384_v4 = vsub.f32 %v13628_v62, %v16711_v43  ;;  %v13708_v43 = vsub.f32 %v284_v2, %v13678_v47 }
 0x2e5   :  { %5350 = vmatpush.msrb.mxu1 %v5349_v31  ;;  %5471 = vmatpush.msrb.mxu3 %v13511_v1  ;;  %v13666_v31 = vand.u32 4294901760, %v285_v12  ;;  %v5373_v50 = vand.u32 4294901760, %v5372_v27  ;;  %v16717_v27 = vand.u32 4294901760, %v13673_v10 }
 0x2e6   :  { %5283 = vmatpush.msrb.mxu0 %v13570_v42  ;;  %5433 = vmatpush.msrb.mxu2 %v13574_v35  ;;  %v5385_v2 = vand.u32 4294901760, %v5384_v4 }
 0x2e7   :  { %5356 = vmatpush.msrb.mxu1 %v5355_v15  ;;  %5473 = vmatpush.msrb.mxu3 %v13526_v3  ;;  %v283_v15 = vld [vmem:[%s16536_s1 + $0x7d0] sm:$0xff]  ;;  %v13694_v24 = vsub.f32 %v285_v12, %v13666_v31  ;;  %v5641_v12 = vsub.f32 %v13649_v61, %v16713_v28 }
 0x2e8   :  { %5285 = vmatpush.msrb.mxu0 %v13597_v5  ;;  %5436 = vmatpush.msrb.mxu2 %v13590_v36  ;;  %v13701_v37 = vand.u32 4294901760, %v283_v15 }
 0x2e9   :  { %5362 = vmatpush.msrb.mxu1 %v5361_v19  ;;  %5475 = vmatpush.msrb.mxu3 %v13541_v13  ;;  %v282_v19 = vld [vmem:[%s16536_s1 + $0x7c8] sm:$0xff]  ;;  %v16718_v28 = vand.u32 4294901760, %v13694_v24  ;;  %v5642_v4 = vand.u32 4294901760, %v5641_v12  ;;  %v13752_v12 = vand.u32 4294901760, %v280_v33 }
 0x2ea   :  { %5287 = vmatpush.msrb.mxu0 %v13622_v59  ;;  %5439 = vmatpush.msrb.mxu2 %v13608_v8  ;;  %v13719_v30 = vand.u32 4294901760, %v282_v19 }
 0x2eb   :  { %5368 = vmatpush.msrb.mxu1 %v5367_v32  ;;  %5477 = vmatpush.msrb.mxu3 %v13558_v39  ;;  %v281_v32 = vld [vmem:[%s16536_s1 + $0x7c0] sm:$0xff]  ;;  %v5659_v22 = vsub.f32 %v13694_v24, %v16718_v28 }
 0x2ec   :  { %5293 = vmatmul.f32.vlgmr.msrb.gmra.mxu0 %v5292_v48  ;;  %5442 = vmatpush.msrb.mxu2 %v13628_v62  ;;  %v5390_v48 = vsub.f32 %v13656_v11, %v16714_v26  ;;  %v13735_v26 = vand.u32 4294901760, %v281_v32 }
 0x2ed   :  { %5494 = vmatpush.msra.mxu0 %v5299_v29  ;;  %5374 = vmatpush.msrb.mxu1 %v5373_v50  ;;  %v5647_v29 = vsub.f32 %v13673_v10, %v16717_v27  ;;  %v13733_v50 = vsub.f32 %v283_v15, %v13701_v37  ;;  %v5653_v15 = vsub.f32 %v13686_v51, %v16716_v0  ;;  %v13764_v0 = vld.sshfl [vmem:[#allocation1 + $0x38] sm:$0xff pattern:$0x73625140] }
 0x2ee   :  { %5479 = vmatpush.msrb.mxu3 %v13570_v42  ;;  %5445 = vmatpush.msrb.mxu2 %v13656_v11  ;;  %v13772_v28 = vsub.f32 %v281_v32, %v13735_v26 }
 0x2ef   :  { %5498 = vmatpush.msra.mxu0 %v5305_v44  ;;  %5380 = vmatpush.msrb.mxu1 %v5379_v45  ;;  %v5391_v44 = vand.u32 4294901760, %v5390_v48  ;;  %v13750_v45 = vsub.f32 %v282_v19, %v13719_v30  ;;  %v32_v48 = vld [vmem:[%s16535_s0 + $0x28] sm:$0xff]  ;;  %v17007_v19 = vand.u32 4294901760, %v13449_v16  ;;  %v16720_v27 = vand.u32 4294901760, %v13733_v50  ;;  %v277_v16 = vld [vmem:[%s16536_s1 + $0x7a0] sm:$0xff] }
 0x2f0   :  { %5481 = vmatpush.msrb.mxu3 %v13597_v5  ;;  %5448 = vmatmul.f32.vlgmr.msrb.gmra.mxu2 %v13582_v53  ;;  %449 = vst [vmem:[#allocation1 + $0x20] ss:$4 sm:$0xff] %v32_v48  ;;  %v5654_v32 = vand.u32 4294901760, %v5653_v15  ;;  %v13787_v48 = vsub.f32 %v280_v33, %v13752_v12  ;;  %v16721_v33 = vand.u32 4294901760, %v13772_v28  ;;  %v13804_v15 = vand.u32 4294901760, %v277_v16 }
 0x2f1   :  { %5502 = vmatpush.msra.mxu0 %v5311_v52  ;;  %5598 = vmatpush.msra.mxu2 %v13613_v60  ;;  %v278_v52 = vld [vmem:[%s16536_s1 + $0x7a8] sm:$0xff] }
 0x2f2   :  { %5386 = vmatpush.msrb.mxu1 %v5385_v2  ;;  %5483 = vmatpush.msrb.mxu3 %v13622_v59  ;;  %v5648_v2 = vand.u32 4294901760, %v5647_v29  ;;  %v17008_v59 = vand.u32 4294901760, %v13708_v43  ;;  %v16723_v29 = vand.u32 4294901760, %v13750_v45 }
 0x2f3   :  { %5487 = vmatmul.f32.vlgmr.msrb.gmra.mxu3 %v5290_v17  ;;  %5506 = vmatpush.msra.mxu0 %v17007_v19  ;;  %v17009_v17 = vand.u32 4294901760, %v13455_v20  ;;  %v13789_v19 = vand.u32 4294901760, %v278_v52  ;;  %v5671_v20 = vsub.f32 %v13733_v50, %v16720_v27 }
 0x2f4   :  { %5600 = vmatpush.msra.mxu2 %v13638_v49  ;;  %5643 = vmatpush.msra.mxu3 %v5642_v4  ;;  %v5665_v53 = vsub.f32 %v13708_v43, %v17008_v59  ;;  %v5660_v59 = vand.u32 4294901760, %v5659_v22  ;;  %v276_v4 = vld [vmem:[%s16536_s1 + $0x798] sm:$0xff]  ;;  %v17010_v22 = vand.u32 4294901760, %v13471_v55  ;;  %v275_v55 = vld [vmem:[%s16536_s1 + $0x790] sm:$0xff] }
 0x2f5   :  { %5392 = vmatpush.msrb.mxu1 %v5391_v44  ;;  %5510 = vmatpush.msra.mxu0 %v17009_v17  ;;  %v13802_v44 = vsub.f32 %v279_v7, %v13774_v57  ;;  %v13815_v7 = vsub.f32 %v278_v52, %v13789_v19  ;;  %v13817_v27 = vand.u32 4294901760, %v276_v4  ;;  %v5683_v52 = vsub.f32 %v13772_v28, %v16721_v33 }
 0x2f6   :  { %5394 = vmatmul.f32.vlgmr.msrb.gmra.mxu1 %v13552_v9  ;;  %5602 = vmatpush.msra.mxu2 %v13658_v40  ;;  %v5666_v17 = vand.u32 4294901760, %v5665_v53  ;;  %v17011_v53 = vand.u32 4294901760, %v13498_v6  ;;  %v274_v6 = vld [vmem:[%s16536_s1 + $0x788] sm:$0xff] }
 0x2f7   :  { %5561 = vmatpush.msra.mxu1 %v13385_v34  ;;  %5649 = vmatpush.msra.mxu3 %v5648_v2  ;;  %v5677_v34 = vsub.f32 %v13750_v45, %v16723_v29  ;;  %v16722_v2 = vand.u32 4294901760, %v13787_v48  ;;  %v13847_v33 = vsub.f32 %v276_v4, %v13817_v27 }
 0x2f8   :  { %5514 = vmatpush.msra.mxu0 %v17010_v22  ;;  %5604 = vmatpush.msra.mxu2 %v13666_v31  ;;  %v13831_v22 = vsub.f32 %v277_v16, %v13804_v15 }
 0x2f9   :  { %5563 = vmatpush.msra.mxu1 %v13395_v41  ;;  %5655 = vmatpush.msra.mxu3 %v5654_v32  ;;  %v5672_v41 = vand.u32 4294901760, %v5671_v20  ;;  %v5694_v32 = vand.u32 4294901760, %v13802_v44  ;;  %v5689_v16 = vsub.f32 %v13787_v48, %v16722_v2  ;;  %v5700_v20 = vand.u32 4294901760, %v13815_v7 }
 0x2fa   :  { %5518 = vmatpush.msra.mxu0 %v17011_v53  ;;  %5606 = vmatpush.msra.mxu2 %v13678_v47  ;;  %v17012_v53 = vand.u32 4294901760, %v13514_v54  ;;  %v273_v54 = vld [vmem:[%s16536_s1 + $0x780] sm:$0xff]  ;;  %v5706_v2 = vand.u32 4294901760, %v13831_v22 }
 0x2fb   :  { %5565 = vmatpush.msra.mxu1 %v13405_v46  ;;  %5661 = vmatpush.msra.mxu3 %v5660_v59  ;;  %v13839_v46 = vand.u32 4294901760, %v275_v55  ;;  %v5678_v59 = vand.u32 4294901760, %v5677_v34  ;;  %v5684_v34 = vand.u32 4294901760, %v5683_v52  ;;  %v5695_v4 = vsub.f32 %v13802_v44, %v5694_v32 }
 0x2fc   :  { %5522 = vmatpush.msra.mxu0 %v17012_v53  ;;  %5608 = vmatpush.msra.mxu2 %v13701_v37  ;;  %v17013_v53 = vand.u32 4294901760, %v13530_v38  ;;  %v17014_v38 = vand.u32 4294901760, %v13545_v56  ;;  %v13871_v29 = vand.u32 4294901760, %v273_v54  ;;  %v5712_v52 = vand.u32 4294901760, %v13847_v33 }
 0x2fd   :  { %5567 = vmatpush.msra.mxu1 %v13418_v21  ;;  %5667 = vmatpush.msra.mxu3 %v5666_v17  ;;  %v13855_v21 = vand.u32 4294901760, %v274_v6  ;;  %v13858_v17 = vand.u32 4294901760, %v13764_v0  ;;  %v17015_v56 = vand.u32 4294901760, %v13562_v23  ;;  %v17016_v23 = vand.u32 4294901760, %v13574_v35 }
 0x2fe   :  { %5526 = vmatpush.msra.mxu0 %v17013_v53  ;;  %5610 = vmatpush.msra.mxu2 %v13719_v30  ;;  %v13869_v53 = vsub.f32 %v275_v55, %v13839_v46 }
 0x2ff   :  { %5569 = vmatpush.msra.mxu1 %v13429_v63  ;;  %5673 = vmatpush.msra.mxu3 %v5672_v41  ;;  %v5690_v63 = vand.u32 4294901760, %v5689_v16  ;;  %v5701_v41 = vsub.f32 %v13815_v7, %v5700_v20  ;;  %v13882_v55 = vsub.f32 %v274_v6, %v13855_v21  ;;  %v13897_v16 = vsub.f32 %v273_v54, %v13871_v29 }
 0x300   :  { %5530 = vmatpush.msra.mxu0 %v17014_v38  ;;  %5612 = vmatpush.msra.mxu2 %v13735_v26  ;;  %v13886_v38 = vsub.f32 %v13764_v0, %v13858_v17  ;;  %v5718_v6 = vand.u32 4294901760, %v13869_v53  ;;  %v5713_v0 = vsub.f32 %v13847_v33, %v5712_v52 }
 0x301   :  { %5571 = vmatpush.msra.mxu1 %v13440_v14  ;;  %5679 = vmatpush.msra.mxu3 %v5678_v59  ;;  %v5696_v14 = vand.u32 4294901760, %v5695_v4  ;;  %v5707_v59 = vsub.f32 %v13831_v22, %v5706_v2  ;;  %v5724_v35 = vand.u32 4294901760, %v13882_v55 }
 0x302   :  { %5534 = vmatpush.msra.mxu0 %v17015_v56  ;;  %5614 = vmatpush.msra.mxu2 %v13752_v12  ;;  %v5631_v4 = vand.u32 4294901760, %v13886_v38  ;;  %v17019_v56 = vand.u32 4294901760, %v13628_v62 }
 0x303   :  { %5573 = vmatpush.msra.mxu1 %v13465_v58  ;;  %5685 = vmatpush.msra.mxu3 %v5684_v34  ;;  %v5702_v58 = vand.u32 4294901760, %v5701_v41  ;;  %v17017_v34 = vand.u32 4294901760, %v13590_v36  ;;  %v5708_v54 = vand.u32 4294901760, %v5707_v59  ;;  %v5719_v36 = vsub.f32 %v13869_v53, %v5718_v6 }
 0x304   :  { %5538 = vmatpush.msra.mxu0 %v17016_v23  ;;  %5616 = vmatpush.msra.mxu2 %v13774_v57  ;;  %v5714_v41 = vand.u32 4294901760, %v5713_v0 }
 0x305   :  { %5575 = vmatpush.msra.mxu1 %v13481_v25  ;;  %5691 = vmatpush.msra.mxu3 %v5690_v63  ;;  %v17018_v25 = vand.u32 4294901760, %v13608_v8  ;;  %v5730_v63 = vand.u32 4294901760, %v13897_v16  ;;  %v5632_v8 = vsub.f32 %v13886_v38, %v5631_v4  ;;  %v5720_v62 = vand.u32 4294901760, %v5719_v36 }
 0x306   :  { %5542 = vmatpush.msra.mxu0 %v17017_v34  ;;  %5618 = vmatpush.msra.mxu2 %v13789_v19 }
 0x307   :  { %5577 = vmatpush.msra.mxu1 %v13495_v18  ;;  %5697 = vmatpush.msra.mxu3 %v5696_v14  ;;  %v5725_v18 = vsub.f32 %v13882_v55, %v5724_v35  ;;  %v5731_v14 = vsub.f32 %v13897_v16, %v5730_v63 }
 0x308   :  { %5546 = vmatpush.msra.mxu0 %v17018_v25  ;;  %5620 = vmatpush.msra.mxu2 %v13804_v15 }
 0x309   :  { %5579 = vmatpush.msra.mxu1 %v13511_v1  ;;  %5703 = vmatpush.msra.mxu3 %v5702_v58  ;;  %v17020_v1 = vand.u32 4294901760, %v13656_v11  ;;  %v5726_v59 = vand.u32 4294901760, %v5725_v18  ;;  %v5732_v11 = vand.u32 4294901760, %v5731_v14 }
 0x30a   :  { %5550 = vmatpush.msra.mxu0 %v17019_v56  ;;  %5622 = vmatpush.msra.mxu2 %v13817_v27 }
 0x30b   :  { %5581 = vmatpush.msra.mxu1 %v13526_v3  ;;  %5709 = vmatpush.msra.mxu3 %v5708_v54  ;;  %v5633_v3 = vand.u32 4294901760, %v5632_v8 }
 0x30c   :  { %5554 = vmatpush.msra.mxu0 %v17020_v1  ;;  %5624 = vmatpush.msra.mxu2 %v13839_v46 }
 0x30d   :  { %5583 = vmatpush.msra.mxu1 %v13541_v13  ;;  %5715 = vmatpush.msra.mxu3 %v5714_v41  ;;  %v17021_v13 = vand.u32 4294901760, %v13649_v61  ;;  %v293_v41 = vld [vmem:[%s16536_s1 + $0x820] sm:$0xff] }
 0x30e   :  { %5556 = vmatmul.f32.vlgmr.msra.gmra.mxu0 %v13552_v9  ;;  %5626 = vmatpush.msra.mxu2 %v13855_v21 }
 0x30f   :  { %5741 = vmatpush.msrb.mxu0 %v13649_v61  ;;  %5585 = vmatpush.msra.mxu1 %v13558_v39  ;;  %v17022_v39 = vand.u32 4294901760, %v13673_v10  ;;  %v17024_v61 = vand.u32 4294901760, %v13686_v51 }
 0x310   :  { %5721 = vmatpush.msra.mxu3 %v5720_v62  ;;  %5628 = vmatpush.msra.mxu2 %v13871_v29  ;;  %v292_v62 = vld [vmem:[%s16536_s1 + $0x818] sm:$0xff] }
 0x311   :  { %5744 = vmatpush.msrb.mxu0 %v13673_v10  ;;  %5587 = vmatpush.msra.mxu1 %v13570_v42  ;;  %v17023_v42 = vld [vmem:[#allocation5_spill] sm:$0xff]  ;;  %v17030_v10 = vand.u32 4294901760, %v13787_v48 }
 0x312   :  { %5727 = vmatpush.msra.mxu3 %v5726_v59  ;;  %5634 = vmatmul.f32.vlgmr.msra.gmra.mxu2 %v5633_v3  ;;  %v14154_v59 = vand.u32 4294901760, %v293_v41 }
 0x313   :  { %5747 = vmatpush.msrb.mxu0 %v13686_v51  ;;  %5835 = vmatpush.msrb.mxu2 %v17021_v13 }
 0x314   :  { %5589 = vmatpush.msra.mxu1 %v13597_v5  ;;  %5733 = vmatpush.msra.mxu3 %v5732_v11  ;;  %v17025_v5 = vand.u32 4294901760, %v13694_v24 }
 0x315   :  { %5735 = vmatmul.f32.vlgmr.msra.gmra.mxu3 %v13858_v17  ;;  %5750 = vmatpush.msrb.mxu0 %v13694_v24  ;;  %v17028_v24 = vand.u32 4294901760, %v13750_v45 }
 0x316   :  { %5839 = vmatpush.msrb.mxu2 %v17022_v39  ;;  %5902 = vmatpush.msrb.mxu3 %v13613_v60  ;;  %v291_v39 = vld [vmem:[%s16536_s1 + $0x810] sm:$0xff] }
 0x317   :  { %5591 = vmatpush.msra.mxu1 %v17023_v42  ;;  %5753 = vmatpush.msrb.mxu0 %v13708_v43 }
 0x318   :  { %5593 = vmatmul.f32.vlgmr.msra.gmra.mxu1 %v13552_v9  ;;  %5843 = vmatpush.msrb.mxu2 %v17024_v61  ;;  %v17026_v9 = vand.u32 4294901760, %v13708_v43 }
 0x319   :  { %5794 = vmatpush.msrb.mxu1 %v13613_v60  ;;  %5904 = vmatpush.msrb.mxu3 %v13638_v49  ;;  %v17027_v60 = vand.u32 4294901760, %v13733_v50 }
 0x31a   :  { %5756 = vmatpush.msrb.mxu0 %v13733_v50  ;;  %5847 = vmatpush.msrb.mxu2 %v17025_v5  ;;  %v14171_v5 = vand.u32 4294901760, %v292_v62 }
 0x31b   :  { %5796 = vmatpush.msrb.mxu1 %v13638_v49  ;;  %5906 = vmatpush.msrb.mxu3 %v13658_v40  ;;  %v301_v49 = vld [vmem:[%s16536_s1 + $0x860] sm:$0xff] }
 0x31c   :  { %5759 = vmatpush.msrb.mxu0 %v13750_v45  ;;  %5851 = vmatpush.msrb.mxu2 %v17026_v9  ;;  %v299_v45 = vld [vmem:[%s16536_s1 + $0x850] sm:$0xff] }
 0x31d   :  { %5798 = vmatpush.msrb.mxu1 %v13658_v40  ;;  %5908 = vmatpush.msrb.mxu3 %v13666_v31  ;;  %v17029_v40 = vand.u32 4294901760, %v13772_v28 }
 0x31e   :  { %5762 = vmatpush.msrb.mxu0 %v13772_v28  ;;  %5855 = vmatpush.msrb.mxu2 %v17027_v60 }
 0x31f   :  { %5800 = vmatpush.msrb.mxu1 %v13666_v31  ;;  %5910 = vmatpush.msrb.mxu3 %v13678_v47 }
 0x320   :  { %5765 = vmatpush.msrb.mxu0 %v13787_v48  ;;  %5859 = vmatpush.msrb.mxu2 %v17028_v24 }
 0x321   :  { %5802 = vmatpush.msrb.mxu1 %v13678_v47  ;;  %5912 = vmatpush.msrb.mxu3 %v13701_v37  ;;  %v304_v47 = vld [vmem:[%s16536_s1 + $0x878] sm:$0xff] }
 0x322   :  { %5768 = vmatpush.msrb.mxu0 %v13802_v44  ;;  %5863 = vmatpush.msrb.mxu2 %v17029_v40  ;;  %v13998_v28 = vand.u32 4294901760, %v304_v47  ;;  %v298_v44 = vld [vmem:[%s16536_s1 + $0x848] sm:$0xff] }
 0x323   :  { %5804 = vmatpush.msrb.mxu1 %v13701_v37  ;;  %5914 = vmatpush.msrb.mxu3 %v13719_v30  ;;  %v303_v37 = vld [vmem:[%s16536_s1 + $0x870] sm:$0xff] }
 0x324   :  { %5771 = vmatpush.msrb.mxu0 %v13815_v7  ;;  %5867 = vmatpush.msrb.mxu2 %v17030_v10  ;;  %v14008_v51 = vand.u32 4294901760, %v303_v37  ;;  %v14021_v31 = vsub.f32 %v304_v47, %v13998_v28  ;;  %v14183_v10 = vand.u32 4294901760, %v291_v39 }
 0x325   :  { %5806 = vmatpush.msrb.mxu1 %v13719_v30  ;;  %5916 = vmatpush.msrb.mxu3 %v13735_v26  ;;  %v302_v30 = vld [vmem:[%s16536_s1 + $0x868] sm:$0xff] }
 0x326   :  { %5774 = vmatpush.msrb.mxu0 %v13831_v22  ;;  %5871 = vmatpush.msrb.mxu2 %v5694_v32  ;;  %v14018_v43 = vand.u32 4294901760, %v302_v30  ;;  %v14034_v50 = vsub.f32 %v303_v37, %v14008_v51  ;;  %v5981_v48 = vand.u32 4294901760, %v14021_v31  ;;  %v297_v32 = vld [vmem:[%s16536_s1 + $0x840] sm:$0xff]  ;;  %v14078_v22 = vand.u32 4294901760, %v298_v44 }
 0x327   :  { %5808 = vmatpush.msrb.mxu1 %v13735_v26  ;;  %5918 = vmatpush.msrb.mxu3 %v13752_v12  ;;  %v300_v26 = vld [vmem:[%s16536_s1 + $0x858] sm:$0xff]  ;;  %v14187_v37 = vsub.f32 %v293_v41, %v14154_v59 }
 0x328   :  { %5777 = vmatpush.msrb.mxu0 %v13847_v33  ;;  %5875 = vmatpush.msrb.mxu2 %v5700_v20  ;;  %v14053_v33 = vand.u32 4294901760, %v299_v45 }
 0x329   :  { %5810 = vmatpush.msrb.mxu1 %v13752_v12  ;;  %5920 = vmatpush.msrb.mxu3 %v13774_v57  ;;  %v14042_v12 = vand.u32 4294901760, %v300_v26 }
 0x32a   :  { %5780 = vmatpush.msrb.mxu0 %v13869_v53  ;;  %5879 = vmatpush.msrb.mxu2 %v5706_v2  ;;  %v14084_v53 = vsub.f32 %v299_v45, %v14053_v33 }
 0x32b   :  { %5812 = vmatpush.msrb.mxu1 %v13774_v57  ;;  %5922 = vmatpush.msrb.mxu3 %v13789_v19  ;;  %v14031_v57 = vand.u32 4294901760, %v301_v49  ;;  %v14068_v7 = vsub.f32 %v300_v26, %v14042_v12 }
 0x32c   :  { %5783 = vmatpush.msrb.mxu0 %v13882_v55  ;;  %5883 = vmatpush.msrb.mxu2 %v5712_v52  ;;  %v296_v52 = vld [vmem:[%s16536_s1 + $0x838] sm:$0xff]  ;;  %v14094_v55 = vand.u32 4294901760, %v297_v32 }
 0x32d   :  { %5814 = vmatpush.msrb.mxu1 %v13789_v19  ;;  %5924 = vmatpush.msrb.mxu3 %v13804_v15  ;;  %v14048_v19 = vsub.f32 %v302_v30, %v14018_v43  ;;  %v14062_v2 = vsub.f32 %v301_v49, %v14031_v57  ;;  %v14108_v34 = vand.u32 4294901760, %v296_v52  ;;  %v290_v30 = vld [vmem:[%s16536_s1 + $0x808] sm:$0xff] }
 0x32e   :  { %5786 = vmatpush.msrb.mxu0 %v13897_v16  ;;  %5887 = vmatpush.msrb.mxu2 %v5718_v6  ;;  %v16733_v6 = vand.u32 4294901760, %v14068_v7  ;;  %v295_v16 = vld [vmem:[%s16536_s1 + $0x830] sm:$0xff] }
 0x32f   :  { %5816 = vmatpush.msrb.mxu1 %v13804_v15  ;;  %5926 = vmatpush.msrb.mxu3 %v13817_v27  ;;  %v5987_v15 = vand.u32 4294901760, %v14034_v50  ;;  %v5993_v20 = vand.u32 4294901760, %v14048_v19  ;;  %v16735_v23 = vand.u32 4294901760, %v14062_v2  ;;  %v14124_v36 = vand.u32 4294901760, %v295_v16 }
 0x330   :  { %5789 = vmatmul.f32.vlgmr.msrb.gmra.mxu0 %v13886_v38  ;;  %5891 = vmatpush.msrb.mxu2 %v5724_v35  ;;  %v16732_v35 = vand.u32 4294901760, %v14084_v53  ;;  %v14143_v38 = vsub.f32 %v296_v52, %v14108_v34  ;;  %v14210_v52 = vand.u32 4294901760, %v290_v30 }
 0x331   :  { %5939 = vmatpush.msra.mxu0 %v13998_v28  ;;  %5818 = vmatpush.msrb.mxu1 %v13817_v27  ;;  %v5982_v27 = vsub.f32 %v14021_v31, %v5981_v48  ;;  %v5994_v0 = vsub.f32 %v14048_v19, %v5993_v20  ;;  %v6000_v25 = vsub.f32 %v14062_v2, %v16735_v23 }
 0x332   :  { %5928 = vmatpush.msrb.mxu3 %v13839_v46  ;;  %5895 = vmatpush.msrb.mxu2 %v5730_v63  ;;  %v14127_v63 = vsub.f32 %v297_v32, %v14094_v55  ;;  %v6012_v1 = vsub.f32 %v14084_v53, %v16732_v35  ;;  %v14158_v11 = vsub.f32 %v295_v16, %v14124_v36  ;;  %v16728_v9 = vand.u32 4294901760, %v14143_v38 }
 0x333   :  { %5941 = vmatpush.msra.mxu0 %v14008_v51  ;;  %5820 = vmatpush.msrb.mxu1 %v13839_v46  ;;  %v5988_v46 = vsub.f32 %v14034_v50, %v5987_v15  ;;  %v5983_v58 = vand.u32 4294901760, %v5982_v27  ;;  %v5995_v56 = vand.u32 4294901760, %v5994_v0  ;;  %v6001_v14 = vand.u32 4294901760, %v6000_v25  ;;  %v320_v27 = vld [vmem:[%s16536_s1 + $0x8f8] sm:$0xff] }
 0x334   :  { %5930 = vmatpush.msrb.mxu3 %v13855_v21  ;;  %5897 = vmatmul.f32.vlgmr.msrb.gmra.mxu2 %v13858_v17  ;;  %v16729_v3 = vand.u32 4294901760, %v14127_v63  ;;  %v6013_v24 = vand.u32 4294901760, %v6012_v1  ;;  %v16727_v47 = vand.u32 4294901760, %v14158_v11  ;;  %v6030_v45 = vsub.f32 %v14143_v38, %v16728_v9 }
 0x335   :  { %5943 = vmatpush.msra.mxu0 %v14018_v43  ;;  %6082 = vmatpush.msra.mxu2 %v14021_v31  ;;  %v5989_v54 = vand.u32 4294901760, %v5988_v46  ;;  %v14203_v32 = vsub.f32 %v292_v62, %v14171_v5  ;;  %v289_v46 = vld [vmem:[%s16536_s1 + $0x800] sm:$0xff]  ;;  %v16724_v0 = vand.u32 4294901760, %v14187_v37  ;;  %v14226_v25 = vand.u32 4294901760, %v320_v27  ;;  %v312_v31 = vld [vmem:[%s16536_s1 + $0x8b8] sm:$0xff] }
 0x336   :  { %5822 = vmatpush.msrb.mxu1 %v13855_v21  ;;  %5932 = vmatpush.msrb.mxu3 %v13871_v29  ;;  %v14111_v21 = vsub.f32 %v298_v44, %v14078_v22  ;;  %v6024_v40 = vsub.f32 %v14127_v63, %v16729_v3  ;;  %v6031_v41 = vand.u32 4294901760, %v6030_v45  ;;  %v14241_v62 = vsub.f32 %v290_v30, %v14210_v52 }
 0x337   :  { %5934 = vmatmul.f32.vlgmr.msrb.gmra.mxu3 %v13858_v17  ;;  %5945 = vmatpush.msra.mxu0 %v14031_v57  ;;  %v294_v17 = vld [vmem:[%s16536_s1 + $0x828] sm:$0xff]  ;;  %v16726_v1 = vand.u32 4294901760, %v14203_v32 }
 0x338   :  { %6085 = vmatpush.msra.mxu2 %v14034_v50  ;;  %6135 = vmatpush.msra.mxu3 %v13998_v28  ;;  %v14139_v18 = vand.u32 4294901760, %v294_v17  ;;  %v16731_v8 = vand.u32 4294901760, %v14111_v21  ;;  %v6025_v16 = vand.u32 4294901760, %v6024_v40  ;;  %v317_v40 = vld [vmem:[%s16536_s1 + $0x8e0] sm:$0xff] }
 0x339   :  { %5824 = vmatpush.msrb.mxu1 %v13871_v29  ;;  %5947 = vmatpush.msra.mxu0 %v14042_v12  ;;  %v6006_v29 = vsub.f32 %v14068_v7, %v16733_v6  ;;  %v14316_v6 = vpop.f32.mrf.mxu0 }
 0x33a   :  { %5828 = vmatmul.f32.vlgmr.msrb.gmra.mxu1 %v5631_v4  ;;  %6088 = vmatpush.msra.mxu2 %v14048_v19  ;;  %v450_v4 = vld.sshfl [vmem:[#allocation1] sm:$0xff pattern:$0x73625140]  ;;  %v6018_v61 = vsub.f32 %v14111_v21, %v16731_v8  ;;  %v14175_v60 = vsub.f32 %v294_v17, %v14139_v18  ;;  %v14221_v17 = vsub.f32 %v291_v39, %v14183_v10 }
 0x33b   :  { %5984 = vmatpush.msra.mxu1 %v5983_v58  ;;  %6137 = vmatpush.msra.mxu3 %v14008_v51  ;;  %v6007_v13 = vand.u32 4294901760, %v6006_v29  ;;  %v14165_v42 = vand.u32 4294901760, %v450_v4  ;;  %v6036_v58 = vsub.f32 %v14158_v11, %v16727_v47  ;;  %v319_v29 = vld [vmem:[%s16536_s1 + $0x8f0] sm:$0xff]  ;;  %v6048_v39 = vsub.f32 %v14187_v37, %v16724_v0  ;;  %17031 = vst [vmem:[#allocation5_spill] sm:$0xff] %v14316_v6 }
 0x33c   :  { %5949 = vmatpush.msra.mxu0 %v14053_v33  ;;  %6091 = vmatpush.msra.mxu2 %v14062_v2  ;;  %v6019_v26 = vand.u32 4294901760, %v6018_v61  ;;  %v16725_v44 = vand.u32 4294901760, %v14175_v60  ;;  %v16730_v61 = vand.u32 4294901760, %v14221_v17 }
 0x33d   :  { %5990 = vmatpush.msra.mxu1 %v5989_v54  ;;  %6139 = vmatpush.msra.mxu3 %v14018_v43  ;;  %v14195_v49 = vsub.f32 %v450_v4, %v14165_v42  ;;  %v14235_v4 = vand.u32 4294901760, %v289_v46 }
 0x33e   :  { %5951 = vmatpush.msra.mxu0 %v14078_v22  ;;  %6094 = vmatpush.msra.mxu2 %v14068_v7 }
 0x33f   :  { %5996 = vmatpush.msra.mxu1 %v5995_v56  ;;  %6141 = vmatpush.msra.mxu3 %v14031_v57  ;;  %v16738_v54 = vand.u32 4294901760, %v14195_v49  ;;  %v6042_v56 = vsub.f32 %v14175_v60, %v16725_v44  ;;  %v316_v44 = vld [vmem:[%s16536_s1 + $0x8d8] sm:$0xff] }
 0x340   :  { %5953 = vmatpush.msra.mxu0 %v14094_v55  ;;  %6097 = vmatpush.msra.mxu2 %v14084_v53  ;;  %v14291_v3 = vand.u32 4294901760, %v316_v44 }
 0x341   :  { %6002 = vmatpush.msra.mxu1 %v6001_v14  ;;  %6143 = vmatpush.msra.mxu3 %v14042_v12  ;;  %v318_v14 = vld [vmem:[%s16536_s1 + $0x8e8] sm:$0xff]  ;;  %v5973_v30 = vsub.f32 %v14195_v49, %v16738_v54  ;;  %v6043_v45 = vand.u32 4294901760, %v6042_v56  ;;  %v6049_v56 = vand.u32 4294901760, %v6048_v39 }
 0x342   :  { %5955 = vmatpush.msra.mxu0 %v14108_v34  ;;  %6100 = vmatpush.msra.mxu2 %v14111_v21  ;;  %v14271_v0 = vand.u32 4294901760, %v318_v14 }
 0x343   :  { %6008 = vmatpush.msra.mxu1 %v6007_v13  ;;  %6145 = vmatpush.msra.mxu3 %v14053_v33  ;;  %v6037_v13 = vand.u32 4294901760, %v6036_v58  ;;  %v14269_v58 = vsub.f32 %v289_v46, %v14235_v4  ;;  %v6060_v46 = vsub.f32 %v14221_v17, %v16730_v61  ;;  %v5974_v47 = vand.u32 4294901760, %v5973_v30 }
 0x344   :  { %5957 = vmatpush.msra.mxu0 %v14124_v36  ;;  %6103 = vmatpush.msra.mxu2 %v14127_v63  ;;  %v14299_v61 = vsub.f32 %v318_v14, %v14271_v0 }
 0x345   :  { %6014 = vmatpush.msra.mxu1 %v6013_v24  ;;  %6147 = vmatpush.msra.mxu3 %v14078_v22  ;;  %v14251_v24 = vand.u32 4294901760, %v319_v29  ;;  %v6061_v14 = vand.u32 4294901760, %v6060_v46 }
 0x346   :  { %5959 = vmatpush.msra.mxu0 %v14139_v18  ;;  %6106 = vmatpush.msra.mxu2 %v14143_v38  ;;  %v16740_v46 = vand.u32 4294901760, %v14299_v61 }
 0x347   :  { %6020 = vmatpush.msra.mxu1 %v6019_v26  ;;  %6149 = vmatpush.msra.mxu3 %v14094_v55  ;;  %v14262_v26 = vsub.f32 %v320_v27, %v14226_v25  ;;  %v16734_v27 = vand.u32 4294901760, %v14241_v62 }
 0x348   :  { %5961 = vmatpush.msra.mxu0 %v14154_v59  ;;  %6109 = vmatpush.msra.mxu2 %v14158_v11 }
 0x349   :  { %6026 = vmatpush.msra.mxu1 %v6025_v16  ;;  %6151 = vmatpush.msra.mxu3 %v14108_v34  ;;  %v6054_v16 = vsub.f32 %v14203_v32, %v16726_v1  ;;  %v14286_v1 = vsub.f32 %v319_v29, %v14251_v24  ;;  %v16736_v9 = vand.u32 4294901760, %v14262_v26  ;;  %v16737_v29 = vand.u32 4294901760, %v14269_v58 }
 0x34a   :  { %5963 = vmatpush.msra.mxu0 %v14171_v5  ;;  %6112 = vmatpush.msra.mxu2 %v14175_v60  ;;  %v6066_v30 = vsub.f32 %v14241_v62, %v16734_v27  ;;  %v14323_v27 = vsub.f32 %v316_v44, %v14291_v3 }
 0x34b   :  { %6032 = vmatpush.msra.mxu1 %v6031_v41  ;;  %6153 = vmatpush.msra.mxu3 %v14124_v36  ;;  %v14279_v41 = vand.u32 4294901760, %v317_v40  ;;  %v6055_v39 = vand.u32 4294901760, %v6054_v16  ;;  %v16739_v16 = vand.u32 4294901760, %v14286_v1 }
 0x34c   :  { %5965 = vmatpush.msra.mxu0 %v14183_v10  ;;  %6115 = vmatpush.msra.mxu2 %v14187_v37  ;;  %v6067_v44 = vand.u32 4294901760, %v6066_v30  ;;  %v14352_v30 = vpop.f32.mrf.mxu2 }
 0x34d   :  { %6038 = vmatpush.msra.mxu1 %v6037_v13  ;;  %6155 = vmatpush.msra.mxu3 %v14139_v18  ;;  %v315_v13 = vld [vmem:[%s16536_s1 + $0x8d0] sm:$0xff]  ;;  %v14307_v8 = vsub.f32 %v317_v40, %v14279_v41  ;;  %v6323_v40 = vsub.f32 %v14262_v26, %v16736_v9  ;;  %17032 = vst [vmem:[#allocation6_spill] sm:$0xff] %v14352_v30 }
 0x34e   :  { %5967 = vmatpush.msra.mxu0 %v14210_v52  ;;  %6118 = vmatpush.msra.mxu2 %v14203_v32  ;;  %v14314_v35 = vand.u32 4294901760, %v315_v13 }
 0x34f   :  { %6044 = vmatpush.msra.mxu1 %v6043_v45  ;;  %6157 = vmatpush.msra.mxu3 %v14154_v59  ;;  %v314_v45 = vld [vmem:[%s16536_s1 + $0x8c8] sm:$0xff]  ;;  %v16741_v9 = vand.u32 4294901760, %v14307_v8  ;;  %v6324_v54 = vand.u32 4294901760, %v6323_v40  ;;  %v14369_v40 = vand.u32 4294901760, %v312_v31 }
 0x350   :  { %5969 = vmatpush.msra.mxu0 %v14235_v4  ;;  %6121 = vmatpush.msra.mxu2 %v14221_v17  ;;  %v14334_v23 = vand.u32 4294901760, %v314_v45 }
 0x351   :  { %6050 = vmatpush.msra.mxu1 %v6049_v56  ;;  %6159 = vmatpush.msra.mxu3 %v14171_v5  ;;  %v313_v56 = vld [vmem:[%s16536_s1 + $0x8c0] sm:$0xff]  ;;  %v6341_v19 = vsub.f32 %v14307_v8, %v16741_v9  ;;  %v17036_v9 = vand.u32 4294901760, %v14323_v27 }
 0x352   :  { %5975 = vmatmul.f32.vlgmr.msra.gmra.mxu0 %v5974_v47  ;;  %6124 = vmatpush.msra.mxu2 %v14241_v62  ;;  %v6072_v47 = vsub.f32 %v14269_v58, %v16737_v29  ;;  %v14350_v29 = vand.u32 4294901760, %v313_v56 }
 0x353   :  { %6176 = vmatpush.msrb.mxu0 %v5981_v48  ;;  %6056 = vmatpush.msra.mxu1 %v6055_v39  ;;  %v6329_v48 = vsub.f32 %v14286_v1, %v16739_v16  ;;  %v14348_v39 = vsub.f32 %v315_v13, %v14314_v35  ;;  %v14367_v16 = vsub.f32 %v314_v45, %v14334_v23  ;;  %v17035_v45 = vand.u32 4294901760, %v14062_v2  ;;  %v309_v2 = vld [vmem:[%s16536_s1 + $0x8a0] sm:$0xff] }
 0x354   :  { %6161 = vmatpush.msra.mxu3 %v14183_v10  ;;  %6127 = vmatpush.msra.mxu2 %v14269_v58  ;;  %v6073_v13 = vand.u32 4294901760, %v6072_v47  ;;  %v14378_v47 = vpop.f32.mrf.mxu3  ;;  %v14386_v30 = vsub.f32 %v313_v56, %v14350_v29 }
 0x355   :  { %6180 = vmatpush.msrb.mxu0 %v5987_v15  ;;  %6062 = vmatpush.msra.mxu1 %v6061_v14  ;;  %v311_v15 = vld [vmem:[%s16536_s1 + $0x8b0] sm:$0xff]  ;;  %v6335_v14 = vsub.f32 %v14299_v61, %v16740_v46  ;;  %17033 = vst [vmem:[#allocation7_spill] sm:$0xff] %v14378_v47  ;;  %v17034_v46 = vand.u32 4294901760, %v14195_v49  ;;  %v6330_v50 = vand.u32 4294901760, %v6329_v48  ;;  %v6347_v47 = vsub.f32 %v14323_v27, %v17036_v9 }
 0x356   :  { %6163 = vmatpush.msra.mxu3 %v14210_v52  ;;  %6130 = vmatmul.f32.vlgmr.msra.gmra.mxu2 %v14195_v49  ;;  %v14388_v6 = vand.u32 4294901760, %v311_v15  ;;  %v17037_v49 = vand.u32 4294901760, %v14068_v7  ;;  %v14401_v48 = vsub.f32 %v312_v31, %v14369_v40  ;;  %v6342_v9 = vand.u32 4294901760, %v6341_v19  ;;  %v308_v7 = vld [vmem:[%s16536_s1 + $0x898] sm:$0xff] }
 0x357   :  { %6184 = vmatpush.msrb.mxu0 %v5993_v20  ;;  %6280 = vmatpush.msrb.mxu2 %v14226_v25  ;;  %v310_v20 = vld [vmem:[%s16536_s1 + $0x8a8] sm:$0xff]  ;;  %v17039_v19 = vand.u32 4294901760, %v14084_v53  ;;  %v6348_v56 = vand.u32 4294901760, %v6347_v47  ;;  %v307_v53 = vld [vmem:[%s16536_s1 + $0x890] sm:$0xff]  ;;  %v17041_v47 = vand.u32 4294901760, %v14111_v21 }
 0x358   :  { %6068 = vmatpush.msra.mxu1 %v6067_v44  ;;  %6165 = vmatpush.msra.mxu3 %v14235_v4  ;;  %v16742_v44 = vand.u32 4294901760, %v14348_v39  ;;  %v306_v21 = vld [vmem:[%s16536_s1 + $0x888] sm:$0xff] }
 0x359   :  { %6169 = vmatmul.f32.vlgmr.msra.gmra.mxu3 %v17034_v46  ;;  %6188 = vmatpush.msrb.mxu0 %v17035_v45  ;;  %v6336_v46 = vand.u32 4294901760, %v6335_v14  ;;  %v14403_v45 = vand.u32 4294901760, %v310_v20  ;;  %v14418_v14 = vsub.f32 %v311_v15, %v14388_v6 }
 0x35a   :  { %6282 = vmatpush.msrb.mxu2 %v14251_v24  ;;  %6325 = vmatpush.msrb.mxu3 %v6324_v54  ;;  %v14405_v54 = vpop.f32.mrf.mxu1  ;;  %v6353_v31 = vsub.f32 %v14348_v39, %v16742_v44  ;;  %v17043_v44 = vand.u32 4294901760, %v14127_v63  ;;  %v305_v63 = vld [vmem:[%s16536_s1 + $0x880] sm:$0xff] }
 0x35b   :  { %6074 = vmatpush.msra.mxu1 %v6073_v13  ;;  %6192 = vmatpush.msrb.mxu0 %v17037_v49  ;;  %17038 = vst [vmem:[#allocation8_spill] sm:$0xff] %v14405_v54  ;;  %v14420_v49 = vand.u32 4294901760, %v309_v2  ;;  %v14431_v15 = vsub.f32 %v310_v20, %v14403_v45  ;;  %v14433_v13 = vand.u32 4294901760, %v308_v7  ;;  %v17047_v54 = vand.u32 4294901760, %v14158_v11 }
 0x35c   :  { %6076 = vmatmul.f32.vlgmr.msra.gmra.mxu1 %v14165_v42  ;;  %6284 = vmatpush.msrb.mxu2 %v14271_v0  ;;  %v17049_v11 = vand.u32 4294901760, %v14175_v60 }
 0x35d   :  { %6243 = vmatpush.msrb.mxu1 %v13998_v28  ;;  %6331 = vmatpush.msrb.mxu3 %v6330_v50  ;;  %v17040_v28 = vand.u32 4294901760, %v14367_v16 }
 0x35e   :  { %6196 = vmatpush.msrb.mxu0 %v17039_v19  ;;  %6286 = vmatpush.msrb.mxu2 %v14279_v41  ;;  %v14463_v19 = vsub.f32 %v308_v7, %v14433_v13  ;;  %v17046_v7 = vand.u32 4294901760, %v14418_v14 }
 0x35f   :  { %6245 = vmatpush.msrb.mxu1 %v14008_v51  ;;  %6337 = vmatpush.msrb.mxu3 %v6336_v46  ;;  %v6359_v50 = vsub.f32 %v14367_v16, %v17040_v28  ;;  %v6354_v51 = vand.u32 4294901760, %v6353_v31  ;;  %v17042_v46 = vand.u32 4294901760, %v14386_v30  ;;  %v14447_v28 = vsub.f32 %v309_v2, %v14420_v49 }
 0x360   :  { %6200 = vmatpush.msrb.mxu0 %v17041_v47  ;;  %6288 = vmatpush.msrb.mxu2 %v14291_v3  ;;  %v451_v47 = vld.sshfl [vmem:[#allocation1 + $0x8] sm:$0xff pattern:$0x73625140]  ;;  %v17044_v31 = vand.u32 4294901760, %v14401_v48 }
 0x361   :  { %6247 = vmatpush.msrb.mxu1 %v14018_v43  ;;  %6343 = vmatpush.msrb.mxu3 %v6342_v9  ;;  %v6365_v20 = vsub.f32 %v14386_v30, %v17042_v46  ;;  %v14455_v43 = vand.u32 4294901760, %v307_v53  ;;  %v6360_v9 = vand.u32 4294901760, %v6359_v50  ;;  %v6388_v46 = vand.u32 4294901760, %v14447_v28 }
 0x362   :  { %6204 = vmatpush.msrb.mxu0 %v17043_v44  ;;  %6290 = vmatpush.msrb.mxu2 %v14314_v35  ;;  %v6371_v2 = vsub.f32 %v14401_v48, %v17044_v31  ;;  %v17045_v44 = vand.u32 4294901760, %v14143_v38  ;;  %v6377_v31 = vsub.f32 %v14418_v14, %v17046_v7  ;;  %v6394_v7 = vand.u32 4294901760, %v14463_v19 }
 0x363   :  { %6249 = vmatpush.msrb.mxu1 %v14031_v57  ;;  %6349 = vmatpush.msrb.mxu3 %v6348_v56  ;;  %v14471_v57 = vand.u32 4294901760, %v306_v21  ;;  %v14473_v56 = vand.u32 4294901760, %v451_v47  ;;  %v6366_v50 = vand.u32 4294901760, %v6365_v20  ;;  %v14484_v38 = vsub.f32 %v307_v53, %v14455_v43 }
 0x364   :  { %6208 = vmatpush.msrb.mxu0 %v17045_v44  ;;  %6292 = vmatpush.msrb.mxu2 %v14334_v23  ;;  %v14486_v44 = vand.u32 4294901760, %v305_v63 }
 0x365   :  { %6251 = vmatpush.msrb.mxu1 %v14042_v12  ;;  %6355 = vmatpush.msrb.mxu3 %v6354_v51  ;;  %v6372_v12 = vand.u32 4294901760, %v6371_v2  ;;  %v17048_v51 = vand.u32 4294901760, %v14431_v15  ;;  %v14500_v53 = vsub.f32 %v451_v47, %v14473_v56  ;;  %v17050_v2 = vand.u32 4294901760, %v14187_v37 }
 0x366   :  { %6212 = vmatpush.msrb.mxu0 %v17047_v54  ;;  %6294 = vmatpush.msrb.mxu2 %v14350_v29  ;;  %v14497_v54 = vsub.f32 %v306_v21, %v14471_v57  ;;  %v6400_v60 = vand.u32 4294901760, %v14484_v38  ;;  %v14511_v21 = vsub.f32 %v305_v63, %v14486_v44  ;;  %v6395_v47 = vsub.f32 %v14463_v19, %v6394_v7 }
 0x367   :  { %6253 = vmatpush.msrb.mxu1 %v14053_v33  ;;  %6361 = vmatpush.msrb.mxu3 %v6360_v9  ;;  %v6383_v20 = vsub.f32 %v14431_v15, %v17048_v51  ;;  %v6378_v33 = vand.u32 4294901760, %v6377_v31  ;;  %v6389_v9 = vsub.f32 %v14447_v28, %v6388_v46  ;;  %v6313_v31 = vand.u32 4294901760, %v14500_v53 }
 0x368   :  { %6216 = vmatpush.msrb.mxu0 %v17049_v11  ;;  %6296 = vmatpush.msrb.mxu2 %v14369_v40  ;;  %v6406_v37 = vand.u32 4294901760, %v14497_v54  ;;  %v6396_v51 = vand.u32 4294901760, %v6395_v47 }
 0x369   :  { %6255 = vmatpush.msrb.mxu1 %v14078_v22  ;;  %6367 = vmatpush.msrb.mxu3 %v6366_v50  ;;  %v6384_v22 = vand.u32 4294901760, %v6383_v20  ;;  %v17051_v50 = vand.u32 4294901760, %v14203_v32  ;;  %v6390_v63 = vand.u32 4294901760, %v6389_v9  ;;  %v6401_v32 = vsub.f32 %v14484_v38, %v6400_v60 }
 0x36a   :  { %6220 = vmatpush.msrb.mxu0 %v17050_v2  ;;  %6298 = vmatpush.msrb.mxu2 %v14388_v6  ;;  %v17053_v20 = vand.u32 4294901760, %v14241_v62  ;;  %v17055_v2 = vand.u32 4294901760, %v14262_v26 }
 0x36b   :  { %6257 = vmatpush.msrb.mxu1 %v14094_v55  ;;  %6373 = vmatpush.msrb.mxu3 %v6372_v12  ;;  %v17052_v55 = vand.u32 4294901760, %v14221_v17  ;;  %v6412_v12 = vand.u32 4294901760, %v14511_v21  ;;  %v6314_v17 = vsub.f32 %v14500_v53, %v6313_v31  ;;  %v6402_v62 = vand.u32 4294901760, %v6401_v32  ;;  %v327_v32 = vld [vmem:[%s16536_s1 + $0x930] sm:$0xff] }
 0x36c   :  { %6224 = vmatpush.msrb.mxu0 %v17051_v50  ;;  %6300 = vmatpush.msrb.mxu2 %v14403_v45 }
 0x36d   :  { %6259 = vmatpush.msrb.mxu1 %v14108_v34  ;;  %6379 = vmatpush.msrb.mxu3 %v6378_v33  ;;  %v6407_v34 = vsub.f32 %v14497_v54, %v6406_v37  ;;  %v6413_v11 = vsub.f32 %v14511_v21, %v6412_v12  ;;  %v14548_v33 = vpop.f32.mrf.mxu0  ;;  %v6315_v9 = vand.u32 4294901760, %v6314_v17  ;;  %v9080_v17 = vld [vmem:[%s16537_s2] ss:$0 sm:$0xff] }
 0x36e   :  { %6228 = vmatpush.msrb.mxu0 %v17052_v55  ;;  %6302 = vmatpush.msrb.mxu2 %v14420_v49 }
 0x36f   :  { %6261 = vmatpush.msrb.mxu1 %v14124_v36  ;;  %6385 = vmatpush.msrb.mxu3 %v6384_v22  ;;  %v17054_v36 = vand.u32 4294901760, %v14269_v58  ;;  %v6414_v58 = vand.u32 4294901760, %v6413_v11 }
 0x370   :  { %6232 = vmatpush.msrb.mxu0 %v17053_v20  ;;  %6304 = vmatpush.msrb.mxu2 %v14433_v13 }
 0x371   :  { %6263 = vmatpush.msrb.mxu1 %v14139_v18  ;;  %6391 = vmatpush.msrb.mxu3 %v6390_v63  ;;  %v6408_v18 = vand.u32 4294901760, %v6407_v34 }
 0x372   :  { %6236 = vmatpush.msrb.mxu0 %v17054_v36  ;;  %6306 = vmatpush.msrb.mxu2 %v14455_v43  ;;  %v326_v36 = vld [vmem:[%s16536_s1 + $0x928] sm:$0xff] }
 0x373   :  { %6265 = vmatpush.msrb.mxu1 %v14154_v59  ;;  %6397 = vmatpush.msrb.mxu3 %v6396_v51  ;;  %v14557_v59 = vpop.f32.mrf.mxu2 }
 0x374   :  { %6238 = vmatmul.f32.vlgmr.msrb.gmra.mxu0 %v14165_v42  ;;  %6308 = vmatpush.msrb.mxu2 %v14471_v57 }
 0x375   :  { %6423 = vmatpush.msra.mxu0 %v14262_v26  ;;  %6267 = vmatpush.msrb.mxu1 %v14171_v5  ;;  %v14563_v5 = vpop.f32.mrf.mxu3  ;;  %v14572_v26 = vpop.f32.mrf.mxu1 }
 0x376   :  { %6403 = vmatpush.msrb.mxu3 %v6402_v62  ;;  %6310 = vmatpush.msrb.mxu2 %v14486_v44 }
 0x377   :  { %6426 = vmatpush.msra.mxu0 %v14286_v1  ;;  %6269 = vmatpush.msrb.mxu1 %v14183_v10  ;;  %v17056_v10 = vand.u32 4294901760, %v14286_v1  ;;  %v17058_v1 = vand.u32 4294901760, %v14307_v8 }
 0x378   :  { %6409 = vmatpush.msrb.mxu3 %v6408_v18  ;;  %6316 = vmatmul.f32.vlgmr.msrb.gmra.mxu2 %v6315_v9  ;;  %v14755_v18 = vand.u32 4294901760, %v327_v32 }
 0x379   :  { %6429 = vmatpush.msra.mxu0 %v14299_v61  ;;  %6517 = vmatpush.msra.mxu2 %v17055_v2  ;;  %v325_v2 = vld [vmem:[%s16536_s1 + $0x920] sm:$0xff] }
 0x37a   :  { %6271 = vmatpush.msrb.mxu1 %v14210_v52  ;;  %6415 = vmatpush.msrb.mxu3 %v6414_v58  ;;  %v17057_v52 = vand.u32 4294901760, %v14299_v61  ;;  %v17064_v61 = vand.u32 4294901760, %v14418_v14 }
 0x37b   :  { %6417 = vmatmul.f32.vlgmr.msrb.gmra.mxu3 %v14473_v56  ;;  %6432 = vmatpush.msra.mxu0 %v14307_v8  ;;  %v17061_v8 = vand.u32 4294901760, %v14367_v16  ;;  %v14705_v22 = vpop.f32.mrf.mxu2 }
 0x37c   :  { %6521 = vmatpush.msra.mxu2 %v17056_v10  ;;  %6584 = vmatpush.msra.mxu3 %v14226_v25 }
 0x37d   :  { %6273 = vmatpush.msrb.mxu1 %v14235_v4  ;;  %6435 = vmatpush.msra.mxu0 %v14323_v27  ;;  %v17063_v4 = vand.u32 4294901760, %v14401_v48  ;;  %v14760_v58 = vpop.f32.mrf.mxu1 }
 0x37e   :  { %6275 = vmatmul.f32.vlgmr.msrb.gmra.mxu1 %v14165_v42  ;;  %6525 = vmatpush.msra.mxu2 %v17057_v52  ;;  %v17059_v42 = vand.u32 4294901760, %v14323_v27  ;;  %v334_v27 = vld [vmem:[%s16536_s1 + $0x968] sm:$0xff]  ;;  %v14772_v52 = vand.u32 4294901760, %v326_v36 }
 0x37f   :  { %6476 = vmatpush.msra.mxu1 %v14226_v25  ;;  %6586 = vmatpush.msra.mxu3 %v14251_v24  ;;  %v17060_v25 = vand.u32 4294901760, %v14348_v39 }
 0x380   :  { %6438 = vmatpush.msra.mxu0 %v14348_v39  ;;  %6529 = vmatpush.msra.mxu2 %v17058_v1  ;;  %17066 = vst [vmem:[#allocation9_spill] sm:$0xff] %v14772_v52 }
 0x381   :  { %6478 = vmatpush.msra.mxu1 %v14251_v24  ;;  %6588 = vmatpush.msra.mxu3 %v14271_v0 }
 0x382   :  { %6441 = vmatpush.msra.mxu0 %v14367_v16  ;;  %6533 = vmatpush.msra.mxu2 %v17059_v42  ;;  %v14640_v16 = vand.u32 4294901760, %v334_v27  ;;  %v17067_v42 = vld [vmem:[#allocation5_spill] sm:$0xff] }
 0x383   :  { %6480 = vmatpush.msra.mxu1 %v14271_v0  ;;  %6590 = vmatpush.msra.mxu3 %v14279_v41  ;;  %v17062_v0 = vand.u32 4294901760, %v14386_v30 }
 0x384   :  { %6444 = vmatpush.msra.mxu0 %v14386_v30  ;;  %6537 = vmatpush.msra.mxu2 %v17060_v25  ;;  %v332_v30 = vld [vmem:[%s16536_s1 + $0x958] sm:$0xff]  ;;  %v521_v25 = vadd.f32 %v9080_v17, %v17067_v42 }
 0x385   :  { %6482 = vmatpush.msra.mxu1 %v14279_v41  ;;  %6592 = vmatpush.msra.mxu3 %v14291_v3  ;;  %v352_v42 = vld [vmem:[%s16536_s1 + $0x9f8] sm:$0xff] }
 0x386   :  { %6447 = vmatpush.msra.mxu0 %v14401_v48  ;;  %6541 = vmatpush.msra.mxu2 %v17061_v8  ;;  %v331_v48 = vld [vmem:[%s16536_s1 + $0x950] sm:$0xff] }
 0x387   :  { %6484 = vmatpush.msra.mxu1 %v14291_v3  ;;  %6594 = vmatpush.msra.mxu3 %v14314_v35  ;;  %v336_v3 = vld [vmem:[%s16536_s1 + $0x978] sm:$0xff] }
 0x388   :  { %6450 = vmatpush.msra.mxu0 %v14418_v14  ;;  %6545 = vmatpush.msra.mxu2 %v17062_v0  ;;  %v14620_v24 = vand.u32 4294901760, %v336_v3  ;;  %v14664_v14 = vand.u32 4294901760, %v332_v30  ;;  %v324_v0 = vld [vmem:[%s16536_s1 + $0x918] sm:$0xff] }
 0x389   :  { %6486 = vmatpush.msra.mxu1 %v14314_v35  ;;  %6596 = vmatpush.msra.mxu3 %v14334_v23  ;;  %v335_v35 = vld [vmem:[%s16536_s1 + $0x970] sm:$0xff] }
 0x38a   :  { %6453 = vmatpush.msra.mxu0 %v14431_v15  ;;  %6549 = vmatpush.msra.mxu2 %v17063_v4  ;;  %v14630_v41 = vand.u32 4294901760, %v335_v35  ;;  %v14643_v39 = vsub.f32 %v336_v3, %v14620_v24  ;;  %v14788_v3 = vand.u32 4294901760, %v325_v2 }
 0x38b   :  { %6488 = vmatpush.msra.mxu1 %v14334_v23  ;;  %6598 = vmatpush.msra.mxu3 %v14350_v29  ;;  %v17065_v23 = vand.u32 4294901760, %v14431_v15  ;;  %v14670_v15 = vsub.f32 %v334_v27, %v14640_v16  ;;  %v323_v27 = vld [vmem:[%s16536_s1 + $0x910] sm:$0xff] }
 0x38c   :  { %6456 = vmatpush.msra.mxu0 %v14447_v28  ;;  %6553 = vmatpush.msra.mxu2 %v17064_v61  ;;  %v14677_v28 = vand.u32 4294901760, %v331_v48  ;;  %17068 = vst [vmem:[#allocation5_spill] sm:$0xff] %v14788_v3  ;;  %v14822_v17 = vsub.f32 %v325_v2, %v14788_v3 }
 0x38d   :  { %6490 = vmatpush.msra.mxu1 %v14350_v29  ;;  %6600 = vmatpush.msra.mxu3 %v14369_v40  ;;  %v333_v29 = vld [vmem:[%s16536_s1 + $0x960] sm:$0xff] }
 0x38e   :  { %6459 = vmatpush.msra.mxu0 %v14463_v19  ;;  %6557 = vmatpush.msra.mxu2 %v17065_v23  ;;  %v14672_v19 = vpop.f32.mrf.mxu0  ;;  %v14710_v47 = vsub.f32 %v331_v48, %v14677_v28  ;;  %v14805_v48 = vand.u32 4294901760, %v324_v0 }
 0x38f   :  { %6492 = vmatpush.msra.mxu1 %v14369_v40  ;;  %6602 = vmatpush.msra.mxu3 %v14388_v6  ;;  %v14656_v40 = vsub.f32 %v335_v35, %v14630_v41  ;;  %v14792_v35 = vsub.f32 %v327_v32, %v14755_v18 }
 0x390   :  { %6462 = vmatpush.msra.mxu0 %v14484_v38  ;;  %6561 = vmatpush.msra.mxu2 %v6388_v46  ;;  %17069 = vst [vmem:[#allocation10_spill] sm:$0xff] %v14805_v48 }
 0x391   :  { %6494 = vmatpush.msra.mxu1 %v14388_v6  ;;  %6604 = vmatpush.msra.mxu3 %v14403_v45  ;;  %v14653_v6 = vand.u32 4294901760, %v333_v29  ;;  %v16755_v46 = vand.u32 4294901760, %v14656_v40 }
 0x392   :  { %6465 = vmatpush.msra.mxu0 %v14497_v54  ;;  %6565 = vmatpush.msra.mxu2 %v6394_v7  ;;  %v14692_v7 = vsub.f32 %v332_v30, %v14664_v14  ;;  %v329_v54 = vld [vmem:[%s16536_s1 + $0x940] sm:$0xff] }
 0x393   :  { %6496 = vmatpush.msra.mxu1 %v14403_v45  ;;  %6606 = vmatpush.msra.mxu3 %v14420_v49  ;;  %v16756_v45 = vand.u32 4294901760, %v14643_v39  ;;  %v14686_v38 = vsub.f32 %v333_v29, %v14653_v6  ;;  %v6670_v50 = vsub.f32 %v14656_v40, %v16755_v46 }
 0x394   :  { %6468 = vmatpush.msra.mxu0 %v14511_v21  ;;  %6569 = vmatpush.msra.mxu2 %v6400_v60  ;;  %v16752_v21 = vand.u32 4294901760, %v14670_v15  ;;  %v16750_v55 = vand.u32 4294901760, %v14692_v7 }
 0x395   :  { %6498 = vmatpush.msra.mxu1 %v14420_v49  ;;  %6608 = vmatpush.msra.mxu3 %v14433_v13  ;;  %v330_v49 = vld [vmem:[%s16536_s1 + $0x948] sm:$0xff]  ;;  %v16751_v63 = vand.u32 4294901760, %v14686_v38  ;;  %v6671_v62 = vand.u32 4294901760, %v6670_v50 }
 0x396   :  { %6471 = vmatmul.f32.vlgmr.msra.gmra.mxu0 %v14500_v53  ;;  %6573 = vmatpush.msra.mxu2 %v6406_v37  ;;  %v14702_v60 = vand.u32 4294901760, %v330_v49  ;;  %v14720_v37 = vand.u32 4294901760, %v329_v54  ;;  %v6676_v20 = vsub.f32 %v14670_v15, %v16752_v21 }
 0x397   :  { %6621 = vmatpush.msrb.mxu0 %v14620_v24  ;;  %6500 = vmatpush.msra.mxu1 %v14433_v13  ;;  %v6664_v13 = vsub.f32 %v14643_v39, %v16756_v45  ;;  %v6682_v11 = vsub.f32 %v14686_v38, %v16751_v63 }
 0x398   :  { %6610 = vmatpush.msra.mxu3 %v14455_v43  ;;  %6577 = vmatpush.msra.mxu2 %v6412_v12  ;;  %v14729_v12 = vpop.f32.mrf.mxu3  ;;  %v14739_v34 = vsub.f32 %v330_v49, %v14702_v60  ;;  %v14758_v9 = vsub.f32 %v329_v54, %v14720_v37  ;;  %v6677_v10 = vand.u32 4294901760, %v6676_v20  ;;  %v14809_v54 = vsub.f32 %v326_v36, %v14772_v52  ;;  %v322_v36 = vld [vmem:[%s16536_s1 + $0x908] sm:$0xff] }
 0x399   :  { %6623 = vmatpush.msrb.mxu0 %v14630_v41  ;;  %6502 = vmatpush.msra.mxu1 %v14455_v43  ;;  %v328_v43 = vld [vmem:[%s16536_s1 + $0x938] sm:$0xff]  ;;  %v6665_v51 = vand.u32 4294901760, %v6664_v13  ;;  %v6683_v4 = vand.u32 4294901760, %v6682_v11  ;;  %v17070_v13 = vld [vmem:[#allocation8_spill] sm:$0xff]  ;;  %v16743_v20 = vand.u32 4294901760, %v14792_v35 }
 0x39a   :  { %6612 = vmatpush.msra.mxu3 %v14471_v57  ;;  %6579 = vmatmul.f32.vlgmr.msra.gmra.mxu2 %v14473_v56  ;;  %v16746_v1 = vand.u32 4294901760, %v14739_v34  ;;  %v16745_v61 = vand.u32 4294901760, %v14758_v9  ;;  %v16748_v2 = vand.u32 4294901760, %v14809_v54 }
 0x39b   :  { %6625 = vmatpush.msrb.mxu0 %v14640_v16  ;;  %6764 = vmatpush.msrb.mxu2 %v14643_v39 }
 0x39c   :  { %6504 = vmatpush.msra.mxu1 %v14471_v57  ;;  %6614 = vmatpush.msra.mxu3 %v14486_v44  ;;  %v14736_v57 = vand.u32 4294901760, %v328_v43  ;;  %v6700_v30 = vsub.f32 %v14739_v34, %v16746_v1  ;;  %v6706_v32 = vsub.f32 %v14758_v9, %v16745_v61  ;;  %v17075_v61 = vld [vmem:[#allocation7_spill] sm:$0xff] }
 0x39d   :  { %6616 = vmatmul.f32.vlgmr.msra.gmra.mxu3 %v14473_v56  ;;  %6627 = vmatpush.msrb.mxu0 %v14653_v6  ;;  %v16747_v56 = vand.u32 4294901760, %v14710_v47 }
 0x39e   :  { %6767 = vmatpush.msrb.mxu2 %v14656_v40  ;;  %6817 = vmatpush.msrb.mxu3 %v14620_v24  ;;  %v14776_v53 = vsub.f32 %v328_v43, %v14736_v57  ;;  %v622_v43 = vadd.f32 %v17070_v13, %v521_v25  ;;  %v6701_v11 = vand.u32 4294901760, %v6700_v30  ;;  %v17071_v25 = vld [vmem:[#allocation6_spill] sm:$0xff]  ;;  %v16749_v30 = vand.u32 4294901760, %v14822_v17 }
 0x39f   :  { %6506 = vmatpush.msra.mxu1 %v14486_v44  ;;  %6629 = vmatpush.msrb.mxu0 %v14664_v14  ;;  %v6688_v44 = vsub.f32 %v14692_v7, %v16750_v55  ;;  %v6694_v8 = vsub.f32 %v14710_v47, %v16747_v56 }
 0x3a0   :  { %6510 = vmatmul.f32.vlgmr.msra.gmra.mxu1 %v6313_v31  ;;  %6770 = vmatpush.msrb.mxu2 %v14670_v15  ;;  %v452_v31 = vld.sshfl [vmem:[#allocation1 + $0x10] sm:$0xff pattern:$0x73625140]  ;;  %v16744_v49 = vand.u32 4294901760, %v14776_v53 }
 0x3a1   :  { %6666 = vmatpush.msrb.mxu1 %v6665_v51  ;;  %6819 = vmatpush.msrb.mxu3 %v14630_v41  ;;  %v6689_v23 = vand.u32 4294901760, %v6688_v44  ;;  %v14799_v29 = vand.u32 4294901760, %v452_v31  ;;  %v6695_v50 = vand.u32 4294901760, %v6694_v8  ;;  %v14818_v51 = vand.u32 4294901760, %v323_v27 }
 0x3a2   :  { %6631 = vmatpush.msrb.mxu0 %v14677_v28  ;;  %6773 = vmatpush.msrb.mxu2 %v14686_v38  ;;  %v6712_v44 = vsub.f32 %v14776_v53, %v16744_v49  ;;  %v14846_v8 = vand.u32 4294901760, %v322_v36 }
 0x3a3   :  { %6672 = vmatpush.msrb.mxu1 %v6671_v62  ;;  %6821 = vmatpush.msrb.mxu3 %v14640_v16  ;;  %v14830_v62 = vsub.f32 %v452_v31, %v14799_v29  ;;  %v676_v31 = vadd.f32 %v17071_v25, %v622_v43  ;;  %v14857_v13 = vsub.f32 %v323_v27, %v14818_v51  ;;  %v14862_v25 = vand.u32 4294901760, %v352_v42 }
 0x3a4   :  { %6633 = vmatpush.msrb.mxu0 %v14702_v60  ;;  %6776 = vmatpush.msrb.mxu2 %v14692_v7  ;;  %17072 = vst [vmem:[#allocation8_spill] sm:$0xff] %v14846_v8  ;;  %v6724_v27 = vsub.f32 %v14809_v54, %v16748_v2  ;;  %v14878_v56 = vsub.f32 %v322_v36, %v14846_v8  ;;  %v349_v36 = vld [vmem:[%s16536_s1 + $0x9e0] sm:$0xff] }
 0x3a5   :  { %6678 = vmatpush.msrb.mxu1 %v6677_v10  ;;  %6823 = vmatpush.msrb.mxu3 %v14653_v6  ;;  %v14838_v10 = vsub.f32 %v324_v0, %v14805_v48  ;;  %v6707_v0 = vand.u32 4294901760, %v6706_v32  ;;  %v16753_v43 = vand.u32 4294901760, %v14830_v62  ;;  %17073 = vst [vmem:[#allocation6_spill] sm:$0xff] %v14862_v25  ;;  %v6713_v32 = vand.u32 4294901760, %v6712_v44 }
 0x3a6   :  { %6635 = vmatpush.msrb.mxu0 %v14720_v37  ;;  %6779 = vmatpush.msrb.mxu2 %v14710_v47  ;;  %v715_v1 = vadd.f32 %v17075_v61, %v676_v31  ;;  %v6730_v2 = vsub.f32 %v14822_v17, %v16749_v30  ;;  %v16757_v61 = vand.u32 4294901760, %v14857_v13  ;;  %v6725_v30 = vand.u32 4294901760, %v6724_v27 }
 0x3a7   :  { %6684 = vmatpush.msrb.mxu1 %v6683_v4  ;;  %6825 = vmatpush.msrb.mxu3 %v14664_v14  ;;  %v321_v4 = vld [vmem:[%s16536_s1 + $0x900] sm:$0xff]  ;;  %v16754_v49 = vand.u32 4294901760, %v14838_v10  ;;  %v14917_v27 = vand.u32 4294901760, %v349_v36 }
 0x3a8   :  { %6637 = vmatpush.msrb.mxu0 %v14736_v57  ;;  %6782 = vmatpush.msrb.mxu2 %v14739_v34 }
 0x3a9   :  { %6690 = vmatpush.msrb.mxu1 %v6689_v23  ;;  %6827 = vmatpush.msrb.mxu3 %v14677_v28  ;;  %v6718_v23 = vsub.f32 %v14792_v35, %v16743_v20  ;;  %v14871_v20 = vand.u32 4294901760, %v321_v4  ;;  %v6736_v55 = vsub.f32 %v14838_v10, %v16754_v49  ;;  %v6742_v49 = vsub.f32 %v14857_v13, %v16757_v61 }
 0x3aa   :  { %6639 = vmatpush.msrb.mxu0 %v14755_v18  ;;  %6785 = vmatpush.msrb.mxu2 %v14758_v9 }
 0x3ab   :  { %6696 = vmatpush.msrb.mxu1 %v6695_v50  ;;  %6829 = vmatpush.msrb.mxu3 %v14702_v60  ;;  %v351_v50 = vld [vmem:[%s16536_s1 + $0x9f0] sm:$0xff]  ;;  %17074 = vst [vmem:[#allocation11_spill] sm:$0xff] %v14871_v20  ;;  %v6719_v44 = vand.u32 4294901760, %v6718_v23  ;;  %v14899_v23 = vsub.f32 %v352_v42, %v14862_v25  ;;  %v14906_v63 = vsub.f32 %v321_v4, %v14871_v20  ;;  %v6731_v4 = vand.u32 4294901760, %v6730_v2 }
 0x3ac   :  { %6641 = vmatpush.msrb.mxu0 %v14772_v52  ;;  %6788 = vmatpush.msrb.mxu2 %v14776_v53  ;;  %v14888_v31 = vand.u32 4294901760, %v351_v50  ;;  %v784_v42 = vadd.f32 %v14548_v33, %v715_v1  ;;  %v347_v2 = vld [vmem:[%s16536_s1 + $0x9d0] sm:$0xff] }
 0x3ad   :  { %6702 = vmatpush.msrb.mxu1 %v6701_v11  ;;  %6831 = vmatpush.msrb.mxu3 %v14720_v37  ;;  %v350_v11 = vld [vmem:[%s16536_s1 + $0x9e8] sm:$0xff]  ;;  %17076 = vst [vmem:[#allocation7_spill] sm:$0xff] %v14899_v23 }
 0x3ae   :  { %6643 = vmatpush.msrb.mxu0 %v14788_v3  ;;  %6791 = vmatpush.msrb.mxu2 %v14792_v35  ;;  %v14908_v21 = vand.u32 4294901760, %v350_v11  ;;  %v14924_v46 = vsub.f32 %v351_v50, %v14888_v31  ;;  %v14955_v50 = vpop.f32.mrf.mxu0 }
 0x3af   :  { %6708 = vmatpush.msrb.mxu1 %v6707_v0  ;;  %6833 = vmatpush.msrb.mxu3 %v14736_v57  ;;  %v6655_v0 = vsub.f32 %v14830_v62, %v16753_v43  ;;  %v348_v43 = vld [vmem:[%s16536_s1 + $0x9d8] sm:$0xff] }
 0x3b0   :  { %6645 = vmatpush.msrb.mxu0 %v14805_v48  ;;  %6794 = vmatpush.msrb.mxu2 %v14809_v54  ;;  %v14929_v45 = vand.u32 4294901760, %v348_v43  ;;  %v14937_v61 = vsub.f32 %v350_v11, %v14908_v21  ;;  %v6743_v11 = vand.u32 4294901760, %v6742_v49  ;;  %v345_v49 = vld [vmem:[%s16536_s1 + $0x9c0] sm:$0xff] }
 0x3b1   :  { %6714 = vmatpush.msrb.mxu1 %v6713_v32  ;;  %6835 = vmatpush.msrb.mxu3 %v14755_v18  ;;  %v6656_v33 = vand.u32 4294901760, %v6655_v0  ;;  %v821_v32 = vadd.f32 %v14572_v26, %v784_v42  ;;  %v17077_v0 = vand.u32 4294901760, %v14878_v56  ;;  %v14953_v42 = vand.u32 4294901760, %v347_v2 }
 0x3b2   :  { %6647 = vmatpush.msrb.mxu0 %v14818_v51  ;;  %6797 = vmatpush.msrb.mxu2 %v14822_v17  ;;  %v17081_v26 = vand.u32 4294901760, %v14906_v63 }
 0x3b3   :  { %6720 = vmatpush.msrb.mxu1 %v6719_v44  ;;  %6837 = vmatpush.msrb.mxu3 %v14772_v52  ;;  %v6737_v44 = vand.u32 4294901760, %v6736_v55  ;;  %v6748_v1 = vsub.f32 %v14878_v56, %v17077_v0  ;;  %v346_v55 = vld [vmem:[%s16536_s1 + $0x9c8] sm:$0xff] }
 0x3b4   :  { %6649 = vmatpush.msrb.mxu0 %v14846_v8  ;;  %6800 = vmatpush.msrb.mxu2 %v14838_v10  ;;  %v14973_v52 = vand.u32 4294901760, %v346_v55 }
 0x3b5   :  { %6726 = vmatpush.msrb.mxu1 %v6725_v30  ;;  %6839 = vmatpush.msrb.mxu3 %v14788_v3  ;;  %v14946_v30 = vsub.f32 %v349_v36, %v14917_v27  ;;  %v17079_v36 = vand.u32 4294901760, %v14899_v23  ;;  %v14962_v3 = vsub.f32 %v348_v43, %v14929_v45  ;;  %v6749_v43 = vand.u32 4294901760, %v6748_v1  ;;  %v14992_v1 = vpop.f32.mrf.mxu2 }
 0x3b6   :  { %6651 = vmatpush.msrb.mxu0 %v14871_v20  ;;  %6803 = vmatpush.msrb.mxu2 %v14857_v13 }
 0x3b7   :  { %17078 = vst [vmem:[#allocation12_spill] sm:$0xff] %v14946_v30  ;;  %6732 = vmatpush.msrb.mxu1 %v6731_v4  ;;  %6841 = vmatpush.msrb.mxu3 %v14805_v48  ;;  %v7005_v0 = vsub.f32 %v14899_v23, %v17079_v36  ;;  %v17080_v4 = vand.u32 4294901760, %v14643_v39  ;;  %v16766_v48 = vand.u32 4294901760, %v14937_v61  ;;  %v862_v36 = vadd.f32 %v14557_v59, %v821_v32  ;;  %v344_v39 = vld [vmem:[%s16536_s1 + $0x9b8] sm:$0xff] }
 0x3b8   :  { %6657 = vmatmul.f32.vlgmr.msrb.gmra.mxu0 %v6656_v33  ;;  %6806 = vmatpush.msrb.mxu2 %v14878_v56  ;;  %v6754_v33 = vsub.f32 %v14906_v63, %v17081_v26  ;;  %v17083_v26 = vand.u32 4294901760, %v14924_v46  ;;  %v14988_v59 = vsub.f32 %v347_v2, %v14953_v42  ;;  %v14990_v32 = vand.u32 4294901760, %v345_v49 }
 0x3b9   :  { %6858 = vmatpush.msra.mxu0 %v17080_v4  ;;  %6738 = vmatpush.msrb.mxu1 %v6737_v44  ;;  %v17082_v44 = vand.u32 4294901760, %v14656_v40  ;;  %v7006_v23 = vand.u32 4294901760, %v7005_v0  ;;  %v15009_v0 = vand.u32 4294901760, %v344_v39  ;;  %v963_v40 = vadd.f32 %v14563_v5, %v862_v36 }
 0x3ba   :  { %6843 = vmatpush.msrb.mxu3 %v14818_v51  ;;  %6809 = vmatpush.msrb.mxu2 %v14906_v63  ;;  %v7011_v4 = vsub.f32 %v14924_v46, %v17083_v26  ;;  %v6755_v2 = vand.u32 4294901760, %v6754_v33  ;;  %v7017_v26 = vsub.f32 %v14937_v61, %v16766_v48  ;;  %v342_v33 = vld [vmem:[%s16536_s1 + $0x9a8] sm:$0xff]  ;;  %v17087_v48 = vand.u32 4294901760, %v14686_v38  ;;  %v341_v38 = vld [vmem:[%s16536_s1 + $0x9a0] sm:$0xff] }
 0x3bb   :  { %6862 = vmatpush.msra.mxu0 %v17082_v44  ;;  %6744 = vmatpush.msrb.mxu1 %v6743_v11  ;;  %v343_v11 = vld [vmem:[%s16536_s1 + $0x9b0] sm:$0xff]  ;;  %v17084_v44 = vand.u32 4294901760, %v14670_v15  ;;  %v17085_v15 = vand.u32 4294901760, %v14946_v30  ;;  %v7034_v36 = vand.u32 4294901760, %v14988_v59 }
 0x3bc   :  { %6845 = vmatpush.msrb.mxu3 %v14846_v8  ;;  %6812 = vmatmul.f32.vlgmr.msrb.gmra.mxu2 %v14830_v62  ;;  %v15007_v8 = vsub.f32 %v346_v55, %v14973_v52  ;;  %v17086_v55 = vand.u32 4294901760, %v14830_v62  ;;  %v7012_v5 = vand.u32 4294901760, %v7011_v4 }
 0x3bd   :  { %6866 = vmatpush.msra.mxu0 %v17084_v44  ;;  %6962 = vmatpush.msra.mxu2 %v14862_v25  ;;  %v7023_v44 = vsub.f32 %v14946_v30, %v17085_v15  ;;  %v15019_v25 = vpop.f32.mrf.mxu3  ;;  %v1017_v15 = vadd.f32 %v14672_v19, %v963_v40  ;;  %v17088_v30 = vand.u32 4294901760, %v14962_v3  ;;  %v15043_v19 = vsub.f32 %v344_v39, %v15009_v0 }
 0x3be   :  { %6750 = vmatpush.msrb.mxu1 %v6749_v43  ;;  %6847 = vmatpush.msrb.mxu3 %v14871_v20  ;;  %v15027_v43 = vsub.f32 %v345_v49, %v14990_v32  ;;  %v15029_v20 = vand.u32 4294901760, %v343_v11  ;;  %v7018_v49 = vand.u32 4294901760, %v7017_v26  ;;  %v16770_v4 = vand.u32 4294901760, %v15007_v8 }
 0x3bf   :  { %6851 = vmatmul.f32.vlgmr.msrb.gmra.mxu3 %v17086_v55  ;;  %6870 = vmatpush.msra.mxu0 %v17087_v48  ;;  %v7029_v62 = vsub.f32 %v14962_v3, %v17088_v30  ;;  %v17089_v48 = vand.u32 4294901760, %v14692_v7  ;;  %v15045_v40 = vand.u32 4294901760, %v342_v33  ;;  %v1303_v55 = vpop.f32.mrf.mxu1  ;;  %v7024_v30 = vand.u32 4294901760, %v7023_v44  ;;  %v340_v7 = vld [vmem:[%s16536_s1 + $0x998] sm:$0xff] }
 0x3c0   :  { %6964 = vmatpush.msra.mxu2 %v14888_v31  ;;  %7007 = vmatpush.msra.mxu3 %v7006_v23  ;;  %v1056_v23 = vadd.f32 %v14760_v58, %v1017_v15  ;;  %v7035_v39 = vsub.f32 %v14988_v59, %v7034_v36  ;;  %v15059_v58 = vsub.f32 %v343_v11, %v15029_v20  ;;  %v15061_v26 = vand.u32 4294901760, %v341_v38 }
 0x3c1   :  { %6756 = vmatpush.msrb.mxu1 %v6755_v2  ;;  %6874 = vmatpush.msra.mxu0 %v17089_v48  ;;  %v16771_v2 = vand.u32 4294901760, %v15027_v43  ;;  %v17090_v44 = vand.u32 4294901760, %v14710_v47  ;;  %v7030_v15 = vand.u32 4294901760, %v7029_v62  ;;  %v15072_v11 = vsub.f32 %v342_v33, %v15045_v40  ;;  %v339_v47 = vld [vmem:[%s16536_s1 + $0x990] sm:$0xff] }
 0x3c2   :  { %6758 = vmatmul.f32.vlgmr.msrb.gmra.mxu1 %v14799_v29  ;;  %6966 = vmatpush.msra.mxu2 %v14908_v21  ;;  %v15074_v48 = vand.u32 4294901760, %v340_v7  ;;  %v1125_v62 = vadd.f32 %v14705_v22, %v1056_v23  ;;  %v338_v22 = vld [vmem:[%s16536_s1 + $0x988] sm:$0xff]  ;;  %v17092_v23 = vand.u32 4294901760, %v14758_v9  ;;  %v337_v9 = vld [vmem:[%s16536_s1 + $0x980] sm:$0xff] }
 0x3c3   :  { %6925 = vmatpush.msra.mxu1 %v14620_v24  ;;  %7013 = vmatpush.msra.mxu3 %v7012_v5  ;;  %v7041_v24 = vsub.f32 %v15007_v8, %v16770_v4  ;;  %v16772_v5 = vand.u32 4294901760, %v15043_v19  ;;  %v7047_v33 = vsub.f32 %v15027_v43, %v16771_v2  ;;  %v15089_v4 = vsub.f32 %v341_v38, %v15061_v26 }
 0x3c4   :  { %6878 = vmatpush.msra.mxu0 %v17090_v44  ;;  %6968 = vmatpush.msra.mxu2 %v14917_v27  ;;  %v7058_v44 = vand.u32 4294901760, %v15059_v58  ;;  %v17093_v2 = vand.u32 4294901760, %v14776_v53  ;;  %v17094_v53 = vand.u32 4294901760, %v14792_v35  ;;  %v17095_v35 = vand.u32 4294901760, %v14809_v54 }
 0x3c5   :  { %6927 = vmatpush.msra.mxu1 %v14630_v41  ;;  %7019 = vmatpush.msra.mxu3 %v7018_v49  ;;  %v17091_v41 = vand.u32 4294901760, %v14739_v34  ;;  %v7036_v49 = vand.u32 4294901760, %v7035_v39  ;;  %v453_v34 = vld.sshfl [vmem:[#allocation1 + $0x18] sm:$0xff pattern:$0x73625140]  ;;  %v7053_v38 = vsub.f32 %v15043_v19, %v16772_v5  ;;  %v7064_v39 = vand.u32 4294901760, %v15072_v11 }
 0x3c6   :  { %6970 = vmatpush.msra.mxu2 %v14929_v45  ;;  %v7070_v5 = vand.u32 4294901760, %v15089_v4 }
 0x3c7   :  { %6882 = vmatpush.msra.mxu0 %v17091_v41  ;;  %6929 = vmatpush.msra.mxu1 %v14640_v16  ;;  %v15097_v16 = vand.u32 4294901760, %v339_v47  ;;  %v15105_v41 = vsub.f32 %v340_v7, %v15074_v48  ;;  %v7048_v7 = vand.u32 4294901760, %v7047_v33 }
 0x3c8   :  { %7025 = vmatpush.msra.mxu3 %v7024_v30  ;;  %6972 = vmatpush.msra.mxu2 %v14953_v42  ;;  %v7042_v30 = vand.u32 4294901760, %v7041_v24  ;;  %v7059_v24 = vsub.f32 %v15059_v58, %v7058_v44 }
 0x3c9   :  { %6886 = vmatpush.msra.mxu0 %v17092_v23  ;;  %6931 = vmatpush.msra.mxu1 %v14653_v6  ;;  %v1162_v23 = vadd.f32 %v14729_v12, %v1125_v62  ;;  %v15114_v6 = vand.u32 4294901760, %v338_v22  ;;  %v15130_v62 = vand.u32 4294901760, %v337_v9 }
 0x3ca   :  { %7031 = vmatpush.msra.mxu3 %v7030_v15  ;;  %6974 = vmatpush.msra.mxu2 %v14973_v52  ;;  %v15116_v15 = vand.u32 4294901760, %v453_v34 }
 0x3cb   :  { %6890 = vmatpush.msra.mxu0 %v17093_v2  ;;  %6933 = vmatpush.msra.mxu1 %v14664_v14  ;;  %v1203_v12 = vadd.f32 %v14955_v50, %v1162_v23  ;;  %v15128_v2 = vsub.f32 %v339_v47, %v15097_v16  ;;  %v7054_v14 = vand.u32 4294901760, %v7053_v38  ;;  %v7076_v50 = vand.u32 4294901760, %v15105_v41 }
 0x3cc   :  { %7037 = vmatpush.msra.mxu3 %v7036_v49  ;;  %6976 = vmatpush.msra.mxu2 %v14990_v32  ;;  %v7065_v49 = vsub.f32 %v15072_v11, %v7064_v39  ;;  %v15141_v47 = vsub.f32 %v338_v22, %v15114_v6  ;;  %v15144_v23 = vsub.f32 %v453_v34, %v15116_v15 }
 0x3cd   :  { %6894 = vmatpush.msra.mxu0 %v17094_v53  ;;  %6935 = vmatpush.msra.mxu1 %v14677_v28  ;;  %v1304_v33 = vadd.f32 %v1303_v55, %v1203_v12  ;;  %v7060_v28 = vand.u32 4294901760, %v7059_v24  ;;  %v17096_v55 = vand.u32 4294901760, %v14822_v17  ;;  %v7082_v54 = vand.u32 4294901760, %v15128_v2  ;;  %v1465_v12 = vpop.f32.mrf.mxu0 }
 0x3ce   :  { %7043 = vmatpush.msra.mxu3 %v7042_v30  ;;  %6978 = vmatpush.msra.mxu2 %v15009_v0  ;;  %v7071_v30 = vsub.f32 %v15089_v4, %v7070_v5  ;;  %v15155_v22 = vsub.f32 %v337_v9, %v15130_v62  ;;  %v7077_v34 = vsub.f32 %v15105_v41, %v7076_v50  ;;  %v17097_v17 = vand.u32 4294901760, %v14838_v10 }
 0x3cf   :  { %6898 = vmatpush.msra.mxu0 %v17095_v35  ;;  %6937 = vmatpush.msra.mxu1 %v14702_v60  ;;  %v7066_v60 = vand.u32 4294901760, %v7065_v49  ;;  %v1358_v38 = vadd.f32 %v14992_v1, %v1304_v33  ;;  %v6995_v9 = vand.u32 4294901760, %v15144_v23  ;;  %v17098_v24 = vand.u32 4294901760, %v14857_v13  ;;  %v1502_v33 = vpop.f32.mrf.mxu1  ;;  %v17100_v35 = vld [vmem:[#allocation9_spill] sm:$0xff] }
 0x3d0   :  { %7049 = vmatpush.msra.mxu3 %v7048_v7  ;;  %6980 = vmatpush.msra.mxu2 %v15029_v20  ;;  %v7088_v7 = vand.u32 4294901760, %v15141_v47  ;;  %v7083_v10 = vsub.f32 %v15128_v2, %v7082_v54  ;;  %v7094_v1 = vand.u32 4294901760, %v15155_v22  ;;  %v7078_v53 = vand.u32 4294901760, %v7077_v34 }
 0x3d1   :  { %6902 = vmatpush.msra.mxu0 %v17096_v55  ;;  %6939 = vmatpush.msra.mxu1 %v14720_v37  ;;  %v7072_v37 = vand.u32 4294901760, %v7071_v30  ;;  %v6996_v49 = vsub.f32 %v15144_v23, %v6995_v9  ;;  %v17102_v30 = vld [vmem:[#allocation5_spill] sm:$0xff] }
 0x3d2   :  { %7055 = vmatpush.msra.mxu3 %v7054_v14  ;;  %6982 = vmatpush.msra.mxu2 %v15045_v40  ;;  %v17099_v14 = vand.u32 4294901760, %v14878_v56  ;;  %v7089_v13 = vsub.f32 %v15141_v47, %v7088_v7  ;;  %v7084_v56 = vand.u32 4294901760, %v7083_v10  ;;  %v1644_v10 = vpop.f32.mrf.mxu3 }
 0x3d3   :  { %6906 = vmatpush.msra.mxu0 %v17097_v17  ;;  %6941 = vmatpush.msra.mxu1 %v14736_v57  ;;  %v1397_v57 = vadd.f32 %v15019_v25, %v1358_v38  ;;  %v17101_v25 = vand.u32 4294901760, %v14906_v63  ;;  %v6997_v34 = vand.u32 4294901760, %v6996_v49  ;;  %v1543_v38 = vpop.f32.mrf.mxu2  ;;  %v17103_v63 = vld [vmem:[#allocation7_spill] sm:$0xff]  ;;  %v17104_v17 = vld [vmem:[#allocation10_spill] sm:$0xff] }
 0x3d4   :  { %7061 = vmatpush.msra.mxu3 %v7060_v28  ;;  %6984 = vmatpush.msra.mxu2 %v15061_v26  ;;  %v7095_v28 = vsub.f32 %v15155_v22, %v7094_v1  ;;  %v17109_v49 = vld [vmem:[#allocation6_spill] sm:$0xff] }
 0x3d5   :  { %6910 = vmatpush.msra.mxu0 %v17098_v24  ;;  %6943 = vmatpush.msra.mxu1 %v14755_v18  ;;  %v1466_v18 = vadd.f32 %v1465_v12, %v1397_v57  ;;  %v17105_v12 = vand.u32 4294901760, %v17103_v63  ;;  %v1698_v57 = vpop.f32.mrf.mxu0 }
 0x3d6   :  { %7067 = vmatpush.msra.mxu3 %v7066_v60  ;;  %6986 = vmatpush.msra.mxu2 %v15074_v48  ;;  %v7090_v60 = vand.u32 4294901760, %v7089_v13 }
 0x3d7   :  { %6914 = vmatpush.msra.mxu0 %v17099_v14  ;;  %6945 = vmatpush.msra.mxu1 %v17100_v35  ;;  %v1503_v55 = vadd.f32 %v1502_v33, %v1466_v18  ;;  %v17107_v14 = vld [vmem:[#allocation12_spill] sm:$0xff]  ;;  %v1737_v33 = vpop.f32.mrf.mxu1  ;;  %v17110_v35 = vld [vmem:[#allocation11_spill] sm:$0xff] }
 0x3d8   :  { %7073 = vmatpush.msra.mxu3 %v7072_v37  ;;  %6988 = vmatpush.msra.mxu2 %v15097_v16  ;;  %v7096_v37 = vand.u32 4294901760, %v7095_v28 }
 0x3d9   :  { %6918 = vmatpush.msra.mxu0 %v17101_v25  ;;  %6947 = vmatpush.msra.mxu1 %v17102_v30  ;;  %v1544_v24 = vadd.f32 %v1543_v38, %v1503_v55  ;;  %v17111_v25 = vand.u32 4294901760, %v14937_v61 }
 0x3da   :  { %7079 = vmatpush.msra.mxu3 %v7078_v53  ;;  %6920 = vmatmul.f32.vlgmr.msra.gmra.mxu0 %v14799_v29  ;;  %v17106_v53 = vld [vmem:[#allocation8_spill] sm:$0xff]  ;;  %v1843_v30 = vpop.f32.mrf.mxu3 }
 0x3db   :  { %6990 = vmatpush.msra.mxu2 %v15114_v6  ;;  %7105 = vmatpush.msrb.mxu0 %v17103_v63  ;;  %v1645_v13 = vadd.f32 %v1644_v10, %v1544_v24  ;;  %v1806_v28 = vpop.f32.mrf.mxu2 }
 0x3dc   :  { %6949 = vmatpush.msra.mxu1 %v17104_v17  ;;  %7085 = vmatpush.msra.mxu3 %v7084_v56 }
 0x3dd   :  { %6992 = vmatpush.msra.mxu2 %v15130_v62  ;;  %7108 = vmatpush.msrb.mxu0 %v14924_v46  ;;  %v1699_v18 = vadd.f32 %v1698_v57, %v1645_v13 }
 0x3de   :  { %6951 = vmatpush.msra.mxu1 %v14818_v51  ;;  %7091 = vmatpush.msra.mxu3 %v7090_v60  ;;  %v17108_v51 = vand.u32 4294901760, %v14924_v46  ;;  %v17112_v46 = vand.u32 4294901760, %v17107_v14  ;;  %v364_v60 = vld [vmem:[%s16536_s1 + $0xa58] sm:$0xff] }
 0x3df   :  { %6998 = vmatmul.f32.vlgmr.msra.gmra.mxu2 %v6997_v34  ;;  %7111 = vmatpush.msrb.mxu0 %v14937_v61  ;;  %v1738_v56 = vadd.f32 %v1737_v33, %v1699_v18  ;;  %v363_v34 = vld [vmem:[%s16536_s1 + $0xa50] sm:$0xff] }
 0x3e0   :  { %7199 = vmatpush.msrb.mxu2 %v17105_v12  ;;  %6953 = vmatpush.msra.mxu1 %v17106_v53  ;;  %v360_v53 = vld [vmem:[%s16536_s1 + $0xa38] sm:$0xff] }
 0x3e1   :  { %7097 = vmatpush.msra.mxu3 %v7096_v37  ;;  %7114 = vmatpush.msrb.mxu0 %v17107_v14  ;;  %v1807_v61 = vadd.f32 %v1806_v28, %v1738_v56 }
 0x3e2   :  { %7099 = vmatmul.f32.vlgmr.msra.gmra.mxu3 %v15116_v15  ;;  %7203 = vmatpush.msrb.mxu2 %v17108_v51 }
 0x3e3   :  { %7266 = vmatpush.msrb.mxu3 %v17109_v49  ;;  %6955 = vmatpush.msra.mxu1 %v17110_v35 }
 0x3e4   :  { %7117 = vmatpush.msrb.mxu0 %v14962_v3  ;;  %6957 = vmatmul.f32.vlgmr.msra.gmra.mxu1 %v14799_v29  ;;  %v17113_v29 = vand.u32 4294901760, %v14962_v3  ;;  %v17114_v3 = vand.u32 4294901760, %v15007_v8 }
 0x3e5   :  { %7207 = vmatpush.msrb.mxu2 %v17111_v25  ;;  %7158 = vmatpush.msrb.mxu1 %v17109_v49  ;;  %v359_v49 = vld [vmem:[%s16536_s1 + $0xa30] sm:$0xff]  ;;  %v15368_v25 = vand.u32 4294901760, %v360_v53 }
 0x3e6   :  { %7268 = vmatpush.msrb.mxu3 %v14888_v31  ;;  %7120 = vmatpush.msrb.mxu0 %v14988_v59  ;;  %v17115_v59 = vand.u32 4294901760, %v15027_v43 }
 0x3e7   :  { %7211 = vmatpush.msrb.mxu2 %v17112_v46  ;;  %7160 = vmatpush.msrb.mxu1 %v14888_v31  ;;  %v1884_v31 = vpop.f32.mrf.mxu0 }
 0x3e8   :  { %7270 = vmatpush.msrb.mxu3 %v14908_v21  ;;  %7123 = vmatpush.msrb.mxu0 %v15007_v8  ;;  %v17116_v8 = vand.u32 4294901760, %v15043_v19 }
 0x3e9   :  { %7215 = vmatpush.msrb.mxu2 %v17113_v29  ;;  %7162 = vmatpush.msrb.mxu1 %v14908_v21  ;;  %v1844_v21 = vadd.f32 %v1843_v30, %v1807_v61  ;;  %v15384_v61 = vand.u32 4294901760, %v359_v49 }
 0x3ea   :  { %7272 = vmatpush.msrb.mxu3 %v14917_v27  ;;  %7126 = vmatpush.msrb.mxu0 %v15027_v43 }
 0x3eb   :  { %7219 = vmatpush.msrb.mxu2 %v7034_v36  ;;  %7164 = vmatpush.msrb.mxu1 %v14917_v27  ;;  %v1985_v36 = vpop.f32.mrf.mxu1  ;;  %v1885_v27 = vadd.f32 %v1884_v31, %v1844_v21  ;;  %v357_v31 = vld [vmem:[%s16536_s1 + $0xa20] sm:$0xff] }
 0x3ec   :  { %7274 = vmatpush.msrb.mxu3 %v14929_v45  ;;  %7129 = vmatpush.msrb.mxu0 %v15043_v19  ;;  %v2039_v19 = vpop.f32.mrf.mxu2 }
 0x3ed   :  { %7223 = vmatpush.msrb.mxu2 %v17114_v3  ;;  %7166 = vmatpush.msrb.mxu1 %v14929_v45  ;;  %v368_v45 = vld [vmem:[%s16536_s1 + $0xa78] sm:$0xff]  ;;  %v1986_v43 = vadd.f32 %v1985_v36, %v1885_v27  ;;  %v454_v27 = vld.sshfl [vmem:[#allocation1 + $0x20] sm:$0xff pattern:$0x73625140] }
 0x3ee   :  { %7276 = vmatpush.msrb.mxu3 %v14953_v42  ;;  %7132 = vmatpush.msrb.mxu0 %v15059_v58  ;;  %v15258_v55 = vand.u32 4294901760, %v368_v45 }
 0x3ef   :  { %7227 = vmatpush.msrb.mxu2 %v17115_v59  ;;  %7168 = vmatpush.msrb.mxu1 %v14953_v42  ;;  %v367_v42 = vld [vmem:[%s16536_s1 + $0xa70] sm:$0xff] }
 0x3f0   :  { %7278 = vmatpush.msrb.mxu3 %v14973_v52  ;;  %7135 = vmatpush.msrb.mxu0 %v15072_v11  ;;  %v15268_v58 = vand.u32 4294901760, %v367_v42  ;;  %v365_v11 = vld [vmem:[%s16536_s1 + $0xa60] sm:$0xff] }
 0x3f1   :  { %7231 = vmatpush.msrb.mxu2 %v17116_v8  ;;  %7170 = vmatpush.msrb.mxu1 %v14973_v52  ;;  %v366_v52 = vld [vmem:[%s16536_s1 + $0xa68] sm:$0xff] }
 0x3f2   :  { %7280 = vmatpush.msrb.mxu3 %v14990_v32  ;;  %7138 = vmatpush.msrb.mxu0 %v15089_v4  ;;  %v2147_v4 = vpop.f32.mrf.mxu0 }
 0x3f3   :  { %7235 = vmatpush.msrb.mxu2 %v7058_v44  ;;  %7172 = vmatpush.msrb.mxu1 %v14990_v32  ;;  %v2040_v32 = vadd.f32 %v2039_v19, %v1986_v43  ;;  %v2078_v44 = vpop.f32.mrf.mxu3  ;;  %v356_v43 = vld [vmem:[%s16536_s1 + $0xa18] sm:$0xff]  ;;  %v15414_v19 = vand.u32 4294901760, %v357_v31 }
 0x3f4   :  { %7282 = vmatpush.msrb.mxu3 %v15009_v0  ;;  %7141 = vmatpush.msrb.mxu0 %v15105_v41  ;;  %v15302_v41 = vand.u32 4294901760, %v364_v60  ;;  %v2225_v10 = vpop.f32.mrf.mxu2 }
 0x3f5   :  { %7239 = vmatpush.msrb.mxu2 %v7064_v39  ;;  %7174 = vmatpush.msrb.mxu1 %v15009_v0  ;;  %v15278_v0 = vand.u32 4294901760, %v366_v52  ;;  %v15281_v39 = vsub.f32 %v368_v45, %v15258_v55  ;;  %v2079_v38 = vadd.f32 %v2078_v44, %v2040_v32  ;;  %v15418_v32 = vsub.f32 %v359_v49, %v15384_v61 }
 0x3f6   :  { %7284 = vmatpush.msrb.mxu3 %v15029_v20  ;;  %7144 = vmatpush.msrb.mxu0 %v15128_v2  ;;  %v15313_v2 = vand.u32 4294901760, %v363_v34 }
 0x3f7   :  { %7243 = vmatpush.msrb.mxu2 %v7070_v5  ;;  %7176 = vmatpush.msrb.mxu1 %v15029_v20  ;;  %v15291_v20 = vand.u32 4294901760, %v365_v11  ;;  %v15294_v5 = vsub.f32 %v367_v42, %v15268_v58  ;;  %v15308_v63 = vsub.f32 %v366_v52, %v15278_v0  ;;  %v2148_v17 = vadd.f32 %v2147_v4, %v2079_v38 }
 0x3f8   :  { %7286 = vmatpush.msrb.mxu3 %v15045_v40  ;;  %7147 = vmatpush.msrb.mxu0 %v15141_v47  ;;  %v15328_v47 = vsub.f32 %v364_v60, %v15302_v41  ;;  %v355_v60 = vld [vmem:[%s16536_s1 + $0xa10] sm:$0xff]  ;;  %v15425_v4 = vand.u32 4294901760, %v454_v27 }
 0x3f9   :  { %7247 = vmatpush.msrb.mxu2 %v7076_v50  ;;  %7178 = vmatpush.msrb.mxu1 %v15045_v40  ;;  %v2184_v40 = vpop.f32.mrf.mxu1  ;;  %v7345_v50 = vand.u32 4294901760, %v15281_v39  ;;  %v15322_v37 = vsub.f32 %v365_v11, %v15291_v20 }
 0x3fa   :  { %7288 = vmatpush.msrb.mxu3 %v15061_v26  ;;  %7150 = vmatpush.msrb.mxu0 %v15155_v22  ;;  %v2185_v24 = vadd.f32 %v2184_v40, %v2148_v17  ;;  %v16785_v22 = vand.u32 4294901760, %v15308_v63  ;;  %v16781_v51 = vand.u32 4294901760, %v15328_v47  ;;  %v2380_v46 = vpop.f32.mrf.mxu0  ;;  %v15431_v40 = vand.u32 4294901760, %v356_v43 }
 0x3fb   :  { %7251 = vmatpush.msrb.mxu2 %v7082_v54  ;;  %7180 = vmatpush.msrb.mxu1 %v15061_v26  ;;  %v362_v54 = vld [vmem:[%s16536_s1 + $0xa48] sm:$0xff]  ;;  %v7351_v26 = vand.u32 4294901760, %v15294_v5  ;;  %v16783_v14 = vand.u32 4294901760, %v15322_v37  ;;  %v2326_v33 = vpop.f32.mrf.mxu3  ;;  %v15455_v49 = vsub.f32 %v454_v27, %v15425_v4 }
 0x3fc   :  { %7290 = vmatpush.msrb.mxu3 %v15074_v48  ;;  %7153 = vmatmul.f32.vlgmr.msrb.gmra.mxu0 %v15144_v23  ;;  %v15338_v12 = vand.u32 4294901760, %v362_v54  ;;  %v2226_v13 = vadd.f32 %v2225_v10, %v2185_v24  ;;  %v7358_v18 = vsub.f32 %v15308_v63, %v16785_v22  ;;  %v15443_v10 = vand.u32 4294901760, %v355_v60 }
 0x3fd   :  { %7255 = vmatpush.msrb.mxu2 %v7088_v7  ;;  %7303 = vmatpush.msra.mxu0 %v15258_v55  ;;  %v361_v7 = vld [vmem:[%s16536_s1 + $0xa40] sm:$0xff]  ;;  %v7364_v29 = vsub.f32 %v15322_v37, %v16783_v14 }
 0x3fe   :  { %7182 = vmatpush.msrb.mxu1 %v15074_v48  ;;  %7292 = vmatpush.msrb.mxu3 %v15097_v16  ;;  %v7346_v48 = vsub.f32 %v15281_v39, %v7345_v50  ;;  %v15354_v57 = vand.u32 4294901760, %v361_v7  ;;  %v2327_v3 = vadd.f32 %v2326_v33, %v2226_v13  ;;  %v7359_v59 = vand.u32 4294901760, %v7358_v18 }
 0x3ff   :  { %7259 = vmatpush.msrb.mxu2 %v7094_v1  ;;  %7305 = vmatpush.msra.mxu0 %v15268_v58  ;;  %v15344_v1 = vsub.f32 %v363_v34, %v15313_v2  ;;  %v7365_v42 = vand.u32 4294901760, %v7364_v29  ;;  %v2488_v34 = vpop.f32.mrf.mxu2  ;;  %v15481_v27 = vsub.f32 %v355_v60, %v15443_v10 }
 0x400   :  { %7184 = vmatpush.msrb.mxu1 %v15097_v16  ;;  %7294 = vmatpush.msrb.mxu3 %v15114_v6  ;;  %v7352_v16 = vsub.f32 %v15294_v5, %v7351_v26  ;;  %v7347_v35 = vand.u32 4294901760, %v7346_v48  ;;  %v15387_v30 = vsub.f32 %v361_v7, %v15354_v57  ;;  %v2381_v8 = vadd.f32 %v2380_v46, %v2327_v3  ;;  %v353_v3 = vld [vmem:[%s16536_s1 + $0xa00] sm:$0xff] }
 0x401   :  { %7261 = vmatmul.f32.vlgmr.msrb.gmra.mxu2 %v15116_v15  ;;  %7307 = vmatpush.msra.mxu0 %v15278_v0  ;;  %v16780_v56 = vand.u32 4294901760, %v15344_v1  ;;  %v2419_v21 = vpop.f32.mrf.mxu1  ;;  %v16775_v48 = vand.u32 4294901760, %v15418_v32  ;;  %v15463_v46 = vsub.f32 %v356_v43, %v15431_v40 }
 0x402   :  { %7446 = vmatpush.msra.mxu2 %v15281_v39  ;;  %7186 = vmatpush.msrb.mxu1 %v15114_v6  ;;  %v15371_v6 = vsub.f32 %v362_v54, %v15338_v12  ;;  %v7353_v28 = vand.u32 4294901760, %v7352_v16  ;;  %v16778_v52 = vand.u32 4294901760, %v15387_v30  ;;  %v2420_v11 = vadd.f32 %v2419_v21, %v2381_v8  ;;  %v354_v16 = vld [vmem:[%s16536_s1 + $0xa08] sm:$0xff]  ;;  %v376_v39 = vld [vmem:[%s16536_s1 + $0xab8] sm:$0xff] }
 0x403   :  { %7296 = vmatpush.msrb.mxu3 %v15130_v62  ;;  %7309 = vmatpush.msra.mxu0 %v15291_v20  ;;  %v7376_v45 = vsub.f32 %v15344_v1, %v16780_v56  ;;  %v2525_v33 = vpop.f32.mrf.mxu3  ;;  %v15470_v29 = vand.u32 4294901760, %v354_v16  ;;  %v7400_v21 = vsub.f32 %v15418_v32, %v16775_v48 }
 0x404   :  { %7298 = vmatmul.f32.vlgmr.msrb.gmra.mxu3 %v15116_v15  ;;  %7449 = vmatpush.msra.mxu2 %v15294_v5  ;;  %v358_v15 = vld [vmem:[%s16536_s1 + $0xa28] sm:$0xff]  ;;  %v16779_v23 = vand.u32 4294901760, %v15371_v6  ;;  %v7388_v7 = vsub.f32 %v15387_v30, %v16778_v52  ;;  %v2489_v13 = vadd.f32 %v2488_v34, %v2420_v11  ;;  %v15495_v34 = vand.u32 4294901760, %v353_v3  ;;  %v375_v5 = vld [vmem:[%s16536_s1 + $0xab0] sm:$0xff] }
 0x405   :  { %7499 = vmatpush.msra.mxu3 %v15258_v55  ;;  %7188 = vmatpush.msrb.mxu1 %v15130_v62  ;;  %v7370_v62 = vsub.f32 %v15328_v47, %v16781_v51  ;;  %v15399_v36 = vand.u32 4294901760, %v358_v15  ;;  %v7377_v24 = vand.u32 4294901760, %v7376_v45  ;;  %v16784_v45 = vand.u32 4294901760, %v15455_v49 }
 0x406   :  { %7311 = vmatpush.msra.mxu0 %v15302_v41  ;;  %7192 = vmatmul.f32.vlgmr.msrb.gmra.mxu1 %v6995_v9  ;;  %v15403_v9 = vsub.f32 %v360_v53, %v15368_v25  ;;  %v7382_v38 = vsub.f32 %v15371_v6, %v16779_v23  ;;  %v15447_v53 = vsub.f32 %v357_v31, %v15414_v19  ;;  %v7389_v31 = vand.u32 4294901760, %v7388_v7 }
 0x407   :  { %7452 = vmatpush.msra.mxu2 %v15308_v63  ;;  %7348 = vmatpush.msra.mxu1 %v7347_v35  ;;  %v7371_v44 = vand.u32 4294901760, %v7370_v62  ;;  %v15435_v54 = vsub.f32 %v358_v15, %v15399_v36  ;;  %v2566_v62 = vpop.f32.mrf.mxu0  ;;  %v2526_v8 = vadd.f32 %v2525_v33, %v2489_v13  ;;  %17118 = vst [vmem:[#allocation5_spill] sm:$0xff] %v15495_v34  ;;  %v382_v13 = vld [vmem:[%s16536_s1 + $0xae8] sm:$0xff]  ;;  %v7401_v33 = vand.u32 4294901760, %v7400_v21 }
 0x408   :  { %7501 = vmatpush.msra.mxu3 %v15268_v58  ;;  %7313 = vmatpush.msra.mxu0 %v15313_v2  ;;  %v16776_v17 = vand.u32 4294901760, %v15403_v9  ;;  %v7383_v35 = vand.u32 4294901760, %v7382_v38  ;;  %v16777_v38 = vand.u32 4294901760, %v15463_v46  ;;  %v15501_v7 = vsub.f32 %v354_v16, %v15470_v29  ;;  %v381_v16 = vld [vmem:[%s16536_s1 + $0xae0] sm:$0xff] }
 0x409   :  { %7455 = vmatpush.msra.mxu2 %v15322_v37  ;;  %7354 = vmatpush.msra.mxu1 %v7353_v28  ;;  %v16774_v15 = vand.u32 4294901760, %v15435_v54  ;;  %v384_v28 = vld [vmem:[%s16536_s1 + $0xaf8] sm:$0xff]  ;;  %v2667_v11 = vpop.f32.mrf.mxu1  ;;  %v15531_v48 = vand.u32 4294901760, %v382_v13 }
 0x40a   :  { %7503 = vmatpush.msra.mxu3 %v15278_v0  ;;  %7315 = vmatpush.msra.mxu0 %v15338_v12  ;;  %v7394_v18 = vsub.f32 %v15403_v9, %v16776_v17  ;;  %v15486_v43 = vand.u32 4294901760, %v384_v28  ;;  %v380_v17 = vld [vmem:[%s16536_s1 + $0xad8] sm:$0xff] }
 0x40b   :  { %7458 = vmatpush.msra.mxu2 %v15328_v47  ;;  %7360 = vmatpush.msra.mxu1 %v7359_v59  ;;  %v16773_v59 = vand.u32 4294901760, %v15447_v53  ;;  %v7406_v60 = vsub.f32 %v15435_v54, %v16774_v15  ;;  %17119 = vst [vmem:[#allocation7_spill] sm:$0xff] %v15531_v48  ;;  %v15551_v51 = vand.u32 4294901760, %v380_v17 }
 0x40c   :  { %7505 = vmatpush.msra.mxu3 %v15291_v20  ;;  %7317 = vmatpush.msra.mxu0 %v15354_v57  ;;  %17117 = vst [vmem:[#allocation9_spill] sm:$0xff] %v15486_v43  ;;  %v15522_v21 = vsub.f32 %v384_v28, %v15486_v43  ;;  %v16786_v28 = vand.u32 4294901760, %v15501_v7 }
 0x40d   :  { %7461 = vmatpush.msra.mxu2 %v15344_v1  ;;  %7366 = vmatpush.msra.mxu1 %v7365_v42  ;;  %v383_v42 = vld [vmem:[%s16536_s1 + $0xaf0] sm:$0xff]  ;;  %v7407_v15 = vand.u32 4294901760, %v7406_v60 }
 0x40e   :  { %7507 = vmatpush.msra.mxu3 %v15302_v41  ;;  %7319 = vmatpush.msra.mxu0 %v15368_v25  ;;  %v16787_v56 = vand.u32 4294901760, %v15522_v21 }
 0x40f   :  { %7464 = vmatpush.msra.mxu2 %v15371_v6  ;;  %7372 = vmatpush.msra.mxu1 %v7371_v44  ;;  %v7395_v44 = vand.u32 4294901760, %v7394_v18  ;;  %v16782_v18 = vand.u32 4294901760, %v15481_v27 }
 0x410   :  { %7509 = vmatpush.msra.mxu3 %v15313_v2  ;;  %7321 = vmatpush.msra.mxu0 %v15384_v61 }
 0x411   :  { %7467 = vmatpush.msra.mxu2 %v15387_v30  ;;  %7378 = vmatpush.msra.mxu1 %v7377_v24  ;;  %v2567_v24 = vadd.f32 %v2566_v62, %v2526_v8  ;;  %v15511_v62 = vand.u32 4294901760, %v383_v42 }
 0x412   :  { %7511 = vmatpush.msra.mxu3 %v15338_v12  ;;  %7323 = vmatpush.msra.mxu0 %v15399_v36 }
 0x413   :  { %7470 = vmatpush.msra.mxu2 %v15403_v9  ;;  %7384 = vmatpush.msra.mxu1 %v7383_v35  ;;  %v7412_v35 = vsub.f32 %v15447_v53, %v16773_v59  ;;  %v2668_v8 = vadd.f32 %v2667_v11, %v2567_v24  ;;  %v2721_v59 = vpop.f32.mrf.mxu2  ;;  %v7418_v11 = vsub.f32 %v15463_v46, %v16777_v38 }
 0x414   :  { %7513 = vmatpush.msra.mxu3 %v15354_v57  ;;  %7325 = vmatpush.msra.mxu0 %v15414_v19  ;;  %v15529_v24 = vsub.f32 %v353_v3, %v15495_v34  ;;  %v7424_v3 = vsub.f32 %v15481_v27, %v16782_v18  ;;  %v15546_v38 = vsub.f32 %v383_v42, %v15511_v62 }
 0x415   :  { %7473 = vmatpush.msra.mxu2 %v15418_v32  ;;  %7390 = vmatpush.msra.mxu1 %v7389_v31  ;;  %v7337_v31 = vsub.f32 %v15455_v49, %v16784_v45  ;;  %v7413_v60 = vand.u32 4294901760, %v7412_v35  ;;  %v2722_v52 = vadd.f32 %v2721_v59, %v2668_v8  ;;  %v2760_v35 = vpop.f32.mrf.mxu3  ;;  %v7419_v42 = vand.u32 4294901760, %v7418_v11  ;;  %v2829_v11 = vpop.f32.mrf.mxu0 }
 0x416   :  { %7515 = vmatpush.msra.mxu3 %v15368_v25  ;;  %7327 = vmatpush.msra.mxu0 %v15431_v40  ;;  %v16788_v59 = vand.u32 4294901760, %v15529_v24  ;;  %v15559_v8 = vsub.f32 %v382_v13, %v15531_v48  ;;  %v7425_v13 = vand.u32 4294901760, %v7424_v3  ;;  %v2866_v3 = vpop.f32.mrf.mxu1 }
 0x417   :  { %7476 = vmatpush.msra.mxu2 %v15435_v54  ;;  %7396 = vmatpush.msra.mxu1 %v7395_v44  ;;  %v15539_v44 = vand.u32 4294901760, %v381_v16  ;;  %v7338_v23 = vand.u32 4294901760, %v7337_v31  ;;  %v7430_v31 = vsub.f32 %v15501_v7, %v16786_v28  ;;  %v2761_v22 = vadd.f32 %v2760_v35, %v2722_v52 }
 0x418   :  { %7517 = vmatpush.msra.mxu3 %v15384_v61  ;;  %7329 = vmatpush.msra.mxu0 %v15443_v10  ;;  %v15581_v28 = vsub.f32 %v380_v17, %v15551_v51  ;;  %v16789_v52 = vand.u32 4294901760, %v15559_v8 }
 0x419   :  { %7479 = vmatpush.msra.mxu2 %v15447_v53  ;;  %7402 = vmatpush.msra.mxu1 %v7401_v33  ;;  %v379_v33 = vld [vmem:[%s16536_s1 + $0xad0] sm:$0xff]  ;;  %v15567_v18 = vsub.f32 %v381_v16, %v15539_v44  ;;  %v7687_v16 = vsub.f32 %v15522_v21, %v16787_v56  ;;  %v2830_v56 = vadd.f32 %v2829_v11, %v2761_v22  ;;  %v7431_v17 = vand.u32 4294901760, %v7430_v31 }
 0x41a   :  { %7519 = vmatpush.msra.mxu3 %v15399_v36  ;;  %7331 = vmatpush.msra.mxu0 %v15470_v29  ;;  %v15574_v45 = vand.u32 4294901760, %v379_v33 }
 0x41b   :  { %7482 = vmatpush.msra.mxu2 %v15463_v46  ;;  %7408 = vmatpush.msra.mxu1 %v7407_v15  ;;  %v378_v15 = vld [vmem:[%s16536_s1 + $0xac8] sm:$0xff]  ;;  %v2867_v31 = vadd.f32 %v2866_v3, %v2830_v56  ;;  %v7699_v56 = vsub.f32 %v15559_v8, %v16789_v52  ;;  %v17124_v52 = vand.u32 4294901760, %v15322_v37  ;;  %v373_v37 = vld [vmem:[%s16536_s1 + $0xaa0] sm:$0xff] }
 0x41c   :  { %7521 = vmatpush.msra.mxu3 %v15414_v19  ;;  %7333 = vmatpush.msra.mxu0 %v15495_v34  ;;  %v15592_v35 = vand.u32 4294901760, %v378_v15  ;;  %v15606_v22 = vsub.f32 %v379_v33, %v15574_v45 }
 0x41d   :  { %7485 = vmatpush.msra.mxu2 %v15481_v27  ;;  %7414 = vmatpush.msra.mxu1 %v7413_v60  ;;  %v377_v60 = vld [vmem:[%s16536_s1 + $0xac0] sm:$0xff] }
 0x41e   :  { %7523 = vmatpush.msra.mxu3 %v15431_v40  ;;  %7339 = vmatmul.f32.vlgmr.msra.gmra.mxu0 %v7338_v23  ;;  %v7436_v23 = vsub.f32 %v15529_v24, %v16788_v59  ;;  %v15608_v11 = vand.u32 4294901760, %v377_v60  ;;  %v7688_v59 = vand.u32 4294901760, %v7687_v16  ;;  %v15623_v3 = vsub.f32 %v378_v15, %v15592_v35 }
 0x41f   :  { %7488 = vmatpush.msra.mxu2 %v15501_v7  ;;  %7540 = vmatpush.msrb.mxu0 %v7345_v50  ;;  %v17120_v50 = vand.u32 4294901760, %v15546_v38  ;;  %v15625_v16 = vand.u32 4294901760, %v376_v39  ;;  %v16795_v14 = vand.u32 4294901760, %v15606_v22 }
 0x420   :  { %7420 = vmatpush.msra.mxu1 %v7419_v42  ;;  %7525 = vmatpush.msra.mxu3 %v15443_v10  ;;  %v7437_v33 = vand.u32 4294901760, %v7436_v23  ;;  %v374_v23 = vld [vmem:[%s16536_s1 + $0xaa8] sm:$0xff] }
 0x421   :  { %7491 = vmatpush.msra.mxu2 %v15529_v24  ;;  %7544 = vmatpush.msrb.mxu0 %v7351_v26  ;;  %v7693_v42 = vsub.f32 %v15546_v38, %v17120_v50  ;;  %v2907_v26 = vpop.f32.mrf.mxu2  ;;  %v17122_v50 = vand.u32 4294901760, %v15567_v18 }
 0x422   :  { %7426 = vmatpush.msra.mxu1 %v7425_v13  ;;  %7527 = vmatpush.msra.mxu3 %v15470_v29  ;;  %v17121_v13 = vand.u32 4294901760, %v15308_v63 }
 0x423   :  { %7494 = vmatmul.f32.vlgmr.msra.gmra.mxu2 %v15455_v49  ;;  %v7705_v63 = vsub.f32 %v15567_v18, %v17122_v50  ;;  %v7694_v15 = vand.u32 4294901760, %v7693_v42  ;;  %v17125_v50 = vand.u32 4294901760, %v15581_v28  ;;  %v17126_v42 = vand.u32 4294901760, %v15328_v47 }
 0x424   :  { %7548 = vmatpush.msrb.mxu0 %v17121_v13  ;;  %7644 = vmatpush.msrb.mxu2 %v15486_v43  ;;  %v17123_v13 = vand.u32 4294901760, %v15455_v49  ;;  %v2908_v43 = vadd.f32 %v2907_v26, %v2867_v31  ;;  %v15655_v31 = vsub.f32 %v376_v39, %v15625_v16  ;;  %v7717_v47 = vsub.f32 %v15606_v22, %v16795_v14 }
 0x425   :  { %7432 = vmatpush.msra.mxu1 %v7431_v17  ;;  %7529 = vmatpush.msra.mxu3 %v15495_v34  ;;  %v15640_v17 = vsub.f32 %v377_v60, %v15608_v11  ;;  %v15642_v34 = vand.u32 4294901760, %v375_v5  ;;  %v7711_v49 = vsub.f32 %v15581_v28, %v17125_v50  ;;  %v7700_v60 = vand.u32 4294901760, %v7699_v56  ;;  %v3062_v50 = vpop.f32.mrf.mxu0 }
 0x426   :  { %7533 = vmatmul.f32.vlgmr.msra.gmra.mxu3 %v17123_v13  ;;  %7552 = vmatpush.msrb.mxu0 %v17124_v52  ;;  %v3008_v52 = vpop.f32.mrf.mxu3  ;;  %v7706_v26 = vand.u32 4294901760, %v7705_v63  ;;  %v17127_v13 = vand.u32 4294901760, %v15344_v1  ;;  %v371_v1 = vld [vmem:[%s16536_s1 + $0xa90] sm:$0xff] }
 0x427   :  { %7646 = vmatpush.msrb.mxu2 %v15511_v62  ;;  %7689 = vmatpush.msrb.mxu3 %v7688_v59  ;;  %v15657_v59 = vand.u32 4294901760, %v374_v23  ;;  %v15670_v56 = vsub.f32 %v375_v5, %v15642_v34  ;;  %v3009_v63 = vadd.f32 %v3008_v52, %v2908_v43  ;;  %v16796_v5 = vand.u32 4294901760, %v15655_v31 }
 0x428   :  { %7438 = vmatpush.msra.mxu1 %v7437_v33  ;;  %7556 = vmatpush.msrb.mxu0 %v17126_v42  ;;  %v372_v33 = vld [vmem:[%s16536_s1 + $0xa98] sm:$0xff]  ;;  %v15672_v42 = vand.u32 4294901760, %v373_v37  ;;  %v17129_v52 = vand.u32 4294901760, %v15371_v6  ;;  %v370_v6 = vld [vmem:[%s16536_s1 + $0xa88] sm:$0xff] }
 0x429   :  { %7440 = vmatmul.f32.vlgmr.msra.gmra.mxu1 %v15425_v4  ;;  %7648 = vmatpush.msrb.mxu2 %v15531_v48  ;;  %v7712_v48 = vand.u32 4294901760, %v7711_v49  ;;  %v15683_v39 = vsub.f32 %v374_v23, %v15657_v59  ;;  %v15685_v43 = vand.u32 4294901760, %v372_v33  ;;  %v3063_v49 = vadd.f32 %v3062_v50, %v3009_v63  ;;  %v455_v50 = vld.sshfl [vmem:[#allocation1 + $0x28] sm:$0xff pattern:$0x73625140] }
 0x42a   :  { %7607 = vmatpush.msrb.mxu1 %v15258_v55  ;;  %7695 = vmatpush.msrb.mxu3 %v7694_v15  ;;  %v3101_v55 = vpop.f32.mrf.mxu1  ;;  %v17128_v15 = vand.u32 4294901760, %v15623_v3 }
 0x42b   :  { %7560 = vmatpush.msrb.mxu0 %v17127_v13  ;;  %7650 = vmatpush.msrb.mxu2 %v15539_v44  ;;  %v16797_v13 = vand.u32 4294901760, %v15670_v56  ;;  %v3102_v63 = vadd.f32 %v3101_v55, %v3063_v49  ;;  %v15715_v55 = vsub.f32 %v372_v33, %v15685_v43  ;;  %v17132_v49 = vand.u32 4294901760, %v15403_v9 }
 0x42c   :  { %7609 = vmatpush.msrb.mxu1 %v15268_v58  ;;  %7701 = vmatpush.msrb.mxu3 %v7700_v60  ;;  %v7723_v14 = vsub.f32 %v15623_v3, %v17128_v15  ;;  %v7718_v58 = vand.u32 4294901760, %v7717_v47  ;;  %v17130_v60 = vand.u32 4294901760, %v15640_v17  ;;  %v15699_v15 = vsub.f32 %v373_v37, %v15672_v42 }
 0x42d   :  { %7564 = vmatpush.msrb.mxu0 %v17129_v52  ;;  %7652 = vmatpush.msrb.mxu2 %v15551_v51  ;;  %v17131_v52 = vand.u32 4294901760, %v15387_v30  ;;  %v7735_v37 = vsub.f32 %v15655_v31, %v16796_v5  ;;  %v369_v30 = vld [vmem:[%s16536_s1 + $0xa80] sm:$0xff]  ;;  %v7741_v33 = vsub.f32 %v15670_v56, %v16797_v13  ;;  %v17133_v9 = vand.u32 4294901760, %v15418_v32 }
 0x42e   :  { %7611 = vmatpush.msrb.mxu1 %v15278_v0  ;;  %7707 = vmatpush.msrb.mxu3 %v7706_v26  ;;  %v7729_v23 = vsub.f32 %v15640_v17, %v17130_v60  ;;  %v15707_v0 = vand.u32 4294901760, %v371_v1  ;;  %v3170_v26 = vpop.f32.mrf.mxu2  ;;  %v7724_v47 = vand.u32 4294901760, %v7723_v14  ;;  %v15725_v14 = vand.u32 4294901760, %v455_v50 }
 0x42f   :  { %7568 = vmatpush.msrb.mxu0 %v17131_v52  ;;  %7654 = vmatpush.msrb.mxu2 %v15574_v45  ;;  %v7752_v52 = vand.u32 4294901760, %v15699_v15  ;;  %v3171_v5 = vadd.f32 %v3170_v26, %v3102_v63  ;;  %v15738_v60 = vand.u32 4294901760, %v369_v30  ;;  %v7758_v63 = vand.u32 4294901760, %v15715_v55 }
 0x430   :  { %7613 = vmatpush.msrb.mxu1 %v15291_v20  ;;  %7713 = vmatpush.msrb.mxu3 %v7712_v48  ;;  %v15723_v20 = vand.u32 4294901760, %v370_v6  ;;  %v7730_v48 = vand.u32 4294901760, %v7729_v23  ;;  %v17134_v23 = vand.u32 4294901760, %v15683_v39  ;;  %v17135_v32 = vand.u32 4294901760, %v15435_v54 }
 0x431   :  { %7572 = vmatpush.msrb.mxu0 %v17132_v49  ;;  %7656 = vmatpush.msrb.mxu2 %v15592_v35  ;;  %v15736_v49 = vsub.f32 %v371_v1, %v15707_v0  ;;  %v15752_v26 = vsub.f32 %v455_v50, %v15725_v14  ;;  %v17136_v54 = vand.u32 4294901760, %v15447_v53  ;;  %v15763_v50 = vsub.f32 %v369_v30, %v15738_v60 }
 0x432   :  { %7615 = vmatpush.msrb.mxu1 %v15302_v41  ;;  %7719 = vmatpush.msrb.mxu3 %v7718_v58  ;;  %v3207_v41 = vpop.f32.mrf.mxu3  ;;  %v7736_v58 = vand.u32 4294901760, %v7735_v37  ;;  %v7747_v13 = vsub.f32 %v15683_v39, %v17134_v23  ;;  %v15749_v1 = vsub.f32 %v370_v6, %v15723_v20  ;;  %v7753_v37 = vsub.f32 %v15699_v15, %v7752_v52  ;;  %v3349_v23 = vpop.f32.mrf.mxu1 }
 0x433   :  { %7576 = vmatpush.msrb.mxu0 %v17133_v9  ;;  %7658 = vmatpush.msrb.mxu2 %v15608_v11  ;;  %v3208_v9 = vadd.f32 %v3207_v41, %v3171_v5  ;;  %v7764_v6 = vand.u32 4294901760, %v15736_v49  ;;  %v17137_v53 = vand.u32 4294901760, %v15463_v46  ;;  %v7677_v30 = vand.u32 4294901760, %v15752_v26 }
 0x434   :  { %7617 = vmatpush.msrb.mxu1 %v15313_v2  ;;  %7725 = vmatpush.msrb.mxu3 %v7724_v47  ;;  %v3248_v2 = vpop.f32.mrf.mxu0  ;;  %v7742_v47 = vand.u32 4294901760, %v7741_v33  ;;  %v7770_v33 = vand.u32 4294901760, %v15749_v1 }
 0x435   :  { %7580 = vmatpush.msrb.mxu0 %v17135_v32  ;;  %7660 = vmatpush.msrb.mxu2 %v15625_v16  ;;  %v3249_v5 = vadd.f32 %v3248_v2, %v3208_v9  ;;  %v7765_v46 = vsub.f32 %v15736_v49, %v7764_v6 }
 0x436   :  { %7619 = vmatpush.msrb.mxu1 %v15338_v12  ;;  %7731 = vmatpush.msrb.mxu3 %v7730_v48  ;;  %v7748_v12 = vand.u32 4294901760, %v7747_v13  ;;  %v7759_v48 = vsub.f32 %v15715_v55, %v7758_v63  ;;  %v17138_v13 = vand.u32 4294901760, %v15481_v27  ;;  %v3403_v32 = vpop.f32.mrf.mxu2  ;;  %v7771_v27 = vsub.f32 %v15749_v1, %v7770_v33 }
 0x437   :  { %7584 = vmatpush.msrb.mxu0 %v17136_v54  ;;  %7662 = vmatpush.msrb.mxu2 %v15642_v34  ;;  %v3350_v41 = vadd.f32 %v3349_v23, %v3249_v5 }
 0x438   :  { %7621 = vmatpush.msrb.mxu1 %v15354_v57  ;;  %7737 = vmatpush.msrb.mxu3 %v7736_v58  ;;  %v7754_v57 = vand.u32 4294901760, %v7753_v37  ;;  %v7776_v58 = vand.u32 4294901760, %v15763_v50  ;;  %v7760_v2 = vand.u32 4294901760, %v7759_v48 }
 0x439   :  { %7588 = vmatpush.msrb.mxu0 %v17137_v53  ;;  %7664 = vmatpush.msrb.mxu2 %v15657_v59  ;;  %v3404_v37 = vadd.f32 %v3403_v32, %v3350_v41  ;;  %v17141_v53 = vand.u32 4294901760, %v15522_v21  ;;  %v17142_v41 = vand.u32 4294901760, %v15546_v38 }
 0x43a   :  { %7623 = vmatpush.msrb.mxu1 %v15368_v25  ;;  %7743 = vmatpush.msrb.mxu3 %v7742_v47  ;;  %v17139_v25 = vand.u32 4294901760, %v15501_v7  ;;  %v7678_v47 = vsub.f32 %v15752_v26, %v7677_v30  ;;  %v7766_v7 = vand.u32 4294901760, %v7765_v46  ;;  %v7777_v9 = vsub.f32 %v15763_v50, %v7776_v58  ;;  %v3442_v54 = vpop.f32.mrf.mxu3  ;;  %v3548_v5 = vpop.f32.mrf.mxu1 }
 0x43b   :  { %7592 = vmatpush.msrb.mxu0 %v17138_v13  ;;  %7666 = vmatpush.msrb.mxu2 %v15672_v42  ;;  %v17144_v13 = vld [vmem:[#allocation5_spill] sm:$0xff] }
 0x43c   :  { %7625 = vmatpush.msrb.mxu1 %v15384_v61  ;;  %7749 = vmatpush.msrb.mxu3 %v7748_v12  ;;  %v17140_v61 = vand.u32 4294901760, %v15529_v24  ;;  %v7679_v23 = vand.u32 4294901760, %v7678_v47  ;;  %v3511_v12 = vpop.f32.mrf.mxu0  ;;  %v3443_v24 = vadd.f32 %v3442_v54, %v3404_v37  ;;  %v7778_v48 = vand.u32 4294901760, %v7777_v9 }
 0x43d   :  { %7596 = vmatpush.msrb.mxu0 %v17139_v25  ;;  %7668 = vmatpush.msrb.mxu2 %v15685_v43 }
 0x43e   :  { %7627 = vmatpush.msrb.mxu1 %v15399_v36  ;;  %7755 = vmatpush.msrb.mxu3 %v7754_v57  ;;  %v7772_v36 = vand.u32 4294901760, %v7771_v27 }
 0x43f   :  { %7600 = vmatpush.msrb.mxu0 %v17140_v61  ;;  %7670 = vmatpush.msrb.mxu2 %v15707_v0 }
 0x440   :  { %7629 = vmatpush.msrb.mxu1 %v15414_v19  ;;  %7761 = vmatpush.msrb.mxu3 %v7760_v2  ;;  %v3512_v19 = vadd.f32 %v3511_v12, %v3443_v24  ;;  %v17147_v2 = vld [vmem:[#allocation7_spill] sm:$0xff]  ;;  %v395_v24 = vld [vmem:[%s16536_s1 + $0xb50] sm:$0xff] }
 0x441   :  { %7602 = vmatmul.f32.vlgmr.msrb.gmra.mxu0 %v15425_v4  ;;  %7672 = vmatpush.msrb.mxu2 %v15723_v20 }
 0x442   :  { %7787 = vmatpush.msra.mxu0 %v15522_v21  ;;  %7631 = vmatpush.msrb.mxu1 %v15431_v40  ;;  %v3549_v57 = vadd.f32 %v3548_v5, %v3512_v19  ;;  %v3589_v40 = vpop.f32.mrf.mxu2  ;;  %v3690_v46 = vpop.f32.mrf.mxu3  ;;  %v15919_v5 = vand.u32 4294901760, %v395_v24 }
 0x443   :  { %7767 = vmatpush.msrb.mxu3 %v7766_v7  ;;  %7674 = vmatpush.msrb.mxu2 %v15738_v60 }
 0x444   :  { %7790 = vmatpush.msra.mxu0 %v15546_v38  ;;  %7633 = vmatpush.msrb.mxu1 %v15443_v10  ;;  %v17143_v10 = vld [vmem:[#allocation9_spill] sm:$0xff]  ;;  %v3590_v21 = vadd.f32 %v3589_v40, %v3549_v57  ;;  %v17146_v38 = vand.u32 4294901760, %v15567_v18  ;;  %v3744_v32 = vpop.f32.mrf.mxu0  ;;  %v15950_v40 = vsub.f32 %v395_v24, %v15919_v5 }
 0x445   :  { %7773 = vmatpush.msrb.mxu3 %v7772_v36  ;;  %7680 = vmatmul.f32.vlgmr.msrb.gmra.mxu2 %v7679_v23  ;;  %v396_v23 = vld [vmem:[%s16536_s1 + $0xb58] sm:$0xff] }
 0x446   :  { %7793 = vmatpush.msra.mxu0 %v15559_v8  ;;  %7881 = vmatpush.msra.mxu2 %v17141_v53  ;;  %v3691_v25 = vadd.f32 %v3690_v46, %v3590_v21 }
 0x447   :  { %7635 = vmatpush.msrb.mxu1 %v15470_v29  ;;  %7779 = vmatpush.msrb.mxu3 %v7778_v48  ;;  %v17145_v29 = vand.u32 4294901760, %v15559_v8  ;;  %v3783_v8 = vpop.f32.mrf.mxu1 }
 0x448   :  { %7781 = vmatmul.f32.vlgmr.msrb.gmra.mxu3 %v15725_v14  ;;  %7796 = vmatpush.msra.mxu0 %v15567_v18  ;;  %v3745_v27 = vadd.f32 %v3744_v32, %v3691_v25  ;;  %v17149_v18 = vand.u32 4294901760, %v15606_v22 }
 0x449   :  { %7885 = vmatpush.msra.mxu2 %v17142_v41  ;;  %7948 = vmatpush.msra.mxu3 %v17143_v10 }
 0x44a   :  { %7637 = vmatpush.msrb.mxu1 %v17144_v13  ;;  %7799 = vmatpush.msra.mxu0 %v15581_v28  ;;  %v3852_v47 = vpop.f32.mrf.mxu2  ;;  %v3889_v37 = vpop.f32.mrf.mxu3 }
 0x44b   :  { %7639 = vmatmul.f32.vlgmr.msrb.gmra.mxu1 %v15425_v4  ;;  %7889 = vmatpush.msra.mxu2 %v17145_v29  ;;  %v17148_v4 = vand.u32 4294901760, %v15581_v28  ;;  %v17150_v28 = vand.u32 4294901760, %v15623_v3 }
 0x44c   :  { %7840 = vmatpush.msra.mxu1 %v17143_v10  ;;  %7950 = vmatpush.msra.mxu3 %v15511_v62 }
 0x44d   :  { %7802 = vmatpush.msra.mxu0 %v15606_v22  ;;  %7893 = vmatpush.msra.mxu2 %v17146_v38  ;;  %v17151_v22 = vand.u32 4294901760, %v15640_v17  ;;  %v391_v38 = vld [vmem:[%s16536_s1 + $0xb30] sm:$0xff] }
 0x44e   :  { %7842 = vmatpush.msra.mxu1 %v15511_v62  ;;  %7952 = vmatpush.msra.mxu3 %v17147_v2  ;;  %v3784_v62 = vadd.f32 %v3783_v8, %v3745_v27  ;;  %v16805_v8 = vand.u32 4294901760, %v15950_v40 }
 0x44f   :  { %7805 = vmatpush.msra.mxu0 %v15623_v3  ;;  %7897 = vmatpush.msra.mxu2 %v17148_v4  ;;  %v17152_v3 = vand.u32 4294901760, %v15655_v31  ;;  %v4031_v9 = vpop.f32.mrf.mxu1 }
 0x450   :  { %7844 = vmatpush.msra.mxu1 %v17147_v2  ;;  %7954 = vmatpush.msra.mxu3 %v15539_v44 }
 0x451   :  { %7808 = vmatpush.msra.mxu0 %v15640_v17  ;;  %7901 = vmatpush.msra.mxu2 %v17149_v18  ;;  %v399_v17 = vld [vmem:[%s16536_s1 + $0xb70] sm:$0xff] }
 0x452   :  { %7846 = vmatpush.msra.mxu1 %v15539_v44  ;;  %7956 = vmatpush.msra.mxu3 %v15551_v51  ;;  %v3853_v44 = vadd.f32 %v3852_v47, %v3784_v62 }
 0x453   :  { %7811 = vmatpush.msra.mxu0 %v15655_v31  ;;  %7905 = vmatpush.msra.mxu2 %v17150_v28  ;;  %v3930_v31 = vpop.f32.mrf.mxu0  ;;  %v15990_v28 = vand.u32 4294901760, %v391_v38 }
 0x454   :  { %7848 = vmatpush.msra.mxu1 %v15551_v51  ;;  %7958 = vmatpush.msra.mxu3 %v15574_v45  ;;  %v400_v51 = vld [vmem:[%s16536_s1 + $0xb78] sm:$0xff]  ;;  %v3890_v7 = vadd.f32 %v3889_v37, %v3853_v44 }
 0x455   :  { %7814 = vmatpush.msra.mxu0 %v15670_v56  ;;  %7909 = vmatpush.msra.mxu2 %v17151_v22  ;;  %v15864_v61 = vand.u32 4294901760, %v400_v51  ;;  %v389_v22 = vld [vmem:[%s16536_s1 + $0xb20] sm:$0xff] }
 0x456   :  { %7850 = vmatpush.msra.mxu1 %v15574_v45  ;;  %7960 = vmatpush.msra.mxu3 %v15592_v35  ;;  %v17153_v45 = vand.u32 4294901760, %v15670_v56  ;;  %v398_v56 = vld [vmem:[%s16536_s1 + $0xb68] sm:$0xff]  ;;  %v3931_v54 = vadd.f32 %v3930_v31, %v3890_v7 }
 0x457   :  { %7817 = vmatpush.msra.mxu0 %v15683_v39  ;;  %7913 = vmatpush.msra.mxu2 %v17152_v3  ;;  %v15884_v36 = vand.u32 4294901760, %v398_v56  ;;  %v4230_v41 = vpop.f32.mrf.mxu1 }
 0x458   :  { %7852 = vmatpush.msra.mxu1 %v15592_v35  ;;  %7962 = vmatpush.msra.mxu3 %v15608_v11  ;;  %v17154_v35 = vand.u32 4294901760, %v15683_v39  ;;  %v397_v39 = vld [vmem:[%s16536_s1 + $0xb60] sm:$0xff]  ;;  %v4032_v12 = vadd.f32 %v4031_v9, %v3931_v54  ;;  %v16024_v9 = vsub.f32 %v391_v38, %v15990_v28 }
 0x459   :  { %7820 = vmatpush.msra.mxu0 %v15699_v15  ;;  %7917 = vmatpush.msra.mxu2 %v17153_v45  ;;  %v4085_v15 = vpop.f32.mrf.mxu2  ;;  %v8058_v45 = vsub.f32 %v15950_v40, %v16805_v8 }
 0x45a   :  { %7854 = vmatpush.msra.mxu1 %v15608_v11  ;;  %7964 = vmatpush.msra.mxu3 %v15625_v16  ;;  %v15874_v11 = vand.u32 4294901760, %v399_v17  ;;  %v4086_v48 = vadd.f32 %v4085_v15, %v4032_v12 }
 0x45b   :  { %7823 = vmatpush.msra.mxu0 %v15715_v55  ;;  %7921 = vmatpush.msra.mxu2 %v17154_v35  ;;  %v15908_v55 = vand.u32 4294901760, %v396_v23  ;;  %v4193_v53 = vpop.f32.mrf.mxu0  ;;  %v16020_v35 = vand.u32 4294901760, %v389_v22 }
 0x45c   :  { %7856 = vmatpush.msra.mxu1 %v15625_v16  ;;  %7966 = vmatpush.msra.mxu3 %v15642_v34  ;;  %v15887_v16 = vsub.f32 %v400_v51, %v15864_v61 }
 0x45d   :  { %7826 = vmatpush.msra.mxu0 %v15736_v49  ;;  %7925 = vmatpush.msra.mxu2 %v7752_v52  ;;  %v15900_v52 = vsub.f32 %v399_v17, %v15874_v11  ;;  %v394_v49 = vld [vmem:[%s16536_s1 + $0xb48] sm:$0xff]  ;;  %v388_v17 = vld [vmem:[%s16536_s1 + $0xb18] sm:$0xff] }
 0x45e   :  { %7858 = vmatpush.msra.mxu1 %v15642_v34  ;;  %7968 = vmatpush.msra.mxu3 %v15657_v59  ;;  %v15897_v34 = vand.u32 4294901760, %v397_v39  ;;  %v15944_v57 = vand.u32 4294901760, %v394_v49  ;;  %v16037_v24 = vand.u32 4294901760, %v388_v17 }
 0x45f   :  { %7829 = vmatpush.msra.mxu0 %v15749_v1  ;;  %7929 = vmatpush.msra.mxu2 %v7758_v63  ;;  %v15914_v63 = vsub.f32 %v398_v56, %v15884_v36  ;;  %v15934_v1 = vsub.f32 %v396_v23, %v15908_v55 }
 0x460   :  { %7860 = vmatpush.msra.mxu1 %v15657_v59  ;;  %7970 = vmatpush.msra.mxu3 %v15672_v42  ;;  %v8027_v59 = vand.u32 4294901760, %v15887_v16  ;;  %v15928_v19 = vsub.f32 %v397_v39, %v15897_v34  ;;  %v387_v39 = vld [vmem:[%s16536_s1 + $0xb10] sm:$0xff] }
 0x461   :  { %7832 = vmatpush.msra.mxu0 %v15763_v50  ;;  %7933 = vmatpush.msra.mxu2 %v7764_v6  ;;  %v8033_v6 = vand.u32 4294901760, %v15900_v52  ;;  %v16812_v50 = vand.u32 4294901760, %v15914_v63  ;;  %v16806_v46 = vand.u32 4294901760, %v15934_v1  ;;  %v4271_v27 = vpop.f32.mrf.mxu2 }
 0x462   :  { %7862 = vmatpush.msra.mxu1 %v15672_v42  ;;  %7972 = vmatpush.msra.mxu3 %v15685_v43  ;;  %v4124_v42 = vpop.f32.mrf.mxu3  ;;  %v16807_v21 = vand.u32 4294901760, %v15928_v19 }
 0x463   :  { %7835 = vmatmul.f32.vlgmr.msra.gmra.mxu0 %v15752_v26  ;;  %7937 = vmatpush.msra.mxu2 %v7770_v33  ;;  %v393_v33 = vld [vmem:[%s16536_s1 + $0xb40] sm:$0xff]  ;;  %v8034_v10 = vsub.f32 %v15900_v52, %v8033_v6  ;;  %v8040_v2 = vsub.f32 %v15914_v63, %v16812_v50  ;;  %v4426_v12 = vpop.f32.mrf.mxu0 }
 0x464   :  { %7985 = vmatpush.msrb.mxu0 %v15864_v61  ;;  %7864 = vmatpush.msra.mxu1 %v15685_v43  ;;  %v8028_v43 = vsub.f32 %v15887_v16, %v8027_v59  ;;  %v15960_v13 = vand.u32 4294901760, %v393_v33  ;;  %v8046_v62 = vsub.f32 %v15928_v19, %v16807_v21 }
 0x465   :  { %7974 = vmatpush.msra.mxu3 %v15707_v0  ;;  %7941 = vmatpush.msra.mxu2 %v7776_v58  ;;  %v4125_v58 = vadd.f32 %v4124_v42, %v4086_v48  ;;  %v8035_v18 = vand.u32 4294901760, %v8034_v10  ;;  %v8041_v44 = vand.u32 4294901760, %v8040_v2  ;;  %v386_v10 = vld [vmem:[%s16536_s1 + $0xb08] sm:$0xff] }
 0x466   :  { %7987 = vmatpush.msrb.mxu0 %v15874_v11  ;;  %7866 = vmatpush.msra.mxu1 %v15707_v0  ;;  %v392_v0 = vld [vmem:[%s16536_s1 + $0xb38] sm:$0xff]  ;;  %v8029_v32 = vand.u32 4294901760, %v8028_v43  ;;  %v15993_v47 = vsub.f32 %v393_v33, %v15960_v13  ;;  %v8047_v7 = vand.u32 4294901760, %v8046_v62  ;;  %v8059_v33 = vand.u32 4294901760, %v8058_v45 }
 0x467   :  { %7976 = vmatpush.msra.mxu3 %v15723_v20  ;;  %7943 = vmatmul.f32.vlgmr.msra.gmra.mxu2 %v15725_v14  ;;  %v4194_v29 = vadd.f32 %v4193_v53, %v4125_v58  ;;  %v15974_v25 = vand.u32 4294901760, %v392_v0  ;;  %v4465_v53 = vpop.f32.mrf.mxu1  ;;  %v16049_v58 = vand.u32 4294901760, %v387_v39  ;;  %v16076_v62 = vand.u32 4294901760, %v386_v10 }
 0x468   :  { %7989 = vmatpush.msrb.mxu0 %v15884_v36  ;;  %8128 = vmatpush.msrb.mxu2 %v15887_v16  ;;  %v16802_v56 = vand.u32 4294901760, %v15993_v47  ;;  %v408_v16 = vld [vmem:[%s16536_s1 + $0xbb8] sm:$0xff] }
 0x469   :  { %7868 = vmatpush.msra.mxu1 %v15723_v20  ;;  %7978 = vmatpush.msra.mxu3 %v15738_v60  ;;  %v15977_v20 = vsub.f32 %v394_v49, %v15944_v57  ;;  %v4231_v4 = vadd.f32 %v4230_v41, %v4194_v29  ;;  %v16009_v26 = vsub.f32 %v392_v0, %v15974_v25  ;;  %v16800_v0 = vand.u32 4294901760, %v16024_v9 }
 0x46a   :  { %7980 = vmatmul.f32.vlgmr.msra.gmra.mxu3 %v15725_v14  ;;  %7991 = vmatpush.msrb.mxu0 %v15897_v34  ;;  %v390_v14 = vld [vmem:[%s16536_s1 + $0xb28] sm:$0xff]  ;;  %v4372_v31 = vpop.f32.mrf.mxu3  ;;  %v8070_v43 = vsub.f32 %v15993_v47, %v16802_v56  ;;  %v16053_v41 = vsub.f32 %v389_v22, %v16020_v35  ;;  %17155 = vst [vmem:[#allocation10_spill] sm:$0xff] %v16076_v62  ;;  %v4534_v22 = vpop.f32.mrf.mxu2  ;;  %v412_v56 = vld [vmem:[%s16536_s1 + $0xbd8] sm:$0xff] }
 0x46b   :  { %8131 = vmatpush.msrb.mxu2 %v15900_v52  ;;  %8181 = vmatpush.msrb.mxu3 %v15864_v61  ;;  %v16005_v3 = vand.u32 4294901760, %v390_v14  ;;  %v16803_v51 = vand.u32 4294901760, %v15977_v20  ;;  %v4272_v37 = vadd.f32 %v4271_v27, %v4231_v4  ;;  %v16801_v48 = vand.u32 4294901760, %v16009_v26  ;;  %v416_v27 = vld [vmem:[%s16536_s1 + $0xbf8] sm:$0xff]  ;;  %v407_v52 = vld [vmem:[%s16536_s1 + $0xbb0] sm:$0xff] }
 0x46c   :  { %7870 = vmatpush.msra.mxu1 %v15738_v60  ;;  %7993 = vmatpush.msrb.mxu0 %v15908_v55  ;;  %v8052_v60 = vsub.f32 %v15934_v1, %v16806_v46  ;;  %v16087_v45 = vsub.f32 %v387_v39, %v16049_v58  ;;  %v16157_v21 = vand.u32 4294901760, %v412_v56 }
 0x46d   :  { %7874 = vmatmul.f32.vlgmr.msra.gmra.mxu1 %v7677_v30  ;;  %8134 = vmatpush.msrb.mxu2 %v15914_v63  ;;  %v456_v30 = vld.sshfl [vmem:[#allocation1 + $0x30] sm:$0xff pattern:$0x73625140]  ;;  %v8064_v15 = vsub.f32 %v15977_v20, %v16803_v51  ;;  %v16041_v49 = vsub.f32 %v390_v14, %v16005_v3  ;;  %v4373_v42 = vadd.f32 %v4372_v31, %v4272_v37  ;;  %v16798_v37 = vand.u32 4294901760, %v16053_v41 }
 0x46e   :  { %8030 = vmatpush.msrb.mxu1 %v8029_v32  ;;  %8183 = vmatpush.msrb.mxu3 %v15874_v11  ;;  %v8053_v54 = vand.u32 4294901760, %v8052_v60  ;;  %v16031_v23 = vand.u32 4294901760, %v456_v30  ;;  %v8076_v2 = vsub.f32 %v16009_v26, %v16801_v48  ;;  %v16069_v14 = vsub.f32 %v388_v17, %v16037_v24  ;;  %v385_v60 = vld [vmem:[%s16536_s1 + $0xb00] sm:$0xff] }
 0x46f   :  { %7995 = vmatpush.msrb.mxu0 %v15919_v5  ;;  %8137 = vmatpush.msrb.mxu2 %v15928_v19  ;;  %v4427_v29 = vadd.f32 %v4426_v12, %v4373_v42  ;;  %v8065_v32 = vand.u32 4294901760, %v8064_v15  ;;  %v16799_v4 = vand.u32 4294901760, %v16041_v49  ;;  %v16092_v31 = vand.u32 4294901760, %v416_v27  ;;  %v4713_v51 = vpop.f32.mrf.mxu1 }
 0x470   :  { %8036 = vmatpush.msrb.mxu1 %v8035_v18  ;;  %8185 = vmatpush.msrb.mxu3 %v15884_v36  ;;  %v16061_v38 = vsub.f32 %v456_v30, %v16031_v23  ;;  %v8082_v30 = vsub.f32 %v16024_v9, %v16800_v0  ;;  %v16101_v12 = vand.u32 4294901760, %v385_v60  ;;  %v16804_v15 = vand.u32 4294901760, %v16069_v14 }
 0x471   :  { %7997 = vmatpush.msrb.mxu0 %v15944_v57  ;;  %8140 = vmatpush.msrb.mxu2 %v15934_v1  ;;  %v4466_v18 = vadd.f32 %v4465_v53, %v4427_v29  ;;  %17156 = vst [vmem:[#allocation8_spill] sm:$0xff] %v16092_v31  ;;  %v8088_v39 = vsub.f32 %v16041_v49, %v16799_v4  ;;  %v414_v53 = vld [vmem:[%s16536_s1 + $0xbe8] sm:$0xff] }
 0x472   :  { %8042 = vmatpush.msrb.mxu1 %v8041_v44  ;;  %8187 = vmatpush.msrb.mxu3 %v15897_v34  ;;  %v8071_v44 = vand.u32 4294901760, %v8070_v43  ;;  %v16810_v17 = vand.u32 4294901760, %v16061_v38  ;;  %17157 = vst [vmem:[#allocation12_spill] sm:$0xff] %v16101_v12  ;;  %v4571_v43 = vpop.f32.mrf.mxu3  ;;  %v8083_v29 = vand.u32 4294901760, %v8082_v30  ;;  %v4612_v30 = vpop.f32.mrf.mxu0  ;;  %v8100_v4 = vsub.f32 %v16069_v14, %v16804_v15 }
 0x473   :  { %7999 = vmatpush.msrb.mxu0 %v15960_v13  ;;  %8143 = vmatpush.msrb.mxu2 %v15950_v40  ;;  %v4535_v42 = vadd.f32 %v4534_v22, %v4466_v18  ;;  %v16135_v0 = vsub.f32 %v385_v60, %v16101_v12  ;;  %v16137_v48 = vand.u32 4294901760, %v414_v53 }
 0x474   :  { %8048 = vmatpush.msrb.mxu1 %v8047_v7  ;;  %8189 = vmatpush.msrb.mxu3 %v15908_v55  ;;  %v415_v7 = vld [vmem:[%s16536_s1 + $0xbf0] sm:$0xff]  ;;  %v8019_v22 = vsub.f32 %v16061_v38, %v16810_v17 }
 0x475   :  { %8001 = vmatpush.msrb.mxu0 %v15974_v25  ;;  %8146 = vmatpush.msrb.mxu2 %v15977_v20  ;;  %v16117_v18 = vand.u32 4294901760, %v415_v7 }
 0x476   :  { %8054 = vmatpush.msrb.mxu1 %v8053_v54  ;;  %8191 = vmatpush.msrb.mxu3 %v15919_v5  ;;  %v8077_v54 = vand.u32 4294901760, %v8076_v2  ;;  %v16808_v2 = vand.u32 4294901760, %v16087_v45 }
 0x477   :  { %8003 = vmatpush.msrb.mxu0 %v15990_v28  ;;  %8149 = vmatpush.msrb.mxu2 %v15993_v47  ;;  %v16152_v8 = vsub.f32 %v415_v7, %v16117_v18  ;;  %v16813_v7 = vand.u32 4294901760, %v16135_v0 }
 0x478   :  { %8060 = vmatpush.msrb.mxu1 %v8059_v33  ;;  %8193 = vmatpush.msrb.mxu3 %v15944_v57  ;;  %v16107_v33 = vsub.f32 %v386_v10, %v16076_v62  ;;  %v413_v10 = vld [vmem:[%s16536_s1 + $0xbe0] sm:$0xff]  ;;  %v8106_v15 = vsub.f32 %v16087_v45, %v16808_v2 }
 0x479   :  { %8005 = vmatpush.msrb.mxu0 %v16005_v3  ;;  %8152 = vmatpush.msrb.mxu2 %v16009_v26 }
 0x47a   :  { %8066 = vmatpush.msrb.mxu1 %v8065_v32  ;;  %8195 = vmatpush.msrb.mxu3 %v15960_v13  ;;  %v8094_v32 = vsub.f32 %v16053_v41, %v16798_v37  ;;  %v8089_v37 = vand.u32 4294901760, %v8088_v39  ;;  %v16145_v39 = vand.u32 4294901760, %v413_v10 }
 0x47b   :  { %8007 = vmatpush.msrb.mxu0 %v16020_v35  ;;  %8155 = vmatpush.msrb.mxu2 %v16024_v9 }
 0x47c   :  { %8072 = vmatpush.msrb.mxu1 %v8071_v44  ;;  %8197 = vmatpush.msrb.mxu3 %v15974_v25  ;;  %v16128_v44 = vsub.f32 %v416_v27, %v16092_v31  ;;  %v4572_v27 = vadd.f32 %v4571_v43, %v4535_v42  ;;  %v8095_v60 = vand.u32 4294901760, %v8094_v32  ;;  %v8020_v43 = vand.u32 4294901760, %v8019_v22 }
 0x47d   :  { %8009 = vmatpush.msrb.mxu0 %v16037_v24  ;;  %8158 = vmatpush.msrb.mxu2 %v16041_v49  ;;  %v8101_v32 = vand.u32 4294901760, %v8100_v4  ;;  %v16173_v2 = vsub.f32 %v413_v10, %v16145_v39  ;;  %v410_v4 = vld [vmem:[%s16536_s1 + $0xbc8] sm:$0xff] }
 0x47e   :  { %8078 = vmatpush.msrb.mxu1 %v8077_v54  ;;  %8199 = vmatpush.msrb.mxu3 %v15990_v28  ;;  %v16809_v54 = vand.u32 4294901760, %v16107_v33  ;;  %v4613_v42 = vadd.f32 %v4612_v30, %v4572_v27  ;;  %v16811_v46 = vand.u32 4294901760, %v16128_v44  ;;  %v16165_v30 = vsub.f32 %v414_v53, %v16137_v48 }
 0x47f   :  { %8011 = vmatpush.msrb.mxu0 %v16049_v58  ;;  %8161 = vmatpush.msrb.mxu2 %v16053_v41  ;;  %v16814_v53 = vand.u32 4294901760, %v16152_v8  ;;  %v16198_v17 = vand.u32 4294901760, %v410_v4 }
 0x480   :  { %8084 = vmatpush.msrb.mxu1 %v8083_v29  ;;  %8201 = vmatpush.msrb.mxu3 %v16005_v3  ;;  %v411_v29 = vld [vmem:[%s16536_s1 + $0xbd0] sm:$0xff]  ;;  %v4714_v27 = vadd.f32 %v4713_v51, %v4613_v42  ;;  %v8112_v22 = vsub.f32 %v16107_v33, %v16809_v54  ;;  %v8107_v51 = vand.u32 4294901760, %v8106_v15  ;;  %v8369_v10 = vsub.f32 %v16128_v44, %v16811_v46 }
 0x481   :  { %8013 = vmatpush.msrb.mxu0 %v16076_v62  ;;  %8164 = vmatpush.msrb.mxu2 %v16069_v14  ;;  %v16180_v42 = vand.u32 4294901760, %v411_v29  ;;  %v16187_v54 = vsub.f32 %v412_v56, %v16157_v21  ;;  %v8118_v15 = vsub.f32 %v16135_v0, %v16813_v7  ;;  %17158 = vst [vmem:[#allocation6_spill] sm:$0xff] %v16198_v17 }
 0x482   :  { %8090 = vmatpush.msrb.mxu1 %v8089_v37  ;;  %8203 = vmatpush.msrb.mxu3 %v16020_v35  ;;  %v4767_v37 = vpop.f32.mrf.mxu2  ;;  %v8113_v56 = vand.u32 4294901760, %v8112_v22  ;;  %v8370_v22 = vand.u32 4294901760, %v8369_v10  ;;  %v16229_v50 = vsub.f32 %v410_v4, %v16198_v17  ;;  %v16231_v10 = vand.u32 4294901760, %v408_v16 }
 0x483   :  { %8015 = vmatpush.msrb.mxu0 %v16101_v12  ;;  %8167 = vmatpush.msrb.mxu2 %v16087_v45  ;;  %v4768_v46 = vadd.f32 %v4767_v37, %v4714_v27  ;;  %v16212_v27 = vsub.f32 %v411_v29, %v16180_v42  ;;  %v8119_v29 = vand.u32 4294901760, %v8118_v15  ;;  %v406_v15 = vld [vmem:[%s16536_s1 + $0xba8] sm:$0xff]  ;;  %v17162_v4 = vand.u32 4294901760, %v15928_v19  ;;  %v405_v19 = vld [vmem:[%s16536_s1 + $0xba0] sm:$0xff] }
 0x484   :  { %8096 = vmatpush.msrb.mxu1 %v8095_v60  ;;  %8205 = vmatpush.msrb.mxu3 %v16037_v24  ;;  %v409_v60 = vld [vmem:[%s16536_s1 + $0xbc0] sm:$0xff] }
 0x485   :  { %8021 = vmatmul.f32.vlgmr.msrb.gmra.mxu0 %v8020_v43  ;;  %8170 = vmatpush.msrb.mxu2 %v16107_v33  ;;  %v16816_v43 = vand.u32 4294901760, %v16165_v30  ;;  %v16214_v37 = vand.u32 4294901760, %v409_v60 }
 0x486   :  { %8222 = vmatpush.msra.mxu0 %v8027_v59  ;;  %8102 = vmatpush.msrb.mxu1 %v8101_v32  ;;  %v4806_v59 = vpop.f32.mrf.mxu3  ;;  %v8375_v32 = vsub.f32 %v16152_v8, %v16814_v53 }
 0x487   :  { %8207 = vmatpush.msrb.mxu3 %v16049_v58  ;;  %8173 = vmatpush.msrb.mxu2 %v16135_v0  ;;  %v8381_v53 = vsub.f32 %v16165_v30, %v16816_v43  ;;  %v4807_v7 = vadd.f32 %v4806_v59, %v4768_v46  ;;  %v17161_v43 = vand.u32 4294901760, %v16061_v38  ;;  %v16821_v46 = vand.u32 4294901760, %v16212_v27 }
 0x488   :  { %8226 = vmatpush.msra.mxu0 %v8033_v6  ;;  %8108 = vmatpush.msrb.mxu1 %v8107_v51  ;;  %v4875_v6 = vpop.f32.mrf.mxu0  ;;  %v17159_v51 = vand.u32 4294901760, %v15914_v63  ;;  %v16248_v59 = vand.u32 4294901760, %v407_v52 }
 0x489   :  { %8209 = vmatpush.msrb.mxu3 %v16076_v62  ;;  %8176 = vmatmul.f32.vlgmr.msrb.gmra.mxu2 %v16061_v38  ;;  %v17160_v62 = vand.u32 4294901760, %v16173_v2 }
 0x48a   :  { %8230 = vmatpush.msra.mxu0 %v17159_v51  ;;  %8326 = vmatpush.msra.mxu2 %v16092_v31  ;;  %v4912_v51 = vpop.f32.mrf.mxu1  ;;  %v8376_v31 = vand.u32 4294901760, %v8375_v32  ;;  %v16820_v32 = vand.u32 4294901760, %v16229_v50 }
 0x48b   :  { %8114 = vmatpush.msrb.mxu1 %v8113_v56  ;;  %8211 = vmatpush.msrb.mxu3 %v16101_v12  ;;  %v8387_v63 = vsub.f32 %v16173_v2, %v17160_v62  ;;  %v16246_v56 = vsub.f32 %v409_v60, %v16214_v37  ;;  %v4876_v62 = vadd.f32 %v4875_v6, %v4807_v7  ;;  %v17163_v12 = vand.u32 4294901760, %v16187_v54 }
 0x48c   :  { %8215 = vmatmul.f32.vlgmr.msrb.gmra.mxu3 %v17161_v43  ;;  %8234 = vmatpush.msra.mxu0 %v17162_v4  ;;  %v17164_v43 = vand.u32 4294901760, %v15934_v1  ;;  %v8382_v60 = vand.u32 4294901760, %v8381_v53  ;;  %v16261_v7 = vsub.f32 %v408_v16, %v16231_v10  ;;  %v16263_v6 = vand.u32 4294901760, %v406_v15  ;;  %v4953_v1 = vpop.f32.mrf.mxu2 }
 0x48d   :  { %8328 = vmatpush.msra.mxu2 %v16117_v18  ;;  %8371 = vmatpush.msra.mxu3 %v8370_v22  ;;  %v8393_v38 = vsub.f32 %v16187_v54, %v17163_v12  ;;  %v4913_v22 = vadd.f32 %v4912_v51, %v4876_v62  ;;  %v8388_v12 = vand.u32 4294901760, %v8387_v63  ;;  %v8399_v53 = vsub.f32 %v16212_v27, %v16821_v46 }
 0x48e   :  { %8120 = vmatpush.msrb.mxu1 %v8119_v29  ;;  %8238 = vmatpush.msra.mxu0 %v17164_v43  ;;  %v404_v29 = vld [vmem:[%s16536_s1 + $0xb98] sm:$0xff]  ;;  %v16822_v16 = vand.u32 4294901760, %v16246_v56  ;;  %v16276_v51 = vsub.f32 %v407_v52, %v16248_v59  ;;  %v16278_v4 = vand.u32 4294901760, %v405_v19  ;;  %v17165_v63 = vand.u32 4294901760, %v15950_v40  ;;  %v403_v40 = vld [vmem:[%s16536_s1 + $0xb90] sm:$0xff] }
 0x48f   :  { %8122 = vmatmul.f32.vlgmr.msrb.gmra.mxu1 %v16031_v23  ;;  %8330 = vmatpush.msra.mxu2 %v16137_v48  ;;  %v8394_v62 = vand.u32 4294901760, %v8393_v38  ;;  %v16289_v52 = vsub.f32 %v406_v15, %v16263_v6  ;;  %v16291_v43 = vand.u32 4294901760, %v404_v29  ;;  %v17166_v38 = vand.u32 4294901760, %v15977_v20  ;;  %v402_v20 = vld [vmem:[%s16536_s1 + $0xb88] sm:$0xff] }
 0x490   :  { %8289 = vmatpush.msra.mxu1 %v15864_v61  ;;  %8377 = vmatpush.msra.mxu3 %v8376_v31  ;;  %v8405_v61 = vsub.f32 %v16229_v50, %v16820_v32  ;;  %v16823_v31 = vand.u32 4294901760, %v16261_v7  ;;  %v8411_v15 = vsub.f32 %v16246_v56, %v16822_v16  ;;  %v16305_v46 = vsub.f32 %v405_v19, %v16278_v4 }
 0x491   :  { %8242 = vmatpush.msra.mxu0 %v17165_v63  ;;  %8332 = vmatpush.msra.mxu2 %v16145_v39  ;;  %v4954_v63 = vadd.f32 %v4953_v1, %v4913_v22  ;;  %v457_v22 = vld.sshfl [vmem:[#allocation1 + $0x38] sm:$0xff pattern:$0x73625140]  ;;  %v17167_v1 = vand.u32 4294901760, %v15993_v47  ;;  %v16321_v16 = vsub.f32 %v404_v29, %v16291_v43  ;;  %v401_v47 = vld [vmem:[%s16536_s1 + $0xb80] sm:$0xff]  ;;  %v17168_v32 = vand.u32 4294901760, %v16009_v26 }
 0x492   :  { %8291 = vmatpush.msra.mxu1 %v15874_v11  ;;  %8383 = vmatpush.msra.mxu3 %v8382_v60  ;;  %v5054_v11 = vpop.f32.mrf.mxu3  ;;  %v8400_v60 = vand.u32 4294901760, %v8399_v53  ;;  %v8406_v53 = vand.u32 4294901760, %v8405_v61  ;;  %v8417_v19 = vsub.f32 %v16261_v7, %v16823_v31  ;;  %v5147_v61 = vpop.f32.mrf.mxu1  ;;  %v8412_v29 = vand.u32 4294901760, %v8411_v15 }
 0x493   :  { %8246 = vmatpush.msra.mxu0 %v17166_v38  ;;  %8334 = vmatpush.msra.mxu2 %v16157_v21  ;;  %v17169_v31 = vand.u32 4294901760, %v16276_v51  ;;  %v17170_v26 = vand.u32 4294901760, %v16024_v9  ;;  %v8440_v15 = vand.u32 4294901760, %v16321_v16  ;;  %v17172_v9 = vand.u32 4294901760, %v16041_v49 }
 0x494   :  { %8293 = vmatpush.msra.mxu1 %v15884_v36  ;;  %8389 = vmatpush.msra.mxu3 %v8388_v12  ;;  %v16313_v36 = vand.u32 4294901760, %v403_v40  ;;  %v5108_v12 = vpop.f32.mrf.mxu0  ;;  %v17173_v49 = vand.u32 4294901760, %v16053_v41 }
 0x495   :  { %8250 = vmatpush.msra.mxu0 %v17167_v1  ;;  %8336 = vmatpush.msra.mxu2 %v16180_v42  ;;  %v5055_v1 = vadd.f32 %v5054_v11, %v4954_v63  ;;  %v8423_v38 = vsub.f32 %v16276_v51, %v17169_v31  ;;  %v8434_v63 = vand.u32 4294901760, %v16305_v46 }
 0x496   :  { %8295 = vmatpush.msra.mxu1 %v15897_v34  ;;  %8395 = vmatpush.msra.mxu3 %v8394_v62  ;;  %v16329_v34 = vand.u32 4294901760, %v402_v20  ;;  %v16331_v62 = vand.u32 4294901760, %v457_v22 }
 0x497   :  { %8254 = vmatpush.msra.mxu0 %v17168_v32  ;;  %8338 = vmatpush.msra.mxu2 %v16198_v17  ;;  %v5109_v11 = vadd.f32 %v5108_v12, %v5055_v1  ;;  %v16342_v32 = vsub.f32 %v403_v40, %v16313_v36  ;;  %v16344_v17 = vand.u32 4294901760, %v401_v47 }
 0x498   :  { %8297 = vmatpush.msra.mxu1 %v15908_v55  ;;  %8401 = vmatpush.msra.mxu3 %v8400_v60  ;;  %v8418_v55 = vand.u32 4294901760, %v8417_v19  ;;  %v17171_v60 = vand.u32 4294901760, %v16289_v52  ;;  %v16355_v40 = vsub.f32 %v402_v20, %v16329_v34  ;;  %v16358_v1 = vsub.f32 %v457_v22, %v16331_v62 }
 0x499   :  { %8258 = vmatpush.msra.mxu0 %v17170_v26  ;;  %8340 = vmatpush.msra.mxu2 %v16214_v37  ;;  %v5148_v12 = vadd.f32 %v5147_v61, %v5109_v11  ;;  %v8435_v19 = vsub.f32 %v16305_v46, %v8434_v63  ;;  %v8446_v20 = vand.u32 4294901760, %v16342_v32  ;;  %v16369_v61 = vsub.f32 %v401_v47, %v16344_v17 }
 0x49a   :  { %8299 = vmatpush.msra.mxu1 %v15919_v5  ;;  %8407 = vmatpush.msra.mxu3 %v8406_v53  ;;  %v8429_v31 = vsub.f32 %v16289_v52, %v17171_v60  ;;  %v5216_v5 = vpop.f32.mrf.mxu2  ;;  %v8424_v53 = vand.u32 4294901760, %v8423_v38  ;;  %v8441_v22 = vsub.f32 %v16321_v16, %v8440_v15  ;;  %v8452_v41 = vand.u32 4294901760, %v16355_v40  ;;  %v5253_v47 = vpop.f32.mrf.mxu3 }
 0x49b   :  { %8262 = vmatpush.msra.mxu0 %v17172_v9  ;;  %8342 = vmatpush.msra.mxu2 %v16231_v10  ;;  %v5217_v38 = vadd.f32 %v5216_v5, %v5148_v12  ;;  %v8359_v11 = vand.u32 4294901760, %v16358_v1  ;;  %v17175_v26 = vand.u32 4294901760, %v16087_v45  ;;  %v5395_v5 = vpop.f32.mrf.mxu1 }
 0x49c   :  { %8301 = vmatpush.msra.mxu1 %v15944_v57  ;;  %8413 = vmatpush.msra.mxu3 %v8412_v29  ;;  %v8430_v57 = vand.u32 4294901760, %v8429_v31  ;;  %v17174_v29 = vand.u32 4294901760, %v16069_v14  ;;  %v8447_v14 = vsub.f32 %v16342_v32, %v8446_v20  ;;  %v5294_v60 = vpop.f32.mrf.mxu0  ;;  %v8442_v31 = vand.u32 4294901760, %v8441_v22 }
 0x49d   :  { %8266 = vmatpush.msra.mxu0 %v17173_v49  ;;  %8344 = vmatpush.msra.mxu2 %v16248_v59  ;;  %v5254_v12 = vadd.f32 %v5253_v47, %v5217_v38  ;;  %v8453_v45 = vsub.f32 %v16355_v40, %v8452_v41  ;;  %v8360_v9 = vsub.f32 %v16358_v1, %v8359_v11  ;;  %v17179_v47 = vld [vmem:[#allocation10_spill] sm:$0xff] }
 0x49e   :  { %8303 = vmatpush.msra.mxu1 %v15960_v13  ;;  %8419 = vmatpush.msra.mxu3 %v8418_v55  ;;  %v8436_v13 = vand.u32 4294901760, %v8435_v19  ;;  %v8458_v55 = vand.u32 4294901760, %v16369_v61 }
 0x49f   :  { %8270 = vmatpush.msra.mxu0 %v17174_v29  ;;  %8346 = vmatpush.msra.mxu2 %v16263_v6  ;;  %v17178_v29 = vand.u32 4294901760, %v16128_v44 }
 0x4a0   :  { %8305 = vmatpush.msra.mxu1 %v15974_v25  ;;  %8425 = vmatpush.msra.mxu3 %v8424_v53  ;;  %v17176_v25 = vand.u32 4294901760, %v16107_v33  ;;  %v17177_v53 = vand.u32 4294901760, %v16135_v0  ;;  %v8448_v33 = vand.u32 4294901760, %v8447_v14  ;;  %v8459_v19 = vsub.f32 %v16369_v61, %v8458_v55 }
 0x4a1   :  { %8274 = vmatpush.msra.mxu0 %v17175_v26  ;;  %8348 = vmatpush.msra.mxu2 %v16278_v4  ;;  %v17181_v26 = vld [vmem:[#allocation8_spill] sm:$0xff] }
 0x4a2   :  { %8307 = vmatpush.msra.mxu1 %v15990_v28  ;;  %8431 = vmatpush.msra.mxu3 %v8430_v57  ;;  %v5295_v28 = vadd.f32 %v5294_v60, %v5254_v12  ;;  %v8361_v57 = vand.u32 4294901760, %v8360_v9  ;;  %v5449_v22 = vpop.f32.mrf.mxu2  ;;  %v8460_v0 = vand.u32 4294901760, %v8459_v19  ;;  %v5488_v38 = vpop.f32.mrf.mxu3  ;;  %v17182_v60 = vld [vmem:[#allocation12_spill] sm:$0xff] }
 0x4a3   :  { %8278 = vmatpush.msra.mxu0 %v17176_v25  ;;  %8350 = vmatpush.msra.mxu2 %v16291_v43  ;;  %v5594_v14 = vpop.f32.mrf.mxu1 }
 0x4a4   :  { %8309 = vmatpush.msra.mxu1 %v16005_v3  ;;  %8437 = vmatpush.msra.mxu3 %v8436_v13  ;;  %v5396_v49 = vadd.f32 %v5395_v5, %v5295_v28  ;;  %v8454_v3 = vand.u32 4294901760, %v8453_v45 }
 0x4a5   :  { %8282 = vmatpush.msra.mxu0 %v17177_v53  ;;  %8352 = vmatpush.msra.mxu2 %v16313_v36 }
 0x4a6   :  { %8311 = vmatpush.msra.mxu1 %v16020_v35  ;;  %8443 = vmatpush.msra.mxu3 %v8442_v31  ;;  %v5450_v35 = vadd.f32 %v5449_v22, %v5396_v49  ;;  %v17183_v31 = vand.u32 4294901760, %v16165_v30 }
 0x4a7   :  { %8284 = vmatmul.f32.vlgmr.msra.gmra.mxu0 %v16031_v23  ;;  %8354 = vmatpush.msra.mxu2 %v16329_v34 }
 0x4a8   :  { %8469 = vmatpush.msrb.mxu0 %v16128_v44  ;;  %8313 = vmatpush.msra.mxu1 %v16037_v24  ;;  %v5557_v24 = vpop.f32.mrf.mxu0  ;;  %v5489_v13 = vadd.f32 %v5488_v38, %v5450_v35 }
 0x4a9   :  { %8449 = vmatpush.msra.mxu3 %v8448_v33  ;;  %8356 = vmatpush.msra.mxu2 %v16344_v17 }
 0x4aa   :  { %8472 = vmatpush.msrb.mxu0 %v16152_v8  ;;  %8315 = vmatpush.msra.mxu1 %v16049_v58  ;;  %v17180_v58 = vand.u32 4294901760, %v16152_v8  ;;  %v5558_v44 = vadd.f32 %v5557_v24, %v5489_v13  ;;  %v17184_v8 = vand.u32 4294901760, %v16173_v2  ;;  %v5635_v25 = vpop.f32.mrf.mxu2  ;;  %v5736_v45 = vpop.f32.mrf.mxu3 }
 0x4ab   :  { %8455 = vmatpush.msra.mxu3 %v8454_v3  ;;  %8362 = vmatmul.f32.vlgmr.msra.gmra.mxu2 %v8361_v57  ;;  %v5829_v9 = vpop.f32.mrf.mxu1 }
 0x4ac   :  { %8475 = vmatpush.msrb.mxu0 %v16165_v30  ;;  %8563 = vmatpush.msrb.mxu2 %v17178_v29  ;;  %v5595_v12 = vadd.f32 %v5594_v14, %v5558_v44 }
 0x4ad   :  { %8317 = vmatpush.msra.mxu1 %v17179_v47  ;;  %8461 = vmatpush.msra.mxu3 %v8460_v0 }
 0x4ae   :  { %8463 = vmatmul.f32.vlgmr.msra.gmra.mxu3 %v16331_v62  ;;  %8478 = vmatpush.msrb.mxu0 %v16173_v2  ;;  %v5636_v30 = vadd.f32 %v5635_v25, %v5595_v12  ;;  %v17186_v2 = vand.u32 4294901760, %v16212_v27 }
 0x4af   :  { %8567 = vmatpush.msrb.mxu2 %v17180_v58  ;;  %8630 = vmatpush.msrb.mxu3 %v17181_v26 }
 0x4b0   :  { %8319 = vmatpush.msra.mxu1 %v17182_v60  ;;  %8481 = vmatpush.msrb.mxu0 %v16187_v54 }
 0x4b1   :  { %8321 = vmatmul.f32.vlgmr.msra.gmra.mxu1 %v16031_v23  ;;  %8571 = vmatpush.msrb.mxu2 %v17183_v31  ;;  %v17185_v23 = vand.u32 4294901760, %v16187_v54  ;;  %v5790_v54 = vpop.f32.mrf.mxu0 }
 0x4b2   :  { %8522 = vmatpush.msrb.mxu1 %v17181_v26  ;;  %8632 = vmatpush.msrb.mxu3 %v16117_v18  ;;  %v5898_v28 = vpop.f32.mrf.mxu2 }
 0x4b3   :  { %8484 = vmatpush.msrb.mxu0 %v16212_v27  ;;  %8575 = vmatpush.msrb.mxu2 %v17184_v8  ;;  %v17188_v27 = vand.u32 4294901760, %v16246_v56 }
 0x4b4   :  { %8524 = vmatpush.msrb.mxu1 %v16117_v18  ;;  %8634 = vmatpush.msrb.mxu3 %v16137_v48  ;;  %v17187_v18 = vand.u32 4294901760, %v16229_v50 }
 0x4b5   :  { %8487 = vmatpush.msrb.mxu0 %v16229_v50  ;;  %8579 = vmatpush.msrb.mxu2 %v17185_v23  ;;  %v17190_v50 = vand.u32 4294901760, %v16261_v7 }
 0x4b6   :  { %8526 = vmatpush.msrb.mxu1 %v16137_v48  ;;  %8636 = vmatpush.msrb.mxu3 %v16145_v39  ;;  %v5737_v48 = vadd.f32 %v5736_v45, %v5636_v30 }
 0x4b7   :  { %8490 = vmatpush.msrb.mxu0 %v16246_v56  ;;  %8583 = vmatpush.msrb.mxu2 %v17186_v2  ;;  %v17191_v56 = vand.u32 4294901760, %v16276_v51 }
 0x4b8   :  { %8528 = vmatpush.msrb.mxu1 %v16145_v39  ;;  %8638 = vmatpush.msrb.mxu3 %v16157_v21  ;;  %v17189_v39 = vld [vmem:[#allocation6_spill] sm:$0xff]  ;;  %v5791_v5 = vadd.f32 %v5790_v54, %v5737_v48 }
 0x4b9   :  { %8493 = vmatpush.msrb.mxu0 %v16261_v7  ;;  %8587 = vmatpush.msrb.mxu2 %v17187_v18 }
 0x4ba   :  { %8530 = vmatpush.msrb.mxu1 %v16157_v21  ;;  %8640 = vmatpush.msrb.mxu3 %v16180_v42  ;;  %v5830_v21 = vadd.f32 %v5829_v9, %v5791_v5 }
 0x4bb   :  { %8496 = vmatpush.msrb.mxu0 %v16276_v51  ;;  %8591 = vmatpush.msrb.mxu2 %v17188_v27  ;;  %v5935_v51 = vpop.f32.mrf.mxu3 }
 0x4bc   :  { %8532 = vmatpush.msrb.mxu1 %v16180_v42  ;;  %8642 = vmatpush.msrb.mxu3 %v17189_v39  ;;  %v17192_v42 = vand.u32 4294901760, %v16289_v52  ;;  %v5899_v7 = vadd.f32 %v5898_v28, %v5830_v21 }
 0x4bd   :  { %8499 = vmatpush.msrb.mxu0 %v16289_v52  ;;  %8595 = vmatpush.msrb.mxu2 %v17190_v50 }
 0x4be   :  { %8534 = vmatpush.msrb.mxu1 %v17189_v39  ;;  %8644 = vmatpush.msrb.mxu3 %v16214_v37 }
 0x4bf   :  { %8502 = vmatpush.msrb.mxu0 %v16305_v46  ;;  %8599 = vmatpush.msrb.mxu2 %v17191_v56  ;;  %v6077_v46 = vpop.f32.mrf.mxu1 }
 0x4c0   :  { %8536 = vmatpush.msrb.mxu1 %v16214_v37  ;;  %8646 = vmatpush.msrb.mxu3 %v16231_v10  ;;  %v5976_v37 = vpop.f32.mrf.mxu0 }
 0x4c1   :  { %8505 = vmatpush.msrb.mxu0 %v16321_v16  ;;  %8603 = vmatpush.msrb.mxu2 %v17192_v42  ;;  %v6131_v16 = vpop.f32.mrf.mxu2 }
 0x4c2   :  { %8538 = vmatpush.msrb.mxu1 %v16231_v10  ;;  %8648 = vmatpush.msrb.mxu3 %v16248_v59  ;;  %v5936_v10 = vadd.f32 %v5935_v51, %v5899_v7 }
 0x4c3   :  { %8508 = vmatpush.msrb.mxu0 %v16342_v32  ;;  %8607 = vmatpush.msrb.mxu2 %v8434_v63  ;;  %v6170_v52 = vpop.f32.mrf.mxu3 }
 0x4c4   :  { %8540 = vmatpush.msrb.mxu1 %v16248_v59  ;;  %8650 = vmatpush.msrb.mxu3 %v16263_v6  ;;  %v5977_v59 = vadd.f32 %v5976_v37, %v5936_v10 }
 0x4c5   :  { %8511 = vmatpush.msrb.mxu0 %v16355_v40  ;;  %8611 = vmatpush.msrb.mxu2 %v8440_v15 }
 0x4c6   :  { %8542 = vmatpush.msrb.mxu1 %v16263_v6  ;;  %8652 = vmatpush.msrb.mxu3 %v16278_v4  ;;  %v6078_v6 = vadd.f32 %v6077_v46, %v5977_v59  ;;  %v8670_v59 = vld [vmem:[%s16538_s3 + $0x18] sm:$0xff] }
 0x4c7   :  { %8514 = vmatpush.msrb.mxu0 %v16369_v61  ;;  %8615 = vmatpush.msrb.mxu2 %v8446_v20 }
 0x4c8   :  { %8544 = vmatpush.msrb.mxu1 %v16278_v4  ;;  %8654 = vmatpush.msrb.mxu3 %v16291_v43  ;;  %v6132_v4 = vadd.f32 %v6131_v16, %v6078_v6  ;;  %v8691_v16 = vand.u32 4294901760, %v8670_v59 }
 0x4c9   :  { %8517 = vmatmul.f32.vlgmr.msrb.gmra.mxu0 %v16358_v1  ;;  %8619 = vmatpush.msrb.mxu2 %v8452_v41  ;;  %v6317_v40 = vpop.f32.mrf.mxu2 }
 0x4ca   :  { %8546 = vmatpush.msrb.mxu1 %v16291_v43  ;;  %8656 = vmatpush.msrb.mxu3 %v16313_v36  ;;  %v6239_v43 = vpop.f32.mrf.mxu0  ;;  %v6171_v63 = vadd.f32 %v6170_v52, %v6132_v4  ;;  %v8669_v4 = vld [vmem:[%s16538_s3 + $0x10] sm:$0xff] }
 0x4cb   :  { %8623 = vmatpush.msrb.mxu2 %v8458_v55  ;;  %v6418_v61 = vpop.f32.mrf.mxu3  ;;  %8692 = vmatpush.msra.mxu0 %v8691_v16 }
 0x4cc   :  { %8548 = vmatpush.msrb.mxu1 %v16313_v36  ;;  %8658 = vmatpush.msrb.mxu3 %v16329_v34  ;;  %v6276_v36 = vpop.f32.mrf.mxu1  ;;  %v6240_v32 = vadd.f32 %v6239_v43, %v6171_v63  ;;  %v8721_v43 = vsub.f32 %v8670_v59, %v8691_v16  ;;  %v8693_v63 = vand.u32 4294901760, %v8669_v4 }
 0x4cd   :  { %8625 = vmatmul.f32.vlgmr.msrb.gmra.mxu2 %v16331_v62 }
 0x4ce   :  { %8550 = vmatpush.msrb.mxu1 %v16329_v34  ;;  %8660 = vmatpush.msrb.mxu3 %v16344_v17  ;;  %v6277_v15 = vadd.f32 %v6276_v36, %v6240_v32  ;;  %v8668_v32 = vld [vmem:[%s16538_s3 + $0x8] sm:$0xff] }
 0x4cf   :  { %8662 = vmatmul.f32.vlgmr.msrb.gmra.mxu3 %v16331_v62  ;;  %8763 = vmatpush.msra.mxu2 %v8721_v43 }
 0x4d0   :  { %8552 = vmatpush.msrb.mxu1 %v16344_v17  ;;  %v6318_v20 = vadd.f32 %v6317_v40, %v6277_v15  ;;  %8792 = vmatpush.msra.mxu3 %v8691_v16  ;;  %v8722_v15 = vand.u32 4294901760, %v8721_v43  ;;  %v8727_v40 = vsub.f32 %v8669_v4, %v8693_v63 }
 0x4d1   :  { %8556 = vmatmul.f32.vlgmr.msrb.gmra.mxu1 %v8359_v11  ;;  %v6580_v62 = vpop.f32.mrf.mxu2  ;;  %8694 = vmatpush.msra.mxu0 %v8693_v63 }
 0x4d2   :  { %v6472_v34 = vpop.f32.mrf.mxu0  ;;  %v6419_v41 = vadd.f32 %v6418_v61, %v6318_v20  ;;  %v8695_v20 = vand.u32 4294901760, %v8668_v32  ;;  %8794 = vmatpush.msra.mxu3 %v8693_v63  ;;  %v8667_v61 = vld [vmem:[%s16538_s3] sm:$0xff]  ;;  %8766 = vmatpush.msra.mxu2 %v8727_v40 }
 0x4d3   :  { %v6617_v49 = vpop.f32.mrf.mxu3 }
 0x4d4   :  { %v6511_v55 = vpop.f32.mrf.mxu1  ;;  %v6473_v53 = vadd.f32 %v6472_v34, %v6419_v41  ;;  %v8723_v41 = vsub.f32 %v8721_v43, %v8722_v15  ;;  %8796 = vmatpush.msra.mxu3 %v8695_v20  ;;  %8696 = vmatpush.msra.mxu0 %v8695_v20 }
 0x4d6   :  { %v6512_v33 = vadd.f32 %v6511_v55, %v6473_v53  ;;  %v8728_v55 = vand.u32 4294901760, %v8727_v40  ;;  %v8733_v53 = vsub.f32 %v8668_v32, %v8695_v20 }
 0x4d8   :  { %v6581_v19 = vadd.f32 %v6580_v62, %v6512_v33  ;;  %v8697_v62 = vand.u32 4294901760, %v8667_v61  ;;  %8769 = vmatpush.msra.mxu2 %v8733_v53 }
 0x4d9   :  { %v6813_v22 = vpop.f32.mrf.mxu2 }
 0x4da   :  { %v6658_v17 = vpop.f32.mrf.mxu0  ;;  %v6618_v3 = vadd.f32 %v6617_v49, %v6581_v19  ;;  %v8724_v19 = vand.u32 4294901760, %v8723_v41  ;;  %v8729_v49 = vsub.f32 %v8727_v40, %v8728_v55  ;;  %8798 = vmatpush.msra.mxu3 %v8697_v62  ;;  %8698 = vmatpush.msra.mxu0 %v8697_v62 }
 0x4db   :  { %v6852_v35 = vpop.f32.mrf.mxu3 }
 0x4dc   :  { %v6759_v1 = vpop.f32.mrf.mxu1  ;;  %v6659_v11 = vadd.f32 %v6658_v17, %v6618_v3  ;;  %v8734_v17 = vand.u32 4294901760, %v8733_v53  ;;  %8725 = vmatpush.msra.mxu1 %v8724_v19  ;;  %8821 = vmatpush.msrb.mxu0 %v8722_v15 }
 0x4de   :  { %v6760_v57 = vadd.f32 %v6759_v1, %v6659_v11  ;;  %v8739_v1 = vsub.f32 %v8667_v61, %v8697_v62  ;;  %8825 = vmatpush.msrb.mxu0 %v8728_v55 }
 0x4e0   :  { %v6814_v0 = vadd.f32 %v6813_v22, %v6760_v57  ;;  %v8730_v57 = vand.u32 4294901760, %v8729_v49  ;;  %v8735_v22 = vsub.f32 %v8733_v53, %v8734_v17  ;;  %8772 = vmatpush.msra.mxu2 %v8739_v1  ;;  %8829 = vmatpush.msrb.mxu0 %v8734_v17  ;;  %v9081_v17 = vld [vmem:[%s16539_s4] ss:$0 sm:$0xff] }
 0x4e1   :  { %v6999_v58 = vpop.f32.mrf.mxu2 }
 0x4e2   :  { %v6921_v38 = vpop.f32.mrf.mxu0  ;;  %v6853_v29 = vadd.f32 %v6852_v35, %v6814_v0  ;;  %v8740_v35 = vand.u32 4294901760, %v8739_v1  ;;  %8731 = vmatpush.msra.mxu1 %v8730_v57 }
 0x4e3   :  { %v7100_v14 = vpop.f32.mrf.mxu3 }
 0x4e4   :  { %v6958_v47 = vpop.f32.mrf.mxu1  ;;  %v6922_v24 = vadd.f32 %v6921_v38, %v6853_v29  ;;  %v8736_v29 = vand.u32 4294901760, %v8735_v22  ;;  %8833 = vmatpush.msrb.mxu0 %v8740_v35 }
 0x4e6   :  { %v6959_v13 = vadd.f32 %v6958_v47, %v6922_v24  ;;  %v8741_v47 = vsub.f32 %v8739_v1, %v8740_v35  ;;  %8737 = vmatpush.msra.mxu1 %v8736_v29 }
 0x4e8   :  { %v7000_v26 = vadd.f32 %v6999_v58, %v6959_v13  ;;  %v8742_v58 = vand.u32 4294901760, %v8741_v47 }
 0x4e9   :  { %v7262_v25 = vpop.f32.mrf.mxu2 }
 0x4ea   :  { %v7154_v60 = vpop.f32.mrf.mxu0  ;;  %v7101_v44 = vadd.f32 %v7100_v14, %v7000_v26  ;;  %8743 = vmatpush.msra.mxu1 %v8742_v58 }
 0x4eb   :  { %v7299_v30 = vpop.f32.mrf.mxu3 }
 0x4ec   :  { %v7193_v31 = vpop.f32.mrf.mxu1  ;;  %v7155_v12 = vadd.f32 %v7154_v60, %v7101_v44  ;;  %8852 = vmatpush.msrb.mxu1 %v8691_v16  ;;  %v8866_v16 = vld [vmem:[%s16540_s5 + $0x8] sm:$0xff] }
 0x4ed   :  { %v8892_v43 = vand.u32 4294901760, %v8866_v16 }
 0x4ee   :  { %v7194_v8 = vadd.f32 %v7193_v31, %v7155_v12  ;;  %8854 = vmatpush.msrb.mxu1 %v8693_v63  ;;  %v8865_v63 = vld [vmem:[%s16540_s5] sm:$0xff] }
 0x4ef   :  { %v8930_v15 = vsub.f32 %v8866_v16, %v8892_v43  ;;  %v8894_v40 = vand.u32 4294901760, %v8865_v63 }
 0x4f0   :  { %v7263_v23 = vadd.f32 %v7262_v25, %v7194_v8  ;;  %8856 = vmatpush.msrb.mxu1 %v8695_v20 }
 0x4f1   :  { %v7495_v27 = vpop.f32.mrf.mxu2  ;;  %v8936_v41 = vsub.f32 %v8865_v63, %v8894_v40 }
 0x4f2   :  { %v7340_v2 = vpop.f32.mrf.mxu0  ;;  %v7300_v45 = vadd.f32 %v7299_v30, %v7263_v23  ;;  %8858 = vmatpush.msrb.mxu1 %v8697_v62 }
 0x4f3   :  { %v7534_v39 = vpop.f32.mrf.mxu3 }
 0x4f4   :  { %v7441_v18 = vpop.f32.mrf.mxu1  ;;  %v7341_v54 = vadd.f32 %v7340_v2, %v7300_v45 }
 0x4f6   :  { %v7442_v48 = vadd.f32 %v7441_v18, %v7341_v54 }
 0x4f8   :  { %v7496_v9 = vadd.f32 %v7495_v27, %v7442_v48 }
 0x4f9   :  { %v7681_v42 = vpop.f32.mrf.mxu2 }
 0x4fa   :  { %v7603_v5 = vpop.f32.mrf.mxu0  ;;  %v7535_v50 = vadd.f32 %v7534_v39, %v7496_v9 }
 0x4fb   :  { %v7782_v51 = vpop.f32.mrf.mxu3 }
 0x4fc   :  { %v7640_v21 = vpop.f32.mrf.mxu1  ;;  %v7604_v56 = vadd.f32 %v7603_v5, %v7535_v50 }
 0x4fe   :  { %v7641_v28 = vadd.f32 %v7640_v21, %v7604_v56 }
 0x500   :  { %v7682_v7 = vadd.f32 %v7681_v42, %v7641_v28 }
 0x501   :  { %v7944_v36 = vpop.f32.mrf.mxu2 }
 0x502   :  { %v7836_v37 = vpop.f32.mrf.mxu0  ;;  %v7783_v10 = vadd.f32 %v7782_v51, %v7682_v7 }
 0x503   :  { %v7981_v33 = vpop.f32.mrf.mxu3 }
 0x504   :  { %v7875_v46 = vpop.f32.mrf.mxu1  ;;  %v7837_v6 = vadd.f32 %v7836_v37, %v7783_v10  ;;  %v8868_v37 = vld [vmem:[%s16540_s5 + $0x18] sm:$0xff] }
 0x505   :  { %v8888_v10 = vand.u32 4294901760, %v8868_v37 }
 0x506   :  { %v7876_v52 = vadd.f32 %v7875_v46, %v7837_v6  ;;  %v8867_v46 = vld [vmem:[%s16540_s5 + $0x10] sm:$0xff] }
 0x507   :  { %v8918_v59 = vsub.f32 %v8868_v37, %v8888_v10  ;;  %v8890_v6 = vand.u32 4294901760, %v8867_v46  ;;  %8889 = vmatpush.msrb.mxu2 %v8888_v10 }
 0x508   :  { %v7945_v34 = vadd.f32 %v7944_v36, %v7876_v52 }
 0x509   :  { %v8919_v4 = vand.u32 4294901760, %v8918_v59  ;;  %v8924_v52 = vsub.f32 %v8867_v46, %v8890_v6  ;;  %8891 = vmatpush.msrb.mxu2 %v8890_v6 }
 0x50a   :  { %v8022_v3 = vpop.f32.mrf.mxu0  ;;  %v7982_v11 = vadd.f32 %v7981_v33, %v7945_v34  ;;  %v8931_v34 = vand.u32 4294901760, %v8930_v15  ;;  %v8937_v33 = vand.u32 4294901760, %v8936_v41 }
 0x50b   :  { %v8920_v36 = vsub.f32 %v8918_v59, %v8919_v4  ;;  %v8925_v32 = vand.u32 4294901760, %v8924_v52  ;;  %8893 = vmatpush.msrb.mxu2 %v8892_v43 }
 0x50c   :  { %v8123_v0 = vpop.f32.mrf.mxu1  ;;  %v8023_v38 = vadd.f32 %v8022_v3, %v7982_v11  ;;  %v8177_v13 = vpop.f32.mrf.mxu2  ;;  %v8932_v53 = vsub.f32 %v8930_v15, %v8931_v34  ;;  %v8938_v19 = vsub.f32 %v8936_v41, %v8937_v33 }
 0x50d   :  { %v8921_v20 = vand.u32 4294901760, %v8920_v36  ;;  %v8926_v61 = vsub.f32 %v8924_v52, %v8925_v32  ;;  %8895 = vmatpush.msrb.mxu2 %v8894_v40 }
 0x50e   :  { %v8124_v24 = vadd.f32 %v8123_v0, %v8023_v38  ;;  %v8933_v62 = vand.u32 4294901760, %v8932_v53  ;;  %v8939_v49 = vand.u32 4294901760, %v8938_v19 }
 0x50f   :  { %v8216_v14 = vpop.f32.mrf.mxu3  ;;  %8922 = vmatpush.msrb.mxu3 %v8921_v20  ;;  %v8927_v55 = vand.u32 4294901760, %v8926_v61 }
 0x510   :  { %v8178_v26 = vadd.f32 %v8177_v13, %v8124_v24 }
 0x511   :  { %8928 = vmatpush.msrb.mxu3 %v8927_v55 }
 0x512   :  { %v8217_v44 = vadd.f32 %v8216_v14, %v8178_v26 }
 0x513   :  { %8934 = vmatpush.msrb.mxu3 %v8933_v62 }
 0x515   :  { %8940 = vmatpush.msrb.mxu3 %v8939_v49 }
 0x524   :  { %v8285_v60 = vpop.f32.mrf.mxu0 }
 0x525   :  { %v8286_v12 = vadd.f32 %v8285_v60, %v8217_v44 }
 0x52e   :  { %v8322_v31 = vpop.f32.mrf.mxu1  ;;  %v8363_v25 = vpop.f32.mrf.mxu2 }
 0x52f   :  { %v8323_v8 = vadd.f32 %v8322_v31, %v8286_v12 }
 0x531   :  { %v8364_v23 = vadd.f32 %v8363_v25, %v8323_v8  ;;  %v8464_v30 = vpop.f32.mrf.mxu3  ;;  %v9082_v8 = vld [vmem:[%s16541_s6] ss:$0 sm:$0xff] }
 0x533   :  { %v8465_v45 = vadd.f32 %v8464_v30, %v8364_v23 }
 0x546   :  { %v8518_v2 = vpop.f32.mrf.mxu0 }
 0x547   :  { %v8519_v18 = vadd.f32 %v8518_v2, %v8465_v45 }
 0x54e   :  { %v8557_v54 = vpop.f32.mrf.mxu1 }
 0x54f   :  { %v8558_v48 = vadd.f32 %v8557_v54, %v8519_v18 }
 0x550   :  { %v8626_v27 = vpop.f32.mrf.mxu2 }
 0x551   :  { %v8627_v9 = vadd.f32 %v8626_v27, %v8558_v48 }
 0x552   :  { %v8663_v39 = vpop.f32.mrf.mxu3 }
 0x553   :  { %v8664_v5 = vadd.f32 %v8663_v39, %v8627_v9 }
 0x555   :  { %v8666_v50 = vmax.f32 %v8664_v5, 0.0 }
 0x557   :  { %v8677_v21 = vsel %vm8675_vm0, %v8666_v50, 0 }
 0x558   :  { %v8699_v56 = vand.u32 4294901760, %v8677_v21 }
 0x55a   :  { %v8700_v28 = vsub.f32 %v8677_v21, %v8699_v56  ;;  %8745 = vmatmul.f32.vlgmr.msra.gmra.mxu1 %v8699_v56 }
 0x55b   :  { %8989 = vmatpush.msra.mxu1 %v8888_v10 }
 0x55c   :  { %v8701_v42 = vand.u32 4294901760, %v8700_v28  ;;  %8775 = vmatmul.f32.vlgmr.msra.gmra.mxu2 %v8700_v28 }
 0x55d   :  { %8991 = vmatpush.msra.mxu1 %v8890_v6  ;;  %9018 = vmatpush.msra.mxu2 %v8919_v4 }
 0x55e   :  { %v8702_v7 = vsub.f32 %v8700_v28, %v8701_v42  ;;  %8802 = vmatmul.f32.vlgmr.msra.gmra.mxu3 %v8701_v42 }
 0x55f   :  { %8993 = vmatpush.msra.mxu1 %v8892_v43  ;;  %9022 = vmatpush.msra.mxu2 %v8925_v32 }
 0x560   :  { %v8703_v51 = vand.u32 4294901760, %v8702_v7  ;;  %9049 = vmatpush.msra.mxu3 %v8888_v10 }
 0x561   :  { %8995 = vmatpush.msra.mxu1 %v8894_v40  ;;  %9026 = vmatpush.msra.mxu2 %v8931_v34 }
 0x562   :  { %8704 = vmatmul.f32.vlgmr.msra.gmra.mxu0 %v8703_v51  ;;  %8860 = vmatmul.f32.vlgmr.msrb.gmra.mxu1 %v8699_v56 }
 0x563   :  { %8960 = vmatpush.msra.mxu0 %v8918_v59  ;;  %9030 = vmatpush.msra.mxu2 %v8937_v33 }
 0x564   :  { %9051 = vmatpush.msra.mxu3 %v8890_v6 }
 0x565   :  { %8963 = vmatpush.msra.mxu0 %v8924_v52 }
 0x566   :  { %9053 = vmatpush.msra.mxu3 %v8892_v43 }
 0x567   :  { %8966 = vmatpush.msra.mxu0 %v8930_v15 }
 0x568   :  { %9055 = vmatpush.msra.mxu3 %v8894_v40 }
 0x569   :  { %8969 = vmatpush.msra.mxu0 %v8936_v41 }
 0x56a   :  { %8835 = vmatmul.f32.vlgmr.msrb.gmra.mxu0 %v8699_v56 }
 0x5d7   :  { %v8746_v3 = vpop.f32.mrf.mxu1 }
 0x5df   :  { %v8705_v1 = vpop.f32.mrf.mxu0  ;;  %v8776_v22 = vpop.f32.mrf.mxu2 }
 0x5e0   :  { %v8706_v11 = vadd.f32 %v9081_v17, %v8705_v1  ;;  %v8861_v24 = vpop.f32.mrf.mxu1 }
 0x5e1   :  { %v8803_v35 = vpop.f32.mrf.mxu3 }
 0x5e2   :  { %v8747_v57 = vadd.f32 %v8746_v3, %v8706_v11 }
 0x5e4   :  { %v8777_v0 = vadd.f32 %v8776_v22, %v8747_v57 }
 0x5e6   :  { %v8804_v38 = vadd.f32 %v8803_v35, %v8777_v0 }
 0x5e7   :  { %v8836_v29 = vpop.f32.mrf.mxu0 }
 0x5e8   :  { %v8837_v47 = vadd.f32 %v8836_v29, %v8804_v38 }
 0x5ea   :  { %v8862_v13 = vadd.f32 %v8861_v24, %v8837_v47 }
 0x5ec   :  { %v8864_v58 = vmax.f32 %v8862_v13, 0.0 }
 0x5ee   :  { %v8874_v26 = vsel %vm8675_vm0, %v8864_v58, 0 }
 0x5ef   :  { %v8896_v14 = vand.u32 4294901760, %v8874_v26 }
 0x5f1   :  { %v8897_v60 = vsub.f32 %v8874_v26, %v8896_v14  ;;  %8942 = vmatmul.f32.vlgmr.msrb.gmra.mxu3 %v8896_v14 }
 0x5f3   :  { %v8898_v44 = vand.u32 4294901760, %v8897_v60  ;;  %8972 = vmatmul.f32.vlgmr.msra.gmra.mxu0 %v8897_v60 }
 0x5f5   :  { %v8899_v31 = vsub.f32 %v8897_v60, %v8898_v44  ;;  %8999 = vmatmul.f32.vlgmr.msra.gmra.mxu1 %v8898_v44 }
 0x5f7   :  { %v8900_v12 = vand.u32 4294901760, %v8899_v31 }
 0x5f9   :  { %8901 = vmatmul.f32.vlgmr.msrb.gmra.mxu2 %v8900_v12  ;;  %9057 = vmatmul.f32.vlgmr.msra.gmra.mxu3 %v8896_v14 }
 0x601   :  { %9032 = vmatmul.f32.vlgmr.msra.gmra.mxu2 %v8896_v14 }
 0x670   :  { %v8973_v45 = vpop.f32.mrf.mxu0 }
 0x672   :  { %v9000_v54 = vpop.f32.mrf.mxu1 }
 0x674   :  { %v8943_v25 = vpop.f32.mrf.mxu3 }
 0x67c   :  { %v8902_v23 = vpop.f32.mrf.mxu2  ;;  %v9058_v39 = vpop.f32.mrf.mxu3 }
 0x67d   :  { %v8903_v30 = vadd.f32 %v9082_v8, %v8902_v23 }
 0x67f   :  { %v8944_v2 = vadd.f32 %v8943_v25, %v8903_v30 }
 0x681   :  { %v8974_v18 = vadd.f32 %v8973_v45, %v8944_v2 }
 0x683   :  { %v9001_v48 = vadd.f32 %v9000_v54, %v8974_v18 }
 0x684   :  { %v9033_v27 = vpop.f32.mrf.mxu2 }
 0x685   :  { %v9034_v9 = vadd.f32 %v9033_v27, %v9001_v48 }
 0x687   :  { %v9059_v5 = vadd.f32 %v9058_v39, %v9034_v9 }
 0x689   :  { %v9061_v50 = vmax.f32 %v9059_v5, 0.0 }
 0x68b   :  { %9062 = vst [vmem:[#allocation2] sm:$0x3] %v9061_v50 }
 0x68c   :  { %9073 = dma.vmem_to_hbm [thread:$0]  %s9069_s21, 32, %s9071_s24, [#allocation3]  }
 0x68d   :  { %9107 = dma.done.wait [#allocation3], 32  }
 0x68e   :  { %9108 = vsyncadd [#allocation3], 4294967264 }
 0x68f   :  { %9078 = vsyncpa [#allocation3], 1 }

</bundles_post_ra>
